<compile_context>
chip_gen: v6e
topology: v6e:2x2x1
jax: 0.10.0
libtpu: 0.0.40
codegen_flags: <defaults>
</compile_context>

<pallas_src>
import functools

import jax
import jax.numpy as jnp
from jax import lax
from jax.experimental import pallas as pl
from jax.experimental.pallas import tpu as pltpu

LANE = 128          # channel padding target (TPU lane width)
TM_DEFAULT = 512    # row tile for all GEMM-style kernels

_CPARAMS_PAR = pltpu.CompilerParams(dimension_semantics=("parallel",),
                                    vmem_limit_bytes=64 * 1024 * 1024)
_CPARAMS_ARB = pltpu.CompilerParams(dimension_semantics=("arbitrary",),
                                    vmem_limit_bytes=64 * 1024 * 1024)


def _round_up(x, m):
    return (x + m - 1) // m * m


# ---------------------------------------------------------------------------
# Pallas kernels
# ---------------------------------------------------------------------------
def _mm_kernel(x_ref, w_ref, b_ref, o_ref, *, in_act, out_act):
    x = x_ref[...]                                    # (TM, K) bf16
    if in_act:
        x = jnp.maximum(x, 0.0)
    acc = jnp.dot(x, w_ref[...], preferred_element_type=jnp.float32)
    acc = acc + b_ref[...]
    if out_act:
        acc = jnp.maximum(acc, 0.0)
    o_ref[...] = acc.astype(o_ref.dtype)


def _resblock_kernel(cols_ref, skip_ref, w1_ref, b1_ref, w2_ref, b2_ref, o_ref):
    # ReLU -> 3x3 conv (GEMM on im2col patches) -> ReLU -> 1x1 conv -> + skip
    p = jnp.maximum(cols_ref[...], 0.0)                                    # bf16
    h = jnp.dot(p, w1_ref[...], preferred_element_type=jnp.float32) + b1_ref[...]
    h = jnp.maximum(h, 0.0).astype(jnp.bfloat16)
    out = jnp.dot(h, w2_ref[...], preferred_element_type=jnp.float32) + b2_ref[...]
    o_ref[...] = (out + skip_ref[...]).astype(o_ref.dtype)


def _vq_kernel(z_ref, cb_ref, c2_ref, zq_ref, idx_ref, loss_ref,
               *, k_real, m_real, tm):
    @pl.when(pl.program_id(0) == 0)
    def _():
        loss_ref[...] = jnp.zeros_like(loss_ref)

    z = z_ref[...]                                    # (TM, Dp) f32
    cb = cb_ref[...]                                  # (Kp, Dp) f32

    # argmin_k ||z - c_k||^2 == argmin_k (||c_k||^2 - 2 z.c_k)   (||z||^2 const per row)
    zc = lax.dot_general(z, cb, (((1,), (1,)), ((), ())),
                         preferred_element_type=jnp.float32)       # (TM, Kp)
    dist = c2_ref[...] - 2.0 * zc
    kio = lax.broadcasted_iota(jnp.int32, dist.shape, 1)
    dist = jnp.where(kio < k_real, dist, 1e30)                     # mask padded codes
    mind = jnp.min(dist, axis=-1, keepdims=True)
    idx = jnp.min(jnp.where(dist <= mind, kio, dist.shape[1]),
                  axis=-1, keepdims=True)                          # first argmin
    onehot = (kio == idx).astype(jnp.float32)
    z_q = jnp.dot(onehot, cb, preferred_element_type=jnp.float32)  # (TM, Dp)

    # accumulate sum of squared diff over real rows (scaled outside the kernel)
    rio = lax.broadcasted_iota(jnp.int32, (z.shape[0], 1), 0) + pl.program_id(0) * tm
    rmask = (rio < m_real).astype(jnp.float32)
    diff = z_q - z
    ssq = jnp.sum(jnp.sum(diff * diff, axis=1, keepdims=True) * rmask,
                  axis=0, keepdims=True)                           # (1, 1)
    loss_ref[...] += ssq

    zq_ref[...] = z_q
    idx_ref[...] = idx.astype(jnp.int32)


# ---------------------------------------------------------------------------
# pallas_call wrappers (row tiling / padding)
# ---------------------------------------------------------------------------
def _row_tiles(M, tm):
    TM = min(tm, _round_up(M, 8))
    Mp = _round_up(M, TM)
    return TM, Mp


def _pad_rows(a, Mp):
    M = a.shape[0]
    return a if M == Mp else jnp.pad(a, ((0, Mp - M), (0, 0)))


def matmul_bias(x, w, b_row, *, in_act=False, out_act=False, tm=TM_DEFAULT):
    """out = relu?( relu?(x) @ w + b ), row-tiled and pipelined over M."""
    M, K = x.shape
    N = w.shape[1]
    TM, Mp = _row_tiles(M, tm)
    out = pl.pallas_call(
        functools.partial(_mm_kernel, in_act=in_act, out_act=out_act),
        grid=(Mp // TM,),
        in_specs=[pl.BlockSpec((TM, K), lambda i: (i, 0)),
                  pl.BlockSpec((K, N), lambda i: (0, 0)),
                  pl.BlockSpec((1, N), lambda i: (0, 0))],
        out_specs=pl.BlockSpec((TM, N), lambda i: (i, 0)),
        out_shape=jax.ShapeDtypeStruct((Mp, N), jnp.float32),
        compiler_params=_CPARAMS_PAR,
    )(_pad_rows(x, Mp), w, b_row)
    return out[:M]


def resblock_gemm(cols, skip, w1, b1, w2, b2, *, tm=TM_DEFAULT):
    M, K = cols.shape
    H1 = w1.shape[1]
    N = w2.shape[1]
    TM, Mp = _row_tiles(M, tm)
    out = pl.pallas_call(
        _resblock_kernel,
        grid=(Mp // TM,),
        in_specs=[pl.BlockSpec((TM, K), lambda i: (i, 0)),
                  pl.BlockSpec((TM, N), lambda i: (i, 0)),
                  pl.BlockSpec((K, H1), lambda i: (0, 0)),
                  pl.BlockSpec((1, H1), lambda i: (0, 0)),
                  pl.BlockSpec((H1, N), lambda i: (0, 0)),
                  pl.BlockSpec((1, N), lambda i: (0, 0))],
        out_specs=pl.BlockSpec((TM, N), lambda i: (i, 0)),
        out_shape=jax.ShapeDtypeStruct((Mp, N), jnp.float32),
        compiler_params=_CPARAMS_PAR,
    )(_pad_rows(cols, Mp), _pad_rows(skip, Mp), w1, b1, w2, b2)
    return out[:M]


def vector_quantize(z_flat, codebook_p, c2_row, k_real, d_real, commitment_cost,
                    *, tm=TM_DEFAULT):
    M, Dp = z_flat.shape
    Kp = codebook_p.shape[0]
    TM, Mp = _row_tiles(M, tm)
    zq, idx, ssq = pl.pallas_call(
        functools.partial(_vq_kernel, k_real=k_real, m_real=M, tm=TM),
        grid=(Mp // TM,),
        in_specs=[pl.BlockSpec((TM, Dp), lambda i: (i, 0)),
                  pl.BlockSpec((Kp, Dp), lambda i: (0, 0)),
                  pl.BlockSpec((1, Kp), lambda i: (0, 0))],
        out_specs=(pl.BlockSpec((TM, Dp), lambda i: (i, 0)),
                   pl.BlockSpec((TM, 1), lambda i: (i, 0)),
                   pl.BlockSpec((1, 1), lambda i: (0, 0))),
        out_shape=(jax.ShapeDtypeStruct((Mp, Dp), jnp.float32),
                   jax.ShapeDtypeStruct((Mp, 1), jnp.int32),
                   jax.ShapeDtypeStruct((1, 1), jnp.float32)),
        compiler_params=_CPARAMS_ARB,
    )(_pad_rows(z_flat, Mp), codebook_p, c2_row)
    # forward-value loss: mse(z_q, sg(z)) + cc * mse(sg(z_q), z) == (1 + cc) * mse
    loss = ssq[0, 0] * (1.0 + commitment_cost) / (M * d_real)
    return zq[:M], idx[:M], loss


# ---------------------------------------------------------------------------
# JAX glue: im2col, conv / deconv wrappers
# ---------------------------------------------------------------------------
def im2col(x, kh, kw, stride, pad):
    """x: NHWC -> (B*OH*OW, kh*kw*C); K ordered as (kh, kw, Cin)."""
    B, H, W, C = x.shape
    xp = jnp.pad(x, ((0, 0), (pad, pad), (pad, pad), (0, 0)))
    OH = (H + 2 * pad - kh) // stride + 1
    OW = (W + 2 * pad - kw) // stride + 1
    cols = []
    for i in range(kh):
        for j in range(kw):
            cols.append(xp[:, i:i + stride * (OH - 1) + 1:stride,
                           j:j + stride * (OW - 1) + 1:stride, :])
    patches = jnp.concatenate(cols, axis=-1)            # (B, OH, OW, kh*kw*C)
    return patches.reshape(B * OH * OW, kh * kw * C), OH, OW


def conv_gemm(x, w_mat, b_row, *, k, stride, pad, in_act=False, out_act=False):
    # TODO(synk): patches are still materialized by XLA in HBM; an in-kernel
    # window gather (kh*kw grid axis) would cut HBM bytes ~k^2x further.
    B = x.shape[0]
    cols, OH, OW = im2col(x.astype(jnp.bfloat16), k, k, stride, pad)
    out = matmul_bias(cols, w_mat, b_row, in_act=in_act, out_act=out_act)
    return out.reshape(B, OH, OW, w_mat.shape[1])


def residual_block(x, w1, b1, w2, b2):
    B, H, W, C = x.shape
    cols, _, _ = im2col(x.astype(jnp.bfloat16), 3, 3, 1, 1)
    out = resblock_gemm(cols, x.reshape(B * H * W, C), w1, b1, w2, b2)
    return out.reshape(B, H, W, C)


def conv_transpose_gemm(x, w_mat, b_row, *, in_act=False, out_act=False):
    """ConvTranspose2d(k=4, s=2, p=1) == 3x3 s1 p1 conv producing 4 phases + pixel shuffle."""
    B, H, W, _ = x.shape
    cout_p = w_mat.shape[1] // 4
    y = conv_gemm(x, w_mat, b_row, k=3, stride=1, pad=1, in_act=in_act, out_act=out_act)
    y = y.reshape(B, H, W, 2, 2, cout_p).transpose(0, 1, 3, 2, 4, 5)
    return y.reshape(B, 2 * H, 2 * W, cout_p)


# ---------------------------------------------------------------------------
# Parameters: deterministic synthetic init + one-time packing (pad + bf16)
# ---------------------------------------------------------------------------
def init_params(key, in_ch, hidden, cb_size, cb_dim):
    keys = iter(jax.random.split(key, 64))

    def conv_w(cout, cin, k):
        return jax.random.normal(next(keys), (cout, cin, k, k), jnp.float32) / jnp.sqrt(cin * k * k)

    def convt_w(cin, cout, k):
        return jax.random.normal(next(keys), (cin, cout, k, k), jnp.float32) / jnp.sqrt(cin * k * k)

    def bias(n):
        return jax.random.normal(next(keys), (n,), jnp.float32) * 0.01

    p = {}
    p["enc_c1_w"], p["enc_c1_b"] = conv_w(hidden, in_ch, 4), bias(hidden)
    p["enc_c2_w"], p["enc_c2_b"] = conv_w(hidden, hidden, 4), bias(hidden)
    for i in (1, 2):
        p[f"enc_rb{i}_w1"], p[f"enc_rb{i}_b1"] = conv_w(hidden, hidden, 3), bias(hidden)
        p[f"enc_rb{i}_w2"], p[f"enc_rb{i}_b2"] = conv_w(hidden, hidden, 1), bias(hidden)
    p["to_cb_w"], p["to_cb_b"] = conv_w(cb_dim, hidden, 1), bias(cb_dim)
    p["from_cb_w"], p["from_cb_b"] = conv_w(hidden, cb_dim, 1), bias(hidden)
    p["codebook"] = jax.random.normal(next(keys), (cb_size, cb_dim), jnp.float32) / cb_size
    for i in (1, 2):
        p[f"dec_rb{i}_w1"], p[f"dec_rb{i}_b1"] = conv_w(hidden, hidden, 3), bias(hidden)
        p[f"dec_rb{i}_w2"], p[f"dec_rb{i}_b2"] = conv_w(hidden, hidden, 1), bias(hidden)
    p["dec_t1_w"], p["dec_t1_b"] = convt_w(hidden, hidden, 4), bias(hidden)
    p["dec_t2_w"], p["dec_t2_b"] = convt_w(hidden, in_ch, 4), bias(in_ch)
    return p


def _pack_conv(w, b):
    """torch Conv2d weight (Cout,Cin,kh,kw) -> lane-padded (kh*kw*Cip, Cop) bf16 GEMM matrix."""
    cout, cin, kh, kw = w.shape
    cip, cop = _round_up(cin, LANE), _round_up(cout, LANE)
    wt = jnp.transpose(w, (2, 3, 1, 0))                           # (kh, kw, Cin, Cout)
    wt = jnp.pad(wt, ((0, 0), (0, 0), (0, cip - cin), (0, cop - cout)))
    w_mat = wt.reshape(kh * kw * cip, cop).astype(jnp.bfloat16)
    b_row = jnp.pad(b, (0, cop - cout)).reshape(1, cop).astype(jnp.float32)
    return w_mat, b_row


def _pack_deconv(w_t, b):
    """ConvTranspose2d(k=4,s=2,p=1) weight (Cin,Cout,4,4) -> equivalent 3x3 conv
       producing 4 output phases: (9*Cip, 4*Cop) bf16 matrix + (1, 4*Cop) f32 bias."""
    cin, cout, _, _ = w_t.shape
    cip, cop = _round_up(cin, LANE), _round_up(cout, LANE)
    w_eq = jnp.zeros((3, 3, cin, 2, 2, cout), jnp.float32)
    for di in (-1, 0, 1):
        for dj in (-1, 0, 1):
            for dy in (0, 1):
                ky = (1 + dy) - 2 * di
                if not 0 <= ky <= 3:
                    continue
                for dx in (0, 1):
                    kx = (1 + dx) - 2 * dj
                    if not 0 <= kx <= 3:
                        continue
                    w_eq = w_eq.at[di + 1, dj + 1, :, dy, dx, :].set(w_t[:, :, ky, kx])
    w_eq = jnp.pad(w_eq, ((0, 0), (0, 0), (0, cip - cin), (0, 0), (0, 0), (0, cop - cout)))
    w_mat = w_eq.reshape(9 * cip, 4 * cop).astype(jnp.bfloat16)
    b_row = jnp.tile(jnp.pad(b, (0, cop - cout)), 4).reshape(1, 4 * cop).astype(jnp.float32)
    return w_mat, b_row


def pack_params(p):
    q = {}
    for name in ("enc_c1", "enc_c2", "to_cb", "from_cb"):
        q[name] = _pack_conv(p[name + "_w"], p[name + "_b"])
    for name in ("enc_rb1", "enc_rb2", "dec_rb1", "dec_rb2"):
        q[name] = (_pack_conv(p[name + "_w1"], p[name + "_b1"]),
                   _pack_conv(p[name + "_w2"], p[name + "_b2"]))
    for name in ("dec_t1", "dec_t2"):
        q[name] = _pack_deconv(p[name + "_w"], p[name + "_b"])
    cb = p["codebook"]
    ks, dd = cb.shape
    cb_p = jnp.pad(cb, ((0, _round_up(ks, LANE) - ks),
                        (0, _round_up(dd, LANE) - dd))).astype(jnp.float32)
    q["codebook"] = cb_p
    q["cb_sq"] = jnp.sum(cb_p * cb_p, axis=-1).reshape(1, cb_p.shape[0])
    return q


# ---------------------------------------------------------------------------
# Full forward pass (NCHW in / out, like the PyTorch module)
# ---------------------------------------------------------------------------
def vqvae_forward(pp, x_nchw, *, cb_size, cb_dim, commitment_cost=0.25):
    x = jnp.transpose(x_nchw, (0, 2, 3, 1)).astype(jnp.float32)   # NCHW -> NHWC
    cin = x.shape[-1]
    x = jnp.pad(x, ((0, 0), (0, 0), (0, 0), (0, _round_up(cin, LANE) - cin)))

    # --- Encoder ---
    h = conv_gemm(x, *pp["enc_c1"], k=4, stride=2, pad=1, out_act=True)
    h = conv_gemm(h, *pp["enc_c2"], k=4, stride=2, pad=1)
    (w1, b1), (w2, b2) = pp["enc_rb1"]
    h = residual_block(h, w1, b1, w2, b2)
    (w1, b1), (w2, b2) = pp["enc_rb2"]
    h = residual_block(h, w1, b1, w2, b2)
    z = conv_gemm(h, *pp["to_cb"], k=1, stride=1, pad=0)          # (B, Hl, Wl, Dp)

    # --- Vector quantizer ---
    B, Hl, Wl, Dp = z.shape
    zq_flat, idx, loss = vector_quantize(z.reshape(B * Hl * Wl, Dp),
                                         pp["codebook"], pp["cb_sq"],
                                         cb_size, cb_dim, commitment_cost)
    z_q = zq_flat.reshape(B, Hl, Wl, Dp)
    indices = idx.reshape(B, Hl, Wl)

    # --- Decoder ---
    h = conv_gemm(z_q, *pp["from_cb"], k=1, stride=1, pad=0)
    (w1, b1), (w2, b2) = pp["dec_rb1"]
    h = residual_block(h, w1, b1, w2, b2)
    (w1, b1), (w2, b2) = pp["dec_rb2"]
    h = residual_block(h, w1, b1, w2, b2)
    h = conv_transpose_gemm(h, *pp["dec_t1"], in_act=True, out_act=True)
    xr = conv_transpose_gemm(h, *pp["dec_t2"])

    x_recon = jnp.transpose(xr[..., :cin], (0, 3, 1, 2))          # NHWC -> NCHW, drop pad
    return x_recon, loss, indices


if __name__ == "__main__":
    key = jax.random.PRNGKey(0)
    pkey, xkey = jax.random.split(key)

    in_ch, hidden, cb_size, cb_dim = 4, 32, 64, 32
    params = init_params(pkey, in_ch, hidden, cb_size, cb_dim)
    packed = pack_params(params)
    x = jax.random.normal(xkey, (2, in_ch, 16, 16), jnp.float32)

    fwd = jax.jit(functools.partial(vqvae_forward, cb_size=cb_size, cb_dim=cb_dim,
                                    commitment_cost=0.25))
    x_recon, loss, indices = fwd(packed, x)
    jax.block_until_ready((x_recon, loss, indices))

    assert x_recon.shape == (2, in_ch, 16, 16)
    assert indices.shape == (2, 4, 4)
    assert loss.shape == ()
    print("KERNEL_OK")
</pallas_src>

<mosaic_0001>
module attributes {stable_mosaic.version = 11 : i64} {
  func.func @_mm_kernel(%arg0: i32, %arg1: memref<128x2048xbf16, #tpu.memory_space<vmem>>, %arg2: memref<2048x128xbf16, #tpu.memory_space<vmem>>, %arg3: memref<1x128xf32, #tpu.memory_space<vmem>>, %arg4: memref<128x128xf32, #tpu.memory_space<vmem>>) attributes {dimension_semantics = [#tpu.dimension_semantics<parallel>], iteration_bounds = array<i64: 1>, scalar_prefetch = 0 : i64, scratch_operands = 0 : i64, tpu.core_type = #tpu.core_type<tc>, window_params = [{transform_indices = @transform_0, window_bounds = array<i64: 128, 2048>}, {pipeline_mode = #tpu.pipeline_mode<synchronous>, transform_indices = @transform_1, window_bounds = array<i64: 2048, 128>}, {pipeline_mode = #tpu.pipeline_mode<synchronous>, transform_indices = @transform_2, window_bounds = array<i64: 1, 128>}, {transform_indices = @transform_3, window_bounds = array<i64: 128, 128>}]} {
    %c0 = arith.constant 0 : index
    %c0_0 = arith.constant 0 : index
    %0 = vector.load %arg1[%c0, %c0_0] : memref<128x2048xbf16, #tpu.memory_space<vmem>>, vector<128x2048xbf16>
    %c0_1 = arith.constant 0 : index
    %c0_2 = arith.constant 0 : index
    %1 = vector.load %arg2[%c0_1, %c0_2] : memref<2048x128xbf16, #tpu.memory_space<vmem>>, vector<2048x128xbf16>
    %cst = arith.constant dense<0.000000e+00> : vector<128x128xf32>
    %2 = tpu.matmul %0, %1, %cst {dimension_numbers = #tpu.dot_dimension_numbers<[1], [0], [0], [1], [0, 0, 1, 1], [], []>} : vector<128x2048xbf16>, vector<2048x128xbf16>, vector<128x128xf32> -> vector<128x128xf32>
    %c0_3 = arith.constant 0 : index
    %c0_4 = arith.constant 0 : index
    %3 = vector.load %arg3[%c0_3, %c0_4] : memref<1x128xf32, #tpu.memory_space<vmem>>, vector<1x128xf32>
    %4 = vector.broadcast %3 : vector<1x128xf32> to vector<128x128xf32>
    %5 = arith.addf %2, %4 : vector<128x128xf32>
    %cst_5 = arith.constant 0.000000e+00 : f32
    %6 = vector.broadcast %cst_5 : f32 to vector<128x128xf32>
    %7 = arith.maximumf %5, %6 : vector<128x128xf32>
    %c0_6 = arith.constant 0 : index
    %c0_7 = arith.constant 0 : index
    %8 = vector.load %arg4[%c0_6, %c0_7] : memref<128x128xf32, #tpu.memory_space<vmem>>, vector<128x128xf32>
    tpu.vector_store %arg4[%c0_6, %c0_7], %7 {strides = array<i32>} : memref<128x128xf32, #tpu.memory_space<vmem>>, vector<128x128xf32>,
    return
  }
  func.func @transform_0(%arg0: i32) -> (i32, i32) {
    %c0_i32 = arith.constant 0 : i32
    %c0_i32_0 = arith.constant 0 : i32
    return %arg0, %c0_i32 : i32, i32
  }
  func.func @transform_1(%arg0: i32) -> (i32, i32) {
    %c0_i32 = arith.constant 0 : i32
    %c0_i32_0 = arith.constant 0 : i32
    %c0_i32_1 = arith.constant 0 : i32
    return %c0_i32, %c0_i32_0 : i32, i32
  }
  func.func @transform_2(%arg0: i32) -> (i32, i32) {
    %c0_i32 = arith.constant 0 : i32
    %c0_i32_0 = arith.constant 0 : i32
    %c0_i32_1 = arith.constant 0 : i32
    return %c0_i32, %c0_i32_0 : i32, i32
  }
  func.func @transform_3(%arg0: i32) -> (i32, i32) {
    %c0_i32 = arith.constant 0 : i32
    %c0_i32_0 = arith.constant 0 : i32
    return %arg0, %c0_i32 : i32, i32
  }
}

module attributes {stable_mosaic.version = 11 : i64} {
  func.func @_mm_kernel(%arg0: i32, %arg1: memref<32x2048xbf16, #tpu.memory_space<vmem>>, %arg2: memref<2048x128xbf16, #tpu.memory_space<vmem>>, %arg3: memref<1x128xf32, #tpu.memory_space<vmem>>, %arg4: memref<32x128xf32, #tpu.memory_space<vmem>>) attributes {dimension_semantics = [#tpu.dimension_semantics<parallel>], iteration_bounds = array<i64: 1>, scalar_prefetch = 0 : i64, scratch_operands = 0 : i64, tpu.core_type = #tpu.core_type<tc>, window_params = [{transform_indices = @transform_0, window_bounds = array<i64: 32, 2048>}, {pipeline_mode = #tpu.pipeline_mode<synchronous>, transform_indices = @transform_1, window_bounds = array<i64: 2048, 128>}, {pipeline_mode = #tpu.pipeline_mode<synchronous>, transform_indices = @transform_2, window_bounds = array<i64: 1, 128>}, {transform_indices = @transform_3, window_bounds = array<i64: 32, 128>}]} {
    %c0 = arith.constant 0 : index
    %c0_0 = arith.constant 0 : index
    %0 = vector.load %arg1[%c0, %c0_0] : memref<32x2048xbf16, #tpu.memory_space<vmem>>, vector<32x2048xbf16>
    %c0_1 = arith.constant 0 : index
    %c0_2 = arith.constant 0 : index
    %1 = vector.load %arg2[%c0_1, %c0_2] : memref<2048x128xbf16, #tpu.memory_space<vmem>>, vector<2048x128xbf16>
    %cst = arith.constant dense<0.000000e+00> : vector<32x128xf32>
    %2 = tpu.matmul %0, %1, %cst {dimension_numbers = #tpu.dot_dimension_numbers<[1], [0], [0], [1], [0, 0, 1, 1], [], []>} : vector<32x2048xbf16>, vector<2048x128xbf16>, vector<32x128xf32> -> vector<32x128xf32>
    %c0_3 = arith.constant 0 : index
    %c0_4 = arith.constant 0 : index
    %3 = vector.load %arg3[%c0_3, %c0_4] : memref<1x128xf32, #tpu.memory_space<vmem>>, vector<1x128xf32>
    %4 = vector.broadcast %3 : vector<1x128xf32> to vector<32x128xf32>
    %5 = arith.addf %2, %4 : vector<32x128xf32>
    %c0_5 = arith.constant 0 : index
    %c0_6 = arith.constant 0 : index
    %6 = vector.load %arg4[%c0_5, %c0_6] : memref<32x128xf32, #tpu.memory_space<vmem>>, vector<32x128xf32>
    tpu.vector_store %arg4[%c0_5, %c0_6], %5 {strides = array<i32>} : memref<32x128xf32, #tpu.memory_space<vmem>>, vector<32x128xf32>,
    return
  }
  func.func @transform_0(%arg0: i32) -> (i32, i32) {
    %c0_i32 = arith.constant 0 : i32
    %c0_i32_0 = arith.constant 0 : i32
    return %arg0, %c0_i32 : i32, i32
  }
  func.func @transform_1(%arg0: i32) -> (i32, i32) {
    %c0_i32 = arith.constant 0 : i32
    %c0_i32_0 = arith.constant 0 : i32
    %c0_i32_1 = arith.constant 0 : i32
    return %c0_i32, %c0_i32_0 : i32, i32
  }
  func.func @transform_2(%arg0: i32) -> (i32, i32) {
    %c0_i32 = arith.constant 0 : i32
    %c0_i32_0 = arith.constant 0 : i32
    %c0_i32_1 = arith.constant 0 : i32
    return %c0_i32, %c0_i32_0 : i32, i32
  }
  func.func @transform_3(%arg0: i32) -> (i32, i32) {
    %c0_i32 = arith.constant 0 : i32
    %c0_i32_0 = arith.constant 0 : i32
    return %arg0, %c0_i32 : i32, i32
  }
}

module attributes {stable_mosaic.version = 11 : i64} {
  func.func @_resblock_kernel(%arg0: i32, %arg1: memref<32x1152xbf16, #tpu.memory_space<vmem>>, %arg2: memref<32x128xf32, #tpu.memory_space<vmem>>, %arg3: memref<1152x128xbf16, #tpu.memory_space<vmem>>, %arg4: memref<1x128xf32, #tpu.memory_space<vmem>>, %arg5: memref<128x128xbf16, #tpu.memory_space<vmem>>, %arg6: memref<1x128xf32, #tpu.memory_space<vmem>>, %arg7: memref<32x128xf32, #tpu.memory_space<vmem>>) attributes {dimension_semantics = [#tpu.dimension_semantics<parallel>], iteration_bounds = array<i64: 1>, scalar_prefetch = 0 : i64, scratch_operands = 0 : i64, tpu.core_type = #tpu.core_type<tc>, window_params = [{transform_indices = @transform_0, window_bounds = array<i64: 32, 1152>}, {transform_indices = @transform_1, window_bounds = array<i64: 32, 128>}, {pipeline_mode = #tpu.pipeline_mode<synchronous>, transform_indices = @transform_2, window_bounds = array<i64: 1152, 128>}, {pipeline_mode = #tpu.pipeline_mode<synchronous>, transform_indices = @transform_3, window_bounds = array<i64: 1, 128>}, {pipeline_mode = #tpu.pipeline_mode<synchronous>, transform_indices = @transform_4, window_bounds = array<i64: 128, 128>}, {pipeline_mode = #tpu.pipeline_mode<synchronous>, transform_indices = @transform_5, window_bounds = array<i64: 1, 128>}, {transform_indices = @transform_6, window_bounds = array<i64: 32, 128>}]} {
    %c0 = arith.constant 0 : index
    %c0_0 = arith.constant 0 : index
    %0 = vector.load %arg1[%c0, %c0_0] : memref<32x1152xbf16, #tpu.memory_space<vmem>>, vector<32x1152xbf16>
    %cst = arith.constant 0.000000e+00 : bf16
    %1 = vector.broadcast %cst : bf16 to vector<32x1152xbf16>
    %2 = arith.maximumf %0, %1 : vector<32x1152xbf16>
    %c0_1 = arith.constant 0 : index
    %c0_2 = arith.constant 0 : index
    %3 = vector.load %arg3[%c0_1, %c0_2] : memref<1152x128xbf16, #tpu.memory_space<vmem>>, vector<1152x128xbf16>
    %cst_3 = arith.constant dense<0.000000e+00> : vector<32x128xf32>
    %4 = tpu.matmul %2, %3, %cst_3 {dimension_numbers = #tpu.dot_dimension_numbers<[1], [0], [0], [1], [0, 0, 1, 1], [], []>} : vector<32x1152xbf16>, vector<1152x128xbf16>, vector<32x128xf32> -> vector<32x128xf32>
    %c0_4 = arith.constant 0 : index
    %c0_5 = arith.constant 0 : index
    %5 = vector.load %arg4[%c0_4, %c0_5] : memref<1x128xf32, #tpu.memory_space<vmem>>, vector<1x128xf32>
    %6 = vector.broadcast %5 : vector<1x128xf32> to vector<32x128xf32>
    %7 = arith.addf %4, %6 : vector<32x128xf32>
    %cst_6 = arith.constant 0.000000e+00 : f32
    %8 = vector.broadcast %cst_6 : f32 to vector<32x128xf32>
    %9 = arith.maximumf %7, %8 : vector<32x128xf32>
    %10 = arith.truncf %9 : vector<32x128xf32> to vector<32x128xbf16>
    %c0_7 = arith.constant 0 : index
    %c0_8 = arith.constant 0 : index
    %11 = vector.load %arg5[%c0_7, %c0_8] : memref<128x128xbf16, #tpu.memory_space<vmem>>, vector<128x128xbf16>
    %cst_9 = arith.constant dense<0.000000e+00> : vector<32x128xf32>
    %12 = tpu.matmul %10, %11, %cst_9 {dimension_numbers = #tpu.dot_dimension_numbers<[1], [0], [0], [1], [0, 0, 1, 1], [], []>} : vector<32x128xbf16>, vector<128x128xbf16>, vector<32x128xf32> -> vector<32x128xf32>
    %c0_10 = arith.constant 0 : index
    %c0_11 = arith.constant 0 : index
    %13 = vector.load %arg6[%c0_10, %c0_11] : memref<1x128xf32, #tpu.memory_space<vmem>>, vector<1x128xf32>
    %14 = vector.broadcast %13 : vector<1x128xf32> to vector<32x128xf32>
    %15 = arith.addf %12, %14 : vector<32x128xf32>
    %c0_12 = arith.constant 0 : index
    %c0_13 = arith.constant 0 : index
    %16 = vector.load %arg2[%c0_12, %c0_13] : memref<32x128xf32, #tpu.memory_space<vmem>>, vector<32x128xf32>
    %17 = arith.addf %15, %16 : vector<32x128xf32>
    %c0_14 = arith.constant 0 : index
    %c0_15 = arith.constant 0 : index
    %18 = vector.load %arg7[%c0_14, %c0_15] : memref<32x128xf32, #tpu.memory_space<vmem>>, vector<32x128xf32>
    tpu.vector_store %arg7[%c0_14, %c0_15], %17 {strides = array<i32>} : memref<32x128xf32, #tpu.memory_space<vmem>>, vector<32x128xf32>,
    return
  }
  func.func @transform_0(%arg0: i32) -> (i32, i32) {
    %c0_i32 = arith.constant 0 : i32
    %c0_i32_0 = arith.constant 0 : i32
    return %arg0, %c0_i32 : i32, i32
  }
  func.func @transform_1(%arg0: i32) -> (i32, i32) {
    %c0_i32 = arith.constant 0 : i32
    %c0_i32_0 = arith.constant 0 : i32
    return %arg0, %c0_i32 : i32, i32
  }
  func.func @transform_2(%arg0: i32) -> (i32, i32) {
    %c0_i32 = arith.constant 0 : i32
    %c0_i32_0 = arith.constant 0 : i32
    %c0_i32_1 = arith.constant 0 : i32
    return %c0_i32, %c0_i32_0 : i32, i32
  }
  func.func @transform_3(%arg0: i32) -> (i32, i32) {
    %c0_i32 = arith.constant 0 : i32
    %c0_i32_0 = arith.constant 0 : i32
    %c0_i32_1 = arith.constant 0 : i32
    return %c0_i32, %c0_i32_0 : i32, i32
  }
  func.func @transform_4(%arg0: i32) -> (i32, i32) {
    %c0_i32 = arith.constant 0 : i32
    %c0_i32_0 = arith.constant 0 : i32
    %c0_i32_1 = arith.constant 0 : i32
    return %c0_i32, %c0_i32_0 : i32, i32
  }
  func.func @transform_5(%arg0: i32) -> (i32, i32) {
    %c0_i32 = arith.constant 0 : i32
    %c0_i32_0 = arith.constant 0 : i32
    %c0_i32_1 = arith.constant 0 : i32
    return %c0_i32, %c0_i32_0 : i32, i32
  }
  func.func @transform_6(%arg0: i32) -> (i32, i32) {
    %c0_i32 = arith.constant 0 : i32
    %c0_i32_0 = arith.constant 0 : i32
    return %arg0, %c0_i32 : i32, i32
  }
}

module attributes {stable_mosaic.version = 11 : i64} {
  func.func @_mm_kernel(%arg0: i32, %arg1: memref<32x128xbf16, #tpu.memory_space<vmem>>, %arg2: memref<128x128xbf16, #tpu.memory_space<vmem>>, %arg3: memref<1x128xf32, #tpu.memory_space<vmem>>, %arg4: memref<32x128xf32, #tpu.memory_space<vmem>>) attributes {dimension_semantics = [#tpu.dimension_semantics<parallel>], iteration_bounds = array<i64: 1>, scalar_prefetch = 0 : i64, scratch_operands = 0 : i64, tpu.core_type = #tpu.core_type<tc>, window_params = [{transform_indices = @transform_0, window_bounds = array<i64: 32, 128>}, {pipeline_mode = #tpu.pipeline_mode<synchronous>, transform_indices = @transform_1, window_bounds = array<i64: 128, 128>}, {pipeline_mode = #tpu.pipeline_mode<synchronous>, transform_indices = @transform_2, window_bounds = array<i64: 1, 128>}, {transform_indices = @transform_3, window_bounds = array<i64: 32, 128>}]} {
    %c0 = arith.constant 0 : index
    %c0_0 = arith.constant 0 : index
    %0 = vector.load %arg1[%c0, %c0_0] : memref<32x128xbf16, #tpu.memory_space<vmem>>, vector<32x128xbf16>
    %c0_1 = arith.constant 0 : index
    %c0_2 = arith.constant 0 : index
    %1 = vector.load %arg2[%c0_1, %c0_2] : memref<128x128xbf16, #tpu.memory_space<vmem>>, vector<128x128xbf16>
    %cst = arith.constant dense<0.000000e+00> : vector<32x128xf32>
    %2 = tpu.matmul %0, %1, %cst {dimension_numbers = #tpu.dot_dimension_numbers<[1], [0], [0], [1], [0, 0, 1, 1], [], []>} : vector<32x128xbf16>, vector<128x128xbf16>, vector<32x128xf32> -> vector<32x128xf32>
    %c0_3 = arith.constant 0 : index
    %c0_4 = arith.constant 0 : index
    %3 = vector.load %arg3[%c0_3, %c0_4] : memref<1x128xf32, #tpu.memory_space<vmem>>, vector<1x128xf32>
    %4 = vector.broadcast %3 : vector<1x128xf32> to vector<32x128xf32>
    %5 = arith.addf %2, %4 : vector<32x128xf32>
    %c0_5 = arith.constant 0 : index
    %c0_6 = arith.constant 0 : index
    %6 = vector.load %arg4[%c0_5, %c0_6] : memref<32x128xf32, #tpu.memory_space<vmem>>, vector<32x128xf32>
    tpu.vector_store %arg4[%c0_5, %c0_6], %5 {strides = array<i32>} : memref<32x128xf32, #tpu.memory_space<vmem>>, vector<32x128xf32>,
    return
  }
  func.func @transform_0(%arg0: i32) -> (i32, i32) {
    %c0_i32 = arith.constant 0 : i32
    %c0_i32_0 = arith.constant 0 : i32
    return %arg0, %c0_i32 : i32, i32
  }
  func.func @transform_1(%arg0: i32) -> (i32, i32) {
    %c0_i32 = arith.constant 0 : i32
    %c0_i32_0 = arith.constant 0 : i32
    %c0_i32_1 = arith.constant 0 : i32
    return %c0_i32, %c0_i32_0 : i32, i32
  }
  func.func @transform_2(%arg0: i32) -> (i32, i32) {
    %c0_i32 = arith.constant 0 : i32
    %c0_i32_0 = arith.constant 0 : i32
    %c0_i32_1 = arith.constant 0 : i32
    return %c0_i32, %c0_i32_0 : i32, i32
  }
  func.func @transform_3(%arg0: i32) -> (i32, i32) {
    %c0_i32 = arith.constant 0 : i32
    %c0_i32_0 = arith.constant 0 : i32
    return %arg0, %c0_i32 : i32, i32
  }
}

module attributes {stable_mosaic.version = 11 : i64} {
  func.func @_vq_kernel(%arg0: i32, %arg1: memref<32x128xf32, #tpu.memory_space<vmem>>, %arg2: memref<128x128xf32, #tpu.memory_space<vmem>>, %arg3: memref<1x128xf32, #tpu.memory_space<vmem>>, %arg4: memref<32x128xf32, #tpu.memory_space<vmem>>, %arg5: memref<32x1xi32, #tpu.memory_space<vmem>>, %arg6: memref<1x1xf32, #tpu.memory_space<vmem>>) attributes {dimension_semantics = [#tpu.dimension_semantics<arbitrary>], iteration_bounds = array<i64: 1>, scalar_prefetch = 0 : i64, scratch_operands = 0 : i64, tpu.core_type = #tpu.core_type<tc>, window_params = [{transform_indices = @transform_0, window_bounds = array<i64: 32, 128>}, {pipeline_mode = #tpu.pipeline_mode<synchronous>, transform_indices = @transform_1, window_bounds = array<i64: 128, 128>}, {pipeline_mode = #tpu.pipeline_mode<synchronous>, transform_indices = @transform_2, window_bounds = array<i64: 1, 128>}, {transform_indices = @transform_3, window_bounds = array<i64: 32, 128>}, {transform_indices = @transform_4, window_bounds = array<i64: 32, 1>}, {pipeline_mode = #tpu.pipeline_mode<synchronous>, transform_indices = @transform_5, window_bounds = array<i64: 1, 1>}]} {
    %c0_i32 = arith.constant 0 : i32
    %0 = arith.cmpi eq, %arg0, %c0_i32 : i32
    %1 = arith.extui %0 : i1 to i32
    %c0_i32_0 = arith.constant 0 : i32
    %2 = arith.cmpi ne, %1, %c0_i32_0 : i32
    scf.if %2 {
      %cst_22 = arith.constant 0.000000e+00 : f32
      %49 = vector.broadcast %cst_22 : f32 to vector<1x1xf32>
      %c0_23 = arith.constant 0 : index
      %c0_24 = arith.constant 0 : index
      %50 = vector.load %arg6[%c0_23, %c0_24] : memref<1x1xf32, #tpu.memory_space<vmem>>, vector<1x1xf32>
      tpu.vector_store %arg6[%c0_23, %c0_24], %49 {strides = array<i32>} : memref<1x1xf32, #tpu.memory_space<vmem>>, vector<1x1xf32>,
    } else {
    }
    %c0 = arith.constant 0 : index
    %c0_1 = arith.constant 0 : index
    %3 = vector.load %arg1[%c0, %c0_1] : memref<32x128xf32, #tpu.memory_space<vmem>>, vector<32x128xf32>
    %c0_2 = arith.constant 0 : index
    %c0_3 = arith.constant 0 : index
    %4 = vector.load %arg2[%c0_2, %c0_3] : memref<128x128xf32, #tpu.memory_space<vmem>>, vector<128x128xf32>
    %cst = arith.constant dense<0.000000e+00> : vector<32x128xf32>
    %5 = tpu.matmul %3, %4, %cst {dimension_numbers = #tpu.dot_dimension_numbers<[1], [1], [0], [0], [0, 0, 1, 0], [], []>} : vector<32x128xf32>, vector<128x128xf32>, vector<32x128xf32> -> vector<32x128xf32>
    %c0_4 = arith.constant 0 : index
    %c0_5 = arith.constant 0 : index
    %6 = vector.load %arg3[%c0_4, %c0_5] : memref<1x128xf32, #tpu.memory_space<vmem>>, vector<1x128xf32>
    %cst_6 = arith.constant 2.000000e+00 : f32
    %7 = vector.broadcast %cst_6 : f32 to vector<32x128xf32>
    %8 = arith.mulf %7, %5 : vector<32x128xf32>
    %9 = vector.broadcast %6 : vector<1x128xf32> to vector<32x128xf32>
    %10 = arith.subf %9, %8 : vector<32x128xf32>
    %11 = tpu.iota {dimensions = array<i32: 1>} : vector<32x128xi32>
    %c64_i32 = arith.constant 64 : i32
    %12 = vector.broadcast %c64_i32 : i32 to vector<32x128xi32>
    %13 = arith.cmpi slt, %11, %12 : vector<32x128xi32>
    %cst_7 = arith.constant 1.000000e+30 : f32
    %14 = vector.broadcast %cst_7 : f32 to vector<32x128xf32>
    %15 = arith.select %13, %10, %14 : vector<32x128xi1>, vector<32x128xf32>
    %cst_8 = arith.constant dense<0x7F800000> : vector<32xf32>
    %16 = vector.multi_reduction <minimumf>, %15, %cst_8 [1] : vector<32x128xf32> to vector<32xf32>
    %17 = vector.shape_cast %16 : vector<32xf32> to vector<32x1xf32>
    %18 = vector.broadcast %17 : vector<32x1xf32> to vector<32x128xf32>
    %19 = arith.cmpf ole, %15, %18 : vector<32x128xf32>
    %c128_i32 = arith.constant 128 : i32
    %20 = vector.broadcast %c128_i32 : i32 to vector<32x128xi32>
    %21 = arith.select %19, %11, %20 : vector<32x128xi1>, vector<32x128xi32>
    %cst_9 = arith.constant dense<2147483647> : vector<32xi32>
    %22 = vector.multi_reduction <minsi>, %21, %cst_9 [1] : vector<32x128xi32> to vector<32xi32>
    %23 = vector.shape_cast %22 : vector<32xi32> to vector<32x1xi32>
    %24 = vector.broadcast %23 : vector<32x1xi32> to vector<32x128xi32>
    %25 = arith.cmpi eq, %11, %24 : vector<32x128xi32>
    %26 = arith.extui %25 : vector<32x128xi1> to vector<32x128xi32>
    %27 = arith.sitofp %26 : vector<32x128xi32> to vector<32x128xf32>
    %cst_10 = arith.constant dense<0.000000e+00> : vector<32x128xf32>
    %28 = tpu.matmul %27, %4, %cst_10 {dimension_numbers = #tpu.dot_dimension_numbers<[1], [0], [0], [1], [0, 0, 1, 1], [], []>} : vector<32x128xf32>, vector<128x128xf32>, vector<32x128xf32> -> vector<32x128xf32>
    %29 = tpu.iota {dimensions = array<i32: 0>} : vector<32x1xi32>
    %c32_i32 = arith.constant 32 : i32
    %30 = arith.muli %arg0, %c32_i32 : i32
    %31 = vector.broadcast %30 : i32 to vector<32x1xi32>
    %32 = arith.addi %29, %31 : vector<32x1xi32>
    %c32_i32_11 = arith.constant 32 : i32
    %33 = vector.broadcast %c32_i32_11 : i32 to vector<32x1xi32>
    %34 = arith.cmpi slt, %32, %33 : vector<32x1xi32>
    %35 = arith.extui %34 : vector<32x1xi1> to vector<32x1xi32>
    %36 = arith.sitofp %35 : vector<32x1xi32> to vector<32x1xf32>
    %37 = arith.subf %28, %3 : vector<32x128xf32>
    %38 = arith.mulf %37, %37 : vector<32x128xf32>
    %cst_12 = arith.constant dense<0.000000e+00> : vector<32xf32>
    %39 = vector.multi_reduction <add>, %38, %cst_12 [1] : vector<32x128xf32> to vector<32xf32>
    %40 = vector.shape_cast %39 : vector<32xf32> to vector<32x1xf32>
    %41 = arith.mulf %40, %36 : vector<32x1xf32>
    %cst_13 = arith.constant dense<0.000000e+00> : vector<1xf32>
    %42 = vector.multi_reduction <add>, %41, %cst_13 [0] : vector<32x1xf32> to vector<1xf32>
    %43 = vector.shape_cast %42 : vector<1xf32> to vector<1x1xf32>
    %c0_14 = arith.constant 0 : index
    %c0_15 = arith.constant 0 : index
    %44 = vector.load %arg6[%c0_14, %c0_15] : memref<1x1xf32, #tpu.memory_space<vmem>>, vector<1x1xf32>
    %45 = arith.addf %44, %43 : vector<1x1xf32>
    %c0_16 = arith.constant 0 : index
    %c0_17 = arith.constant 0 : index
    %46 = vector.load %arg6[%c0_16, %c0_17] : memref<1x1xf32, #tpu.memory_space<vmem>>, vector<1x1xf32>
    tpu.vector_store %arg6[%c0_16, %c0_17], %45 {strides = array<i32>} : memref<1x1xf32, #tpu.memory_space<vmem>>, vector<1x1xf32>,
    %c0_18 = arith.constant 0 : index
    %c0_19 = arith.constant 0 : index
    %47 = vector.load %arg4[%c0_18, %c0_19] : memref<32x128xf32, #tpu.memory_space<vmem>>, vector<32x128xf32>
    tpu.vector_store %arg4[%c0_18, %c0_19], %28 {strides = array<i32>} : memref<32x128xf32, #tpu.memory_space<vmem>>, vector<32x128xf32>,
    %c0_20 = arith.constant 0 : index
    %c0_21 = arith.constant 0 : index
    %48 = vector.load %arg5[%c0_20, %c0_21] : memref<32x1xi32, #tpu.memory_space<vmem>>, vector<32x1xi32>
    tpu.vector_store %arg5[%c0_20, %c0_21], %23 {strides = array<i32>} : memref<32x1xi32, #tpu.memory_space<vmem>>, vector<32x1xi32>,
    return
  }
  func.func @transform_0(%arg0: i32) -> (i32, i32) {
    %c0_i32 = arith.constant 0 : i32
    %c0_i32_0 = arith.constant 0 : i32
    return %arg0, %c0_i32 : i32, i32
  }
  func.func @transform_1(%arg0: i32) -> (i32, i32) {
    %c0_i32 = arith.constant 0 : i32
    %c0_i32_0 = arith.constant 0 : i32
    %c0_i32_1 = arith.constant 0 : i32
    return %c0_i32, %c0_i32_0 : i32, i32
  }
  func.func @transform_2(%arg0: i32) -> (i32, i32) {
    %c0_i32 = arith.constant 0 : i32
    %c0_i32_0 = arith.constant 0 : i32
    %c0_i32_1 = arith.constant 0 : i32
    return %c0_i32, %c0_i32_0 : i32, i32
  }
  func.func @transform_3(%arg0: i32) -> (i32, i32) {
    %c0_i32 = arith.constant 0 : i32
    %c0_i32_0 = arith.constant 0 : i32
    return %arg0, %c0_i32 : i32, i32
  }
  func.func @transform_4(%arg0: i32) -> (i32, i32) {
    %c0_i32 = arith.constant 0 : i32
    %c0_i32_0 = arith.constant 0 : i32
    return %arg0, %c0_i32 : i32, i32
  }
  func.func @transform_5(%arg0: i32) -> (i32, i32) {
    %c0_i32 = arith.constant 0 : i32
    %c0_i32_0 = arith.constant 0 : i32
    %c0_i32_1 = arith.constant 0 : i32
    return %c0_i32, %c0_i32_0 : i32, i32
  }
}

module attributes {stable_mosaic.version = 11 : i64} {
  func.func @_mm_kernel(%arg0: i32, %arg1: memref<32x1152xbf16, #tpu.memory_space<vmem>>, %arg2: memref<1152x512xbf16, #tpu.memory_space<vmem>>, %arg3: memref<1x512xf32, #tpu.memory_space<vmem>>, %arg4: memref<32x512xf32, #tpu.memory_space<vmem>>) attributes {dimension_semantics = [#tpu.dimension_semantics<parallel>], iteration_bounds = array<i64: 1>, scalar_prefetch = 0 : i64, scratch_operands = 0 : i64, tpu.core_type = #tpu.core_type<tc>, window_params = [{transform_indices = @transform_0, window_bounds = array<i64: 32, 1152>}, {pipeline_mode = #tpu.pipeline_mode<synchronous>, transform_indices = @transform_1, window_bounds = array<i64: 1152, 512>}, {pipeline_mode = #tpu.pipeline_mode<synchronous>, transform_indices = @transform_2, window_bounds = array<i64: 1, 512>}, {transform_indices = @transform_3, window_bounds = array<i64: 32, 512>}]} {
    %c0 = arith.constant 0 : index
    %c0_0 = arith.constant 0 : index
    %0 = vector.load %arg1[%c0, %c0_0] : memref<32x1152xbf16, #tpu.memory_space<vmem>>, vector<32x1152xbf16>
    %cst = arith.constant 0.000000e+00 : bf16
    %1 = vector.broadcast %cst : bf16 to vector<32x1152xbf16>
    %2 = arith.maximumf %0, %1 : vector<32x1152xbf16>
    %c0_1 = arith.constant 0 : index
    %c0_2 = arith.constant 0 : index
    %3 = vector.load %arg2[%c0_1, %c0_2] : memref<1152x512xbf16, #tpu.memory_space<vmem>>, vector<1152x512xbf16>
    %cst_3 = arith.constant dense<0.000000e+00> : vector<32x512xf32>
    %4 = tpu.matmul %2, %3, %cst_3 {dimension_numbers = #tpu.dot_dimension_numbers<[1], [0], [0], [1], [0, 0, 1, 1], [], []>} : vector<32x1152xbf16>, vector<1152x512xbf16>, vector<32x512xf32> -> vector<32x512xf32>
    %c0_4 = arith.constant 0 : index
    %c0_5 = arith.constant 0 : index
    %5 = vector.load %arg3[%c0_4, %c0_5] : memref<1x512xf32, #tpu.memory_space<vmem>>, vector<1x512xf32>
    %6 = vector.broadcast %5 : vector<1x512xf32> to vector<32x512xf32>
    %7 = arith.addf %4, %6 : vector<32x512xf32>
    %cst_6 = arith.constant 0.000000e+00 : f32
    %8 = vector.broadcast %cst_6 : f32 to vector<32x512xf32>
    %9 = arith.maximumf %7, %8 : vector<32x512xf32>
    %c0_7 = arith.constant 0 : index
    %c0_8 = arith.constant 0 : index
    %10 = vector.load %arg4[%c0_7, %c0_8] : memref<32x512xf32, #tpu.memory_space<vmem>>, vector<32x512xf32>
    tpu.vector_store %arg4[%c0_7, %c0_8], %9 {strides = array<i32>} : memref<32x512xf32, #tpu.memory_space<vmem>>, vector<32x512xf32>,
    return
  }
  func.func @transform_0(%arg0: i32) -> (i32, i32) {
    %c0_i32 = arith.constant 0 : i32
    %c0_i32_0 = arith.constant 0 : i32
    return %arg0, %c0_i32 : i32, i32
  }
  func.func @transform_1(%arg0: i32) -> (i32, i32) {
    %c0_i32 = arith.constant 0 : i32
    %c0_i32_0 = arith.constant 0 : i32
    %c0_i32_1 = arith.constant 0 : i32
    return %c0_i32, %c0_i32_0 : i32, i32
  }
  func.func @transform_2(%arg0: i32) -> (i32, i32) {
    %c0_i32 = arith.constant 0 : i32
    %c0_i32_0 = arith.constant 0 : i32
    %c0_i32_1 = arith.constant 0 : i32
    return %c0_i32, %c0_i32_0 : i32, i32
  }
  func.func @transform_3(%arg0: i32) -> (i32, i32) {
    %c0_i32 = arith.constant 0 : i32
    %c0_i32_0 = arith.constant 0 : i32
    return %arg0, %c0_i32 : i32, i32
  }
}

module attributes {stable_mosaic.version = 11 : i64} {
  func.func @_mm_kernel(%arg0: i32, %arg1: memref<128x1152xbf16, #tpu.memory_space<vmem>>, %arg2: memref<1152x512xbf16, #tpu.memory_space<vmem>>, %arg3: memref<1x512xf32, #tpu.memory_space<vmem>>, %arg4: memref<128x512xf32, #tpu.memory_space<vmem>>) attributes {dimension_semantics = [#tpu.dimension_semantics<parallel>], iteration_bounds = array<i64: 1>, scalar_prefetch = 0 : i64, scratch_operands = 0 : i64, tpu.core_type = #tpu.core_type<tc>, window_params = [{transform_indices = @transform_0, window_bounds = array<i64: 128, 1152>}, {pipeline_mode = #tpu.pipeline_mode<synchronous>, transform_indices = @transform_1, window_bounds = array<i64: 1152, 512>}, {pipeline_mode = #tpu.pipeline_mode<synchronous>, transform_indices = @transform_2, window_bounds = array<i64: 1, 512>}, {transform_indices = @transform_3, window_bounds = array<i64: 128, 512>}]} {
    %c0 = arith.constant 0 : index
    %c0_0 = arith.constant 0 : index
    %0 = vector.load %arg1[%c0, %c0_0] : memref<128x1152xbf16, #tpu.memory_space<vmem>>, vector<128x1152xbf16>
    %c0_1 = arith.constant 0 : index
    %c0_2 = arith.constant 0 : index
    %1 = vector.load %arg2[%c0_1, %c0_2] : memref<1152x512xbf16, #tpu.memory_space<vmem>>, vector<1152x512xbf16>
    %cst = arith.constant dense<0.000000e+00> : vector<128x512xf32>
    %2 = tpu.matmul %0, %1, %cst {dimension_numbers = #tpu.dot_dimension_numbers<[1], [0], [0], [1], [0, 0, 1, 1], [], []>} : vector<128x1152xbf16>, vector<1152x512xbf16>, vector<128x512xf32> -> vector<128x512xf32>
    %c0_3 = arith.constant 0 : index
    %c0_4 = arith.constant 0 : index
    %3 = vector.load %arg3[%c0_3, %c0_4] : memref<1x512xf32, #tpu.memory_space<vmem>>, vector<1x512xf32>
    %4 = vector.broadcast %3 : vector<1x512xf32> to vector<128x512xf32>
    %5 = arith.addf %2, %4 : vector<128x512xf32>
    %c0_5 = arith.constant 0 : index
    %c0_6 = arith.constant 0 : index
    %6 = vector.load %arg4[%c0_5, %c0_6] : memref<128x512xf32, #tpu.memory_space<vmem>>, vector<128x512xf32>
    tpu.vector_store %arg4[%c0_5, %c0_6], %5 {strides = array<i32>} : memref<128x512xf32, #tpu.memory_space<vmem>>, vector<128x512xf32>,
    return
  }
  func.func @transform_0(%arg0: i32) -> (i32, i32) {
    %c0_i32 = arith.constant 0 : i32
    %c0_i32_0 = arith.constant 0 : i32
    return %arg0, %c0_i32 : i32, i32
  }
  func.func @transform_1(%arg0: i32) -> (i32, i32) {
    %c0_i32 = arith.constant 0 : i32
    %c0_i32_0 = arith.constant 0 : i32
    %c0_i32_1 = arith.constant 0 : i32
    return %c0_i32, %c0_i32_0 : i32, i32
  }
  func.func @transform_2(%arg0: i32) -> (i32, i32) {
    %c0_i32 = arith.constant 0 : i32
    %c0_i32_0 = arith.constant 0 : i32
    %c0_i32_1 = arith.constant 0 : i32
    return %c0_i32, %c0_i32_0 : i32, i32
  }
  func.func @transform_3(%arg0: i32) -> (i32, i32) {
    %c0_i32 = arith.constant 0 : i32
    %c0_i32_0 = arith.constant 0 : i32
    return %arg0, %c0_i32 : i32, i32
  }
}

</mosaic_0001>

<bundles_post_ra>
// kernel: vqvae_forward.11
= control target key start
LH: loop header
LB: loop body
LE: loop exit
PB: predicated region body
PF: predicated region fallthrough
CT: control target
= control target key end

     0   :  { %s4656_s1 = inlined_call_operand.vmem [shape: bf16[2048,128], index: 1, kind: input, shape index: {}]   ;;  %s4657_s0 = inlined_call_operand.vmem [shape: bf16[128,2048], index: 0, kind: input, shape index: {}]   ;;  %s4658_s2 = inlined_call_operand.vmem [shape: f32[1,128], index: 2, kind: input, shape index: {}]   ;;  %s4659_s3 = inlined_call_operand.vmem [shape: f32[128,128], index: 3, kind: output, shape index: {}]  }
   0x1   :  { %v3395_v0 = vld [vmem:[%s4656_s1 + $0x78] sm:$0xff]   ;;  %v3399_v4 = vld [vmem:[%s4656_s1 + $0x70] sm:$0xff]   ;;  %v3403_v8 = vld [vmem:[%s4656_s1 + $0x68] sm:$0xff]  }
   0x2   :  { %v3396_v1 = vld [vmem:[%s4656_s1 + $0xf8] sm:$0xff]   ;;  %2883 = vmatprep.subr.bf16.mxu0 %v3395_v0  ;;  %v3400_v5 = vld [vmem:[%s4656_s1 + $0xf0] sm:$0xff]   ;;  %v3404_v9 = vld [vmem:[%s4656_s1 + $0xe8] sm:$0xff]  }
   0x3   :  { %v3397_v2 = vld [vmem:[%s4656_s1 + $0x38] sm:$0xff]   ;;  %2947 = vmatprep.subr.bf16.mxu1 %v3396_v1  ;;  %v3401_v6 = vld [vmem:[%s4656_s1 + $0x30] sm:$0xff]   ;;  %v3405_v10 = vld [vmem:[%s4656_s1 + $0x28] sm:$0xff]  }
   0x4   :  { %v3398_v3 = vld [vmem:[%s4656_s1 + $0xb8] sm:$0xff]   ;;  %2884 = vmatpush3.bf16.msra.mxu0 %v3397_v2  ;;  %v3402_v7 = vld [vmem:[%s4656_s1 + $0xb0] sm:$0xff]   ;;  %v3406_v11 = vld [vmem:[%s4656_s1 + $0xa8] sm:$0xff]  }
   0x5   :  { %2948 = vmatpush3.bf16.msra.mxu1 %v3398_v3  ;;  %2885 = vmatprep.subr.bf16.mxu0 %v3399_v4  ;;  %v3407_v12 = vld [vmem:[%s4656_s1 + $0x60] sm:$0xff]   ;;  %v3411_v16 = vld [vmem:[%s4656_s1 + $0x58] sm:$0xff]   ;;  %v3415_v20 = vld [vmem:[%s4656_s1 + $0x50] sm:$0xff]  }
   0x6   :  { %2949 = vmatprep.subr.bf16.mxu1 %v3400_v5  ;;  %v3408_v13 = vld [vmem:[%s4656_s1 + $0xe0] sm:$0xff]   ;;  %v3412_v17 = vld [vmem:[%s4656_s1 + $0xd8] sm:$0xff]   ;;  %v3416_v21 = vld [vmem:[%s4656_s1 + $0xd0] sm:$0xff]  }
   0x7   :  { %v3409_v14 = vld [vmem:[%s4656_s1 + $0x20] sm:$0xff]   ;;  %v3413_v18 = vld [vmem:[%s4656_s1 + $0x18] sm:$0xff]   ;;  %v3417_v22 = vld [vmem:[%s4656_s1 + $0x10] sm:$0xff]  }
   0x8   :  { %2886 = vmatpush3.bf16.msra.mxu0 %v3401_v6  ;;  %v3410_v15 = vld [vmem:[%s4656_s1 + $0xa0] sm:$0xff]   ;;  %v3414_v19 = vld [vmem:[%s4656_s1 + $0x98] sm:$0xff]   ;;  %v3418_v23 = vld [vmem:[%s4656_s1 + $0x90] sm:$0xff]  }
   0x9   :  { %2950 = vmatpush3.bf16.msra.mxu1 %v3402_v7  ;;  %2887 = vmatprep.subr.bf16.mxu0 %v3403_v8  ;;  %v3419_v24 = vld [vmem:[%s4656_s1 + $0x48] sm:$0xff]   ;;  %v3423_v28 = vld [vmem:[%s4656_s1 + $0x40] sm:$0xff]   ;;  %v3427_v40 = vld [vmem:[%s4656_s1 + $0x178] sm:$0xff]  }
   0xa   :  { %2951 = vmatprep.subr.bf16.mxu1 %v3404_v9  ;;  %v3420_v25 = vld [vmem:[%s4656_s1 + $0xc8] sm:$0xff]   ;;  %v3424_v29 = vld [vmem:[%s4656_s1 + $0xc0] sm:$0xff]   ;;  %v3428_v41 = vld [vmem:[%s4656_s1 + $0x138] sm:$0xff]  }
   0xb   :  { %v3421_v26 = vld [vmem:[%s4656_s1 + $0x8] sm:$0xff]   ;;  %v3425_v30 = vld [vmem:[%s4656_s1] sm:$0xff]   ;;  %v3429_v42 = vld [vmem:[%s4656_s1 + $0x1f8] sm:$0xff]  }
   0xc   :  { %2888 = vmatpush3.bf16.msra.mxu0 %v3405_v10  ;;  %v3422_v27 = vld [vmem:[%s4656_s1 + $0x88] sm:$0xff]   ;;  %v3426_v31 = vld [vmem:[%s4656_s1 + $0x80] sm:$0xff]   ;;  %v3430_v43 = vld [vmem:[%s4656_s1 + $0x1b8] sm:$0xff]  }
   0xd   :  { %2952 = vmatpush3.bf16.msra.mxu1 %v3406_v11  ;;  %2889 = vmatprep.subr.bf16.mxu0 %v3407_v12  ;;  %v15_v32 = vld [vmem:[%s4657_s0] sm:$0xff]  ;;  %v16_v34 = vld [vmem:[%s4657_s0 + $0x8] sm:$0xff]  ;;  %v3431_v50 = vld [vmem:[%s4656_s1 + $0x170] sm:$0xff]  }
   0xe   :  { %2953 = vmatprep.subr.bf16.mxu1 %v3408_v13  ;;  %v23_v33 = vld [vmem:[%s4657_s0 + $0x40] sm:$0xff]  ;;  %v24_v37 = vld [vmem:[%s4657_s0 + $0x48] sm:$0xff]  ;;  %v3432_v52 = vld [vmem:[%s4656_s1 + $0x130] sm:$0xff]  }
   0xf   :  { %v2627_v35 = vcombine.low %v15_v32, %v23_v33  ;;  %v2628_v36 = vcombine.high %v15_v32, %v23_v33  ;;  %v2629_v38 = vcombine.low %v16_v34, %v24_v37  ;;  %v2630_v39 = vcombine.high %v16_v34, %v24_v37  ;;  %v31_v44 = vld [vmem:[%s4657_s0 + $0x80] sm:$0xff]  ;;  %v32_v47 = vld [vmem:[%s4657_s0 + $0x88] sm:$0xff]  ;;  %v3433_v54 = vld [vmem:[%s4656_s1 + $0x1f0] sm:$0xff]  }
  0x10   :  { %2890 = vmatpush3.bf16.msra.mxu0 %v3409_v14  ;;  %v39_v45 = vld [vmem:[%s4657_s0 + $0xc0] sm:$0xff]  ;;  %v40_v48 = vld [vmem:[%s4657_s0 + $0xc8] sm:$0xff]  ;;  %v3434_v55 = vld [vmem:[%s4656_s1 + $0x1b0] sm:$0xff]  }
  0x11   :  { %2954 = vmatpush3.bf16.msra.mxu1 %v3410_v15  ;;  %2891 = vmatprep.subr.bf16.mxu0 %v3411_v16  ;;  %v2644_v46 = vcombine.high %v31_v44, %v39_v45  ;;  %v2646_v49 = vcombine.high %v32_v47, %v40_v48  ;;  %v2643_v51 = vcombine.low %v31_v44, %v39_v45  ;;  %v47_v56 = vld [vmem:[%s4657_s0 + $0x100] sm:$0xff]  ;;  %v48_v58 = vld [vmem:[%s4657_s0 + $0x108] sm:$0xff]  ;;  %v3449_v32 = vld [vmem:[%s4656_s1 + $0x1d0] sm:$0xff]  }
  0x12   :  { %2955 = vmatprep.subr.bf16.mxu1 %v3412_v17  ;;  %1846 = vmatprep.mubr.bf16.mxu0 %v2628_v36  ;;  %v2645_v53 = vcombine.low %v32_v47, %v40_v48  ;;  %v55_v57 = vld [vmem:[%s4657_s0 + $0x140] sm:$0xff]  ;;  %v56_v59 = vld [vmem:[%s4657_s0 + $0x148] sm:$0xff]  ;;  %v3450_v33 = vld [vmem:[%s4656_s1 + $0x190] sm:$0xff]  }
  0x13   :  { %1943 = vmatprep.mubr.bf16.mxu1 %v2630_v39  ;;  %v2660_v60 = vcombine.high %v47_v56, %v55_v57  ;;  %v2662_v61 = vcombine.high %v48_v58, %v56_v59  ;;  %v3435_v62 = vld [vmem:[%s4656_s1 + $0x168] sm:$0xff]   ;;  %v2659_v2 = vcombine.low %v47_v56, %v55_v57  ;;  %v63_v3 = vld [vmem:[%s4657_s0 + $0x180] sm:$0xff]  ;;  %v2661_v6 = vcombine.low %v48_v58, %v56_v59  ;;  %v3459_v56 = vld [vmem:[%s4656_s1 + $0x278] sm:$0xff]  }
  0x14   :  { %2892 = vmatpush3.bf16.msra.mxu0 %v3413_v18  ;;  %v3436_v63 = vld [vmem:[%s4656_s1 + $0x128] sm:$0xff]   ;;  %v71_v4 = vld [vmem:[%s4657_s0 + $0x1c0] sm:$0xff]  ;;  %v3443_v18 = vld [vmem:[%s4656_s1 + $0x158] sm:$0xff]  }
  0x15   :  { %2956 = vmatpush3.bf16.msra.mxu1 %v3414_v19  ;;  %2893 = vmatprep.subr.bf16.mxu0 %v3415_v20  ;;  %v3437_v0 = vld [vmem:[%s4656_s1 + $0x1e8] sm:$0xff]   ;;  %v2676_v7 = vcombine.high %v63_v3, %v71_v4  ;;  %v3439_v10 = vld [vmem:[%s4656_s1 + $0x160] sm:$0xff]   ;;  %v2675_v19 = vcombine.low %v63_v3, %v71_v4  ;;  %v3444_v20 = vld [vmem:[%s4656_s1 + $0x118] sm:$0xff]  }
  0x16   :  { %2957 = vmatprep.subr.bf16.mxu1 %v3416_v21  ;;  %v3438_v1 = vld [vmem:[%s4656_s1 + $0x1a8] sm:$0xff]   ;;  %v3440_v11 = vld [vmem:[%s4656_s1 + $0x120] sm:$0xff]   ;;  %v3461_v58 = vld [vmem:[%s4656_s1 + $0x2f8] sm:$0xff]  }
  0x17   :  { %v64_v5 = vld [vmem:[%s4657_s0 + $0x188] sm:$0xff]  ;;  %v3441_v12 = vld [vmem:[%s4656_s1 + $0x1e0] sm:$0xff]   ;;  %v26_v3 = vld [vmem:[%s4657_s0 + $0x58] sm:$0xff] }
  0x18   :  { %2894 = vmatpush3.bf16.msra.mxu0 %v3417_v22  ;;  %v72_v8 = vld [vmem:[%s4657_s0 + $0x1c8] sm:$0xff]  ;;  %v3442_v13 = vld [vmem:[%s4656_s1 + $0x1a0] sm:$0xff]  }
  0x19   :  { %2958 = vmatpush3.bf16.msra.mxu1 %v3418_v23  ;;  %2895 = vmatprep.subr.bf16.mxu0 %v3419_v24  ;;  %v2678_v9 = vcombine.high %v64_v5, %v72_v8  ;;  %v79_v14 = vld [vmem:[%s4657_s0 + $0x200] sm:$0xff]  ;;  %v80_v16 = vld [vmem:[%s4657_s0 + $0x208] sm:$0xff]  ;;  %v2677_v21 = vcombine.low %v64_v5, %v72_v8  ;;  %v3445_v23 = vld [vmem:[%s4656_s1 + $0x1d8] sm:$0xff]  }
  0x1a   :  { %2959 = vmatprep.subr.bf16.mxu1 %v3420_v25  ;;  %v87_v15 = vld [vmem:[%s4657_s0 + $0x240] sm:$0xff]  ;;  %v88_v17 = vld [vmem:[%s4657_s0 + $0x248] sm:$0xff]  ;;  %v3446_v25 = vld [vmem:[%s4656_s1 + $0x198] sm:$0xff]  }
  0x1b   :  { %v2692_v22 = vcombine.high %v79_v14, %v87_v15  ;;  %v2694_v24 = vcombine.high %v80_v16, %v88_v17  ;;  %v2691_v34 = vcombine.low %v79_v14, %v87_v15  ;;  %v3452_v39 = vld [vmem:[%s4656_s1 + $0x108] sm:$0xff]   ;;  %v3456_v48 = vld [vmem:[%s4656_s1 + $0x100] sm:$0xff]   ;;  %v33_v8 = vld [vmem:[%s4657_s0 + $0x90] sm:$0xff] }
  0x1c   :  { %2896 = vmatpush3.bf16.msra.mxu0 %v3421_v26  ;;  %v95_v26 = vld [vmem:[%s4657_s0 + $0x280] sm:$0xff]  ;;  %v112_v44 = vld [vmem:[%s4657_s0 + $0x308] sm:$0xff]  ;;  %v3462_v15 = vld [vmem:[%s4656_s1 + $0x2b8] sm:$0xff]  }
  0x1d   :  { %2960 = vmatpush3.bf16.msra.mxu1 %v3422_v27  ;;  %2897 = vmatprep.subr.bf16.mxu0 %v3423_v28  ;;  %v103_v27 = vld [vmem:[%s4657_s0 + $0x2c0] sm:$0xff]  ;;  %v3447_v28 = vld [vmem:[%s4656_s1 + $0x150] sm:$0xff]   ;;  %v120_v45 = vld [vmem:[%s4657_s0 + $0x348] sm:$0xff] }
  0x1e   :  { %2961 = vmatprep.subr.bf16.mxu1 %v3424_v29  ;;  %v96_v29 = vld [vmem:[%s4657_s0 + $0x288] sm:$0xff]  ;;  %v2708_v36 = vcombine.high %v95_v26, %v103_v27  ;;  %v2707_v47 = vcombine.low %v95_v26, %v103_v27 }
  0x1f   :  { %v128_v57 = vld [vmem:[%s4657_s0 + $0x388] sm:$0xff] }
  0x20   :  { %2898 = vmatpush3.bf16.msra.mxu0 %v3425_v30  ;;  %v104_v30 = vld [vmem:[%s4657_s0 + $0x2c8] sm:$0xff] }
  0x21   :  { %2962 = vmatpush3.bf16.msra.mxu1 %v3426_v31  ;;  %3011 = vmatprep.subr.bf16.mxu0 %v3427_v40  ;;  %v3448_v31 = vld [vmem:[%s4656_s1 + $0x110] sm:$0xff]   ;;  %v2710_v37 = vcombine.high %v96_v29, %v104_v30  ;;  %v3453_v40 = vld [vmem:[%s4656_s1 + $0x1c8] sm:$0xff]  }
  0x22   :  { %3075 = vmatprep.subr.bf16.mxu1 %v3429_v42  ;;  %v119_v42 = vld [vmem:[%s4657_s0 + $0x340] sm:$0xff]  ;;  %v136_v59 = vld [vmem:[%s4657_s0 + $0x3c8] sm:$0xff] }
  0x23   :  { %1847 = vmatmul.mubr.bf16.vlgmr.msra.gmra.mxu0 %v2627_v35  ;;  %v2693_v35 = vcombine.low %v80_v16, %v88_v17  ;;  %v2741_v5 = vcombine.low %v128_v57, %v136_v59  ;;  %v3463_v17 = vld [vmem:[%s4656_s1 + $0x270] sm:$0xff]   ;;  %v3467_v26 = vld [vmem:[%s4656_s1 + $0x268] sm:$0xff]  }
  0x24   :  { %1944 = vmatmul.mubr.bf16.vlgmr.msra.gmra.mxu1 %v2629_v38  ;;  %3012 = vmatpush3.bf16.msra.mxu0 %v3428_v41  ;;  %v3451_v38 = vld [vmem:[%s4656_s1 + $0x148] sm:$0xff]   ;;  %v111_v41 = vld [vmem:[%s4657_s0 + $0x300] sm:$0xff] }
  0x25   :  { %3076 = vmatpush3.bf16.msra.mxu1 %v3430_v43  ;;  %1854 = vmatprep.mubr.bf16.mxu0 %v2644_v46  ;;  %v3454_v43 = vld [vmem:[%s4656_s1 + $0x188] sm:$0xff]   ;;  %v3455_v46 = vld [vmem:[%s4656_s1 + $0x140] sm:$0xff]  }
  0x26   :  { %1951 = vmatprep.mubr.bf16.mxu1 %v2646_v49  ;;  %3013 = vmatprep.subr.bf16.mxu0 %v3431_v50  ;;  %v2709_v49 = vcombine.low %v96_v29, %v104_v30  ;;  %v2724_v50 = vcombine.high %v111_v41, %v119_v42  ;;  %v3469_v27 = vld [vmem:[%s4656_s1 + $0x2e8] sm:$0xff]  }
  0x27   :  { %3077 = vmatprep.subr.bf16.mxu1 %v3433_v54  ;;  %v127_v54 = vld [vmem:[%s4657_s0 + $0x380] sm:$0xff] }
  0x28   :  { %3014 = vmatpush3.bf16.msra.mxu0 %v3432_v52  ;;  %v2726_v52 = vcombine.high %v112_v44, %v120_v45 }
  0x29   :  { %3078 = vmatpush3.bf16.msra.mxu1 %v3434_v55  ;;  %3015 = vmatprep.subr.bf16.mxu0 %v3435_v62  ;;  %v135_v55 = vld [vmem:[%s4657_s0 + $0x3c0] sm:$0xff] }
  0x2a   :  { %3079 = vmatprep.subr.bf16.mxu1 %v3437_v0  ;;  %v2740_v62 = vcombine.high %v127_v54, %v135_v55  ;;  %v17_v0 = vld [vmem:[%s4657_s0 + $0x10] sm:$0xff]  ;;  %v2739_v4 = vcombine.low %v127_v54, %v135_v55  ;;  %v82_v54 = vld [vmem:[%s4657_s0 + $0x218] sm:$0xff] }
  0x2b   :  { %1855 = vmatmul.mubr.bf16.gmra.mxu0 %v2643_v51  ;;  %v3457_v51 = vld [vmem:[%s4656_s1 + $0x1c0] sm:$0xff]   ;;  %v90_v55 = vld [vmem:[%s4657_s0 + $0x258] sm:$0xff] }
  0x2c   :  { %1952 = vmatmul.mubr.bf16.gmra.mxu1 %v2645_v53  ;;  %1862 = vmatprep.mubr.bf16.mxu0 %v2660_v60  ;;  %v3458_v53 = vld [vmem:[%s4656_s1 + $0x180] sm:$0xff]   ;;  %v2723_v60 = vcombine.low %v111_v41, %v119_v42  ;;  %v3475_v42 = vld [vmem:[%s4656_s1 + $0x258] sm:$0xff]  }
  0x2d   :  { %1959 = vmatprep.mubr.bf16.mxu1 %v2662_v61  ;;  %3016 = vmatpush3.bf16.msra.mxu0 %v3436_v63  ;;  %v2725_v61 = vcombine.low %v112_v44, %v120_v45  ;;  %v2742_v63 = vcombine.high %v128_v57, %v136_v59  ;;  %v3474_v41 = vld [vmem:[%s4656_s1 + $0x2a0] sm:$0xff]   ;;  %v3477_v44 = vld [vmem:[%s4656_s1 + $0x2d8] sm:$0xff]   ;;  %v3482_v57 = vld [vmem:[%s4656_s1 + $0x290] sm:$0xff]  }
  0x2e   :  { %3080 = vmatpush3.bf16.msra.mxu1 %v3438_v1  ;;  %3017 = vmatprep.subr.bf16.mxu0 %v3439_v10  ;;  %v25_v1 = vld [vmem:[%s4657_s0 + $0x50] sm:$0xff] }
  0x2f   :  { %3081 = vmatprep.subr.bf16.mxu1 %v3441_v12  ;;  %v2631_v10 = vcombine.low %v17_v0, %v25_v1  ;;  %v34_v12 = vld [vmem:[%s4657_s0 + $0x98] sm:$0xff] }
  0x31   :  { %3018 = vmatpush3.bf16.msra.mxu0 %v3440_v11  ;;  %v3460_v11 = vld [vmem:[%s4656_s1 + $0x238] sm:$0xff]  }
  0x32   :  { %3082 = vmatpush3.bf16.msra.mxu1 %v3442_v13  ;;  %3019 = vmatprep.subr.bf16.mxu0 %v3443_v18  ;;  %v42_v13 = vld [vmem:[%s4657_s0 + $0xd8] sm:$0xff] }
  0x33   :  { %1863 = vmatmul.mubr.bf16.gmra.mxu0 %v2659_v2  ;;  %3083 = vmatprep.subr.bf16.mxu1 %v3445_v23  ;;  %v18_v2 = vld [vmem:[%s4657_s0 + $0x18] sm:$0xff]  ;;  %v2650_v18 = vcombine.high %v34_v12, %v42_v13  ;;  %v57_v23 = vld [vmem:[%s4657_s0 + $0x150] sm:$0xff]  ;;  %v2649_v29 = vcombine.low %v34_v12, %v42_v13  ;;  %v2697_v13 = vcombine.low %v82_v54, %v90_v55 }
  0x34   :  { %1960 = vmatmul.mubr.bf16.gmra.mxu1 %v2661_v6  ;;  %1870 = vmatprep.mubr.bf16.mxu0 %v2676_v7  ;;  %v2632_v6 = vcombine.high %v17_v0, %v25_v1  ;;  %v2634_v7 = vcombine.high %v18_v2, %v26_v3  ;;  %v2633_v14 = vcombine.low %v18_v2, %v26_v3  ;;  %v3484_v0 = vld [vmem:[%s4656_s1 + $0x208] sm:$0xff]   ;;  %v3487_v2 = vld [vmem:[%s4656_s1 + $0x240] sm:$0xff]   ;;  %v97_v3 = vld [vmem:[%s4657_s0 + $0x290] sm:$0xff] }
  0x35   :  { %1967 = vmatprep.mubr.bf16.mxu1 %v2678_v9  ;;  %3020 = vmatpush3.bf16.msra.mxu0 %v3444_v20  ;;  %v41_v9 = vld [vmem:[%s4657_s0 + $0xd0] sm:$0xff]  ;;  %v3486_v1 = vld [vmem:[%s4656_s1 + $0x288] sm:$0xff]   ;;  %v3493_v12 = vld [vmem:[%s4656_s1 + $0x3f8] sm:$0xff]  }
  0x36   :  { %3084 = vmatpush3.bf16.msra.mxu1 %v3446_v25  ;;  %3021 = vmatprep.subr.bf16.mxu0 %v3447_v28  ;;  %v2648_v16 = vcombine.high %v33_v8, %v41_v9  ;;  %v3465_v20 = vld [vmem:[%s4656_s1 + $0x2f0] sm:$0xff]   ;;  %v58_v25 = vld [vmem:[%s4657_s0 + $0x158] sm:$0xff]  ;;  %v2647_v28 = vcombine.low %v33_v8, %v41_v9  ;;  %v3488_v8 = vld [vmem:[%s4656_s1 + $0x200] sm:$0xff]  }
  0x37   :  { %3085 = vmatprep.subr.bf16.mxu1 %v3449_v32  ;;  %v3468_v32 = vld [vmem:[%s4656_s1 + $0x228] sm:$0xff]   ;;  %v3490_v9 = vld [vmem:[%s4656_s1 + $0x280] sm:$0xff]  }
  0x39   :  { %3022 = vmatpush3.bf16.msra.mxu0 %v3448_v31 }
  0x3a   :  { %3086 = vmatpush3.bf16.msra.mxu1 %v3450_v33  ;;  %3023 = vmatprep.subr.bf16.mxu0 %v3451_v38  ;;  %v3470_v33 = vld [vmem:[%s4656_s1 + $0x2a8] sm:$0xff]   ;;  %v66_v38 = vld [vmem:[%s4657_s0 + $0x198] sm:$0xff] }
  0x3b   :  { %1871 = vmatmul.mubr.bf16.gmra.mxu0 %v2675_v19  ;;  %3087 = vmatprep.subr.bf16.mxu1 %v3453_v40  ;;  %v3464_v19 = vld [vmem:[%s4656_s1 + $0x230] sm:$0xff]   ;;  %v3472_v40 = vld [vmem:[%s4656_s1 + $0x220] sm:$0xff]  }
  0x3c   :  { %1968 = vmatmul.mubr.bf16.gmra.mxu1 %v2677_v21  ;;  %1878 = vmatprep.mubr.bf16.mxu0 %v2692_v22  ;;  %v3466_v21 = vld [vmem:[%s4656_s1 + $0x2b0] sm:$0xff]  }
  0x3d   :  { %1975 = vmatprep.mubr.bf16.mxu1 %v2694_v24  ;;  %3024 = vmatpush3.bf16.msra.mxu0 %v3452_v39  ;;  %v49_v22 = vld [vmem:[%s4657_s0 + $0x110] sm:$0xff]  ;;  %v50_v24 = vld [vmem:[%s4657_s0 + $0x118] sm:$0xff] }
  0x3e   :  { %3088 = vmatpush3.bf16.msra.mxu1 %v3454_v43  ;;  %3025 = vmatprep.subr.bf16.mxu0 %v3455_v46  ;;  %v2664_v30 = vcombine.high %v49_v22, %v57_v23  ;;  %v2666_v31 = vcombine.high %v50_v24, %v58_v25  ;;  %v74_v39 = vld [vmem:[%s4657_s0 + $0x1d8] sm:$0xff]  ;;  %v2663_v43 = vcombine.low %v49_v22, %v57_v23 }
  0x3f   :  { %3089 = vmatprep.subr.bf16.mxu1 %v3457_v51  ;;  %v2665_v45 = vcombine.low %v50_v24, %v58_v25  ;;  %v81_v51 = vld [vmem:[%s4657_s0 + $0x210] sm:$0xff] }
  0x40   :  { %v129_v24 = vld [vmem:[%s4657_s0 + $0x390] sm:$0xff] }
  0x41   :  { %3026 = vmatpush3.bf16.msra.mxu0 %v3456_v48  ;;  %v2682_v48 = vcombine.high %v66_v38, %v74_v39  ;;  %v137_v25 = vld [vmem:[%s4657_s0 + $0x3d0] sm:$0xff] }
  0x42   :  { %3090 = vmatpush3.bf16.msra.mxu1 %v3458_v53  ;;  %3139 = vmatprep.subr.bf16.mxu0 %v3459_v56  ;;  %v89_v53 = vld [vmem:[%s4657_s0 + $0x250] sm:$0xff] }
  0x43   :  { %1879 = vmatmul.mubr.bf16.gmra.mxu0 %v2691_v34  ;;  %3203 = vmatprep.subr.bf16.mxu1 %v3461_v58  ;;  %v3471_v34 = vld [vmem:[%s4656_s1 + $0x260] sm:$0xff]   ;;  %v3480_v56 = vld [vmem:[%s4656_s1 + $0x210] sm:$0xff]   ;;  %v3483_v58 = vld [vmem:[%s4656_s1 + $0x248] sm:$0xff]  }
  0x44   :  { %1976 = vmatmul.mubr.bf16.gmra.mxu1 %v2693_v35  ;;  %1886 = vmatprep.mubr.bf16.mxu0 %v2708_v36  ;;  %v65_v35 = vld [vmem:[%s4657_s0 + $0x190] sm:$0xff] }
  0x45   :  { %1983 = vmatprep.mubr.bf16.mxu1 %v2710_v37  ;;  %v73_v36 = vld [vmem:[%s4657_s0 + $0x1d0] sm:$0xff]  ;;  %v3473_v37 = vld [vmem:[%s4656_s1 + $0x2e0] sm:$0xff]  }
  0x46   :  { %v2680_v46 = vcombine.high %v65_v35, %v73_v36  ;;  %v2679_v59 = vcombine.low %v65_v35, %v73_v36  ;;  %v28_v35 = vld [vmem:[%s4657_s0 + $0x68] sm:$0xff]  ;;  %v2743_v36 = vcombine.low %v129_v24, %v137_v25 }
  0x4b   :  { %1887 = vmatmul.mubr.bf16.gmra.mxu0 %v2707_v47  ;;  %v3476_v47 = vld [vmem:[%s4656_s1 + $0x218] sm:$0xff]  }
  0x4c   :  { %1984 = vmatmul.mubr.bf16.gmra.mxu1 %v2709_v49  ;;  %1894 = vmatprep.mubr.bf16.mxu0 %v2724_v50  ;;  %v3478_v49 = vld [vmem:[%s4656_s1 + $0x298] sm:$0xff]   ;;  %v3479_v50 = vld [vmem:[%s4656_s1 + $0x250] sm:$0xff]  }
  0x4d   :  { %1991 = vmatprep.mubr.bf16.mxu1 %v2726_v52  ;;  %v3481_v52 = vld [vmem:[%s4656_s1 + $0x2d0] sm:$0xff]  }
  0x53   :  { %1895 = vmatmul.mubr.bf16.gmra.mxu0 %v2723_v60  ;;  %v3485_v60 = vld [vmem:[%s4656_s1 + $0x2c8] sm:$0xff]  }
  0x54   :  { %1992 = vmatmul.mubr.bf16.gmra.mxu1 %v2725_v61  ;;  %1902 = vmatprep.mubr.bf16.mxu0 %v2740_v62  ;;  %v2681_v61 = vcombine.low %v66_v38, %v74_v39  ;;  %v2696_v62 = vcombine.high %v81_v51, %v89_v53 }
  0x55   :  { %1999 = vmatprep.mubr.bf16.mxu1 %v2742_v63  ;;  %v2698_v63 = vcombine.high %v82_v54, %v90_v55  ;;  %v51_v54 = vld [vmem:[%s4657_s0 + $0x120] sm:$0xff] }
  0x56   :  { %v59_v55 = vld [vmem:[%s4657_s0 + $0x160] sm:$0xff] }
  0x5b   :  { %1903 = vmatmul.mubr.bf16.gmra.mxu0 %v2739_v4  ;;  %v105_v4 = vld [vmem:[%s4657_s0 + $0x2d0] sm:$0xff] }
  0x5c   :  { %2000 = vmatmul.mubr.bf16.gmra.mxu1 %v2741_v5  ;;  %2040 = vmatprep.mubr.bf16.mxu0 %v2632_v6  ;;  %v3489_v5 = vld [vmem:[%s4656_s1 + $0x2c0] sm:$0xff]   ;;  %v98_v6 = vld [vmem:[%s4657_s0 + $0x298] sm:$0xff] }
  0x5d   :  { %2137 = vmatprep.mubr.bf16.mxu1 %v2634_v7  ;;  %v106_v7 = vld [vmem:[%s4657_s0 + $0x2d8] sm:$0xff] }
  0x63   :  { %2041 = vmatmul.mubr.bf16.vlgmr.msra.gmra.mxu0 %v2631_v10  ;;  %v3491_v10 = vld [vmem:[%s4656_s1 + $0x378] sm:$0xff]  }
  0x64   :  { %2138 = vmatmul.mubr.bf16.vlgmr.msra.gmra.mxu1 %v2633_v14  ;;  %3140 = vmatpush3.bf16.msra.mxu0 %v3460_v11  ;;  %v2695_v11 = vcombine.low %v81_v51, %v89_v53  ;;  %v2712_v14 = vcombine.high %v97_v3, %v105_v4  ;;  %v3497_v51 = vld [vmem:[%s4656_s1 + $0x3f0] sm:$0xff]  }
  0x65   :  { %3204 = vmatpush3.bf16.msra.mxu1 %v3462_v15  ;;  %2048 = vmatprep.mubr.bf16.mxu0 %v2648_v16  ;;  %v2714_v15 = vcombine.high %v98_v6, %v106_v7  ;;  %v113_v16 = vld [vmem:[%s4657_s0 + $0x310] sm:$0xff] }
  0x66   :  { %2145 = vmatprep.mubr.bf16.mxu1 %v2650_v18  ;;  %3141 = vmatprep.subr.bf16.mxu0 %v3463_v17  ;;  %v121_v17 = vld [vmem:[%s4657_s0 + $0x350] sm:$0xff]  ;;  %v114_v18 = vld [vmem:[%s4657_s0 + $0x318] sm:$0xff] }
  0x67   :  { %3205 = vmatprep.subr.bf16.mxu1 %v3465_v20  ;;  %v2711_v20 = vcombine.low %v97_v3, %v105_v4  ;;  %v2728_v22 = vcombine.high %v113_v16, %v121_v17  ;;  %v3498_v53 = vld [vmem:[%s4656_s1 + $0x3b0] sm:$0xff]   ;;  %v3505_v3 = vld [vmem:[%s4656_s1 + $0x3e0] sm:$0xff]  }
  0x68   :  { %3142 = vmatpush3.bf16.msra.mxu0 %v3464_v19  ;;  %v122_v19 = vld [vmem:[%s4657_s0 + $0x358] sm:$0xff]  ;;  %v67_v4 = vld [vmem:[%s4657_s0 + $0x1a0] sm:$0xff] }
  0x69   :  { %3206 = vmatpush3.bf16.msra.mxu1 %v3466_v21  ;;  %3143 = vmatprep.subr.bf16.mxu0 %v3467_v26  ;;  %v2713_v21 = vcombine.low %v98_v6, %v106_v7  ;;  %v2730_v23 = vcombine.high %v114_v18, %v122_v19  ;;  %v130_v26 = vld [vmem:[%s4657_s0 + $0x398] sm:$0xff]  ;;  %v68_v6 = vld [vmem:[%s4657_s0 + $0x1a8] sm:$0xff]  ;;  %v3504_v7 = vld [vmem:[%s4656_s1 + $0x320] sm:$0xff]  }
  0x6a   :  { %3207 = vmatprep.subr.bf16.mxu1 %v3469_v27  ;;  %v138_v27 = vld [vmem:[%s4657_s0 + $0x3d8] sm:$0xff] }
  0x6b   :  { %2049 = vmatmul.mubr.bf16.gmra.mxu0 %v2647_v28  ;;  %v2727_v28 = vcombine.low %v113_v16, %v121_v17  ;;  %v3508_v16 = vld [vmem:[%s4656_s1 + $0x318] sm:$0xff]  }
  0x6c   :  { %2146 = vmatmul.mubr.bf16.gmra.mxu1 %v2649_v29  ;;  %2056 = vmatprep.mubr.bf16.mxu0 %v2664_v30  ;;  %v2729_v29 = vcombine.low %v114_v18, %v122_v19  ;;  %v2744_v30 = vcombine.high %v129_v24, %v137_v25  ;;  %v3510_v17 = vld [vmem:[%s4656_s1 + $0x398] sm:$0xff]   ;;  %v3511_v18 = vld [vmem:[%s4656_s1 + $0x350] sm:$0xff]   ;;  %v92_v24 = vld [vmem:[%s4657_s0 + $0x268] sm:$0xff] }
  0x6d   :  { %2153 = vmatprep.mubr.bf16.mxu1 %v2666_v31  ;;  %3144 = vmatpush3.bf16.msra.mxu0 %v3468_v32  ;;  %v2746_v31 = vcombine.high %v130_v26, %v138_v27  ;;  %v19_v32 = vld [vmem:[%s4657_s0 + $0x20] sm:$0xff]  ;;  %v3513_v19 = vld [vmem:[%s4656_s1 + $0x3d0] sm:$0xff]  }
  0x6e   :  { %3208 = vmatpush3.bf16.msra.mxu1 %v3470_v33  ;;  %3145 = vmatprep.subr.bf16.mxu0 %v3471_v34  ;;  %v27_v33 = vld [vmem:[%s4657_s0 + $0x60] sm:$0xff]  ;;  %v20_v34 = vld [vmem:[%s4657_s0 + $0x28] sm:$0xff]  ;;  %v3514_v25 = vld [vmem:[%s4656_s1 + $0x390] sm:$0xff]  }
  0x6f   :  { %3209 = vmatprep.subr.bf16.mxu1 %v3473_v37  ;;  %v2745_v37 = vcombine.low %v130_v26, %v138_v27  ;;  %v2636_v38 = vcombine.high %v19_v32, %v27_v33  ;;  %v2638_v39 = vcombine.high %v20_v34, %v28_v35  ;;  %v3515_v26 = vld [vmem:[%s4656_s1 + $0x348] sm:$0xff]  }
  0x71   :  { %3146 = vmatpush3.bf16.msra.mxu0 %v3472_v40  ;;  %v35_v40 = vld [vmem:[%s4657_s0 + $0xa0] sm:$0xff] }
  0x72   :  { %3210 = vmatpush3.bf16.msra.mxu1 %v3474_v41  ;;  %3147 = vmatprep.subr.bf16.mxu0 %v3475_v42  ;;  %v43_v41 = vld [vmem:[%s4657_s0 + $0xe0] sm:$0xff]  ;;  %v2635_v42 = vcombine.low %v19_v32, %v27_v33  ;;  %v3516_v32 = vld [vmem:[%s4656_s1 + $0x308] sm:$0xff]  }
  0x73   :  { %2057 = vmatmul.mubr.bf16.gmra.mxu0 %v2663_v43  ;;  %3211 = vmatprep.subr.bf16.mxu1 %v3477_v44  ;;  %v36_v43 = vld [vmem:[%s4657_s0 + $0xa8] sm:$0xff] }
  0x74   :  { %2154 = vmatmul.mubr.bf16.gmra.mxu1 %v2665_v45  ;;  %2064 = vmatprep.mubr.bf16.mxu0 %v2680_v46  ;;  %v44_v44 = vld [vmem:[%s4657_s0 + $0xe8] sm:$0xff]  ;;  %v2637_v45 = vcombine.low %v20_v34, %v28_v35  ;;  %v3492_v46 = vld [vmem:[%s4656_s1 + $0x338] sm:$0xff]   ;;  %v3519_v34 = vld [vmem:[%s4656_s1 + $0x340] sm:$0xff]  }
  0x75   :  { %2161 = vmatprep.mubr.bf16.mxu1 %v2682_v48  ;;  %3148 = vmatpush3.bf16.msra.mxu0 %v3476_v47  ;;  %v3494_v47 = vld [vmem:[%s4656_s1 + $0x3b8] sm:$0xff]   ;;  %v2652_v48 = vcombine.high %v35_v40, %v43_v41  ;;  %v3518_v33 = vld [vmem:[%s4656_s1 + $0x388] sm:$0xff]   ;;  %v3521_v35 = vld [vmem:[%s4656_s1 + $0x3c0] sm:$0xff]  }
  0x76   :  { %3212 = vmatpush3.bf16.msra.mxu1 %v3478_v49  ;;  %3149 = vmatprep.subr.bf16.mxu0 %v3479_v50  ;;  %v2654_v49 = vcombine.high %v36_v43, %v44_v44  ;;  %v3495_v50 = vld [vmem:[%s4656_s1 + $0x370] sm:$0xff]  }
  0x77   :  { %3213 = vmatprep.subr.bf16.mxu1 %v3481_v52  ;;  %v3496_v52 = vld [vmem:[%s4656_s1 + $0x330] sm:$0xff]  }
  0x79   :  { %3150 = vmatpush3.bf16.msra.mxu0 %v3480_v56  ;;  %v3499_v56 = vld [vmem:[%s4656_s1 + $0x368] sm:$0xff]  }
  0x7a   :  { %3214 = vmatpush3.bf16.msra.mxu1 %v3482_v57  ;;  %3151 = vmatprep.subr.bf16.mxu0 %v3483_v58  ;;  %v52_v57 = vld [vmem:[%s4657_s0 + $0x128] sm:$0xff] }
  0x7b   :  { %2065 = vmatmul.mubr.bf16.gmra.mxu0 %v2679_v59  ;;  %3215 = vmatprep.subr.bf16.mxu1 %v3485_v60  ;;  %v60_v58 = vld [vmem:[%s4657_s0 + $0x168] sm:$0xff]  ;;  %v2651_v60 = vcombine.low %v35_v40, %v43_v41  ;;  %v3522_v41 = vld [vmem:[%s4656_s1 + $0x380] sm:$0xff]  }
  0x7c   :  { %2162 = vmatmul.mubr.bf16.gmra.mxu1 %v2681_v61  ;;  %2072 = vmatprep.mubr.bf16.mxu0 %v2696_v62  ;;  %v3501_v59 = vld [vmem:[%s4656_s1 + $0x3e8] sm:$0xff]   ;;  %v2653_v61 = vcombine.low %v36_v43, %v44_v44  ;;  %v2668_v62 = vcombine.high %v51_v54, %v59_v55 }
  0x7d   :  { %2169 = vmatprep.mubr.bf16.mxu1 %v2698_v63  ;;  %3152 = vmatpush3.bf16.msra.mxu0 %v3484_v0  ;;  %v2670_v63 = vcombine.high %v52_v57, %v60_v58  ;;  %v3500_v0 = vld [vmem:[%s4656_s1 + $0x328] sm:$0xff]  }
  0x7e   :  { %3216 = vmatpush3.bf16.msra.mxu1 %v3486_v1  ;;  %3153 = vmatprep.subr.bf16.mxu0 %v3487_v2  ;;  %v3502_v1 = vld [vmem:[%s4656_s1 + $0x3a8] sm:$0xff]   ;;  %v3503_v2 = vld [vmem:[%s4656_s1 + $0x360] sm:$0xff]  }
  0x7f   :  { %3217 = vmatprep.subr.bf16.mxu1 %v3489_v5  ;;  %v75_v5 = vld [vmem:[%s4657_s0 + $0x1e0] sm:$0xff]  ;;  %v108_v40 = vld [vmem:[%s4657_s0 + $0x2e8] sm:$0xff] }
  0x80   :  { %v2683_v27 = vcombine.low %v67_v4, %v75_v5 }
  0x81   :  { %3154 = vmatpush3.bf16.msra.mxu0 %v3488_v8  ;;  %v76_v8 = vld [vmem:[%s4657_s0 + $0x1e8] sm:$0xff] }
  0x82   :  { %3218 = vmatpush3.bf16.msra.mxu1 %v3490_v9  ;;  %3267 = vmatprep.subr.bf16.mxu0 %v3491_v10  ;;  %v3506_v9 = vld [vmem:[%s4656_s1 + $0x3a0] sm:$0xff]   ;;  %v3507_v10 = vld [vmem:[%s4656_s1 + $0x358] sm:$0xff]  }
  0x83   :  { %2073 = vmatmul.mubr.bf16.gmra.mxu0 %v2695_v11  ;;  %3331 = vmatprep.subr.bf16.mxu1 %v3493_v12  ;;  %v2667_v11 = vcombine.low %v51_v54, %v59_v55  ;;  %v3509_v12 = vld [vmem:[%s4656_s1 + $0x3d8] sm:$0xff]   ;;  %v131_v54 = vld [vmem:[%s4657_s0 + $0x3a0] sm:$0xff] }
  0x84   :  { %2170 = vmatmul.mubr.bf16.gmra.mxu1 %v2697_v13  ;;  %2080 = vmatprep.mubr.bf16.mxu0 %v2712_v14  ;;  %v2669_v13 = vcombine.low %v52_v57, %v60_v58  ;;  %v2684_v14 = vcombine.high %v67_v4, %v75_v5  ;;  %v139_v55 = vld [vmem:[%s4657_s0 + $0x3e0] sm:$0xff]  ;;  %v140_v57 = vld [vmem:[%s4657_s0 + $0x3e8] sm:$0xff] }
  0x85   :  { %2177 = vmatprep.mubr.bf16.mxu1 %v2714_v15  ;;  %v2686_v15 = vcombine.high %v68_v6, %v76_v8 }
  0x8b   :  { %2081 = vmatmul.mubr.bf16.gmra.mxu0 %v2711_v20  ;;  %v83_v20 = vld [vmem:[%s4657_s0 + $0x220] sm:$0xff] }
  0x8c   :  { %2178 = vmatmul.mubr.bf16.gmra.mxu1 %v2713_v21  ;;  %2088 = vmatprep.mubr.bf16.mxu0 %v2728_v22  ;;  %v91_v21 = vld [vmem:[%s4657_s0 + $0x260] sm:$0xff]  ;;  %v84_v22 = vld [vmem:[%s4657_s0 + $0x228] sm:$0xff] }
  0x8d   :  { %2185 = vmatprep.mubr.bf16.mxu1 %v2730_v23  ;;  %v3512_v23 = vld [vmem:[%s4656_s1 + $0x310] sm:$0xff]   ;;  %v2701_v43 = vcombine.low %v84_v22, %v92_v24 }
  0x93   :  { %2089 = vmatmul.mubr.bf16.gmra.mxu0 %v2727_v28  ;;  %v3517_v28 = vld [vmem:[%s4656_s1 + $0x3c8] sm:$0xff]  }
  0x94   :  { %2186 = vmatmul.mubr.bf16.gmra.mxu1 %v2729_v29  ;;  %2096 = vmatprep.mubr.bf16.mxu0 %v2744_v30  ;;  %v2685_v29 = vcombine.low %v68_v6, %v76_v8  ;;  %v2700_v30 = vcombine.high %v83_v20, %v91_v21  ;;  %v37_v6 = vld [vmem:[%s4657_s0 + $0xb0] sm:$0xff]  ;;  %v38_v8 = vld [vmem:[%s4657_s0 + $0xb8] sm:$0xff] }
  0x95   :  { %2193 = vmatprep.mubr.bf16.mxu1 %v2746_v31  ;;  %v2702_v31 = vcombine.high %v84_v22, %v92_v24  ;;  %v54_v22 = vld [vmem:[%s4657_s0 + $0x138] sm:$0xff] }
  0x9b   :  { %2097 = vmatmul.mubr.bf16.gmra.mxu0 %v2743_v36  ;;  %v99_v36 = vld [vmem:[%s4657_s0 + $0x2a0] sm:$0xff] }
  0x9c   :  { %2194 = vmatmul.mubr.bf16.gmra.mxu1 %v2745_v37  ;;  %2234 = vmatprep.mubr.bf16.mxu0 %v2636_v38  ;;  %v107_v37 = vld [vmem:[%s4657_s0 + $0x2e0] sm:$0xff] }
  0x9d   :  { %2331 = vmatprep.mubr.bf16.mxu1 %v2638_v39  ;;  %v3520_v38 = vld [vmem:[%s4656_s1 + $0x300] sm:$0xff]   ;;  %v100_v39 = vld [vmem:[%s4657_s0 + $0x2a8] sm:$0xff]  ;;  %v2716_v44 = vcombine.high %v99_v36, %v107_v37 }
  0xa3   :  { %2235 = vmatmul.mubr.bf16.vlgmr.msra.gmra.mxu0 %v2635_v42  ;;  %v2699_v42 = vcombine.low %v83_v20, %v91_v21 }
  0xa4   :  { %2332 = vmatmul.mubr.bf16.vlgmr.msra.gmra.mxu1 %v2637_v45  ;;  %3268 = vmatpush3.bf16.msra.mxu0 %v3492_v46  ;;  %v2718_v45 = vcombine.high %v100_v39, %v108_v40  ;;  %v115_v46 = vld [vmem:[%s4657_s0 + $0x320] sm:$0xff] }
  0xa5   :  { %3332 = vmatpush3.bf16.msra.mxu1 %v3494_v47  ;;  %2242 = vmatprep.mubr.bf16.mxu0 %v2652_v48  ;;  %v123_v47 = vld [vmem:[%s4657_s0 + $0x360] sm:$0xff]  ;;  %v116_v48 = vld [vmem:[%s4657_s0 + $0x328] sm:$0xff] }
  0xa6   :  { %2339 = vmatprep.mubr.bf16.mxu1 %v2654_v49  ;;  %3269 = vmatprep.subr.bf16.mxu0 %v3495_v50  ;;  %v124_v49 = vld [vmem:[%s4657_s0 + $0x368] sm:$0xff]  ;;  %v2715_v50 = vcombine.low %v99_v36, %v107_v37  ;;  %v2731_v58 = vcombine.low %v115_v46, %v123_v47 }
  0xa7   :  { %3333 = vmatprep.subr.bf16.mxu1 %v3497_v51  ;;  %v2717_v51 = vcombine.low %v100_v39, %v108_v40 }
  0xa8   :  { %3270 = vmatpush3.bf16.msra.mxu0 %v3496_v52  ;;  %v2732_v52 = vcombine.high %v115_v46, %v123_v47  ;;  %v70_v46 = vld [vmem:[%s4657_s0 + $0x1b8] sm:$0xff] }
  0xa9   :  { %3334 = vmatpush3.bf16.msra.mxu1 %v3498_v53  ;;  %3271 = vmatprep.subr.bf16.mxu0 %v3499_v56  ;;  %v2734_v53 = vcombine.high %v116_v48, %v124_v49  ;;  %v132_v56 = vld [vmem:[%s4657_s0 + $0x3a8] sm:$0xff]  ;;  %v78_v47 = vld [vmem:[%s4657_s0 + $0x1f8] sm:$0xff] }
  0xaa   :  { %3335 = vmatprep.subr.bf16.mxu1 %v3501_v59  ;;  %v2733_v59 = vcombine.low %v116_v48, %v124_v49 }
  0xab   :  { %2243 = vmatmul.mubr.bf16.gmra.mxu0 %v2651_v60  ;;  %v2748_v60 = vcombine.high %v131_v54, %v139_v55 }
  0xac   :  { %2340 = vmatmul.mubr.bf16.gmra.mxu1 %v2653_v61  ;;  %2250 = vmatprep.mubr.bf16.mxu0 %v2668_v62  ;;  %v2750_v61 = vcombine.high %v132_v56, %v140_v57  ;;  %v21_v62 = vld [vmem:[%s4657_s0 + $0x30] sm:$0xff] }
  0xad   :  { %2347 = vmatprep.mubr.bf16.mxu1 %v2670_v63  ;;  %3272 = vmatpush3.bf16.msra.mxu0 %v3500_v0  ;;  %v29_v63 = vld [vmem:[%s4657_s0 + $0x70] sm:$0xff]  ;;  %v22_v0 = vld [vmem:[%s4657_s0 + $0x38] sm:$0xff] }
  0xae   :  { %3336 = vmatpush3.bf16.msra.mxu1 %v3502_v1  ;;  %3273 = vmatprep.subr.bf16.mxu0 %v3503_v2  ;;  %v30_v1 = vld [vmem:[%s4657_s0 + $0x78] sm:$0xff]  ;;  %v2747_v2 = vcombine.low %v131_v54, %v139_v55  ;;  %v2640_v4 = vcombine.high %v21_v62, %v29_v63 }
  0xaf   :  { %3337 = vmatprep.subr.bf16.mxu1 %v3505_v3  ;;  %v2749_v3 = vcombine.low %v132_v56, %v140_v57  ;;  %v2642_v5 = vcombine.high %v22_v0, %v30_v1  ;;  %v2690_v56 = vcombine.high %v70_v46, %v78_v47 }
  0xb1   :  { %3274 = vmatpush3.bf16.msra.mxu0 %v3504_v7  ;;  %v45_v7 = vld [vmem:[%s4657_s0 + $0xf0] sm:$0xff] }
  0xb2   :  { %3338 = vmatpush3.bf16.msra.mxu1 %v3506_v9  ;;  %3275 = vmatprep.subr.bf16.mxu0 %v3507_v10  ;;  %v46_v9 = vld [vmem:[%s4657_s0 + $0xf8] sm:$0xff]  ;;  %v2639_v10 = vcombine.low %v21_v62, %v29_v63 }
  0xb3   :  { %2251 = vmatmul.mubr.bf16.gmra.mxu0 %v2667_v11  ;;  %3339 = vmatprep.subr.bf16.mxu1 %v3509_v12  ;;  %v2641_v11 = vcombine.low %v22_v0, %v30_v1  ;;  %v2656_v12 = vcombine.high %v37_v6, %v45_v7  ;;  %v85_v1 = vld [vmem:[%s4657_s0 + $0x230] sm:$0xff] }
  0xb4   :  { %2348 = vmatmul.mubr.bf16.gmra.mxu1 %v2669_v13  ;;  %2258 = vmatprep.mubr.bf16.mxu0 %v2684_v14  ;;  %v2658_v13 = vcombine.high %v38_v8, %v46_v9 }
  0xb5   :  { %2355 = vmatprep.mubr.bf16.mxu1 %v2686_v15  ;;  %3276 = vmatpush3.bf16.msra.mxu0 %v3508_v16  ;;  %v4242_v16 = vld [vmem:[%s4658_s2] ss:$0 sm:$0xff] }
  0xb6   :  { %3340 = vmatpush3.bf16.msra.mxu1 %v3510_v17  ;;  %3277 = vmatprep.subr.bf16.mxu0 %v3511_v18  ;;  %v53_v18 = vld [vmem:[%s4657_s0 + $0x130] sm:$0xff] }
  0xb7   :  { %3341 = vmatprep.subr.bf16.mxu1 %v3513_v19  ;;  %v61_v19 = vld [vmem:[%s4657_s0 + $0x170] sm:$0xff] }
  0xb9   :  { %3278 = vmatpush3.bf16.msra.mxu0 %v3512_v23  ;;  %v62_v23 = vld [vmem:[%s4657_s0 + $0x178] sm:$0xff] }
  0xba   :  { %3342 = vmatpush3.bf16.msra.mxu1 %v3514_v25  ;;  %3279 = vmatprep.subr.bf16.mxu0 %v3515_v26  ;;  %v2655_v26 = vcombine.low %v37_v6, %v45_v7  ;;  %v86_v6 = vld [vmem:[%s4657_s0 + $0x238] sm:$0xff] }
  0xbb   :  { %2259 = vmatmul.mubr.bf16.gmra.mxu0 %v2683_v27  ;;  %3343 = vmatprep.subr.bf16.mxu1 %v3517_v28  ;;  %v94_v7 = vld [vmem:[%s4657_s0 + $0x278] sm:$0xff] }
  0xbc   :  { %2356 = vmatmul.mubr.bf16.gmra.mxu1 %v2685_v29  ;;  %2266 = vmatprep.mubr.bf16.mxu0 %v2700_v30  ;;  %v2657_v29 = vcombine.low %v38_v8, %v46_v9  ;;  %v2672_v30 = vcombine.high %v53_v18, %v61_v19 }
  0xbd   :  { %2363 = vmatprep.mubr.bf16.mxu1 %v2702_v31  ;;  %3280 = vmatpush3.bf16.msra.mxu0 %v3516_v32  ;;  %v2674_v32 = vcombine.high %v54_v22, %v62_v23 }
  0xbe   :  { %3344 = vmatpush3.bf16.msra.mxu1 %v3518_v33  ;;  %3281 = vmatprep.subr.bf16.mxu0 %v3519_v34 }
  0xbf   :  { %3345 = vmatprep.subr.bf16.mxu1 %v3521_v35 }
  0xc1   :  { %3282 = vmatpush3.bf16.msra.mxu0 %v3520_v38 }
  0xc2   :  { %3346 = vmatpush3.bf16.msra.mxu1 %v3522_v41  ;;  %v69_v41 = vld [vmem:[%s4657_s0 + $0x1b0] sm:$0xff] }
  0xc3   :  { %2267 = vmatmul.mubr.bf16.gmra.mxu0 %v2699_v42  ;;  %v77_v42 = vld [vmem:[%s4657_s0 + $0x1f0] sm:$0xff] }
  0xc4   :  { %2364 = vmatmul.mubr.bf16.gmra.mxu1 %v2701_v43  ;;  %2274 = vmatprep.mubr.bf16.mxu0 %v2716_v44  ;;  %v2688_v54 = vcombine.high %v69_v41, %v77_v42 }
  0xc5   :  { %2371 = vmatprep.mubr.bf16.mxu1 %v2718_v45 }
  0xcb   :  { %2275 = vmatmul.mubr.bf16.gmra.mxu0 %v2715_v50  ;;  %v2671_v50 = vcombine.low %v53_v18, %v61_v19 }
  0xcc   :  { %2372 = vmatmul.mubr.bf16.gmra.mxu1 %v2717_v51  ;;  %2282 = vmatprep.mubr.bf16.mxu0 %v2732_v52 }
  0xcd   :  { %2379 = vmatprep.mubr.bf16.mxu1 %v2734_v53  ;;  %v2673_v53 = vcombine.low %v54_v22, %v62_v23 }
  0xd3   :  { %2283 = vmatmul.mubr.bf16.gmra.mxu0 %v2731_v58 }
  0xd4   :  { %2380 = vmatmul.mubr.bf16.gmra.mxu1 %v2733_v59  ;;  %2290 = vmatprep.mubr.bf16.mxu0 %v2748_v60 }
  0xd5   :  { %2387 = vmatprep.mubr.bf16.mxu1 %v2750_v61 }
  0xdb   :  { %2291 = vmatmul.mubr.bf16.gmra.mxu0 %v2747_v2  ;;  %v93_v2 = vld [vmem:[%s4657_s0 + $0x270] sm:$0xff] }
  0xdc   :  { %2388 = vmatmul.mubr.bf16.gmra.mxu1 %v2749_v3  ;;  %2428 = vmatprep.mubr.bf16.mxu0 %v2640_v4 }
  0xdd   :  { %2525 = vmatprep.mubr.bf16.mxu1 %v2642_v5 }
  0xe3   :  { %v2899_v14 = vpop.f32.mrf.mxu0  ;;  %2429 = vmatmul.mubr.bf16.vlgmr.msra.gmra.mxu0 %v2639_v10  ;;  %v2687_v10 = vcombine.low %v69_v41, %v77_v42 }
  0xe4   :  { %v2963_v15 = vpop.f32.mrf.mxu1  ;;  %2526 = vmatmul.mubr.bf16.vlgmr.msra.gmra.mxu1 %v2641_v11  ;;  %2436 = vmatprep.mubr.bf16.mxu0 %v2656_v12 }
  0xe5   :  { %v2900_v17 = vpop.f32.mrf.mxu0  ;;  %2533 = vmatprep.mubr.bf16.mxu1 %v2658_v13  ;;  %v2689_v13 = vcombine.low %v70_v46, %v78_v47 }
  0xe6   :  { %v2901_v20 = vadd.f32 %v2900_v17, %v2899_v14  ;;  %v2964_v21 = vpop.f32.mrf.mxu1  ;;  %v2704_v14 = vcombine.high %v85_v1, %v93_v2  ;;  %v2706_v17 = vcombine.high %v86_v6, %v94_v7 }
  0xe7   :  { %v2965_v24 = vadd.f32 %v2964_v21, %v2963_v15  ;;  %v2902_v25 = vpop.f32.mrf.mxu0 }
  0xe8   :  { %v1849_v27 = vadd.f32 %v2901_v20, %v4242_v16  ;;  %v2966_v28 = vpop.f32.mrf.mxu1 }
  0xe9   :  { %v2903_v31 = vpop.f32.mrf.mxu0 }
  0xea   :  { %v4257_v33 = vadd.f32 %v2965_v24, %v1849_v27  ;;  %v2904_v34 = vadd.f32 %v2903_v31, %v2902_v25  ;;  %v2967_v35 = vpop.f32.mrf.mxu1  ;;  %v109_v27 = vld [vmem:[%s4657_s0 + $0x2f0] sm:$0xff]  ;;  %v102_v31 = vld [vmem:[%s4657_s0 + $0x2b8] sm:$0xff] }
  0xeb   :  { %v2968_v36 = vadd.f32 %v2967_v35, %v2966_v28  ;;  %v2905_v37 = vpop.f32.mrf.mxu0  ;;  %2437 = vmatmul.mubr.bf16.gmra.mxu0 %v2655_v26  ;;  %v101_v26 = vld [vmem:[%s4657_s0 + $0x2b0] sm:$0xff] }
  0xec   :  { %v1852_v38 = vadd.f32 %v2904_v34, %v4242_v16  ;;  %v2969_v39 = vpop.f32.mrf.mxu1  ;;  %2534 = vmatmul.mubr.bf16.gmra.mxu1 %v2657_v29  ;;  %2444 = vmatprep.mubr.bf16.mxu0 %v2672_v30 }
  0xed   :  { %v2906_v40 = vpop.f32.mrf.mxu0  ;;  %2541 = vmatprep.mubr.bf16.mxu1 %v2674_v32  ;;  %v110_v32 = vld [vmem:[%s4657_s0 + $0x2f8] sm:$0xff] }
  0xee   :  { %v4266_v43 = vadd.f32 %v2968_v36, %v1852_v38  ;;  %v2907_v44 = vadd.f32 %v2906_v40, %v2905_v37  ;;  %v2970_v45 = vpop.f32.mrf.mxu1  ;;  %v2703_v36 = vcombine.low %v85_v1, %v93_v2  ;;  %v2720_v40 = vcombine.high %v101_v26, %v109_v27 }
  0xef   :  { %v2971_v48 = vadd.f32 %v2970_v45, %v2969_v39  ;;  %v2908_v49 = vpop.f32.mrf.mxu0  ;;  %v2705_v39 = vcombine.low %v86_v6, %v94_v7  ;;  %v2722_v42 = vcombine.high %v102_v31, %v110_v32  ;;  %v2721_v1 = vcombine.low %v102_v31, %v110_v32 }
  0xf0   :  { %v1857_v51 = vadd.f32 %v2907_v44, %v4242_v16  ;;  %v2972_v52 = vpop.f32.mrf.mxu1 }
  0xf1   :  { %v2909_v55 = vpop.f32.mrf.mxu0 }
  0xf2   :  { %v4275_v57 = vadd.f32 %v2971_v48, %v1857_v51  ;;  %v2910_v58 = vadd.f32 %v2909_v55, %v2908_v49  ;;  %v2973_v59 = vpop.f32.mrf.mxu1 }
  0xf3   :  { %v2974_v60 = vadd.f32 %v2973_v59, %v2972_v52  ;;  %v2911_v61 = vpop.f32.mrf.mxu0  ;;  %2445 = vmatmul.mubr.bf16.gmra.mxu0 %v2671_v50  ;;  %v117_v52 = vld [vmem:[%s4657_s0 + $0x330] sm:$0xff]  ;;  %v126_v59 = vld [vmem:[%s4657_s0 + $0x378] sm:$0xff] }
  0xf4   :  { %v1860_v62 = vadd.f32 %v2910_v58, %v4242_v16  ;;  %v2975_v63 = vpop.f32.mrf.mxu1  ;;  %2542 = vmatmul.mubr.bf16.gmra.mxu1 %v2673_v53  ;;  %2452 = vmatprep.mubr.bf16.mxu0 %v2688_v54  ;;  %v125_v53 = vld [vmem:[%s4657_s0 + $0x370] sm:$0xff]  ;;  %v118_v58 = vld [vmem:[%s4657_s0 + $0x338] sm:$0xff] }
  0xf5   :  { %v2912_v0 = vpop.f32.mrf.mxu0  ;;  %2549 = vmatprep.mubr.bf16.mxu1 %v2690_v56  ;;  %v2736_v2 = vcombine.high %v117_v52, %v125_v53 }
  0xf6   :  { %v4284_v3 = vadd.f32 %v2974_v60, %v1860_v62  ;;  %v2913_v4 = vadd.f32 %v2912_v0, %v2911_v61  ;;  %v2976_v5 = vpop.f32.mrf.mxu1  ;;  %v2719_v62 = vcombine.low %v101_v26, %v109_v27 }
  0xf7   :  { %v2977_v8 = vadd.f32 %v2976_v5, %v2975_v63  ;;  %v2914_v9 = vpop.f32.mrf.mxu0  ;;  %v2738_v5 = vcombine.high %v118_v58, %v126_v59 }
  0xf8   :  { %v1865_v11 = vadd.f32 %v2913_v4, %v4242_v16  ;;  %v2978_v12 = vpop.f32.mrf.mxu1 }
  0xf9   :  { %v2915_v15 = vpop.f32.mrf.mxu0 }
  0xfa   :  { %v4293_v18 = vadd.f32 %v2977_v8, %v1865_v11  ;;  %v2916_v19 = vadd.f32 %v2915_v15, %v2914_v9  ;;  %v2979_v20 = vpop.f32.mrf.mxu1  ;;  %v141_v15 = vld [vmem:[%s4657_s0 + $0x3f0] sm:$0xff] }
  0xfb   :  { %v2980_v21 = vadd.f32 %v2979_v20, %v2978_v12  ;;  %v2917_v22 = vpop.f32.mrf.mxu0  ;;  %2453 = vmatmul.mubr.bf16.gmra.mxu0 %v2687_v10 }
  0xfc   :  { %v1868_v23 = vadd.f32 %v2916_v19, %v4242_v16  ;;  %v2981_v24 = vpop.f32.mrf.mxu1  ;;  %2550 = vmatmul.mubr.bf16.gmra.mxu1 %v2689_v13  ;;  %2460 = vmatprep.mubr.bf16.mxu0 %v2704_v14  ;;  %v133_v14 = vld [vmem:[%s4657_s0 + $0x3b0] sm:$0xff] }
  0xfd   :  { %v2918_v25 = vpop.f32.mrf.mxu0  ;;  %2557 = vmatprep.mubr.bf16.mxu1 %v2706_v17 }
  0xfe   :  { %v4302_v28 = vadd.f32 %v2980_v21, %v1868_v23  ;;  %v2919_v29 = vadd.f32 %v2918_v25, %v2917_v22  ;;  %v2982_v30 = vpop.f32.mrf.mxu1  ;;  %v134_v21 = vld [vmem:[%s4657_s0 + $0x3b8] sm:$0xff]  ;;  %v2735_v25 = vcombine.low %v117_v52, %v125_v53 }
  0xff   :  { %v2983_v34 = vadd.f32 %v2982_v30, %v2981_v24  ;;  %v2920_v35 = vpop.f32.mrf.mxu0  ;;  %v142_v22 = vld [vmem:[%s4657_s0 + $0x3f8] sm:$0xff]  ;;  %v2752_v30 = vcombine.high %v133_v14, %v141_v15 }
 0x100   :  { %v1873_v37 = vadd.f32 %v2919_v29, %v4242_v16  ;;  %v2984_v38 = vpop.f32.mrf.mxu1  ;;  %v2737_v29 = vcombine.low %v118_v58, %v126_v59  ;;  %v2754_v32 = vcombine.high %v134_v21, %v142_v22  ;;  %v2753_v52 = vcombine.low %v134_v21, %v142_v22 }
 0x101   :  { %v2921_v41 = vpop.f32.mrf.mxu0 }
 0x102   :  { %v4311_v44 = vadd.f32 %v2983_v34, %v1873_v37  ;;  %v2922_v45 = vadd.f32 %v2921_v41, %v2920_v35  ;;  %v2985_v46 = vpop.f32.mrf.mxu1 }
 0x103   :  { %v2986_v47 = vadd.f32 %v2985_v46, %v2984_v38  ;;  %v2923_v48 = vpop.f32.mrf.mxu0  ;;  %2461 = vmatmul.mubr.bf16.gmra.mxu0 %v2703_v36 }
 0x104   :  { %v1876_v49 = vadd.f32 %v2922_v45, %v4242_v16  ;;  %v2987_v50 = vpop.f32.mrf.mxu1  ;;  %2558 = vmatmul.mubr.bf16.gmra.mxu1 %v2705_v39  ;;  %2468 = vmatprep.mubr.bf16.mxu0 %v2720_v40 }
 0x105   :  { %v2924_v51 = vpop.f32.mrf.mxu0  ;;  %2565 = vmatprep.mubr.bf16.mxu1 %v2722_v42 }
 0x106   :  { %v4320_v54 = vadd.f32 %v2986_v47, %v1876_v49  ;;  %v2925_v55 = vadd.f32 %v2924_v51, %v2923_v48  ;;  %v2988_v56 = vpop.f32.mrf.mxu1  ;;  %v2751_v49 = vcombine.low %v133_v14, %v141_v15 }
 0x107   :  { %v2989_v60 = vadd.f32 %v2988_v56, %v2987_v50  ;;  %v2926_v61 = vpop.f32.mrf.mxu0 }
 0x108   :  { %v1881_v63 = vadd.f32 %v2925_v55, %v4242_v16  ;;  %v2990_v0 = vpop.f32.mrf.mxu1 }
 0x109   :  { %v2927_v4 = vpop.f32.mrf.mxu0 }
 0x10a   :  { %v4329_v6 = vadd.f32 %v2989_v60, %v1881_v63  ;;  %v2928_v7 = vadd.f32 %v2927_v4, %v2926_v61  ;;  %v2991_v8 = vpop.f32.mrf.mxu1 }
 0x10b   :  { %v2992_v9 = vadd.f32 %v2991_v8, %v2990_v0  ;;  %v2929_v10 = vpop.f32.mrf.mxu0  ;;  %2469 = vmatmul.mubr.bf16.gmra.mxu0 %v2719_v62 }
 0x10c   :  { %v1884_v11 = vadd.f32 %v2928_v7, %v4242_v16  ;;  %v2993_v12 = vpop.f32.mrf.mxu1  ;;  %2566 = vmatmul.mubr.bf16.gmra.mxu1 %v2721_v1  ;;  %2476 = vmatprep.mubr.bf16.mxu0 %v2736_v2 }
 0x10d   :  { %v2930_v13 = vpop.f32.mrf.mxu0  ;;  %2573 = vmatprep.mubr.bf16.mxu1 %v2738_v5 }
 0x10e   :  { %v4338_v17 = vadd.f32 %v2992_v9, %v1884_v11  ;;  %v2931_v19 = vadd.f32 %v2930_v13, %v2929_v10  ;;  %v2994_v20 = vpop.f32.mrf.mxu1 }
 0x10f   :  { %v2995_v23 = vadd.f32 %v2994_v20, %v2993_v12  ;;  %v2932_v24 = vpop.f32.mrf.mxu0 }
 0x110   :  { %v1889_v26 = vadd.f32 %v2931_v19, %v4242_v16  ;;  %v2996_v27 = vpop.f32.mrf.mxu1 }
 0x111   :  { %v2933_v31 = vpop.f32.mrf.mxu0 }
 0x112   :  { %v4347_v34 = vadd.f32 %v2995_v23, %v1889_v26  ;;  %v2934_v35 = vadd.f32 %v2933_v31, %v2932_v24  ;;  %v2997_v36 = vpop.f32.mrf.mxu1 }
 0x113   :  { %v2998_v37 = vadd.f32 %v2997_v36, %v2996_v27  ;;  %v2935_v38 = vpop.f32.mrf.mxu0  ;;  %2477 = vmatmul.mubr.bf16.gmra.mxu0 %v2735_v25 }
 0x114   :  { %v1892_v39 = vadd.f32 %v2934_v35, %v4242_v16  ;;  %v2999_v40 = vpop.f32.mrf.mxu1  ;;  %2574 = vmatmul.mubr.bf16.gmra.mxu1 %v2737_v29  ;;  %2484 = vmatprep.mubr.bf16.mxu0 %v2752_v30 }
 0x115   :  { %v2936_v41 = vpop.f32.mrf.mxu0  ;;  %2581 = vmatprep.mubr.bf16.mxu1 %v2754_v32 }
 0x116   :  { %v4350_v42 = vadd.f32 %v2998_v37, %v1892_v39  ;;  %v2937_v45 = vadd.f32 %v2936_v41, %v2935_v38  ;;  %v3000_v46 = vpop.f32.mrf.mxu1 }
 0x117   :  { %v3001_v47 = vadd.f32 %v3000_v46, %v2999_v40  ;;  %v2938_v48 = vpop.f32.mrf.mxu0 }
 0x118   :  { %v1897_v50 = vadd.f32 %v2937_v45, %v4242_v16  ;;  %v3002_v51 = vpop.f32.mrf.mxu1 }
 0x119   :  { %v2939_v53 = vpop.f32.mrf.mxu0 }
 0x11a   :  { %v4353_v55 = vadd.f32 %v3001_v47, %v1897_v50  ;;  %v2940_v56 = vadd.f32 %v2939_v53, %v2938_v48  ;;  %v3003_v58 = vpop.f32.mrf.mxu1 }
 0x11b   :  { %v3004_v59 = vadd.f32 %v3003_v58, %v3002_v51  ;;  %v2941_v60 = vpop.f32.mrf.mxu0  ;;  %2485 = vmatmul.mubr.bf16.gmra.mxu0 %v2751_v49 }
 0x11c   :  { %v1900_v61 = vadd.f32 %v2940_v56, %v4242_v16  ;;  %v3005_v62 = vpop.f32.mrf.mxu1  ;;  %2582 = vmatmul.mubr.bf16.gmra.mxu1 %v2753_v52 }
 0x11d   :  { %v2942_v63 = vpop.f32.mrf.mxu0 }
 0x11e   :  { %v4356_v0 = vadd.f32 %v3004_v59, %v1900_v61  ;;  %v2943_v1 = vadd.f32 %v2942_v63, %v2941_v60  ;;  %v3006_v2 = vpop.f32.mrf.mxu1 }
 0x11f   :  { %v3007_v4 = vadd.f32 %v3006_v2, %v3005_v62  ;;  %v2944_v5 = vpop.f32.mrf.mxu0 }
 0x120   :  { %v1905_v7 = vadd.f32 %v2943_v1, %v4242_v16  ;;  %v3008_v8 = vpop.f32.mrf.mxu1 }
 0x121   :  { %v2945_v9 = vpop.f32.mrf.mxu0 }
 0x122   :  { %v4359_v10 = vadd.f32 %v3007_v4, %v1905_v7  ;;  %v2946_v11 = vadd.f32 %v2945_v9, %v2944_v5  ;;  %v3009_v12 = vpop.f32.mrf.mxu1 }
 0x123   :  { %v3010_v13 = vadd.f32 %v3009_v12, %v3008_v8  ;;  %v3027_v14 = vpop.f32.mrf.mxu0 }
 0x124   :  { %v1908_v15 = vadd.f32 %v2946_v11, %v4242_v16  ;;  %v3091_v19 = vpop.f32.mrf.mxu1 }
 0x125   :  { %v3028_v20 = vpop.f32.mrf.mxu0 }
 0x126   :  { %v4362_v21 = vadd.f32 %v3010_v13, %v1908_v15  ;;  %v3029_v22 = vadd.f32 %v3028_v20, %v3027_v14  ;;  %v3092_v23 = vpop.f32.mrf.mxu1 }
 0x127   :  { %v3093_v24 = vadd.f32 %v3092_v23, %v3091_v19  ;;  %v3030_v25 = vpop.f32.mrf.mxu0 }
 0x128   :  { %v2043_v26 = vadd.f32 %v3029_v22, %v4257_v33  ;;  %v3094_v27 = vpop.f32.mrf.mxu1 }
 0x129   :  { %v3031_v29 = vpop.f32.mrf.mxu0 }
 0x12a   :  { %v4365_v30 = vadd.f32 %v3093_v24, %v2043_v26  ;;  %v3032_v31 = vadd.f32 %v3031_v29, %v3030_v25  ;;  %v3095_v32 = vpop.f32.mrf.mxu1 }
 0x12b   :  { %v3096_v35 = vadd.f32 %v3095_v32, %v3094_v27  ;;  %v3033_v36 = vpop.f32.mrf.mxu0 }
 0x12c   :  { %v2046_v16 = vadd.f32 %v3032_v31, %v4266_v43  ;;  %v3097_v37 = vpop.f32.mrf.mxu1 }
 0x12d   :  { %v3034_v38 = vpop.f32.mrf.mxu0 }
 0x12e   :  { %v4368_v39 = vadd.f32 %v3096_v35, %v2046_v16  ;;  %v3035_v40 = vadd.f32 %v3034_v38, %v3033_v36  ;;  %v3098_v41 = vpop.f32.mrf.mxu1 }
 0x12f   :  { %v3099_v45 = vadd.f32 %v3098_v41, %v3097_v37  ;;  %v3036_v46 = vpop.f32.mrf.mxu0 }
 0x130   :  { %v2051_v33 = vadd.f32 %v3035_v40, %v4275_v57  ;;  %v3100_v47 = vpop.f32.mrf.mxu1 }
 0x131   :  { %v3037_v48 = vpop.f32.mrf.mxu0 }
 0x132   :  { %v4371_v49 = vadd.f32 %v3099_v45, %v2051_v33  ;;  %v3038_v50 = vadd.f32 %v3037_v48, %v3036_v46  ;;  %v3101_v51 = vpop.f32.mrf.mxu1 }
 0x133   :  { %v3102_v52 = vadd.f32 %v3101_v51, %v3100_v47  ;;  %v3039_v53 = vpop.f32.mrf.mxu0 }
 0x134   :  { %v2054_v43 = vadd.f32 %v3038_v50, %v4284_v3  ;;  %v3103_v56 = vpop.f32.mrf.mxu1 }
 0x135   :  { %v3040_v58 = vpop.f32.mrf.mxu0 }
 0x136   :  { %v4374_v59 = vadd.f32 %v3102_v52, %v2054_v43  ;;  %v3041_v60 = vadd.f32 %v3040_v58, %v3039_v53  ;;  %v3104_v61 = vpop.f32.mrf.mxu1 }
 0x137   :  { %v3105_v62 = vadd.f32 %v3104_v61, %v3103_v56  ;;  %v3042_v63 = vpop.f32.mrf.mxu0 }
 0x138   :  { %v2059_v57 = vadd.f32 %v3041_v60, %v4293_v18  ;;  %v3106_v1 = vpop.f32.mrf.mxu1 }
 0x139   :  { %v3043_v2 = vpop.f32.mrf.mxu0 }
 0x13a   :  { %v4377_v4 = vadd.f32 %v3105_v62, %v2059_v57  ;;  %v3044_v5 = vadd.f32 %v3043_v2, %v3042_v63  ;;  %v3107_v7 = vpop.f32.mrf.mxu1 }
 0x13b   :  { %v3108_v8 = vadd.f32 %v3107_v7, %v3106_v1  ;;  %v3045_v9 = vpop.f32.mrf.mxu0 }
 0x13c   :  { %v2062_v3 = vadd.f32 %v3044_v5, %v4302_v28  ;;  %v3109_v11 = vpop.f32.mrf.mxu1 }
 0x13d   :  { %v3046_v12 = vpop.f32.mrf.mxu0 }
 0x13e   :  { %v4380_v13 = vadd.f32 %v3108_v8, %v2062_v3  ;;  %v3047_v14 = vadd.f32 %v3046_v12, %v3045_v9  ;;  %v3110_v15 = vpop.f32.mrf.mxu1 }
 0x13f   :  { %v3111_v19 = vadd.f32 %v3110_v15, %v3109_v11  ;;  %v3048_v20 = vpop.f32.mrf.mxu0 }
 0x140   :  { %v2067_v18 = vadd.f32 %v3047_v14, %v4311_v44  ;;  %v3112_v22 = vpop.f32.mrf.mxu1 }
 0x141   :  { %v3049_v23 = vpop.f32.mrf.mxu0 }
 0x142   :  { %v4383_v24 = vadd.f32 %v3111_v19, %v2067_v18  ;;  %v3050_v25 = vadd.f32 %v3049_v23, %v3048_v20  ;;  %v3113_v26 = vpop.f32.mrf.mxu1 }
 0x143   :  { %v3114_v27 = vadd.f32 %v3113_v26, %v3112_v22  ;;  %v3051_v29 = vpop.f32.mrf.mxu0 }
 0x144   :  { %v2070_v28 = vadd.f32 %v3050_v25, %v4320_v54  ;;  %v3115_v31 = vpop.f32.mrf.mxu1 }
 0x145   :  { %v3052_v32 = vpop.f32.mrf.mxu0 }
 0x146   :  { %v4386_v35 = vadd.f32 %v3114_v27, %v2070_v28  ;;  %v3053_v36 = vadd.f32 %v3052_v32, %v3051_v29  ;;  %v3116_v16 = vpop.f32.mrf.mxu1 }
 0x147   :  { %v3117_v37 = vadd.f32 %v3116_v16, %v3115_v31  ;;  %v3054_v38 = vpop.f32.mrf.mxu0 }
 0x148   :  { %v2075_v44 = vadd.f32 %v3053_v36, %v4329_v6  ;;  %v3118_v40 = vpop.f32.mrf.mxu1 }
 0x149   :  { %v3055_v41 = vpop.f32.mrf.mxu0 }
 0x14a   :  { %v4389_v45 = vadd.f32 %v3117_v37, %v2075_v44  ;;  %v3056_v46 = vadd.f32 %v3055_v41, %v3054_v38  ;;  %v3119_v33 = vpop.f32.mrf.mxu1 }
 0x14b   :  { %v3120_v47 = vadd.f32 %v3119_v33, %v3118_v40  ;;  %v3057_v48 = vpop.f32.mrf.mxu0 }
 0x14c   :  { %v2078_v54 = vadd.f32 %v3056_v46, %v4338_v17  ;;  %v3121_v50 = vpop.f32.mrf.mxu1 }
 0x14d   :  { %v3058_v51 = vpop.f32.mrf.mxu0 }
 0x14e   :  { %v4392_v52 = vadd.f32 %v3120_v47, %v2078_v54  ;;  %v3059_v53 = vadd.f32 %v3058_v51, %v3057_v48  ;;  %v3122_v43 = vpop.f32.mrf.mxu1 }
 0x14f   :  { %v3123_v56 = vadd.f32 %v3122_v43, %v3121_v50  ;;  %v3060_v58 = vpop.f32.mrf.mxu0 }
 0x150   :  { %v2083_v6 = vadd.f32 %v3059_v53, %v4347_v34  ;;  %v3124_v60 = vpop.f32.mrf.mxu1 }
 0x151   :  { %v3061_v61 = vpop.f32.mrf.mxu0 }
 0x152   :  { %v4395_v62 = vadd.f32 %v3123_v56, %v2083_v6  ;;  %v3062_v63 = vadd.f32 %v3061_v61, %v3060_v58  ;;  %v3125_v57 = vpop.f32.mrf.mxu1 }
 0x153   :  { %v3126_v1 = vadd.f32 %v3125_v57, %v3124_v60  ;;  %v3063_v2 = vpop.f32.mrf.mxu0 }
 0x154   :  { %4660 = vst [vmem:[#allocation2_spill] sm:$0xff] %v4395_v62  ;;  %v2086_v17 = vadd.f32 %v3062_v63, %v4350_v42  ;;  %v3127_v5 = vpop.f32.mrf.mxu1 }
 0x155   :  { %v3064_v7 = vpop.f32.mrf.mxu0 }
 0x156   :  { %v4398_v8 = vadd.f32 %v3126_v1, %v2086_v17  ;;  %v3065_v9 = vadd.f32 %v3064_v7, %v3063_v2  ;;  %v3128_v3 = vpop.f32.mrf.mxu1 }
 0x157   :  { %v3129_v11 = vadd.f32 %v3128_v3, %v3127_v5  ;;  %v3066_v12 = vpop.f32.mrf.mxu0 }
 0x158   :  { %4661 = vst [vmem:[#allocation3_spill] sm:$0xff] %v4398_v8  ;;  %v2091_v34 = vadd.f32 %v3065_v9, %v4353_v55  ;;  %v3130_v14 = vpop.f32.mrf.mxu1 }
 0x159   :  { %v3067_v15 = vpop.f32.mrf.mxu0 }
 0x15a   :  { %v4401_v19 = vadd.f32 %v3129_v11, %v2091_v34  ;;  %v3068_v20 = vadd.f32 %v3067_v15, %v3066_v12  ;;  %v3131_v18 = vpop.f32.mrf.mxu1 }
 0x15b   :  { %v3132_v22 = vadd.f32 %v3131_v18, %v3130_v14  ;;  %v3069_v23 = vpop.f32.mrf.mxu0 }
 0x15c   :  { %4662 = vst [vmem:[#allocation4_spill] sm:$0xff] %v4401_v19  ;;  %v2094_v42 = vadd.f32 %v3068_v20, %v4356_v0  ;;  %v3133_v25 = vpop.f32.mrf.mxu1 }
 0x15d   :  { %v3070_v26 = vpop.f32.mrf.mxu0 }
 0x15e   :  { %v4404_v27 = vadd.f32 %v3132_v22, %v2094_v42  ;;  %v3071_v29 = vadd.f32 %v3070_v26, %v3069_v23  ;;  %v3134_v28 = vpop.f32.mrf.mxu1 }
 0x15f   :  { %v3135_v31 = vadd.f32 %v3134_v28, %v3133_v25  ;;  %v3072_v32 = vpop.f32.mrf.mxu0 }
 0x160   :  { %4663 = vst [vmem:[#allocation5_spill] sm:$0xff] %v4404_v27  ;;  %v2099_v55 = vadd.f32 %v3071_v29, %v4359_v10  ;;  %v3136_v36 = vpop.f32.mrf.mxu1 }
 0x161   :  { %v3073_v16 = vpop.f32.mrf.mxu0 }
 0x162   :  { %v4407_v37 = vadd.f32 %v3135_v31, %v2099_v55  ;;  %v3074_v38 = vadd.f32 %v3073_v16, %v3072_v32  ;;  %v3137_v44 = vpop.f32.mrf.mxu1 }
 0x163   :  { %v3138_v40 = vadd.f32 %v3137_v44, %v3136_v36  ;;  %v3155_v41 = vpop.f32.mrf.mxu0 }
 0x164   :  { %4664 = vst [vmem:[#allocation6_spill] sm:$0xff] %v4407_v37  ;;  %v2102_v0 = vadd.f32 %v3074_v38, %v4362_v21  ;;  %v4410_v46 = vpop.f32.mrf.mxu1 }
 0x165   :  { %v3156_v33 = vpop.f32.mrf.mxu0 }
 0x166   :  { %v4412_v47 = vadd.f32 %v3138_v40, %v2102_v0  ;;  %v4414_v48 = vpop.f32.mrf.mxu1 }
 0x167   :  { %v3158_v54 = vpop.f32.mrf.mxu0 }
 0x168   :  { %4665 = vst [vmem:[#allocation7_spill] sm:$0xff] %v4412_v47  ;;  %v4416_v50 = vpop.f32.mrf.mxu1 }
 0x169   :  { %v3159_v10 = vpop.f32.mrf.mxu0 }
 0x16a   :  { %v4418_v51 = vpop.f32.mrf.mxu1 }
 0x16b   :  { %v4420_v53 = vpop.f32.mrf.mxu0 }
 0x16c   :  { %v4422_v43 = vpop.f32.mrf.mxu1 }
 0x16d   :  { %v4424_v56 = vpop.f32.mrf.mxu0 }
 0x16e   :  { %v4426_v21 = vpop.f32.mrf.mxu1 }
 0x16f   :  { %v4428_v58 = vpop.f32.mrf.mxu0 }
 0x170   :  { %v4430_v6 = vpop.f32.mrf.mxu1 }
 0x171   :  { %v4432_v60 = vpop.f32.mrf.mxu0 }
 0x172   :  { %v4434_v61 = vpop.f32.mrf.mxu1 }
 0x173   :  { %v4436_v63 = vpop.f32.mrf.mxu0 }
 0x174   :  { %v4438_v57 = vpop.f32.mrf.mxu1 }
 0x175   :  { %v4440_v1 = vpop.f32.mrf.mxu0 }
 0x176   :  { %v4442_v2 = vpop.f32.mrf.mxu1 }
 0x177   :  { %v4444_v17 = vpop.f32.mrf.mxu0 }
 0x178   :  { %v4446_v5 = vpop.f32.mrf.mxu1 }
 0x179   :  { %v4448_v7 = vpop.f32.mrf.mxu0 }
 0x17a   :  { %v4450_v9 = vpop.f32.mrf.mxu1 }
 0x17b   :  { %v4452_v3 = vpop.f32.mrf.mxu0 }
 0x17c   :  { %v4454_v11 = vpop.f32.mrf.mxu1 }
 0x17d   :  { %v4456_v12 = vpop.f32.mrf.mxu0 }
 0x17e   :  { %v4458_v34 = vpop.f32.mrf.mxu1 }
 0x17f   :  { %v4460_v14 = vpop.f32.mrf.mxu0 }
 0x180   :  { %v4462_v15 = vpop.f32.mrf.mxu1 }
 0x181   :  { %v4464_v20 = vpop.f32.mrf.mxu0 }
 0x182   :  { %v4466_v18 = vpop.f32.mrf.mxu1 }
 0x183   :  { %v4468_v22 = vpop.f32.mrf.mxu0 }
 0x184   :  { %v4470_v23 = vpop.f32.mrf.mxu1 }
 0x185   :  { %v4472_v42 = vpop.f32.mrf.mxu0 }
 0x186   :  { %v4474_v25 = vpop.f32.mrf.mxu1 }
 0x187   :  { %v4476_v26 = vpop.f32.mrf.mxu0 }
 0x188   :  { %v4478_v29 = vpop.f32.mrf.mxu1 }
 0x189   :  { %v4480_v28 = vpop.f32.mrf.mxu0 }
 0x18a   :  { %v4482_v31 = vpop.f32.mrf.mxu1 }
 0x18b   :  { %4666 = vst [vmem:[#allocation8_spill] sm:$0xff] %v4482_v31  ;;  %v4484_v32 = vpop.f32.mrf.mxu0 }
 0x18c   :  { %v4486_v55 = vpop.f32.mrf.mxu1 }
 0x18d   :  { %4667 = vst [vmem:[#allocation9_spill] sm:$0xff] %v4486_v55  ;;  %v4488_v36 = vpop.f32.mrf.mxu0 }
 0x18e   :  { %v4490_v16 = vpop.f32.mrf.mxu1 }
 0x18f   :  { %4668 = vst [vmem:[#allocation10_spill] sm:$0xff] %v4490_v16  ;;  %v4492_v38 = vpop.f32.mrf.mxu0 }
 0x190   :  { %4669 = vst [vmem:[#allocation11_spill] sm:$0xff] %v4492_v38  ;;  %v4494_v44 = vpop.f32.mrf.mxu1 }
 0x191   :  { %4670 = vst [vmem:[#allocation12_spill] sm:$0xff] %v4494_v44  ;;  %v4496_v40 = vpop.f32.mrf.mxu0 }
 0x192   :  { %4671 = vst [vmem:[#allocation13_spill] sm:$0xff] %v4496_v40  ;;  %v4498_v0 = vpop.f32.mrf.mxu1 }
 0x193   :  { %4672 = vst [vmem:[#allocation14_spill] sm:$0xff] %v4498_v0  ;;  %v4500_v47 = vpop.f32.mrf.mxu0 }
 0x194   :  { %4673 = vst [vmem:[#allocation15_spill] sm:$0xff] %v4500_v47  ;;  %v4502_v37 = vpop.f32.mrf.mxu1  ;;  %v3157_v47 = vadd.f32 %v3156_v33, %v3155_v41 }
 0x195   :  { %4674 = vst [vmem:[#allocation16_spill] sm:$0xff] %v4502_v37  ;;  %v4504_v27 = vpop.f32.mrf.mxu0 }
 0x196   :  { %4675 = vst [vmem:[#allocation17_spill] sm:$0xff] %v4504_v27  ;;  %v4506_v19 = vpop.f32.mrf.mxu1 }
 0x197   :  { %4676 = vst [vmem:[#allocation18_spill] sm:$0xff] %v4506_v19  ;;  %v4508_v8 = vpop.f32.mrf.mxu0 }
 0x198   :  { %4677 = vst [vmem:[#allocation19_spill] sm:$0xff] %v4508_v8  ;;  %v4510_v55 = vpop.f32.mrf.mxu1  ;;  %v3160_v8 = vadd.f32 %v3159_v10, %v3158_v54  ;;  %v3224_v10 = vadd.f32 %v4418_v51, %v4416_v50 }
 0x199   :  { %4678 = vst [vmem:[#allocation20_spill] sm:$0xff] %v4510_v55  ;;  %v4512_v16 = vpop.f32.mrf.mxu0  ;;  %v2237_v55 = vadd.f32 %v3157_v47, %v4365_v30 }
 0x19a   :  { %4679 = vst [vmem:[#allocation21_spill] sm:$0xff] %v4512_v16  ;;  %v4514_v38 = vpop.f32.mrf.mxu1  ;;  %v2240_v41 = vadd.f32 %v3160_v8, %v4368_v39  ;;  %v3166_v39 = vadd.f32 %v4432_v60, %v4428_v58 }
 0x19b   :  { %4680 = vst [vmem:[#allocation22_spill] sm:$0xff] %v4514_v38  ;;  %v4516_v44 = vpop.f32.mrf.mxu0 }
 0x19c   :  { %4681 = vst [vmem:[#allocation23_spill] sm:$0xff] %v4516_v44  ;;  %v4518_v40 = vpop.f32.mrf.mxu1 }
 0x19d   :  { %4682 = vst [vmem:[#allocation24_spill] sm:$0xff] %v4518_v40  ;;  %v4520_v0 = vpop.f32.mrf.mxu0  ;;  %v3221_v40 = vadd.f32 %v4414_v48, %v4410_v46 }
 0x19e   :  { %4683 = vst [vmem:[#allocation25_spill] sm:$0xff] %v4520_v0  ;;  %v4522_v37 = vpop.f32.mrf.mxu1  ;;  %v2337_v0 = vadd.f32 %v3224_v10, %v2240_v41 }
 0x19f   :  { %4684 = vst [vmem:[#allocation26_spill] sm:$0xff] %v4522_v37  ;;  %v4524_v27 = vpop.f32.mrf.mxu0  ;;  %v2334_v37 = vadd.f32 %v3221_v40, %v2237_v55 }
 0x1a0   :  { %4685 = vst [vmem:[#allocation27_spill] sm:$0xff] %v4524_v27  ;;  %v4526_v19 = vpop.f32.mrf.mxu1  ;;  %v3163_v27 = vadd.f32 %v4424_v56, %v4420_v53  ;;  %v3227_v56 = vadd.f32 %v4426_v21, %v4422_v43  ;;  %v3230_v43 = vadd.f32 %v4434_v61, %v4430_v6  ;;  %v3233_v6 = vadd.f32 %v4442_v2, %v4438_v57 }
 0x1a1   :  { %4686 = vst [vmem:[#allocation28_spill] sm:$0xff] %v4526_v19  ;;  %v4528_v62 = vpop.f32.mrf.mxu0  ;;  %v3236_v2 = vadd.f32 %v4450_v9, %v4446_v5  ;;  %v3239_v5 = vadd.f32 %v4458_v34, %v4454_v11  ;;  %v3242_v11 = vadd.f32 %v4466_v18, %v4462_v15  ;;  %v3245_v18 = vadd.f32 %v4474_v25, %v4470_v23  ;;  %v4689_v23 = vld [vmem:[#allocation8_spill] sm:$0xff] }
 0x1a2   :  { %4687 = vst [vmem:[#allocation29_spill] sm:$0xff] %v4528_v62  ;;  %v4531_v16 = vpop.f32.mrf.mxu1  ;;  %v2245_v46 = vadd.f32 %v3163_v27, %v4371_v49  ;;  %v2248_v49 = vadd.f32 %v3166_v39, %v4374_v59  ;;  %v3172_v59 = vadd.f32 %v4448_v7, %v4444_v17  ;;  %v3175_v17 = vadd.f32 %v4456_v12, %v4452_v3 }
 0x1a3   :  { %4688 = vst [vmem:[#allocation30_spill] sm:$0xff] %v4531_v16  ;;  %v3283_v38 = vpop.f32.mrf.mxu0  ;;  %v3248_v25 = vadd.f32 %v4689_v23, %v4478_v29  ;;  %v4694_v29 = vld [vmem:[#allocation10_spill] sm:$0xff]  ;;  %v4706_v23 = vld [vmem:[#allocation23_spill] sm:$0xff] }
 0x1a4   :  { %v3347_v44 = vpop.f32.mrf.mxu1  ;;  %v2342_v40 = vadd.f32 %v3227_v56, %v2245_v46  ;;  %v2345_v41 = vadd.f32 %v3230_v43, %v2248_v49  ;;  %v2261_v12 = vadd.f32 %v3175_v17, %v4383_v24  ;;  %v3181_v24 = vadd.f32 %v4472_v42, %v4468_v22 }
 0x1a5   :  { %v3284_v33 = vpop.f32.mrf.mxu0  ;;  %v3184_v22 = vadd.f32 %v4480_v28, %v4476_v26 }
 0x1a6   :  { %v3285_v19 = vadd.f32 %v3284_v33, %v3283_v38  ;;  %v3348_v54 = vpop.f32.mrf.mxu1 }
 0x1a7   :  { %v3286_v30 = vpop.f32.mrf.mxu0  ;;  %v3349_v16 = vadd.f32 %v3348_v54, %v3347_v44  ;;  %v2272_v28 = vadd.f32 %v3184_v22, %v4392_v52  ;;  %v4691_v52 = vld [vmem:[#allocation11_spill] sm:$0xff] }
 0x1a8   :  { %v2431_v47 = vadd.f32 %v3285_v19, %v2334_v37  ;;  %v3350_v62 = vpop.f32.mrf.mxu1  ;;  %v3169_v37 = vadd.f32 %v4440_v1, %v4436_v63 }
 0x1a9   :  { %v3287_v31 = vpop.f32.mrf.mxu0 }
 0x1aa   :  { %v2528_v8 = vadd.f32 %v3349_v16, %v2431_v47  ;;  %v3288_v48 = vadd.f32 %v3287_v31, %v3286_v30  ;;  %v3351_v55 = vpop.f32.mrf.mxu1  ;;  %v2253_v63 = vadd.f32 %v3169_v37, %v4377_v4 }
 0x1ab   :  { %v3289_v53 = vpop.f32.mrf.mxu0  ;;  %v3352_v51 = vadd.f32 %v3351_v55, %v3350_v62 }
 0x1ac   :  { %v2590_v38 = vmax.f32 %v2528_v8, 0.0  ;;  %v2434_v50 = vadd.f32 %v3288_v48, %v2337_v0  ;;  %v3353_v19 = vpop.f32.mrf.mxu1  ;;  %v2350_v39 = vadd.f32 %v3233_v6, %v2253_v63  ;;  %v2256_v48 = vadd.f32 %v3172_v59, %v4380_v13 }
 0x1ad   :  { %v3290_v44 = vpop.f32.mrf.mxu0  ;;  %v3178_v13 = vadd.f32 %v4464_v20, %v4460_v14  ;;  %v2269_v59 = vadd.f32 %v3181_v24, %v4389_v45  ;;  %v3187_v45 = vadd.f32 %v4488_v36, %v4484_v32  ;;  %v4690_v32 = vld [vmem:[#allocation2_spill] sm:$0xff] }
 0x1ae   :  { %2606 = vst [vmem:[%s4659_s3] sm:$0xff] %v2590_v38  ;;  %v2531_v27 = vadd.f32 %v3352_v51, %v2434_v50  ;;  %v3291_v58 = vadd.f32 %v3290_v44, %v3289_v53  ;;  %v3354_v60 = vpop.f32.mrf.mxu1  ;;  %v2353_v3 = vadd.f32 %v3236_v2, %v2256_v48  ;;  %v4692_v2 = vld [vmem:[#allocation13_spill] sm:$0xff] }
 0x1af   :  { %v3292_v31 = vpop.f32.mrf.mxu0  ;;  %v3355_v16 = vadd.f32 %v3354_v60, %v3353_v19  ;;  %v2264_v14 = vadd.f32 %v3178_v13, %v4386_v35  ;;  %v2366_v26 = vadd.f32 %v3245_v18, %v2269_v59  ;;  %v2277_v36 = vadd.f32 %v3187_v45, %v4690_v32  ;;  %v4693_v13 = vld [vmem:[#allocation9_spill] sm:$0xff]  ;;  %v4708_v32 = vld [vmem:[#allocation20_spill] sm:$0xff] }
 0x1b0   :  { %v2591_v62 = vmax.f32 %v2531_v27, 0.0  ;;  %v2439_v21 = vadd.f32 %v3291_v58, %v2342_v40  ;;  %v3356_v0 = vpop.f32.mrf.mxu1 }
 0x1b1   :  { %v3293_v1 = vpop.f32.mrf.mxu0 }
 0x1b2   :  { %2607 = vst [vmem:[%s4659_s3 + $0x8] sm:$0xff] %v2591_v62  ;;  %v2536_v33 = vadd.f32 %v3355_v16, %v2439_v21  ;;  %v3294_v54 = vadd.f32 %v3293_v1, %v3292_v31  ;;  %v3357_v10 = vpop.f32.mrf.mxu1  ;;  %v2358_v31 = vadd.f32 %v3239_v5, %v2261_v12  ;;  %v2361_v1 = vadd.f32 %v3242_v11, %v2264_v14 }
 0x1b3   :  { %v3295_v61 = vpop.f32.mrf.mxu0  ;;  %v3358_v46 = vadd.f32 %v3357_v10, %v3356_v0 }
 0x1b4   :  { %v2592_v30 = vmax.f32 %v2536_v33, 0.0  ;;  %v2442_v47 = vadd.f32 %v3294_v54, %v2345_v41  ;;  %v3359_v4 = vpop.f32.mrf.mxu1 }
 0x1b5   :  { %v3296_v8 = vpop.f32.mrf.mxu0 }
 0x1b6   :  { %2608 = vst [vmem:[%s4659_s3 + $0x10] sm:$0xff] %v2592_v30  ;;  %v2539_v7 = vadd.f32 %v3358_v46, %v2442_v47  ;;  %v3297_v55 = vadd.f32 %v3296_v8, %v3295_v61  ;;  %v3360_v53 = vpop.f32.mrf.mxu1 }
 0x1b7   :  { %v3298_v57 = vpop.f32.mrf.mxu0  ;;  %v3361_v50 = vadd.f32 %v3360_v53, %v3359_v4 }
 0x1b8   :  { %v2593_v56 = vmax.f32 %v2539_v7, 0.0  ;;  %v2447_v38 = vadd.f32 %v3297_v55, %v2350_v39  ;;  %v3362_v51 = vpop.f32.mrf.mxu1 }
 0x1b9   :  { %v3299_v19 = vpop.f32.mrf.mxu0 }
 0x1ba   :  { %2609 = vst [vmem:[%s4659_s3 + $0x18] sm:$0xff] %v2593_v56  ;;  %v2544_v37 = vadd.f32 %v3361_v50, %v2447_v38  ;;  %v3300_v44 = vadd.f32 %v3299_v19, %v3298_v57  ;;  %v3363_v40 = vpop.f32.mrf.mxu1  ;;  %v2369_v57 = vadd.f32 %v3248_v25, %v2272_v28  ;;  %v3190_v56 = vadd.f32 %v4692_v2, %v4691_v52  ;;  %v4707_v25 = vld [vmem:[#allocation25_spill] sm:$0xff] }
 0x1bb   :  { %v3301_v49 = vpop.f32.mrf.mxu0  ;;  %v3364_v58 = vadd.f32 %v3363_v40, %v3362_v51  ;;  %v3251_v19 = vadd.f32 %v4694_v29, %v4693_v13  ;;  %v4710_v13 = vld [vmem:[#allocation6_spill] sm:$0xff] }
 0x1bc   :  { %v2594_v9 = vmax.f32 %v2544_v37, 0.0  ;;  %v2450_v27 = vadd.f32 %v3300_v44, %v2353_v3  ;;  %v3365_v60 = vpop.f32.mrf.mxu1 }
 0x1bd   :  { %v3302_v20 = vpop.f32.mrf.mxu0 }
 0x1be   :  { %2610 = vst [vmem:[%s4659_s3 + $0x20] sm:$0xff] %v2594_v9  ;;  %v2547_v43 = vadd.f32 %v3364_v58, %v2450_v27  ;;  %v3303_v62 = vadd.f32 %v3302_v20, %v3301_v49  ;;  %v3366_v21 = vpop.f32.mrf.mxu1  ;;  %v2374_v49 = vadd.f32 %v3251_v19, %v2277_v36  ;;  %v4695_v9 = vld [vmem:[#allocation3_spill] sm:$0xff]  ;;  %v4709_v36 = vld [vmem:[#allocation22_spill] sm:$0xff] }
 0x1bf   :  { %v3304_v34 = vpop.f32.mrf.mxu0  ;;  %v3367_v63 = vadd.f32 %v3366_v21, %v3365_v60  ;;  %v2280_v27 = vadd.f32 %v3190_v56, %v4695_v9  ;;  %v4696_v58 = vld [vmem:[#allocation15_spill] sm:$0xff]  ;;  %v4697_v60 = vld [vmem:[#allocation17_spill] sm:$0xff]  ;;  %v4699_v21 = vld [vmem:[#allocation14_spill] sm:$0xff] }
 0x1c0   :  { %v2595_v16 = vmax.f32 %v2547_v43, 0.0  ;;  %v2455_v0 = vadd.f32 %v3303_v62, %v2358_v31  ;;  %v3368_v35 = vpop.f32.mrf.mxu1  ;;  %v3193_v14 = vadd.f32 %v4697_v60, %v4696_v58  ;;  %v4698_v62 = vld [vmem:[#allocation12_spill] sm:$0xff]  ;;  %v4711_v19 = vld [vmem:[#allocation27_spill] sm:$0xff]  ;;  %v4714_v9 = vld [vmem:[#allocation26_spill] sm:$0xff] }
 0x1c1   :  { %v3305_v41 = vpop.f32.mrf.mxu0  ;;  %v3254_v11 = vadd.f32 %v4699_v21, %v4698_v62 }
 0x1c2   :  { %2611 = vst [vmem:[%s4659_s3 + $0x28] sm:$0xff] %v2595_v16  ;;  %v2552_v42 = vadd.f32 %v3367_v63, %v2455_v0  ;;  %v3306_v33 = vadd.f32 %v3305_v41, %v3304_v34  ;;  %v3369_v54 = vpop.f32.mrf.mxu1 }
 0x1c3   :  { %v3307_v15 = vpop.f32.mrf.mxu0  ;;  %v3370_v61 = vadd.f32 %v3369_v54, %v3368_v35  ;;  %v4700_v35 = vld [vmem:[#allocation19_spill] sm:$0xff]  ;;  %v2377_v22 = vadd.f32 %v3254_v11, %v2280_v27 }
 0x1c4   :  { %v2596_v10 = vmax.f32 %v2552_v42, 0.0  ;;  %v2458_v6 = vadd.f32 %v3306_v33, %v2361_v1  ;;  %v3371_v30 = vpop.f32.mrf.mxu1  ;;  %v4701_v1 = vld [vmem:[#allocation21_spill] sm:$0xff]  ;;  %v4702_v42 = vld [vmem:[#allocation4_spill] sm:$0xff] }
 0x1c5   :  { %v3308_v47 = vpop.f32.mrf.mxu0  ;;  %v3196_v41 = vadd.f32 %v4701_v1, %v4700_v35  ;;  %v2285_v33 = vadd.f32 %v3193_v14, %v4702_v42 }
 0x1c6   :  { %2612 = vst [vmem:[%s4659_s3 + $0x30] sm:$0xff] %v2596_v10  ;;  %v2555_v46 = vadd.f32 %v3370_v61, %v2458_v6  ;;  %v3309_v4 = vadd.f32 %v3308_v47, %v3307_v15  ;;  %v3372_v39 = vpop.f32.mrf.mxu1  ;;  %v4703_v6 = vld [vmem:[#allocation16_spill] sm:$0xff]  ;;  %v4704_v61 = vld [vmem:[#allocation18_spill] sm:$0xff] }
 0x1c7   :  { %v3310_v8 = vpop.f32.mrf.mxu0  ;;  %v3373_v7 = vadd.f32 %v3372_v39, %v3371_v30  ;;  %v3257_v30 = vadd.f32 %v4704_v61, %v4703_v6 }
 0x1c8   :  { %v2597_v48 = vmax.f32 %v2555_v46, 0.0  ;;  %v2463_v17 = vadd.f32 %v3309_v4, %v2366_v26  ;;  %v3374_v55 = vpop.f32.mrf.mxu1  ;;  %v4705_v46 = vld [vmem:[#allocation5_spill] sm:$0xff] }
 0x1c9   :  { %v3311_v53 = vpop.f32.mrf.mxu0  ;;  %v2288_v4 = vadd.f32 %v3196_v41, %v4705_v46 }
 0x1ca   :  { %2613 = vst [vmem:[%s4659_s3 + $0x38] sm:$0xff] %v2597_v48  ;;  %v2560_v38 = vadd.f32 %v3373_v7, %v2463_v17  ;;  %v3312_v50 = vadd.f32 %v3311_v53, %v3310_v8  ;;  %v3375_v51 = vpop.f32.mrf.mxu1  ;;  %v2382_v8 = vadd.f32 %v3257_v30, %v2285_v33  ;;  %v3199_v48 = vadd.f32 %v4707_v25, %v4706_v23 }
 0x1cb   :  { %v3313_v3 = vpop.f32.mrf.mxu0  ;;  %v3376_v44 = vadd.f32 %v3375_v51, %v3374_v55  ;;  %v3260_v53 = vadd.f32 %v4709_v36, %v4708_v32 }
 0x1cc   :  { %v2598_v12 = vmax.f32 %v2560_v38, 0.0  ;;  %v2466_v37 = vadd.f32 %v3312_v50, %v2369_v57  ;;  %v3377_v40 = vpop.f32.mrf.mxu1  ;;  %v2293_v29 = vadd.f32 %v3199_v48, %v4710_v13 }
 0x1cd   :  { %v3314_v5 = vpop.f32.mrf.mxu0  ;;  %v2385_v50 = vadd.f32 %v3260_v53, %v2288_v4 }
 0x1ce   :  { %2614 = vst [vmem:[%s4659_s3 + $0x40] sm:$0xff] %v2598_v12  ;;  %v2563_v20 = vadd.f32 %v3376_v44, %v2466_v37  ;;  %v3315_v31 = vadd.f32 %v3314_v5, %v3313_v3  ;;  %v3378_v24 = vpop.f32.mrf.mxu1  ;;  %v4712_v3 = vld [vmem:[#allocation29_spill] sm:$0xff]  ;;  %v4713_v5 = vld [vmem:[#allocation24_spill] sm:$0xff] }
 0x1cf   :  { %v3316_v43 = vpop.f32.mrf.mxu0  ;;  %v3379_v0 = vadd.f32 %v3378_v24, %v3377_v40  ;;  %v3202_v12 = vadd.f32 %v4712_v3, %v4711_v19  ;;  %v3263_v27 = vadd.f32 %v4714_v9, %v4713_v5 }
 0x1d0   :  { %v2599_v34 = vmax.f32 %v2563_v20, 0.0  ;;  %v2471_v16 = vadd.f32 %v3315_v31, %v2374_v49  ;;  %v3380_v63 = vpop.f32.mrf.mxu1 }
 0x1d1   :  { %v3317_v59 = vpop.f32.mrf.mxu0  ;;  %v2390_v24 = vadd.f32 %v3263_v27, %v2293_v29 }
 0x1d2   :  { %2615 = vst [vmem:[%s4659_s3 + $0x48] sm:$0xff] %v2599_v34  ;;  %v2568_v54 = vadd.f32 %v3379_v0, %v2471_v16  ;;  %v3318_v15 = vadd.f32 %v3317_v59, %v3316_v43  ;;  %v3381_v18 = vpop.f32.mrf.mxu1  ;;  %v4715_v43 = vld [vmem:[#allocation7_spill] sm:$0xff]  ;;  %v4716_v0 = vld [vmem:[#allocation28_spill] sm:$0xff] }
 0x1d3   :  { %v3319_v10 = vpop.f32.mrf.mxu0  ;;  %v3382_v26 = vadd.f32 %v3381_v18, %v3380_v63  ;;  %v2296_v62 = vadd.f32 %v3202_v12, %v4715_v43  ;;  %v4717_v63 = vld [vmem:[#allocation30_spill] sm:$0xff] }
 0x1d4   :  { %v2600_v45 = vmax.f32 %v2568_v54, 0.0  ;;  %v2474_v47 = vadd.f32 %v3318_v15, %v2377_v22  ;;  %v3383_v28 = vpop.f32.mrf.mxu1  ;;  %v3266_v35 = vadd.f32 %v4717_v63, %v4716_v0 }
 0x1d5   :  { %v3320_v39 = vpop.f32.mrf.mxu0 }
 0x1d6   :  { %2616 = vst [vmem:[%s4659_s3 + $0x50] sm:$0xff] %v2600_v45  ;;  %v2571_v17 = vadd.f32 %v3382_v26, %v2474_v47  ;;  %v3321_v7 = vadd.f32 %v3320_v39, %v3319_v10  ;;  %v3384_v55 = vpop.f32.mrf.mxu1  ;;  %v2393_v33 = vadd.f32 %v3266_v35, %v2296_v62 }
 0x1d7   :  { %v3322_v57 = vpop.f32.mrf.mxu0  ;;  %v3385_v56 = vadd.f32 %v3384_v55, %v3383_v28 }
 0x1d8   :  { %v2601_v52 = vmax.f32 %v2571_v17, 0.0  ;;  %v2479_v2 = vadd.f32 %v3321_v7, %v2382_v8  ;;  %v3386_v38 = vpop.f32.mrf.mxu1 }
 0x1d9   :  { %v3323_v51 = vpop.f32.mrf.mxu0 }
 0x1da   :  { %2617 = vst [vmem:[%s4659_s3 + $0x58] sm:$0xff] %v2601_v52  ;;  %v2576_v37 = vadd.f32 %v3385_v56, %v2479_v2  ;;  %v3324_v44 = vadd.f32 %v3323_v51, %v3322_v57  ;;  %v3387_v40 = vpop.f32.mrf.mxu1 }
 0x1db   :  { %v3325_v49 = vpop.f32.mrf.mxu0  ;;  %v3388_v14 = vadd.f32 %v3387_v40, %v3386_v38 }
 0x1dc   :  { %v2602_v58 = vmax.f32 %v2576_v37, 0.0  ;;  %v2482_v60 = vadd.f32 %v3324_v44, %v2385_v50  ;;  %v3389_v20 = vpop.f32.mrf.mxu1 }
 0x1dd   :  { %v3326_v31 = vpop.f32.mrf.mxu0 }
 0x1de   :  { %2618 = vst [vmem:[%s4659_s3 + $0x60] sm:$0xff] %v2602_v58  ;;  %v2579_v21 = vadd.f32 %v3388_v14, %v2482_v60  ;;  %v3327_v11 = vadd.f32 %v3326_v31, %v3325_v49  ;;  %v3390_v34 = vpop.f32.mrf.mxu1 }
 0x1df   :  { %v3328_v16 = vpop.f32.mrf.mxu0  ;;  %v3391_v59 = vadd.f32 %v3390_v34, %v3389_v20 }
 0x1e0   :  { %v2603_v1 = vmax.f32 %v2579_v21, 0.0  ;;  %v2487_v41 = vadd.f32 %v3327_v11, %v2390_v24  ;;  %v3392_v22 = vpop.f32.mrf.mxu1 }
 0x1e1   :  { %v3329_v42 = vpop.f32.mrf.mxu0 }
 0x1e2   :  { %2619 = vst [vmem:[%s4659_s3 + $0x68] sm:$0xff] %v2603_v1  ;;  %v2584_v54 = vadd.f32 %v3391_v59, %v2487_v41  ;;  %v3330_v15 = vadd.f32 %v3329_v42, %v3328_v16  ;;  %v3393_v18 = vpop.f32.mrf.mxu1 }
 0x1e3   :  { %v3394_v61 = vadd.f32 %v3393_v18, %v3392_v22 }
 0x1e4   :  { %v2604_v10 = vmax.f32 %v2584_v54, 0.0  ;;  %v2490_v6 = vadd.f32 %v3330_v15, %v2393_v33 }
 0x1e6   :  { %2620 = vst [vmem:[%s4659_s3 + $0x70] sm:$0xff] %v2604_v10  ;;  %v2587_v30 = vadd.f32 %v3394_v61, %v2490_v6 }
 0x1e8   :  { %v2605_v45 = vmax.f32 %v2587_v30, 0.0 }
 0x1ea   :  { %2621 = vst [vmem:[%s4659_s3 + $0x78] sm:$0xff] %v2605_v45 }

// kernel: vqvae_forward.15
= control target key start
LH: loop header
LB: loop body
LE: loop exit
PB: predicated region body
PF: predicated region fallthrough
CT: control target
= control target key end

     0   :  { %s275_s1 = inlined_call_operand.vmem [shape: bf16[128,128], index: 1, kind: input, shape index: {}]   ;;  %s276_s0 = inlined_call_operand.vmem [shape: bf16[32,128], index: 0, kind: input, shape index: {}]   ;;  %s277_s2 = inlined_call_operand.vmem [shape: f32[1,128], index: 2, kind: input, shape index: {}]   ;;  %s278_s3 = inlined_call_operand.vmem [shape: f32[32,128], index: 3, kind: output, shape index: {}]  }
   0x1   :  { %v200_v0 = vld [vmem:[%s275_s1 + $0x38] sm:$0xff]   ;;  %v201_v1 = vld [vmem:[%s275_s1 + $0x30] sm:$0xff]   ;;  %v202_v2 = vld [vmem:[%s275_s1 + $0x28] sm:$0xff]  }
   0x2   :  { %180 = vmatprep.subr.bf16.mxu0 %v200_v0  ;;  %v203_v3 = vld [vmem:[%s275_s1 + $0x20] sm:$0xff]   ;;  %v204_v5 = vld [vmem:[%s275_s1 + $0x18] sm:$0xff]   ;;  %v205_v6 = vld [vmem:[%s275_s1 + $0x10] sm:$0xff]  }
   0x3   :  { %181 = vmatpush3.bf16.msra.mxu0 %v200_v0  ;;  %v208_v4 = vld [vmem:[%s276_s0] sm:$0xff]   ;;  %v206_v7 = vld [vmem:[%s275_s1 + $0x8] sm:$0xff]  }
   0x4   :  { %182 = vmatprep.subr.bf16.mxu0 %v201_v1  ;;  %196 = vmatprep.mubr.bf16.mxu0 %v208_v4  ;;  %v207_v8 = vld [vmem:[%s275_s1] sm:$0xff]   ;;  %v209_v9 = vld [vmem:[%s276_s0 + $0x8] sm:$0xff]  }
   0x5   :  { %v159_v10 = vld [vmem:[%s277_s2] ss:$0 sm:$0xff] }
   0x7   :  { %183 = vmatpush3.bf16.msra.mxu0 %v201_v1 }
   0x8   :  { %184 = vmatprep.subr.bf16.mxu0 %v202_v2 }
   0xb   :  { %185 = vmatpush3.bf16.msra.mxu0 %v202_v2 }
   0xc   :  { %186 = vmatprep.subr.bf16.mxu0 %v203_v3 }
   0xf   :  { %187 = vmatpush3.bf16.msra.mxu0 %v203_v3 }
  0x10   :  { %188 = vmatprep.subr.bf16.mxu0 %v204_v5 }
  0x13   :  { %189 = vmatpush3.bf16.msra.mxu0 %v204_v5 }
  0x14   :  { %190 = vmatprep.subr.bf16.mxu0 %v205_v6 }
  0x17   :  { %191 = vmatpush3.bf16.msra.mxu0 %v205_v6 }
  0x18   :  { %192 = vmatprep.subr.bf16.mxu0 %v206_v7 }
  0x1b   :  { %193 = vmatpush3.bf16.msra.mxu0 %v206_v7 }
  0x1c   :  { %194 = vmatprep.subr.bf16.mxu0 %v207_v8 }
  0x1f   :  { %195 = vmatpush3.bf16.msra.mxu0 %v207_v8 }
  0x22   :  { %197 = vmatmul.mubr.bf16.vlgmr.msra.gmra.mxu0 %v209_v9 }
  0xe2   :  { %v198_v11 = vpop.f32.mrf.mxu0 }
  0xe3   :  { %v145_v12 = vadd.f32 %v198_v11, %v159_v10 }
  0xe4   :  { %v136_v13 = vpop.f32.mrf.mxu0 }
  0xe5   :  { %153 = vst [vmem:[%s278_s3 + $0x10] sm:$0xff] %v145_v12  ;;  %v137_v14 = vadd.f32 %v159_v10, %v136_v13 }
  0xe6   :  { %v199_v15 = vpop.f32.mrf.mxu0 }
  0xe7   :  { %151 = vst [vmem:[%s278_s3] sm:$0xff] %v137_v14  ;;  %v148_v16 = vadd.f32 %v199_v15, %v159_v10 }
  0xe8   :  { %v139_v17 = vpop.f32.mrf.mxu0 }
  0xe9   :  { %154 = vst [vmem:[%s278_s3 + $0x18] sm:$0xff] %v148_v16  ;;  %v140_v18 = vadd.f32 %v159_v10, %v139_v17 }
  0xeb   :  { %152 = vst [vmem:[%s278_s3 + $0x8] sm:$0xff] %v140_v18 }

// kernel: vqvae_forward.12
= control target key start
LH: loop header
LB: loop body
LE: loop exit
PB: predicated region body
PF: predicated region fallthrough
CT: control target
= control target key end

     0   :  { %s2669_s1 = inlined_call_operand.vmem [shape: bf16[2048,128], index: 1, kind: input, shape index: {}]   ;;  %s2670_s0 = inlined_call_operand.vmem [shape: bf16[32,2048], index: 0, kind: input, shape index: {}]   ;;  %s2671_s2 = inlined_call_operand.vmem [shape: f32[1,128], index: 2, kind: input, shape index: {}]   ;;  %s2672_s3 = inlined_call_operand.vmem [shape: f32[32,128], index: 3, kind: output, shape index: {}]  }
   0x1   :  { %v2023_v0 = vld [vmem:[%s2669_s1 + $0x78] sm:$0xff]   ;;  %v2027_v4 = vld [vmem:[%s2669_s1 + $0x70] sm:$0xff]   ;;  %v2031_v8 = vld [vmem:[%s2669_s1 + $0x68] sm:$0xff]  }
   0x2   :  { %v2024_v1 = vld [vmem:[%s2669_s1 + $0xf8] sm:$0xff]   ;;  %1799 = vmatprep.subr.bf16.mxu0 %v2023_v0  ;;  %v2028_v5 = vld [vmem:[%s2669_s1 + $0xf0] sm:$0xff]   ;;  %v2032_v9 = vld [vmem:[%s2669_s1 + $0xe8] sm:$0xff]  }
   0x3   :  { %v2025_v2 = vld [vmem:[%s2669_s1 + $0x38] sm:$0xff]   ;;  %1827 = vmatprep.subr.bf16.mxu1 %v2024_v1  ;;  %v2029_v6 = vld [vmem:[%s2669_s1 + $0x30] sm:$0xff]   ;;  %v2033_v10 = vld [vmem:[%s2669_s1 + $0x28] sm:$0xff]  }
   0x4   :  { %v2026_v3 = vld [vmem:[%s2669_s1 + $0xb8] sm:$0xff]   ;;  %1800 = vmatpush3.bf16.msra.mxu0 %v2025_v2  ;;  %v2030_v7 = vld [vmem:[%s2669_s1 + $0xb0] sm:$0xff]   ;;  %v2034_v11 = vld [vmem:[%s2669_s1 + $0xa8] sm:$0xff]  }
   0x5   :  { %1828 = vmatpush3.bf16.msra.mxu1 %v2026_v3  ;;  %1801 = vmatprep.subr.bf16.mxu0 %v2027_v4  ;;  %v2035_v12 = vld [vmem:[%s2669_s1 + $0x60] sm:$0xff]   ;;  %v2039_v16 = vld [vmem:[%s2669_s1 + $0x58] sm:$0xff]   ;;  %v2043_v20 = vld [vmem:[%s2669_s1 + $0x50] sm:$0xff]  }
   0x6   :  { %1829 = vmatprep.subr.bf16.mxu1 %v2028_v5  ;;  %v2036_v13 = vld [vmem:[%s2669_s1 + $0xe0] sm:$0xff]   ;;  %v2040_v17 = vld [vmem:[%s2669_s1 + $0xd8] sm:$0xff]   ;;  %v2044_v21 = vld [vmem:[%s2669_s1 + $0xd0] sm:$0xff]  }
   0x7   :  { %v2037_v14 = vld [vmem:[%s2669_s1 + $0x20] sm:$0xff]   ;;  %v2041_v18 = vld [vmem:[%s2669_s1 + $0x18] sm:$0xff]   ;;  %v2045_v22 = vld [vmem:[%s2669_s1 + $0x10] sm:$0xff]  }
   0x8   :  { %1802 = vmatpush3.bf16.msra.mxu0 %v2029_v6  ;;  %v2038_v15 = vld [vmem:[%s2669_s1 + $0xa0] sm:$0xff]   ;;  %v2042_v19 = vld [vmem:[%s2669_s1 + $0x98] sm:$0xff]   ;;  %v2046_v23 = vld [vmem:[%s2669_s1 + $0x90] sm:$0xff]  }
   0x9   :  { %1830 = vmatpush3.bf16.msra.mxu1 %v2030_v7  ;;  %1803 = vmatprep.subr.bf16.mxu0 %v2031_v8  ;;  %v2047_v24 = vld [vmem:[%s2669_s1 + $0x48] sm:$0xff]   ;;  %v2051_v28 = vld [vmem:[%s2669_s1 + $0x40] sm:$0xff]   ;;  %v2055_v40 = vld [vmem:[%s2669_s1 + $0x178] sm:$0xff]  }
   0xa   :  { %1831 = vmatprep.subr.bf16.mxu1 %v2032_v9  ;;  %v2048_v25 = vld [vmem:[%s2669_s1 + $0xc8] sm:$0xff]   ;;  %v2052_v29 = vld [vmem:[%s2669_s1 + $0xc0] sm:$0xff]   ;;  %v2056_v41 = vld [vmem:[%s2669_s1 + $0x1f8] sm:$0xff]  }
   0xb   :  { %v2049_v26 = vld [vmem:[%s2669_s1 + $0x8] sm:$0xff]   ;;  %v2053_v30 = vld [vmem:[%s2669_s1] sm:$0xff]   ;;  %v2057_v42 = vld [vmem:[%s2669_s1 + $0x138] sm:$0xff]  }
   0xc   :  { %1804 = vmatpush3.bf16.msra.mxu0 %v2033_v10  ;;  %v2050_v27 = vld [vmem:[%s2669_s1 + $0x88] sm:$0xff]   ;;  %v2054_v31 = vld [vmem:[%s2669_s1 + $0x80] sm:$0xff]   ;;  %v2058_v43 = vld [vmem:[%s2669_s1 + $0x1b8] sm:$0xff]  }
   0xd   :  { %1832 = vmatpush3.bf16.msra.mxu1 %v2034_v11  ;;  %1805 = vmatprep.subr.bf16.mxu0 %v2035_v12  ;;  %v15_v32 = vld [vmem:[%s2670_s0] sm:$0xff]  ;;  %v16_v34 = vld [vmem:[%s2670_s0 + $0x8] sm:$0xff]  ;;  %v2059_v44 = vld [vmem:[%s2669_s1 + $0x170] sm:$0xff]  }
   0xe   :  { %1833 = vmatprep.subr.bf16.mxu1 %v2036_v13  ;;  %v23_v33 = vld [vmem:[%s2670_s0 + $0x40] sm:$0xff]  ;;  %v24_v37 = vld [vmem:[%s2670_s0 + $0x48] sm:$0xff]  ;;  %v2060_v45 = vld [vmem:[%s2669_s1 + $0x1f0] sm:$0xff]  }
   0xf   :  { %v1639_v35 = vcombine.low %v15_v32, %v23_v33  ;;  %v1640_v36 = vcombine.high %v15_v32, %v23_v33  ;;  %v1641_v38 = vcombine.low %v16_v34, %v24_v37  ;;  %v1642_v39 = vcombine.high %v16_v34, %v24_v37  ;;  %v2061_v46 = vld [vmem:[%s2669_s1 + $0x130] sm:$0xff]   ;;  %v2063_v48 = vld [vmem:[%s2669_s1 + $0x168] sm:$0xff]   ;;  %v2067_v52 = vld [vmem:[%s2669_s1 + $0x160] sm:$0xff]  }
  0x10   :  { %1806 = vmatpush3.bf16.msra.mxu0 %v2037_v14  ;;  %v2062_v47 = vld [vmem:[%s2669_s1 + $0x1b0] sm:$0xff]   ;;  %v2064_v49 = vld [vmem:[%s2669_s1 + $0x1e8] sm:$0xff]   ;;  %v2068_v53 = vld [vmem:[%s2669_s1 + $0x1e0] sm:$0xff]  }
  0x11   :  { %1834 = vmatpush3.bf16.msra.mxu1 %v2038_v15  ;;  %1807 = vmatprep.subr.bf16.mxu0 %v2039_v16  ;;  %v2065_v50 = vld [vmem:[%s2669_s1 + $0x128] sm:$0xff]   ;;  %v2069_v54 = vld [vmem:[%s2669_s1 + $0x120] sm:$0xff]   ;;  %v2071_v56 = vld [vmem:[%s2669_s1 + $0x158] sm:$0xff]  }
  0x12   :  { %1835 = vmatprep.subr.bf16.mxu1 %v2040_v17  ;;  %1270 = vmatprep.mubr.bf16.mxu0 %v1640_v36  ;;  %v2066_v51 = vld [vmem:[%s2669_s1 + $0x1a8] sm:$0xff]   ;;  %v2070_v55 = vld [vmem:[%s2669_s1 + $0x1a0] sm:$0xff]   ;;  %v2072_v57 = vld [vmem:[%s2669_s1 + $0x1d8] sm:$0xff]  }
  0x13   :  { %1319 = vmatprep.mubr.bf16.mxu1 %v1642_v39  ;;  %v2073_v58 = vld [vmem:[%s2669_s1 + $0x118] sm:$0xff]   ;;  %v31_v60 = vld [vmem:[%s2670_s0 + $0x80] sm:$0xff]  ;;  %v32_v0 = vld [vmem:[%s2670_s0 + $0x88] sm:$0xff] }
  0x14   :  { %1808 = vmatpush3.bf16.msra.mxu0 %v2041_v18  ;;  %v2074_v59 = vld [vmem:[%s2669_s1 + $0x198] sm:$0xff]   ;;  %v39_v61 = vld [vmem:[%s2670_s0 + $0xc0] sm:$0xff]  ;;  %v40_v1 = vld [vmem:[%s2670_s0 + $0xc8] sm:$0xff] }
  0x15   :  { %1836 = vmatpush3.bf16.msra.mxu1 %v2042_v19  ;;  %1809 = vmatprep.subr.bf16.mxu0 %v2043_v20  ;;  %v1656_v62 = vcombine.high %v31_v60, %v39_v61  ;;  %v1655_v63 = vcombine.low %v31_v60, %v39_v61  ;;  %v1658_v2 = vcombine.high %v32_v0, %v40_v1  ;;  %v2075_v3 = vld [vmem:[%s2669_s1 + $0x150] sm:$0xff]   ;;  %v2079_v8 = vld [vmem:[%s2669_s1 + $0x148] sm:$0xff]   ;;  %v2083_v12 = vld [vmem:[%s2669_s1 + $0x140] sm:$0xff]  }
  0x16   :  { %1837 = vmatprep.subr.bf16.mxu1 %v2044_v21  ;;  %v1657_v4 = vcombine.low %v32_v0, %v40_v1  ;;  %v2076_v5 = vld [vmem:[%s2669_s1 + $0x1d0] sm:$0xff]   ;;  %v2080_v9 = vld [vmem:[%s2669_s1 + $0x1c8] sm:$0xff]   ;;  %v2084_v13 = vld [vmem:[%s2669_s1 + $0x1c0] sm:$0xff]  }
  0x17   :  { %v2077_v6 = vld [vmem:[%s2669_s1 + $0x110] sm:$0xff]   ;;  %v2081_v10 = vld [vmem:[%s2669_s1 + $0x108] sm:$0xff]   ;;  %v2085_v14 = vld [vmem:[%s2669_s1 + $0x100] sm:$0xff]  }
  0x18   :  { %1810 = vmatpush3.bf16.msra.mxu0 %v2045_v22  ;;  %v2078_v7 = vld [vmem:[%s2669_s1 + $0x190] sm:$0xff]   ;;  %v2082_v11 = vld [vmem:[%s2669_s1 + $0x188] sm:$0xff]   ;;  %v2086_v15 = vld [vmem:[%s2669_s1 + $0x180] sm:$0xff]  }
  0x19   :  { %1838 = vmatpush3.bf16.msra.mxu1 %v2046_v23  ;;  %1811 = vmatprep.subr.bf16.mxu0 %v2047_v24  ;;  %v17_v16 = vld [vmem:[%s2670_s0 + $0x10] sm:$0xff]  ;;  %v18_v18 = vld [vmem:[%s2670_s0 + $0x18] sm:$0xff]  ;;  %v2095_v36 = vld [vmem:[%s2669_s1 + $0x268] sm:$0xff]  }
  0x1a   :  { %1839 = vmatprep.subr.bf16.mxu1 %v2048_v25  ;;  %v25_v17 = vld [vmem:[%s2670_s0 + $0x50] sm:$0xff]  ;;  %v26_v19 = vld [vmem:[%s2670_s0 + $0x58] sm:$0xff]  ;;  %v2096_v37 = vld [vmem:[%s2669_s1 + $0x2e8] sm:$0xff]  }
  0x1b   :  { %v1643_v20 = vcombine.low %v17_v16, %v25_v17  ;;  %v1644_v21 = vcombine.high %v17_v16, %v25_v17  ;;  %v1645_v22 = vcombine.low %v18_v18, %v26_v19  ;;  %v1646_v23 = vcombine.high %v18_v18, %v26_v19  ;;  %v2087_v24 = vld [vmem:[%s2669_s1 + $0x278] sm:$0xff]   ;;  %v33_v32 = vld [vmem:[%s2670_s0 + $0x90] sm:$0xff]  ;;  %v2115_v60 = vld [vmem:[%s2669_s1 + $0x240] sm:$0xff]  }
  0x1c   :  { %1812 = vmatpush3.bf16.msra.mxu0 %v2049_v26  ;;  %v2088_v25 = vld [vmem:[%s2669_s1 + $0x2f8] sm:$0xff]   ;;  %v41_v33 = vld [vmem:[%s2670_s0 + $0xd0] sm:$0xff]  ;;  %v2116_v61 = vld [vmem:[%s2669_s1 + $0x2c0] sm:$0xff]  }
  0x1d   :  { %1840 = vmatpush3.bf16.msra.mxu1 %v2050_v27  ;;  %1813 = vmatprep.subr.bf16.mxu0 %v2051_v28  ;;  %v2089_v26 = vld [vmem:[%s2669_s1 + $0x238] sm:$0xff]   ;;  %v2091_v28 = vld [vmem:[%s2669_s1 + $0x270] sm:$0xff]   ;;  %v1660_v34 = vcombine.high %v33_v32, %v41_v33  ;;  %v19_v0 = vld [vmem:[%s2670_s0 + $0x20] sm:$0xff] }
  0x1e   :  { %1841 = vmatprep.subr.bf16.mxu1 %v2052_v29  ;;  %v2090_v27 = vld [vmem:[%s2669_s1 + $0x2b8] sm:$0xff]   ;;  %v2092_v29 = vld [vmem:[%s2669_s1 + $0x2f0] sm:$0xff]   ;;  %v27_v1 = vld [vmem:[%s2670_s0 + $0x60] sm:$0xff] }
  0x1f   :  { %v42_v39 = vld [vmem:[%s2670_s0 + $0xd8] sm:$0xff]  ;;  %v35_v16 = vld [vmem:[%s2670_s0 + $0xa0] sm:$0xff] }
  0x20   :  { %1814 = vmatpush3.bf16.msra.mxu0 %v2053_v30  ;;  %v2093_v30 = vld [vmem:[%s2669_s1 + $0x230] sm:$0xff]   ;;  %v43_v17 = vld [vmem:[%s2670_s0 + $0xe0] sm:$0xff] }
  0x21   :  { %1842 = vmatpush3.bf16.msra.mxu1 %v2054_v31  ;;  %1855 = vmatprep.subr.bf16.mxu0 %v2055_v40  ;;  %v2094_v31 = vld [vmem:[%s2669_s1 + $0x2b0] sm:$0xff]   ;;  %v1664_v18 = vcombine.high %v35_v16, %v43_v17  ;;  %v1663_v19 = vcombine.low %v35_v16, %v43_v17 }
  0x22   :  { %1883 = vmatprep.subr.bf16.mxu1 %v2056_v41  ;;  %v2097_v41 = vld [vmem:[%s2669_s1 + $0x228] sm:$0xff]  }
  0x23   :  { %1271 = vmatmul.mubr.bf16.vlgmr.msra.gmra.mxu0 %v1639_v35  ;;  %v1659_v35 = vcombine.low %v33_v32, %v41_v33  ;;  %v2135_v32 = vld [vmem:[%s2669_s1 + $0x358] sm:$0xff]  }
  0x24   :  { %1320 = vmatmul.mubr.bf16.vlgmr.msra.gmra.mxu1 %v1641_v38  ;;  %1856 = vmatpush3.bf16.msra.mxu0 %v2057_v42  ;;  %v34_v38 = vld [vmem:[%s2670_s0 + $0x98] sm:$0xff] }
  0x25   :  { %1884 = vmatpush3.bf16.msra.mxu1 %v2058_v43  ;;  %1857 = vmatprep.subr.bf16.mxu0 %v2059_v44  ;;  %v1662_v40 = vcombine.high %v34_v38, %v42_v39  ;;  %v1661_v42 = vcombine.low %v34_v38, %v42_v39  ;;  %v2098_v43 = vld [vmem:[%s2669_s1 + $0x2a8] sm:$0xff]   ;;  %v2099_v44 = vld [vmem:[%s2669_s1 + $0x260] sm:$0xff]   ;;  %v2136_v33 = vld [vmem:[%s2669_s1 + $0x3d8] sm:$0xff]  }
  0x26   :  { %1885 = vmatprep.subr.bf16.mxu1 %v2060_v45  ;;  %1278 = vmatprep.mubr.bf16.mxu0 %v1656_v62  ;;  %v2100_v45 = vld [vmem:[%s2669_s1 + $0x2e0] sm:$0xff]   ;;  %v2141_v38 = vld [vmem:[%s2669_s1 + $0x310] sm:$0xff]  }
  0x27   :  { %1327 = vmatprep.mubr.bf16.mxu1 %v1658_v2  ;;  %v2117_v62 = vld [vmem:[%s2669_s1 + $0x200] sm:$0xff]   ;;  %v1647_v2 = vcombine.low %v19_v0, %v27_v1  ;;  %v2142_v39 = vld [vmem:[%s2669_s1 + $0x390] sm:$0xff]  }
  0x28   :  { %1858 = vmatpush3.bf16.msra.mxu0 %v2061_v46  ;;  %v2101_v46 = vld [vmem:[%s2669_s1 + $0x220] sm:$0xff]  }
  0x29   :  { %1886 = vmatpush3.bf16.msra.mxu1 %v2062_v47  ;;  %1859 = vmatprep.subr.bf16.mxu0 %v2063_v48  ;;  %v2102_v47 = vld [vmem:[%s2669_s1 + $0x2a0] sm:$0xff]   ;;  %v2103_v48 = vld [vmem:[%s2669_s1 + $0x258] sm:$0xff]  }
  0x2a   :  { %1887 = vmatprep.subr.bf16.mxu1 %v2064_v49  ;;  %v2104_v49 = vld [vmem:[%s2669_s1 + $0x2d8] sm:$0xff]  }
  0x2b   :  { %1279 = vmatmul.mubr.bf16.gmra.mxu0 %v1655_v63  ;;  %v2118_v63 = vld [vmem:[%s2669_s1 + $0x280] sm:$0xff]  }
  0x2c   :  { %1860 = vmatpush3.bf16.msra.mxu0 %v2065_v50  ;;  %1328 = vmatmul.mubr.bf16.gmra.mxu1 %v1657_v4  ;;  %v2105_v50 = vld [vmem:[%s2669_s1 + $0x218] sm:$0xff]   ;;  %v20_v4 = vld [vmem:[%s2670_s0 + $0x28] sm:$0xff] }
  0x2d   :  { %1888 = vmatpush3.bf16.msra.mxu1 %v2066_v51  ;;  %1861 = vmatprep.subr.bf16.mxu0 %v2067_v52  ;;  %v2106_v51 = vld [vmem:[%s2669_s1 + $0x298] sm:$0xff]   ;;  %v2107_v52 = vld [vmem:[%s2669_s1 + $0x250] sm:$0xff]  }
  0x2e   :  { %1889 = vmatprep.subr.bf16.mxu1 %v2068_v53  ;;  %1368 = vmatprep.mubr.bf16.mxu0 %v1644_v21  ;;  %v2108_v53 = vld [vmem:[%s2669_s1 + $0x2d0] sm:$0xff]   ;;  %v2128_v21 = vld [vmem:[%s2669_s1 + $0x3e8] sm:$0xff]  }
  0x2f   :  { %1417 = vmatprep.mubr.bf16.mxu1 %v1646_v23  ;;  %v44_v23 = vld [vmem:[%s2670_s0 + $0xe8] sm:$0xff] }
  0x30   :  { %1862 = vmatpush3.bf16.msra.mxu0 %v2069_v54  ;;  %v2109_v54 = vld [vmem:[%s2669_s1 + $0x210] sm:$0xff]  }
  0x31   :  { %1890 = vmatpush3.bf16.msra.mxu1 %v2070_v55  ;;  %1863 = vmatprep.subr.bf16.mxu0 %v2071_v56  ;;  %v2110_v55 = vld [vmem:[%s2669_s1 + $0x290] sm:$0xff]   ;;  %v2111_v56 = vld [vmem:[%s2669_s1 + $0x248] sm:$0xff]  }
  0x32   :  { %1891 = vmatprep.subr.bf16.mxu1 %v2072_v57  ;;  %v2112_v57 = vld [vmem:[%s2669_s1 + $0x2c8] sm:$0xff]  }
  0x34   :  { %1864 = vmatpush3.bf16.msra.mxu0 %v2073_v58  ;;  %v2113_v58 = vld [vmem:[%s2669_s1 + $0x208] sm:$0xff]  }
  0x35   :  { %1892 = vmatpush3.bf16.msra.mxu1 %v2074_v59  ;;  %1865 = vmatprep.subr.bf16.mxu0 %v2075_v3  ;;  %v2114_v59 = vld [vmem:[%s2669_s1 + $0x288] sm:$0xff]   ;;  %v1648_v3 = vcombine.high %v19_v0, %v27_v1 }
  0x36   :  { %1893 = vmatprep.subr.bf16.mxu1 %v2076_v5  ;;  %v28_v5 = vld [vmem:[%s2670_s0 + $0x68] sm:$0xff] }
  0x38   :  { %1866 = vmatpush3.bf16.msra.mxu0 %v2077_v6  ;;  %v1649_v6 = vcombine.low %v20_v4, %v28_v5 }
  0x39   :  { %1894 = vmatpush3.bf16.msra.mxu1 %v2078_v7  ;;  %1867 = vmatprep.subr.bf16.mxu0 %v2079_v8  ;;  %v1650_v7 = vcombine.high %v20_v4, %v28_v5  ;;  %v2119_v8 = vld [vmem:[%s2669_s1 + $0x378] sm:$0xff]  }
  0x3a   :  { %1895 = vmatprep.subr.bf16.mxu1 %v2080_v9  ;;  %v2120_v9 = vld [vmem:[%s2669_s1 + $0x3f8] sm:$0xff]  }
  0x3c   :  { %1868 = vmatpush3.bf16.msra.mxu0 %v2081_v10  ;;  %v2121_v10 = vld [vmem:[%s2669_s1 + $0x338] sm:$0xff]  }
  0x3d   :  { %1896 = vmatpush3.bf16.msra.mxu1 %v2082_v11  ;;  %1869 = vmatprep.subr.bf16.mxu0 %v2083_v12  ;;  %v2122_v11 = vld [vmem:[%s2669_s1 + $0x3b8] sm:$0xff]   ;;  %v2123_v12 = vld [vmem:[%s2669_s1 + $0x370] sm:$0xff]  }
  0x3e   :  { %1897 = vmatprep.subr.bf16.mxu1 %v2084_v13  ;;  %v2124_v13 = vld [vmem:[%s2669_s1 + $0x3f0] sm:$0xff]  }
  0x40   :  { %1870 = vmatpush3.bf16.msra.mxu0 %v2085_v14  ;;  %v2125_v14 = vld [vmem:[%s2669_s1 + $0x330] sm:$0xff]  }
  0x41   :  { %1898 = vmatpush3.bf16.msra.mxu1 %v2086_v15  ;;  %1911 = vmatprep.subr.bf16.mxu0 %v2087_v24  ;;  %v2126_v15 = vld [vmem:[%s2669_s1 + $0x3b0] sm:$0xff]  }
  0x42   :  { %1939 = vmatprep.subr.bf16.mxu1 %v2088_v25  ;;  %v2129_v25 = vld [vmem:[%s2669_s1 + $0x328] sm:$0xff]  }
  0x43   :  { %1369 = vmatmul.mubr.bf16.vlgmr.msra.gmra.mxu0 %v1643_v20  ;;  %v2127_v20 = vld [vmem:[%s2669_s1 + $0x368] sm:$0xff]  }
  0x44   :  { %1418 = vmatmul.mubr.bf16.vlgmr.msra.gmra.mxu1 %v1645_v22  ;;  %1912 = vmatpush3.bf16.msra.mxu0 %v2089_v26  ;;  %v36_v22 = vld [vmem:[%s2670_s0 + $0xa8] sm:$0xff] }
  0x45   :  { %1940 = vmatpush3.bf16.msra.mxu1 %v2090_v27  ;;  %1913 = vmatprep.subr.bf16.mxu0 %v2091_v28  ;;  %v1666_v24 = vcombine.high %v36_v22, %v44_v23  ;;  %v1665_v26 = vcombine.low %v36_v22, %v44_v23  ;;  %v2130_v27 = vld [vmem:[%s2669_s1 + $0x3a8] sm:$0xff]   ;;  %v2131_v28 = vld [vmem:[%s2669_s1 + $0x360] sm:$0xff]  }
  0x46   :  { %1941 = vmatprep.subr.bf16.mxu1 %v2092_v29  ;;  %1376 = vmatprep.mubr.bf16.mxu0 %v1660_v34  ;;  %v2132_v29 = vld [vmem:[%s2669_s1 + $0x3e0] sm:$0xff]   ;;  %v2137_v34 = vld [vmem:[%s2669_s1 + $0x318] sm:$0xff]  }
  0x47   :  { %1425 = vmatprep.mubr.bf16.mxu1 %v1662_v40  ;;  %v2143_v40 = vld [vmem:[%s2669_s1 + $0x348] sm:$0xff]  }
  0x48   :  { %1914 = vmatpush3.bf16.msra.mxu0 %v2093_v30  ;;  %v2133_v30 = vld [vmem:[%s2669_s1 + $0x320] sm:$0xff]  }
  0x49   :  { %1942 = vmatpush3.bf16.msra.mxu1 %v2094_v31  ;;  %1915 = vmatprep.subr.bf16.mxu0 %v2095_v36  ;;  %v2134_v31 = vld [vmem:[%s2669_s1 + $0x3a0] sm:$0xff]   ;;  %v2139_v36 = vld [vmem:[%s2669_s1 + $0x350] sm:$0xff]  }
  0x4a   :  { %1943 = vmatprep.subr.bf16.mxu1 %v2096_v37  ;;  %v2140_v37 = vld [vmem:[%s2669_s1 + $0x3d0] sm:$0xff]  }
  0x4b   :  { %1377 = vmatmul.mubr.bf16.gmra.mxu0 %v1659_v35  ;;  %v2138_v35 = vld [vmem:[%s2669_s1 + $0x398] sm:$0xff]  }
  0x4c   :  { %1916 = vmatpush3.bf16.msra.mxu0 %v2097_v41  ;;  %1426 = vmatmul.mubr.bf16.gmra.mxu1 %v1661_v42  ;;  %v2144_v41 = vld [vmem:[%s2669_s1 + $0x3c8] sm:$0xff]  }
  0x4d   :  { %1944 = vmatpush3.bf16.msra.mxu1 %v2098_v43  ;;  %1917 = vmatprep.subr.bf16.mxu0 %v2099_v44  ;;  %v2145_v42 = vld [vmem:[%s2669_s1 + $0x308] sm:$0xff]   ;;  %v2147_v44 = vld [vmem:[%s2669_s1 + $0x340] sm:$0xff]  }
  0x4e   :  { %1945 = vmatprep.subr.bf16.mxu1 %v2100_v45  ;;  %1466 = vmatprep.mubr.bf16.mxu0 %v1648_v3  ;;  %v2146_v43 = vld [vmem:[%s2669_s1 + $0x388] sm:$0xff]   ;;  %v2148_v45 = vld [vmem:[%s2669_s1 + $0x3c0] sm:$0xff]  }
  0x4f   :  { %1515 = vmatprep.mubr.bf16.mxu1 %v1650_v7 }
  0x50   :  { %1918 = vmatpush3.bf16.msra.mxu0 %v2101_v46  ;;  %v2149_v46 = vld [vmem:[%s2669_s1 + $0x300] sm:$0xff]  }
  0x51   :  { %1946 = vmatpush3.bf16.msra.mxu1 %v2102_v47  ;;  %1919 = vmatprep.subr.bf16.mxu0 %v2103_v48  ;;  %v2150_v47 = vld [vmem:[%s2669_s1 + $0x380] sm:$0xff]   ;;  %v21_v48 = vld [vmem:[%s2670_s0 + $0x30] sm:$0xff] }
  0x52   :  { %1947 = vmatprep.subr.bf16.mxu1 %v2104_v49  ;;  %v29_v49 = vld [vmem:[%s2670_s0 + $0x70] sm:$0xff] }
  0x54   :  { %1920 = vmatpush3.bf16.msra.mxu0 %v2105_v50  ;;  %v22_v50 = vld [vmem:[%s2670_s0 + $0x38] sm:$0xff] }
  0x55   :  { %1948 = vmatpush3.bf16.msra.mxu1 %v2106_v51  ;;  %1921 = vmatprep.subr.bf16.mxu0 %v2107_v52  ;;  %v1651_v51 = vcombine.low %v21_v48, %v29_v49  ;;  %v1652_v52 = vcombine.high %v21_v48, %v29_v49 }
  0x56   :  { %1949 = vmatprep.subr.bf16.mxu1 %v2108_v53  ;;  %v30_v53 = vld [vmem:[%s2670_s0 + $0x78] sm:$0xff] }
  0x58   :  { %1922 = vmatpush3.bf16.msra.mxu0 %v2109_v54  ;;  %v37_v54 = vld [vmem:[%s2670_s0 + $0xb0] sm:$0xff] }
  0x59   :  { %1950 = vmatpush3.bf16.msra.mxu1 %v2110_v55  ;;  %1923 = vmatprep.subr.bf16.mxu0 %v2111_v56  ;;  %v45_v55 = vld [vmem:[%s2670_s0 + $0xf0] sm:$0xff]  ;;  %v1653_v56 = vcombine.low %v22_v50, %v30_v53 }
  0x5a   :  { %1951 = vmatprep.subr.bf16.mxu1 %v2112_v57  ;;  %v1654_v57 = vcombine.high %v22_v50, %v30_v53 }
  0x5c   :  { %1924 = vmatpush3.bf16.msra.mxu0 %v2113_v58  ;;  %v1668_v58 = vcombine.high %v37_v54, %v45_v55 }
  0x5d   :  { %1952 = vmatpush3.bf16.msra.mxu1 %v2114_v59  ;;  %1925 = vmatprep.subr.bf16.mxu0 %v2115_v60  ;;  %v38_v59 = vld [vmem:[%s2670_s0 + $0xb8] sm:$0xff] }
  0x5e   :  { %1953 = vmatprep.subr.bf16.mxu1 %v2116_v61  ;;  %v46_v60 = vld [vmem:[%s2670_s0 + $0xf8] sm:$0xff] }
  0x5f   :  { %v1670_v61 = vcombine.high %v38_v59, %v46_v60 }
  0x60   :  { %1926 = vmatpush3.bf16.msra.mxu0 %v2117_v62  ;;  %v1667_v62 = vcombine.low %v37_v54, %v45_v55 }
  0x61   :  { %1954 = vmatpush3.bf16.msra.mxu1 %v2118_v63  ;;  %1967 = vmatprep.subr.bf16.mxu0 %v2119_v8  ;;  %v1669_v63 = vcombine.low %v38_v59, %v46_v60 }
  0x62   :  { %1995 = vmatprep.subr.bf16.mxu1 %v2120_v9 }
  0x63   :  { %1467 = vmatmul.mubr.bf16.vlgmr.msra.gmra.mxu0 %v1647_v2 }
  0x64   :  { %1516 = vmatmul.mubr.bf16.vlgmr.msra.gmra.mxu1 %v1649_v6  ;;  %1968 = vmatpush3.bf16.msra.mxu0 %v2121_v10 }
  0x65   :  { %1996 = vmatpush3.bf16.msra.mxu1 %v2122_v11  ;;  %1969 = vmatprep.subr.bf16.mxu0 %v2123_v12 }
  0x66   :  { %1997 = vmatprep.subr.bf16.mxu1 %v2124_v13  ;;  %1474 = vmatprep.mubr.bf16.mxu0 %v1664_v18 }
  0x67   :  { %1523 = vmatprep.mubr.bf16.mxu1 %v1666_v24 }
  0x68   :  { %1970 = vmatpush3.bf16.msra.mxu0 %v2125_v14 }
  0x69   :  { %1998 = vmatpush3.bf16.msra.mxu1 %v2126_v15  ;;  %1971 = vmatprep.subr.bf16.mxu0 %v2127_v20 }
  0x6a   :  { %1999 = vmatprep.subr.bf16.mxu1 %v2128_v21 }
  0x6b   :  { %1475 = vmatmul.mubr.bf16.gmra.mxu0 %v1663_v19 }
  0x6c   :  { %1972 = vmatpush3.bf16.msra.mxu0 %v2129_v25  ;;  %1524 = vmatmul.mubr.bf16.gmra.mxu1 %v1665_v26 }
  0x6d   :  { %2000 = vmatpush3.bf16.msra.mxu1 %v2130_v27  ;;  %1973 = vmatprep.subr.bf16.mxu0 %v2131_v28 }
  0x6e   :  { %2001 = vmatprep.subr.bf16.mxu1 %v2132_v29  ;;  %1564 = vmatprep.mubr.bf16.mxu0 %v1652_v52 }
  0x6f   :  { %1613 = vmatprep.mubr.bf16.mxu1 %v1654_v57 }
  0x70   :  { %1974 = vmatpush3.bf16.msra.mxu0 %v2133_v30 }
  0x71   :  { %2002 = vmatpush3.bf16.msra.mxu1 %v2134_v31  ;;  %1975 = vmatprep.subr.bf16.mxu0 %v2135_v32 }
  0x72   :  { %2003 = vmatprep.subr.bf16.mxu1 %v2136_v33 }
  0x74   :  { %1976 = vmatpush3.bf16.msra.mxu0 %v2137_v34 }
  0x75   :  { %2004 = vmatpush3.bf16.msra.mxu1 %v2138_v35  ;;  %1977 = vmatprep.subr.bf16.mxu0 %v2139_v36 }
  0x76   :  { %2005 = vmatprep.subr.bf16.mxu1 %v2140_v37 }
  0x78   :  { %1978 = vmatpush3.bf16.msra.mxu0 %v2141_v38 }
  0x79   :  { %2006 = vmatpush3.bf16.msra.mxu1 %v2142_v39  ;;  %1979 = vmatprep.subr.bf16.mxu0 %v2143_v40  ;;  %v1638_v40 = vld [vmem:[%s2671_s2] ss:$0 sm:$0xff] }
  0x7a   :  { %2007 = vmatprep.subr.bf16.mxu1 %v2144_v41 }
  0x7c   :  { %1980 = vmatpush3.bf16.msra.mxu0 %v2145_v42 }
  0x7d   :  { %2008 = vmatpush3.bf16.msra.mxu1 %v2146_v43  ;;  %1981 = vmatprep.subr.bf16.mxu0 %v2147_v44 }
  0x7e   :  { %2009 = vmatprep.subr.bf16.mxu1 %v2148_v45 }
  0x80   :  { %1982 = vmatpush3.bf16.msra.mxu0 %v2149_v46 }
  0x81   :  { %2010 = vmatpush3.bf16.msra.mxu1 %v2150_v47 }
  0x83   :  { %1565 = vmatmul.mubr.bf16.vlgmr.msra.gmra.mxu0 %v1651_v51 }
  0x84   :  { %1614 = vmatmul.mubr.bf16.vlgmr.msra.gmra.mxu1 %v1653_v56  ;;  %1572 = vmatprep.mubr.bf16.mxu0 %v1668_v58 }
  0x85   :  { %1621 = vmatprep.mubr.bf16.mxu1 %v1670_v61 }
  0x8b   :  { %1573 = vmatmul.mubr.bf16.gmra.mxu0 %v1667_v62 }
  0x8c   :  { %1622 = vmatmul.mubr.bf16.gmra.mxu1 %v1669_v63 }
  0xe3   :  { %v1815_v0 = vpop.f32.mrf.mxu0 }
  0xe4   :  { %v1843_v2 = vpop.f32.mrf.mxu1 }
  0xe5   :  { %v1816_v1 = vpop.f32.mrf.mxu0 }
  0xe6   :  { %v1844_v4 = vpop.f32.mrf.mxu1  ;;  %v1817_v39 = vadd.f32 %v1816_v1, %v1815_v0 }
  0xe7   :  { %v1818_v3 = vpop.f32.mrf.mxu0  ;;  %v1845_v44 = vadd.f32 %v1844_v4, %v1843_v2 }
  0xe8   :  { %v1846_v6 = vpop.f32.mrf.mxu1  ;;  %v1273_v43 = vadd.f32 %v1817_v39, %v1638_v40 }
  0xe9   :  { %v1819_v5 = vpop.f32.mrf.mxu0 }
  0xea   :  { %v1847_v8 = vpop.f32.mrf.mxu1  ;;  %v1820_v45 = vadd.f32 %v1819_v5, %v1818_v3  ;;  %v1322_v50 = vadd.f32 %v1845_v44, %v1273_v43 }
  0xeb   :  { %v1821_v7 = vpop.f32.mrf.mxu0  ;;  %v1848_v53 = vadd.f32 %v1847_v8, %v1846_v6 }
  0xec   :  { %v1849_v10 = vpop.f32.mrf.mxu1  ;;  %v1276_v51 = vadd.f32 %v1820_v45, %v1638_v40 }
  0xed   :  { %v1822_v9 = vpop.f32.mrf.mxu0 }
  0xee   :  { %v1850_v12 = vpop.f32.mrf.mxu1  ;;  %v1823_v48 = vadd.f32 %v1822_v9, %v1821_v7  ;;  %v1325_v61 = vadd.f32 %v1848_v53, %v1276_v51 }
  0xef   :  { %v1824_v11 = vpop.f32.mrf.mxu0  ;;  %v1851_v58 = vadd.f32 %v1850_v12, %v1849_v10 }
  0xf0   :  { %v1852_v14 = vpop.f32.mrf.mxu1  ;;  %v1281_v57 = vadd.f32 %v1823_v48, %v1638_v40 }
  0xf1   :  { %v1825_v13 = vpop.f32.mrf.mxu0 }
  0xf2   :  { %v1853_v16 = vpop.f32.mrf.mxu1  ;;  %v1826_v59 = vadd.f32 %v1825_v13, %v1824_v11  ;;  %v1330_v3 = vadd.f32 %v1851_v58, %v1281_v57 }
  0xf3   :  { %v1854_v5 = vadd.f32 %v1853_v16, %v1852_v14 }
  0xf4   :  { %v1284_v4 = vadd.f32 %v1826_v59, %v1638_v40 }
 0x103   :  { %v1871_v15 = vpop.f32.mrf.mxu0 }
 0x104   :  { %v1899_v18 = vpop.f32.mrf.mxu1 }
 0x105   :  { %v1872_v17 = vpop.f32.mrf.mxu0 }
 0x106   :  { %v1900_v20 = vpop.f32.mrf.mxu1  ;;  %v1873_v47 = vadd.f32 %v1872_v17, %v1871_v15 }
 0x107   :  { %v1874_v19 = vpop.f32.mrf.mxu0  ;;  %v1901_v55 = vadd.f32 %v1900_v20, %v1899_v18  ;;  %v1333_v20 = vadd.f32 %v1854_v5, %v1284_v4 }
 0x108   :  { %v1902_v22 = vpop.f32.mrf.mxu1  ;;  %v1371_v54 = vadd.f32 %v1873_v47, %v1322_v50 }
 0x109   :  { %v1875_v21 = vpop.f32.mrf.mxu0 }
 0x10a   :  { %v1903_v24 = vpop.f32.mrf.mxu1  ;;  %v1876_v56 = vadd.f32 %v1875_v21, %v1874_v19  ;;  %v1420_v1 = vadd.f32 %v1901_v55, %v1371_v54 }
 0x10b   :  { %v1877_v23 = vpop.f32.mrf.mxu0  ;;  %v1904_v9 = vadd.f32 %v1903_v24, %v1902_v22 }
 0x10c   :  { %v1905_v25 = vpop.f32.mrf.mxu1  ;;  %v1374_v2 = vadd.f32 %v1876_v56, %v1325_v61 }
 0x10d   :  { %v1878_v26 = vpop.f32.mrf.mxu0 }
 0x10e   :  { %v1906_v27 = vpop.f32.mrf.mxu1  ;;  %v1879_v0 = vadd.f32 %v1878_v26, %v1877_v23  ;;  %v1423_v12 = vadd.f32 %v1904_v9, %v1374_v2 }
 0x10f   :  { %v1880_v28 = vpop.f32.mrf.mxu0  ;;  %v1907_v19 = vadd.f32 %v1906_v27, %v1905_v25 }
 0x110   :  { %v2651_v29 = vpop.f32.mrf.mxu1  ;;  %v1379_v18 = vadd.f32 %v1879_v0, %v1330_v3 }
 0x111   :  { %v1881_v30 = vpop.f32.mrf.mxu0 }
 0x112   :  { %v1909_v32 = vpop.f32.mrf.mxu1  ;;  %v1882_v10 = vadd.f32 %v1881_v30, %v1880_v28  ;;  %v1428_v14 = vadd.f32 %v1907_v19, %v1379_v18 }
 0x113   :  { %v1910_v24 = vadd.f32 %v1909_v32, %v2651_v29 }
 0x114   :  { %v1382_v16 = vadd.f32 %v1882_v10, %v1333_v20 }
 0x116   :  { %v1431_v47 = vadd.f32 %v1910_v24, %v1382_v16 }
 0x123   :  { %v1927_v31 = vpop.f32.mrf.mxu0 }
 0x124   :  { %v1955_v33 = vpop.f32.mrf.mxu1 }
 0x125   :  { %v1928_v34 = vpop.f32.mrf.mxu0 }
 0x126   :  { %v1956_v35 = vpop.f32.mrf.mxu1  ;;  %v1929_v62 = vadd.f32 %v1928_v34, %v1927_v31 }
 0x127   :  { %v1930_v36 = vpop.f32.mrf.mxu0  ;;  %v1957_v6 = vadd.f32 %v1956_v35, %v1955_v33 }
 0x128   :  { %v1958_v37 = vpop.f32.mrf.mxu1  ;;  %v1469_v15 = vadd.f32 %v1929_v62, %v1420_v1 }
 0x129   :  { %v1931_v38 = vpop.f32.mrf.mxu0 }
 0x12a   :  { %v1959_v41 = vpop.f32.mrf.mxu1  ;;  %v1932_v8 = vadd.f32 %v1931_v38, %v1930_v36  ;;  %v1518_v26 = vadd.f32 %v1957_v6, %v1469_v15 }
 0x12b   :  { %v1933_v42 = vpop.f32.mrf.mxu0  ;;  %v1960_v33 = vadd.f32 %v1959_v41, %v1958_v37 }
 0x12c   :  { %v1961_v46 = vpop.f32.mrf.mxu1  ;;  %v1472_v31 = vadd.f32 %v1932_v8, %v1423_v12 }
 0x12d   :  { %v1934_v49 = vpop.f32.mrf.mxu0 }
 0x12e   :  { %v1962_v52 = vpop.f32.mrf.mxu1  ;;  %v1935_v21 = vadd.f32 %v1934_v49, %v1933_v42  ;;  %v1521_v38 = vadd.f32 %v1960_v33, %v1472_v31 }
 0x12f   :  { %v1936_v60 = vpop.f32.mrf.mxu0  ;;  %v1963_v28 = vadd.f32 %v1962_v52, %v1961_v46 }
 0x130   :  { %v1964_v63 = vpop.f32.mrf.mxu1  ;;  %v1477_v27 = vadd.f32 %v1935_v21, %v1428_v14 }
 0x131   :  { %v1937_v7 = vpop.f32.mrf.mxu0 }
 0x132   :  { %v1965_v17 = vpop.f32.mrf.mxu1  ;;  %v1938_v40 = vadd.f32 %v1937_v7, %v1936_v60  ;;  %v1526_v37 = vadd.f32 %v1963_v28, %v1477_v27 }
 0x133   :  { %v1966_v50 = vadd.f32 %v1965_v17, %v1964_v63 }
 0x134   :  { %v1480_v49 = vadd.f32 %v1938_v40, %v1431_v47 }
 0x136   :  { %v1529_v58 = vadd.f32 %v1966_v50, %v1480_v49 }
 0x143   :  { %v1983_v11 = vpop.f32.mrf.mxu0 }
 0x144   :  { %v2011_v13 = vpop.f32.mrf.mxu1 }
 0x145   :  { %v1984_v23 = vpop.f32.mrf.mxu0 }
 0x146   :  { %v1985_v34 = vadd.f32 %v1984_v23, %v1983_v11  ;;  %v2012_v39 = vpop.f32.mrf.mxu1 }
 0x147   :  { %v1986_v22 = vpop.f32.mrf.mxu0  ;;  %v2013_v36 = vadd.f32 %v2012_v39, %v2011_v13 }
 0x148   :  { %v1567_v35 = vadd.f32 %v1985_v34, %v1518_v26  ;;  %v2014_v25 = vpop.f32.mrf.mxu1 }
 0x149   :  { %v1987_v30 = vpop.f32.mrf.mxu0 }
 0x14a   :  { %v1616_v42 = vadd.f32 %v2013_v36, %v1567_v35  ;;  %v1988_v43 = vadd.f32 %v1987_v30, %v1986_v22  ;;  %v2015_v44 = vpop.f32.mrf.mxu1 }
 0x14b   :  { %v1989_v45 = vpop.f32.mrf.mxu0  ;;  %v2016_v29 = vadd.f32 %v2015_v44, %v2014_v25 }
 0x14c   :  { %1630 = vst [vmem:[%s2672_s3] sm:$0xff] %v1616_v42  ;;  %v1570_v48 = vadd.f32 %v1988_v43, %v1521_v38  ;;  %v2017_v32 = vpop.f32.mrf.mxu1 }
 0x14d   :  { %v1990_v41 = vpop.f32.mrf.mxu0 }
 0x14e   :  { %v1619_v46 = vadd.f32 %v2016_v29, %v1570_v48  ;;  %v1991_v51 = vadd.f32 %v1990_v41, %v1989_v45  ;;  %v2018_v52 = vpop.f32.mrf.mxu1 }
 0x14f   :  { %v1992_v53 = vpop.f32.mrf.mxu0  ;;  %v2019_v55 = vadd.f32 %v2018_v52, %v2017_v32 }
 0x150   :  { %1631 = vst [vmem:[%s2672_s3 + $0x8] sm:$0xff] %v1619_v46  ;;  %v1575_v54 = vadd.f32 %v1991_v51, %v1526_v37  ;;  %v2020_v56 = vpop.f32.mrf.mxu1 }
 0x151   :  { %v1993_v57 = vpop.f32.mrf.mxu0 }
 0x152   :  { %v1624_v59 = vadd.f32 %v2019_v55, %v1575_v54  ;;  %v1994_v60 = vadd.f32 %v1993_v57, %v1992_v53  ;;  %v2021_v61 = vpop.f32.mrf.mxu1 }
 0x153   :  { %v2022_v63 = vadd.f32 %v2021_v61, %v2020_v56 }
 0x154   :  { %1632 = vst [vmem:[%s2672_s3 + $0x10] sm:$0xff] %v1624_v59  ;;  %v1578_v62 = vadd.f32 %v1994_v60, %v1529_v58 }
 0x156   :  { %v1627_v0 = vadd.f32 %v2022_v63, %v1578_v62 }
 0x158   :  { %1633 = vst [vmem:[%s2672_s3 + $0x18] sm:$0xff] %v1627_v0 }

// kernel: vqvae_forward.13
= control target key start
LH: loop header
LB: loop body
LE: loop exit
PB: predicated region body
PF: predicated region fallthrough
CT: control target
= control target key end

     0   :  { %v1479_v33 = vmov 0   ;;  %s1865_s2 = inlined_call_operand.vmem [shape: bf16[1152,128], index: 2, kind: input, shape index: {}]   ;;  %s1866_s0 = inlined_call_operand.vmem [shape: bf16[32,1152], index: 0, kind: input, shape index: {}]   ;;  %s1867_s4 = inlined_call_operand.vmem [shape: bf16[128,128], index: 4, kind: input, shape index: {}]   ;;  %s1868_s3 = inlined_call_operand.vmem [shape: f32[1,128], index: 3, kind: input, shape index: {}]   ;;  %s1869_s5 = inlined_call_operand.vmem [shape: f32[1,128], index: 5, kind: input, shape index: {}]   ;;  %s1870_s1 = inlined_call_operand.vmem [shape: f32[32,128], index: 1, kind: input, shape index: {}]   ;;  %s1871_s6 = inlined_call_operand.vmem [shape: f32[32,128], index: 6, kind: output, shape index: {}]  }
   0x1   :  { %v1399_v0 = vld [vmem:[%s1865_s2 + $0x78] sm:$0xff]   ;;  %v1403_v4 = vld [vmem:[%s1865_s2 + $0x70] sm:$0xff]   ;;  %v1407_v8 = vld [vmem:[%s1865_s2 + $0x68] sm:$0xff]  }
   0x2   :  { %v1400_v1 = vld [vmem:[%s1865_s2 + $0x38] sm:$0xff]   ;;  %1226 = vmatprep.subr.bf16.mxu0 %v1399_v0  ;;  %v1404_v5 = vld [vmem:[%s1865_s2 + $0x30] sm:$0xff]   ;;  %v1408_v9 = vld [vmem:[%s1865_s2 + $0x28] sm:$0xff]  }
   0x3   :  { %v1401_v2 = vld [vmem:[%s1865_s2 + $0xf8] sm:$0xff]   ;;  %1227 = vmatpush3.bf16.msra.mxu0 %v1400_v1  ;;  %v1405_v6 = vld [vmem:[%s1865_s2 + $0xf0] sm:$0xff]   ;;  %v1409_v10 = vld [vmem:[%s1865_s2 + $0xe8] sm:$0xff]  }
   0x4   :  { %v1402_v3 = vld [vmem:[%s1865_s2 + $0xb8] sm:$0xff]   ;;  %1254 = vmatprep.subr.bf16.mxu1 %v1401_v2  ;;  %1228 = vmatprep.subr.bf16.mxu0 %v1403_v4  ;;  %v1406_v7 = vld [vmem:[%s1865_s2 + $0xb0] sm:$0xff]   ;;  %v1410_v11 = vld [vmem:[%s1865_s2 + $0xa8] sm:$0xff]  }
   0x5   :  { %1255 = vmatpush3.bf16.msra.mxu1 %v1402_v3  ;;  %v1411_v12 = vld [vmem:[%s1865_s2 + $0x60] sm:$0xff]   ;;  %v1415_v16 = vld [vmem:[%s1865_s2 + $0x58] sm:$0xff]   ;;  %v1419_v20 = vld [vmem:[%s1865_s2 + $0x50] sm:$0xff]  }
   0x6   :  { %1256 = vmatprep.subr.bf16.mxu1 %v1405_v6  ;;  %v1412_v13 = vld [vmem:[%s1865_s2 + $0x20] sm:$0xff]   ;;  %v1416_v17 = vld [vmem:[%s1865_s2 + $0x18] sm:$0xff]   ;;  %v1420_v21 = vld [vmem:[%s1865_s2 + $0x10] sm:$0xff]  }
   0x7   :  { %1229 = vmatpush3.bf16.msra.mxu0 %v1404_v5  ;;  %v1413_v14 = vld [vmem:[%s1865_s2 + $0xe0] sm:$0xff]   ;;  %v1417_v18 = vld [vmem:[%s1865_s2 + $0xd8] sm:$0xff]   ;;  %v1421_v22 = vld [vmem:[%s1865_s2 + $0xd0] sm:$0xff]  }
   0x8   :  { %1230 = vmatprep.subr.bf16.mxu0 %v1407_v8  ;;  %v1414_v15 = vld [vmem:[%s1865_s2 + $0xa0] sm:$0xff]   ;;  %v1418_v19 = vld [vmem:[%s1865_s2 + $0x98] sm:$0xff]   ;;  %v1422_v23 = vld [vmem:[%s1865_s2 + $0x90] sm:$0xff]  }
   0x9   :  { %1257 = vmatpush3.bf16.msra.mxu1 %v1406_v7  ;;  %v1423_v24 = vld [vmem:[%s1865_s2 + $0x48] sm:$0xff]   ;;  %v1427_v28 = vld [vmem:[%s1865_s2 + $0x40] sm:$0xff]   ;;  %v1431_v37 = vld [vmem:[%s1865_s2 + $0x178] sm:$0xff]  }
   0xa   :  { %1258 = vmatprep.subr.bf16.mxu1 %v1409_v10  ;;  %v1424_v25 = vld [vmem:[%s1865_s2 + $0x8] sm:$0xff]   ;;  %v1428_v29 = vld [vmem:[%s1865_s2] sm:$0xff]   ;;  %v1432_v44 = vld [vmem:[%s1865_s2 + $0x138] sm:$0xff]  }
   0xb   :  { %1231 = vmatpush3.bf16.msra.mxu0 %v1408_v9  ;;  %v1425_v26 = vld [vmem:[%s1865_s2 + $0xc8] sm:$0xff]   ;;  %v1429_v30 = vld [vmem:[%s1865_s2 + $0xc0] sm:$0xff]   ;;  %v1433_v45 = vld [vmem:[%s1865_s2 + $0x1f8] sm:$0xff]  }
   0xc   :  { %1232 = vmatprep.subr.bf16.mxu0 %v1411_v12  ;;  %v1426_v27 = vld [vmem:[%s1865_s2 + $0x88] sm:$0xff]   ;;  %v24_v31 = vld [vmem:[%s1866_s0] sm:$0xff]  ;;  %v1434_v48 = vld [vmem:[%s1865_s2 + $0x1b8] sm:$0xff]  }
   0xd   :  { %1259 = vmatpush3.bf16.msra.mxu1 %v1410_v11  ;;  %v29_v32 = vld [vmem:[%s1866_s0 + $0x24] sm:$0xff]  ;;  %v44_v34 = vmax.bf16 %v1479_v33, %v24_v31  ;;  %v30_v41 = vld [vmem:[%s1866_s0 + $0x2c] sm:$0xff]  ;;  %v1447_v61 = vld [vmem:[%s1865_s2 + $0x158] sm:$0xff]  }
   0xe   :  { %1260 = vmatprep.subr.bf16.mxu1 %v1413_v14  ;;  %v49_v35 = vmax.bf16 %v1479_v33, %v29_v32  ;;  %v1430_v36 = vld [vmem:[%s1865_s2 + $0x80] sm:$0xff]   ;;  %v25_v38 = vld [vmem:[%s1866_s0 + $0x8] sm:$0xff]  ;;  %v50_v43 = vmax.bf16 %v1479_v33, %v30_v41  ;;  %v1435_v49 = vld [vmem:[%s1865_s2 + $0x170] sm:$0xff]  }
   0xf   :  { %1233 = vmatpush3.bf16.msra.mxu0 %v1412_v13  ;;  %v45_v42 = vmax.bf16 %v1479_v33, %v25_v38  ;;  %v1436_v50 = vld [vmem:[%s1865_s2 + $0x130] sm:$0xff]   ;;  %v1439_v53 = vld [vmem:[%s1865_s2 + $0x168] sm:$0xff]   ;;  %v1443_v57 = vld [vmem:[%s1865_s2 + $0x160] sm:$0xff]  }
  0x10   :  { %1234 = vmatprep.subr.bf16.mxu0 %v1415_v16  ;;  %v1128_v39 = vcombine.high %v44_v34, %v49_v35  ;;  %v1127_v40 = vcombine.low %v44_v34, %v49_v35  ;;  %v1437_v51 = vld [vmem:[%s1865_s2 + $0x1f0] sm:$0xff]   ;;  %v1440_v54 = vld [vmem:[%s1865_s2 + $0x128] sm:$0xff]   ;;  %v1444_v58 = vld [vmem:[%s1865_s2 + $0x120] sm:$0xff]  }
  0x11   :  { %1261 = vmatpush3.bf16.msra.mxu1 %v1414_v15  ;;  %v1130_v46 = vcombine.high %v45_v42, %v50_v43  ;;  %v1129_v47 = vcombine.low %v45_v42, %v50_v43  ;;  %v1438_v52 = vld [vmem:[%s1865_s2 + $0x1b0] sm:$0xff]   ;;  %v1441_v55 = vld [vmem:[%s1865_s2 + $0x1e8] sm:$0xff]   ;;  %v1445_v59 = vld [vmem:[%s1865_s2 + $0x1e0] sm:$0xff]  }
  0x12   :  { %1262 = vmatprep.subr.bf16.mxu1 %v1417_v18  ;;  %771 = vmatprep.mubr.bf16.mxu0 %v1128_v39  ;;  %v1442_v56 = vld [vmem:[%s1865_s2 + $0x1a8] sm:$0xff]   ;;  %v1446_v60 = vld [vmem:[%s1865_s2 + $0x1a0] sm:$0xff]   ;;  %v1448_v62 = vld [vmem:[%s1865_s2 + $0x118] sm:$0xff]  }
  0x13   :  { %1235 = vmatpush3.bf16.msra.mxu0 %v1416_v17  ;;  %820 = vmatprep.mubr.bf16.mxu1 %v1130_v46  ;;  %v34_v63 = vld [vmem:[%s1866_s0 + $0x48] sm:$0xff]  ;;  %v1449_v3 = vld [vmem:[%s1865_s2 + $0x1d8] sm:$0xff]   ;;  %v35_v7 = vld [vmem:[%s1866_s0 + $0x50] sm:$0xff] }
  0x14   :  { %1236 = vmatprep.subr.bf16.mxu0 %v1419_v20  ;;  %v39_v0 = vld [vmem:[%s1866_s0 + $0x6c] sm:$0xff]  ;;  %v54_v1 = vmax.bf16 %v1479_v33, %v34_v63  ;;  %v1450_v4 = vld [vmem:[%s1865_s2 + $0x198] sm:$0xff]   ;;  %v55_v9 = vmax.bf16 %v1479_v33, %v35_v7 }
  0x15   :  { %1263 = vmatpush3.bf16.msra.mxu1 %v1418_v19  ;;  %v59_v2 = vmax.bf16 %v1479_v33, %v39_v0  ;;  %v40_v8 = vld [vmem:[%s1866_s0 + $0x74] sm:$0xff]  ;;  %v1455_v17 = vld [vmem:[%s1865_s2 + $0x148] sm:$0xff]   ;;  %v32_v31 = vld [vmem:[%s1866_s0 + $0x3c] sm:$0xff] }
  0x16   :  { %1264 = vmatprep.subr.bf16.mxu1 %v1421_v22  ;;  %v60_v10 = vmax.bf16 %v1479_v33, %v40_v8  ;;  %v1451_v11 = vld [vmem:[%s1865_s2 + $0x150] sm:$0xff]   ;;  %v1456_v18 = vld [vmem:[%s1865_s2 + $0x108] sm:$0xff]   ;;  %v1460_v22 = vld [vmem:[%s1865_s2 + $0x100] sm:$0xff]  }
  0x17   :  { %1237 = vmatpush3.bf16.msra.mxu0 %v1420_v21  ;;  %v1137_v5 = vcombine.high %v54_v1, %v59_v2  ;;  %v1136_v6 = vcombine.low %v54_v1, %v59_v2  ;;  %v1452_v12 = vld [vmem:[%s1865_s2 + $0x110] sm:$0xff]   ;;  %v1457_v19 = vld [vmem:[%s1865_s2 + $0x1c8] sm:$0xff]   ;;  %v1459_v21 = vld [vmem:[%s1865_s2 + $0x140] sm:$0xff]  }
  0x18   :  { %1238 = vmatprep.subr.bf16.mxu0 %v1423_v24  ;;  %v1139_v13 = vcombine.high %v55_v9, %v60_v10  ;;  %v1138_v14 = vcombine.low %v55_v9, %v60_v10  ;;  %v1453_v15 = vld [vmem:[%s1865_s2 + $0x1d0] sm:$0xff]   ;;  %v1458_v20 = vld [vmem:[%s1865_s2 + $0x188] sm:$0xff]   ;;  %v36_v38 = vld [vmem:[%s1866_s0 + $0x58] sm:$0xff] }
  0x19   :  { %1265 = vmatpush3.bf16.msra.mxu1 %v1422_v23  ;;  %v1454_v16 = vld [vmem:[%s1865_s2 + $0x190] sm:$0xff]   ;;  %v1461_v23 = vld [vmem:[%s1865_s2 + $0x1c0] sm:$0xff]   ;;  %v56_v42 = vmax.bf16 %v1479_v33, %v36_v38  ;;  %v1467_v0 = vld [vmem:[%s1865_s2 + $0x218] sm:$0xff]  }
  0x1a   :  { %1266 = vmatprep.subr.bf16.mxu1 %v1425_v26  ;;  %v26_v24 = vld [vmem:[%s1866_s0 + $0x10] sm:$0xff]  ;;  %v41_v39 = vld [vmem:[%s1866_s0 + $0x7c] sm:$0xff]  ;;  %v1477_v9 = vld [vmem:[%s1867_s4 + $0x8] sm:$0xff]  }
  0x1b   :  { %1239 = vmatpush3.bf16.msra.mxu0 %v1424_v25  ;;  %v31_v25 = vld [vmem:[%s1866_s0 + $0x34] sm:$0xff]  ;;  %v46_v26 = vmax.bf16 %v1479_v33, %v26_v24  ;;  %v61_v43 = vmax.bf16 %v1479_v33, %v41_v39  ;;  %v1470_v2 = vld [vmem:[%s1865_s2 + $0x200] sm:$0xff]  }
  0x1c   :  { %1240 = vmatprep.subr.bf16.mxu0 %v1427_v28  ;;  %v1462_v28 = vld [vmem:[%s1865_s2 + $0x180] sm:$0xff]   ;;  %v1468_v1 = vld [vmem:[%s1865_s2 + $0x210] sm:$0xff]   ;;  %v1475_v7 = vld [vmem:[%s1867_s4 + $0x18] sm:$0xff]  }
  0x1d   :  { %1267 = vmatpush3.bf16.msra.mxu1 %v1426_v27  ;;  %v51_v27 = vmax.bf16 %v1479_v33, %v31_v25  ;;  %v1476_v8 = vld [vmem:[%s1867_s4 + $0x10] sm:$0xff]   ;;  %v1478_v10 = vld [vmem:[%s1867_s4] sm:$0xff]  }
  0x1e   :  { %1268 = vmatprep.subr.bf16.mxu1 %v1429_v30  ;;  %v27_v30 = vld [vmem:[%s1866_s0 + $0x18] sm:$0xff] }
  0x1f   :  { %1241 = vmatpush3.bf16.msra.mxu0 %v1428_v29  ;;  %v1463_v29 = vld [vmem:[%s1865_s2 + $0x238] sm:$0xff]   ;;  %v1131_v32 = vcombine.low %v46_v26, %v51_v27  ;;  %v1132_v34 = vcombine.high %v46_v26, %v51_v27  ;;  %v47_v35 = vmax.bf16 %v1479_v33, %v27_v30 }
  0x20   :  { %1282 = vmatprep.subr.bf16.mxu0 %v1431_v37  ;;  %v1464_v37 = vld [vmem:[%s1865_s2 + $0x230] sm:$0xff]  }
  0x21   :  { %1269 = vmatpush3.bf16.msra.mxu1 %v1430_v36  ;;  %v52_v36 = vmax.bf16 %v1479_v33, %v32_v31 }
  0x22   :  { %772 = vmatmul.mubr.bf16.vlgmr.msra.gmra.mxu0 %v1127_v40  ;;  %1310 = vmatprep.subr.bf16.mxu1 %v1433_v45  ;;  %v42_v45 = vld [vmem:[%s1866_s0 + $0x84] sm:$0xff] }
  0x23   :  { %1283 = vmatpush3.bf16.msra.mxu0 %v1432_v44  ;;  %779 = vmatprep.mubr.bf16.mxu0 %v1137_v5  ;;  %v1133_v40 = vcombine.low %v47_v35, %v52_v36  ;;  %v1134_v41 = vcombine.high %v47_v35, %v52_v36  ;;  %v37_v44 = vld [vmem:[%s1866_s0 + $0x60] sm:$0xff]  ;;  %v1473_v5 = vld [vmem:[%s1867_s4 + $0x28] sm:$0xff]  }
  0x24   :  { %821 = vmatmul.mubr.bf16.vlgmr.msra.gmra.mxu1 %v1129_v47  ;;  %1284 = vmatprep.subr.bf16.mxu0 %v1435_v49  ;;  %v57_v46 = vmax.bf16 %v1479_v33, %v37_v44  ;;  %v1141_v47 = vcombine.high %v56_v42, %v61_v43  ;;  %v1465_v49 = vld [vmem:[%s1865_s2 + $0x228] sm:$0xff]  }
  0x25   :  { %1311 = vmatpush3.bf16.msra.mxu1 %v1434_v48  ;;  %828 = vmatprep.mubr.bf16.mxu1 %v1139_v13  ;;  %v62_v48 = vmax.bf16 %v1479_v33, %v42_v45 }
  0x26   :  { %1312 = vmatprep.subr.bf16.mxu1 %v1437_v51  ;;  %v1140_v51 = vcombine.low %v56_v42, %v61_v43  ;;  %v1126_v43 = vld [vmem:[%s1868_s3] ss:$0 sm:$0xff] }
  0x27   :  { %1285 = vmatpush3.bf16.msra.mxu0 %v1436_v50  ;;  %v1143_v50 = vcombine.high %v57_v46, %v62_v48 }
  0x28   :  { %1286 = vmatprep.subr.bf16.mxu0 %v1439_v53  ;;  %v33_v53 = vld [vmem:[%s1866_s0 + $0x44] sm:$0xf] }
  0x29   :  { %1313 = vmatpush3.bf16.msra.mxu1 %v1438_v52  ;;  %v28_v52 = vld [vmem:[%s1866_s0 + $0x20] sm:$0xf] }
  0x2a   :  { %1314 = vmatprep.subr.bf16.mxu1 %v1441_v55  ;;  %780 = vmatmul.mubr.bf16.gmra.mxu0 %v1136_v6  ;;  %v1466_v55 = vld [vmem:[%s1865_s2 + $0x220] sm:$0xff]  }
  0x2b   :  { %1287 = vmatpush3.bf16.msra.mxu0 %v1440_v54  ;;  %869 = vmatprep.mubr.bf16.mxu0 %v1132_v34  ;;  %v1142_v54 = vcombine.low %v57_v46, %v62_v48  ;;  %v1474_v6 = vld [vmem:[%s1867_s4 + $0x20] sm:$0xff]  }
  0x2c   :  { %1288 = vmatprep.subr.bf16.mxu0 %v1443_v57  ;;  %829 = vmatmul.mubr.bf16.gmra.mxu1 %v1138_v14  ;;  %v53_v57 = vmax.bf16 %v1479_v33, %v33_v53 }
  0x2d   :  { %1315 = vmatpush3.bf16.msra.mxu1 %v1442_v56  ;;  %918 = vmatprep.mubr.bf16.mxu1 %v1134_v41  ;;  %v48_v56 = vmax.bf16 %v1479_v33, %v28_v52 }
  0x2e   :  { %1316 = vmatprep.subr.bf16.mxu1 %v1445_v59  ;;  %v43_v59 = vld [vmem:[%s1866_s0 + $0x8c] sm:$0xf] }
  0x2f   :  { %1289 = vmatpush3.bf16.msra.mxu0 %v1444_v58  ;;  %v38_v58 = vld [vmem:[%s1866_s0 + $0x68] sm:$0xf] }
  0x30   :  { %1290 = vmatprep.subr.bf16.mxu0 %v1447_v61  ;;  %v63_v61 = vmax.bf16 %v1479_v33, %v43_v59 }
  0x31   :  { %1317 = vmatpush3.bf16.msra.mxu1 %v1446_v60  ;;  %v58_v60 = vmax.bf16 %v1479_v33, %v38_v58  ;;  %v1469_v33 = vld [vmem:[%s1865_s2 + $0x208] sm:$0xff]  }
  0x32   :  { %1318 = vmatprep.subr.bf16.mxu1 %v1449_v3  ;;  %v1471_v3 = vld [vmem:[%s1867_s4 + $0x38] sm:$0xff]  }
  0x33   :  { %1291 = vmatpush3.bf16.msra.mxu0 %v1448_v62  ;;  %v1135_v62 = vcombine.low %v48_v56, %v53_v57  ;;  %v1144_v63 = vcombine.low %v58_v60, %v63_v61 }
  0x34   :  { %1292 = vmatprep.subr.bf16.mxu0 %v1451_v11 }
  0x35   :  { %1319 = vmatpush3.bf16.msra.mxu1 %v1450_v4  ;;  %v1472_v4 = vld [vmem:[%s1867_s4 + $0x30] sm:$0xff]  }
  0x36   :  { %1320 = vmatprep.subr.bf16.mxu1 %v1453_v15 }
  0x37   :  { %1293 = vmatpush3.bf16.msra.mxu0 %v1452_v12 }
  0x38   :  { %1294 = vmatprep.subr.bf16.mxu0 %v1455_v17 }
  0x39   :  { %1321 = vmatpush3.bf16.msra.mxu1 %v1454_v16 }
  0x3a   :  { %1322 = vmatprep.subr.bf16.mxu1 %v1457_v19 }
  0x3b   :  { %1295 = vmatpush3.bf16.msra.mxu0 %v1456_v18 }
  0x3c   :  { %1296 = vmatprep.subr.bf16.mxu0 %v1459_v21 }
  0x3d   :  { %1323 = vmatpush3.bf16.msra.mxu1 %v1458_v20 }
  0x3e   :  { %1324 = vmatprep.subr.bf16.mxu1 %v1461_v23 }
  0x3f   :  { %1297 = vmatpush3.bf16.msra.mxu0 %v1460_v22 }
  0x40   :  { %1358 = vmatprep.subr.bf16.mxu0 %v1463_v29 }
  0x41   :  { %1325 = vmatpush3.bf16.msra.mxu1 %v1462_v28 }
  0x42   :  { %870 = vmatmul.mubr.bf16.vlgmr.msra.gmra.mxu0 %v1131_v32  ;;  %1378 = vmatprep.subr.bf16.mxu1 %v1471_v3 }
  0x43   :  { %1359 = vmatpush3.bf16.msra.mxu0 %v1463_v29  ;;  %877 = vmatprep.mubr.bf16.mxu0 %v1141_v47 }
  0x44   :  { %919 = vmatmul.mubr.bf16.vlgmr.msra.gmra.mxu1 %v1133_v40  ;;  %1360 = vmatprep.subr.bf16.mxu0 %v1464_v37 }
  0x45   :  { %926 = vmatprep.mubr.bf16.mxu1 %v1143_v50  ;;  %1379 = vmatpush3.bf16.msra.mxu1 %v1471_v3 }
  0x46   :  { %1380 = vmatprep.subr.bf16.mxu1 %v1472_v4 }
  0x47   :  { %1361 = vmatpush3.bf16.msra.mxu0 %v1464_v37 }
  0x48   :  { %1362 = vmatprep.subr.bf16.mxu0 %v1465_v49 }
  0x49   :  { %1381 = vmatpush3.bf16.msra.mxu1 %v1472_v4 }
  0x4a   :  { %878 = vmatmul.mubr.bf16.gmra.mxu0 %v1140_v51  ;;  %1382 = vmatprep.subr.bf16.mxu1 %v1473_v5 }
  0x4b   :  { %1363 = vmatpush3.bf16.msra.mxu0 %v1465_v49  ;;  %1374 = vmatprep.mubr.bf16.mxu0 %v1135_v62 }
  0x4c   :  { %927 = vmatmul.mubr.bf16.gmra.mxu1 %v1142_v54  ;;  %1364 = vmatprep.subr.bf16.mxu0 %v1466_v55 }
  0x4d   :  { %1383 = vmatpush3.bf16.msra.mxu1 %v1473_v5 }
  0x4e   :  { %1384 = vmatprep.subr.bf16.mxu1 %v1474_v6 }
  0x4f   :  { %1365 = vmatpush3.bf16.msra.mxu0 %v1466_v55 }
  0x50   :  { %1366 = vmatprep.subr.bf16.mxu0 %v1467_v0 }
  0x51   :  { %1385 = vmatpush3.bf16.msra.mxu1 %v1474_v6 }
  0x52   :  { %1386 = vmatprep.subr.bf16.mxu1 %v1475_v7 }
  0x53   :  { %1367 = vmatpush3.bf16.msra.mxu0 %v1467_v0 }
  0x54   :  { %1368 = vmatprep.subr.bf16.mxu0 %v1468_v1 }
  0x55   :  { %1387 = vmatpush3.bf16.msra.mxu1 %v1475_v7 }
  0x56   :  { %1388 = vmatprep.subr.bf16.mxu1 %v1476_v8 }
  0x57   :  { %1369 = vmatpush3.bf16.msra.mxu0 %v1468_v1 }
  0x58   :  { %1370 = vmatprep.subr.bf16.mxu0 %v1469_v33 }
  0x59   :  { %1389 = vmatpush3.bf16.msra.mxu1 %v1476_v8 }
  0x5a   :  { %1390 = vmatprep.subr.bf16.mxu1 %v1477_v9 }
  0x5b   :  { %1371 = vmatpush3.bf16.msra.mxu0 %v1469_v33 }
  0x5c   :  { %1372 = vmatprep.subr.bf16.mxu0 %v1470_v2 }
  0x5d   :  { %1391 = vmatpush3.bf16.msra.mxu1 %v1477_v9 }
  0x5e   :  { %1392 = vmatprep.subr.bf16.mxu1 %v1478_v10 }
  0x5f   :  { %1373 = vmatpush3.bf16.msra.mxu0 %v1470_v2 }
  0x61   :  { %1393 = vmatpush3.bf16.msra.mxu1 %v1478_v10 }
  0x62   :  { %1375 = vmatmul.mubr.bf16.vlgmr.msra.gmra.mxu0 %v1144_v63 }
  0xe2   :  { %v1242_v11 = vpop.f32.mrf.mxu0 }
  0xe4   :  { %v1270_v12 = vpop.f32.mrf.mxu1  ;;  %v1243_v13 = vpop.f32.mrf.mxu0 }
  0xe5   :  { %v1244_v41 = vadd.f32 %v1243_v13, %v1242_v11 }
  0xe6   :  { %v1271_v14 = vpop.f32.mrf.mxu1  ;;  %v1245_v15 = vpop.f32.mrf.mxu0 }
  0xe7   :  { %v774_v48 = vadd.f32 %v1244_v41, %v1126_v43  ;;  %v1272_v49 = vadd.f32 %v1271_v14, %v1270_v12 }
  0xe8   :  { %v1273_v16 = vpop.f32.mrf.mxu1  ;;  %v1246_v17 = vpop.f32.mrf.mxu0 }
  0xe9   :  { %v1247_v44 = vadd.f32 %v1246_v17, %v1245_v15  ;;  %v823_v60 = vadd.f32 %v1272_v49, %v774_v48 }
  0xea   :  { %v1274_v18 = vpop.f32.mrf.mxu1  ;;  %v1248_v19 = vpop.f32.mrf.mxu0 }
  0xeb   :  { %v777_v52 = vadd.f32 %v1247_v44, %v1126_v43  ;;  %v1275_v53 = vadd.f32 %v1274_v18, %v1273_v16 }
  0xec   :  { %v1276_v20 = vpop.f32.mrf.mxu1  ;;  %v1249_v21 = vpop.f32.mrf.mxu0 }
  0xed   :  { %v1250_v45 = vadd.f32 %v1249_v21, %v1248_v19  ;;  %v826_v63 = vadd.f32 %v1275_v53, %v777_v52 }
  0xee   :  { %v1277_v22 = vpop.f32.mrf.mxu1  ;;  %v1251_v23 = vpop.f32.mrf.mxu0 }
  0xef   :  { %v782_v54 = vadd.f32 %v1250_v45, %v1126_v43  ;;  %v1278_v55 = vadd.f32 %v1277_v22, %v1276_v20 }
  0xf0   :  { %v1279_v24 = vpop.f32.mrf.mxu1  ;;  %v1252_v25 = vpop.f32.mrf.mxu0 }
  0xf1   :  { %v1253_v42 = vadd.f32 %v1252_v25, %v1251_v23  ;;  %v831_v0 = vadd.f32 %v1278_v55, %v782_v54 }
  0xf2   :  { %v1280_v26 = vpop.f32.mrf.mxu1 }
  0xf3   :  { %v785_v50 = vadd.f32 %v1253_v42, %v1126_v43  ;;  %v1281_v51 = vadd.f32 %v1280_v26, %v1279_v24  ;;  %v1217_v26 = vld [vmem:[%s1869_s5] ss:$0 sm:$0xff] }
  0xf5   :  { %v834_v61 = vadd.f32 %v1281_v51, %v785_v50 }
 0x102   :  { %v1298_v27 = vpop.f32.mrf.mxu0 }
 0x104   :  { %v1299_v28 = vpop.f32.mrf.mxu0  ;;  %v1326_v29 = vpop.f32.mrf.mxu1 }
 0x105   :  { %v1300_v56 = vadd.f32 %v1299_v28, %v1298_v27  ;;  %v1112_v28 = vld [vmem:[%s1870_s1 + $0x10] sm:$0xff] }
 0x106   :  { %v1301_v30 = vpop.f32.mrf.mxu0  ;;  %v1327_v31 = vpop.f32.mrf.mxu1 }
 0x107   :  { %v872_v1 = vadd.f32 %v1300_v56, %v823_v60  ;;  %v1328_v33 = vadd.f32 %v1327_v31, %v1326_v29  ;;  %v1110_v31 = vld [vmem:[%s1870_s1] sm:$0xff] }
 0x108   :  { %v1302_v32 = vpop.f32.mrf.mxu0  ;;  %v1329_v34 = vpop.f32.mrf.mxu1 }
 0x109   :  { %v1303_v62 = vadd.f32 %v1302_v32, %v1301_v30  ;;  %v921_v10 = vadd.f32 %v1328_v33, %v872_v1 }
 0x10a   :  { %v1304_v35 = vpop.f32.mrf.mxu0  ;;  %v1330_v36 = vpop.f32.mrf.mxu1 }
 0x10b   :  { %v875_v7 = vadd.f32 %v1303_v62, %v826_v63  ;;  %v1331_v8 = vadd.f32 %v1330_v36, %v1329_v34  ;;  %v1113_v36 = vld [vmem:[%s1870_s1 + $0x18] sm:$0xff] }
 0x10c   :  { %v1305_v37 = vpop.f32.mrf.mxu0  ;;  %v1332_v38 = vpop.f32.mrf.mxu1 }
 0x10d   :  { %v1306_v58 = vadd.f32 %v1305_v37, %v1304_v35  ;;  %v924_v16 = vadd.f32 %v1331_v8, %v875_v7 }
 0x10e   :  { %v1307_v39 = vpop.f32.mrf.mxu0  ;;  %v1333_v40 = vpop.f32.mrf.mxu1 }
 0x10f   :  { %v880_v4 = vadd.f32 %v1306_v58, %v831_v0  ;;  %v1334_v5 = vadd.f32 %v1333_v40, %v1332_v38  ;;  %v1111_v40 = vld [vmem:[%s1870_s1 + $0x8] sm:$0xff] }
 0x110   :  { %v1308_v46 = vpop.f32.mrf.mxu0  ;;  %v1335_v47 = vpop.f32.mrf.mxu1 }
 0x111   :  { %v1309_v57 = vadd.f32 %v1308_v46, %v1307_v39  ;;  %v929_v12 = vadd.f32 %v1334_v5, %v880_v4 }
 0x112   :  { %v1336_v59 = vpop.f32.mrf.mxu1 }
 0x113   :  { %v883_v2 = vadd.f32 %v1309_v57, %v834_v61  ;;  %v1337_v3 = vadd.f32 %v1336_v59, %v1335_v47 }
 0x115   :  { %v932_v11 = vadd.f32 %v1337_v3, %v883_v2 }
 0x122   :  { %v1376_v6 = vpop.f32.mrf.mxu0 }
 0x123   :  { %v978_v17 = vadd.f32 %v1376_v6, %v929_v12 }
 0x124   :  { %v969_v9 = vpop.f32.mrf.mxu0 }
 0x125   :  { %v970_v14 = vadd.f32 %v969_v9, %v921_v10  ;;  %v986_v23 = vmax.f32 %v978_v17, 0.0 }
 0x126   :  { %v1377_v13 = vpop.f32.mrf.mxu0 }
 0x127   :  { %v981_v15 = vadd.f32 %v1377_v13, %v932_v11  ;;  %v984_v21 = vmax.f32 %v970_v14, 0.0 }
 0x128   :  { %v972_v18 = vpop.f32.mrf.mxu0 }
 0x129   :  { %v973_v19 = vadd.f32 %v972_v18, %v924_v16  ;;  %v987_v20 = vmax.f32 %v981_v15, 0.0 }
 0x12b   :  { %v985_v22 = vmax.f32 %v973_v19, 0.0  ;;  %v989_v25 = vpack.c.bf16 %v987_v20, %v986_v23 }
 0x12d   :  { %v988_v24 = vpack.c.bf16 %v985_v22, %v984_v21 }
 0x12f   :  { %1394 = vmatprep.mubr.bf16.mxu1 %v988_v24 }
 0x130   :  { %1395 = vmatmul.mubr.bf16.vlgmr.msra.gmra.mxu1 %v989_v25 }
 0x1f0   :  { %v1396_v27 = vpop.f32.mrf.mxu1 }
 0x1f1   :  { %v1104_v29 = vadd.f32 %v1396_v27, %v1217_v26 }
 0x1f2   :  { %v1095_v30 = vpop.f32.mrf.mxu1 }
 0x1f3   :  { %v1116_v32 = vadd.f32 %v1112_v28, %v1104_v29  ;;  %v1096_v34 = vadd.f32 %v1217_v26, %v1095_v30 }
 0x1f4   :  { %v1397_v35 = vpop.f32.mrf.mxu1 }
 0x1f5   :  { %1120 = vst [vmem:[%s1871_s6 + $0x10] sm:$0xff] %v1116_v32  ;;  %v1114_v37 = vadd.f32 %v1110_v31, %v1096_v34  ;;  %v1107_v38 = vadd.f32 %v1397_v35, %v1217_v26 }
 0x1f6   :  { %v1098_v39 = vpop.f32.mrf.mxu1 }
 0x1f7   :  { %1118 = vst [vmem:[%s1871_s6] sm:$0xff] %v1114_v37  ;;  %v1117_v41 = vadd.f32 %v1113_v36, %v1107_v38  ;;  %v1099_v42 = vadd.f32 %v1217_v26, %v1098_v39 }
 0x1f9   :  { %1121 = vst [vmem:[%s1871_s6 + $0x18] sm:$0xff] %v1117_v41  ;;  %v1115_v43 = vadd.f32 %v1111_v40, %v1099_v42 }
 0x1fb   :  { %1119 = vst [vmem:[%s1871_s6 + $0x8] sm:$0xff] %v1115_v43 }

// kernel: vqvae_forward.16
= control target key start
LH: loop header
LB: loop body
LE: loop exit
PB: predicated region body
PF: predicated region fallthrough
CT: control target
= control target key end

     0   :  { %s713_s0 = inlined_call_operand.vmem [shape: f32[32,128], index: 0, kind: input, shape index: {}]   ;;  %s714_s1 = inlined_call_operand.vmem [shape: f32[128,128], index: 1, kind: input, shape index: {}]   ;;  %s715_s2 = inlined_call_operand.vmem [shape: f32[1,128], index: 2, kind: input, shape index: {}]   ;;  %s716_s3 = inlined_call_operand.vmem [shape: f32[32,128], index: 3, kind: output, shape index: {0}]   ;;  %s717_s4 = inlined_call_operand.vmem [shape: s32[32,1], index: 4, kind: output, shape index: {1}]   ;;  %s718_s5 = inlined_call_operand.hbm [shape: f32[1,1], index: 5, kind: output, shape index: {2}]  }
   0x1   :  { %v43_v0 = vld [vmem:[%s714_s1 + $0x78] sm:$0xff]  ;;  %v42_v1 = vld [vmem:[%s714_s1 + $0x70] sm:$0xff]  ;;  %v41_v2 = vld [vmem:[%s714_s1 + $0x68] sm:$0xff] }
   0x2   :  { %456 = vmatprep.subr.mxu0 %v43_v0  ;;  %494 = vmatprep.subr.mxu1 %v43_v0  ;;  %v602_v3 = vld [vmem:[%s713_s0] sm:$0xff] }
   0x3   :  { %457 = vmatpush3.xpose.msra.mxu0 %v43_v0  ;;  %495 = vmatpush3.msra.mxu1 %v43_v0 }
   0x4   :  { %458 = vmatprep.subr.mxu0 %v42_v1  ;;  %496 = vmatprep.subr.mxu1 %v42_v1 }
   0x5   :  { %497 = vmatpush3.msra.mxu1 %v42_v1  ;;  %488 = vmatprep.mubr.f32.mxu0 %v602_v3 }
   0x6   :  { %498 = vmatprep.subr.mxu1 %v41_v2 }
   0x7   :  { %459 = vmatpush3.xpose.msra.mxu0 %v42_v1 }
   0x8   :  { %11 = vsyncpa [#allocation3], 0  ;;  %460 = vmatprep.subr.mxu0 %v41_v2  ;;  %v40_v4 = vld [vmem:[%s714_s1 + $0x60] sm:$0xff]  ;;  %499 = vmatpush3.msra.mxu1 %v41_v2  ;;  %v39_v5 = vld [vmem:[%s714_s1 + $0x58] sm:$0xff]  ;;  %v144_v20 = vlaneseq  ;;  %vm380_vm9 = vcmask 7168   ;;  %vm22_vm14 = vcmask 0  }
   0x9   :  { %500 = vmatprep.subr.mxu1 %v40_v4  ;;  %v38_v6 = vld [vmem:[%s714_s1 + $0x50] sm:$0xff]  ;;  %v37_v7 = vld [vmem:[%s714_s1 + $0x48] sm:$0xff]  ;;  %v36_v8 = vld [vmem:[%s714_s1 + $0x40] sm:$0xff] }
   0xa   :  { %501 = vmatpush3.msra.mxu1 %v40_v4  ;;  %v35_v9 = vld [vmem:[%s714_s1 + $0x38] sm:$0xff]  ;;  %v34_v10 = vld [vmem:[%s714_s1 + $0x30] sm:$0xff]  ;;  %v33_v11 = vld [vmem:[%s714_s1 + $0x28] sm:$0xff]  ;;  %v662_v23 = vand.u32 127, %v144_v20 }
   0xb   :  { %461 = vmatpush3.xpose.msra.mxu0 %v41_v2  ;;  %502 = vmatprep.subr.mxu1 %v39_v5  ;;  %v32_v12 = vld [vmem:[%s714_s1 + $0x20] sm:$0xff]  ;;  %v31_v13 = vld [vmem:[%s714_s1 + $0x18] sm:$0xff]  ;;  %v30_v14 = vld [vmem:[%s714_s1 + $0x10] sm:$0xff] }
   0xc   :  { %462 = vmatprep.subr.mxu0 %v40_v4  ;;  %503 = vmatpush3.msra.mxu1 %v39_v5  ;;  %v29_v15 = vld [vmem:[%s714_s1 + $0x8] sm:$0xff]  ;;  %v28_v16 = vld [vmem:[%s714_s1] sm:$0xff]  ;;  %v652_v18 = vld [vmem:[%s713_s0 + $0x10] sm:$0xff]  ;;  %vm146_vm0 = vcmp.lt.s32.totalorder %v662_v23, 64 }
   0xd   :  { %504 = vmatprep.subr.mxu1 %v38_v6  ;;  %v647_v17 = vld [vmem:[%s713_s0 + $0x8] sm:$0xff]  ;;  %v659_v19 = vld [vmem:[%s713_s0 + $0x18] sm:$0xff]  ;;  %v407_v27 = vld [vmem:[%s715_s2] ss:$0 sm:$0xff] }
   0xe   :  { %505 = vmatpush3.msra.mxu1 %v38_v6 }
   0xf   :  { %463 = vmatpush3.xpose.msra.mxu0 %v40_v4  ;;  %506 = vmatprep.subr.mxu1 %v37_v7 }
  0x10   :  { %464 = vmatprep.subr.mxu0 %v39_v5  ;;  %507 = vmatpush3.msra.mxu1 %v37_v7 }
  0x11   :  { %508 = vmatprep.subr.mxu1 %v36_v8 }
  0x12   :  { %509 = vmatpush3.msra.mxu1 %v36_v8 }
  0x13   :  { %465 = vmatpush3.xpose.msra.mxu0 %v39_v5  ;;  %510 = vmatprep.subr.mxu1 %v35_v9 }
  0x14   :  { %466 = vmatprep.subr.mxu0 %v38_v6  ;;  %511 = vmatpush3.msra.mxu1 %v35_v9 }
  0x15   :  { %512 = vmatprep.subr.mxu1 %v34_v10 }
  0x16   :  { %513 = vmatpush3.msra.mxu1 %v34_v10 }
  0x17   :  { %467 = vmatpush3.xpose.msra.mxu0 %v38_v6  ;;  %514 = vmatprep.subr.mxu1 %v33_v11 }
  0x18   :  { %468 = vmatprep.subr.mxu0 %v37_v7  ;;  %515 = vmatpush3.msra.mxu1 %v33_v11 }
  0x19   :  { %516 = vmatprep.subr.mxu1 %v32_v12 }
  0x1a   :  { %517 = vmatpush3.msra.mxu1 %v32_v12 }
  0x1b   :  { %469 = vmatpush3.xpose.msra.mxu0 %v37_v7  ;;  %518 = vmatprep.subr.mxu1 %v31_v13 }
  0x1c   :  { %470 = vmatprep.subr.mxu0 %v36_v8  ;;  %519 = vmatpush3.msra.mxu1 %v31_v13 }
  0x1d   :  { %520 = vmatprep.subr.mxu1 %v30_v14 }
  0x1e   :  { %521 = vmatpush3.msra.mxu1 %v30_v14 }
  0x1f   :  { %471 = vmatpush3.xpose.msra.mxu0 %v36_v8  ;;  %522 = vmatprep.subr.mxu1 %v29_v15 }
  0x20   :  { %472 = vmatprep.subr.mxu0 %v35_v9  ;;  %523 = vmatpush3.msra.mxu1 %v29_v15 }
  0x21   :  { %524 = vmatprep.subr.mxu1 %v28_v16 }
  0x22   :  { %525 = vmatpush3.msra.mxu1 %v28_v16 }
  0x23   :  { %473 = vmatpush3.xpose.msra.mxu0 %v35_v9 }
  0x24   :  { %474 = vmatprep.subr.mxu0 %v34_v10 }
  0x27   :  { %475 = vmatpush3.xpose.msra.mxu0 %v34_v10 }
  0x28   :  { %476 = vmatprep.subr.mxu0 %v33_v11 }
  0x2b   :  { %477 = vmatpush3.xpose.msra.mxu0 %v33_v11 }
  0x2c   :  { %478 = vmatprep.subr.mxu0 %v32_v12 }
  0x2f   :  { %479 = vmatpush3.xpose.msra.mxu0 %v32_v12 }
  0x30   :  { %480 = vmatprep.subr.mxu0 %v31_v13 }
  0x33   :  { %481 = vmatpush3.xpose.msra.mxu0 %v31_v13 }
  0x34   :  { %482 = vmatprep.subr.mxu0 %v30_v14 }
  0x37   :  { %483 = vmatpush3.xpose.msra.mxu0 %v30_v14 }
  0x38   :  { %484 = vmatprep.subr.mxu0 %v29_v15 }
  0x3b   :  { %485 = vmatpush3.xpose.msra.mxu0 %v29_v15 }
  0x3c   :  { %486 = vmatprep.subr.mxu0 %v28_v16 }
  0x3f   :  { %487 = vmatpush3.xpose.msra.mxu0 %v28_v16 }
  0x42   :  { %489 = vmatmul.mubr.f32.vlgmr.msra.gmra.mxu0 %v647_v17 }
  0x43   :  { %491 = vmatprep.mubr.f32.mxu0 %v652_v18 }
  0x46   :  { %492 = vmatmul.mubr.f32.gmra.mxu0 %v659_v19 }
 0x102   :  { %v490_v21 = vpop.f32.mrf.mxu0 }
 0x103   :  { %v131_v24 = vmul.f32 2.0, %v490_v21 }
 0x104   :  { %v110_v22 = vpop.f32.mrf.mxu0 }
 0x105   :  { %v130_v25 = vmul.f32 2.0, %v110_v22  ;;  %v141_v33 = vsub.f32 %v407_v27, %v131_v24 }
 0x106   :  { %v493_v26 = vpop.f32.mrf.mxu0 }
 0x107   :  { %v140_v28 = vsub.f32 %v407_v27, %v130_v25  ;;  %v133_v30 = vmul.f32 2.0, %v493_v26  ;;  %v148_v35 = vsel %vm146_vm0, %v141_v33, 1e+30  ;;  %v557_v26 = vmov 1.0  }
 0x108   :  { %v120_v29 = vpop.f32.mrf.mxu0 }
 0x109   :  { %v132_v31 = vmul.f32 2.0, %v120_v29  ;;  %v147_v32 = vsel %vm146_vm0, %v140_v28, 1e+30  ;;  %v143_v37 = vsub.f32 %v407_v27, %v133_v30 }
 0x10a   :  { %151 = vmin.xlane.f32.xlu0 %v147_v32 }
 0x10b   :  { %v142_v34 = vsub.f32 %v407_v27, %v132_v31  ;;  %v150_v38 = vsel %vm146_vm0, %v143_v37, 1e+30 }
 0x10d   :  { %v149_v36 = vsel %vm146_vm0, %v142_v34, 1e+30 }
 0x10e   :  { %153 = vmin.xlane.f32.xlu0 %v148_v35  ;;  %155 = vmin.xlane.f32.xlu1 %v149_v36 }
 0x112   :  { %157 = vmin.xlane.f32.xlu1 %v150_v38 }
 0x193   :  { %v152_v39 = vpop.xlane.xlu0 %151 }
 0x194   :  { %vm159_vm1 = vcmp.le.f32.partialorder %v147_v32, %v152_v39 }
 0x195   :  { %v163_v40 = vsel %vm159_vm1, %v662_v23, 128 }
 0x196   :  { %v168_v41 = vshra.s32 %v163_v40, 16  ;;  %v167_v55 = vand.u32 65535, %v163_v40 }
 0x197   :  { %v154_v42 = vpop.xlane.xlu0 %153  ;;  %v156_v43 = vpop.xlane.xlu1 %155 }
 0x198   :  { %vm160_vm2 = vcmp.le.f32.partialorder %v148_v35, %v154_v42  ;;  %vm161_vm3 = vcmp.le.f32.partialorder %v149_v36, %v156_v43  ;;  %v170_v44 = vcvt.s32.f32 %v168_v41  ;;  %v169_v59 = vcvt.s32.f32 %v167_v55 }
 0x199   :  { %v164_v45 = vsel %vm160_vm2, %v662_v23, 128  ;;  %v165_v46 = vsel %vm161_vm3, %v662_v23, 128 }
 0x19a   :  { %171 = vmin.xlane.f32.xlu0 %v170_v44  ;;  %v182_v47 = vshra.s32 %v164_v45, 16  ;;  %v196_v48 = vshra.s32 %v165_v46, 16  ;;  %v181_v56 = vand.u32 65535, %v164_v45  ;;  %v195_v57 = vand.u32 65535, %v165_v46 }
 0x19b   :  { %v158_v49 = vpop.xlane.xlu1 %157 }
 0x19c   :  { %vm162_vm4 = vcmp.le.f32.partialorder %v150_v38, %v158_v49  ;;  %v184_v50 = vcvt.s32.f32 %v182_v47  ;;  %v198_v51 = vcvt.s32.f32 %v196_v48  ;;  %v197_v0 = vcvt.s32.f32 %v195_v57 }
 0x19d   :  { %v166_v52 = vsel %vm162_vm4, %v662_v23, 128  ;;  %v183_v1 = vcvt.s32.f32 %v181_v56 }
 0x19e   :  { %185 = vmin.xlane.f32.xlu1 %v184_v50  ;;  %199 = vmin.xlane.f32.xlu0 %v198_v51  ;;  %v210_v53 = vshra.s32 %v166_v52, 16  ;;  %v209_v61 = vand.u32 65535, %v166_v52 }
 0x1a0   :  { %v212_v54 = vcvt.s32.f32 %v210_v53  ;;  %v211_v6 = vcvt.s32.f32 %v209_v61 }
 0x1a2   :  { %213 = vmin.xlane.f32.xlu1 %v212_v54 }
 0x223   :  { %v172_v58 = vpop.xlane.xlu0 %171 }
 0x224   :  { %vm173_vm5 = vcmp.eq.f32.partialorder %v170_v44, %v172_v58  ;;  %v178_v8 = vcvt.f32.s32 %v172_v58 }
 0x225   :  { %v174_v60 = vsel %vm173_vm5, %v169_v59, inf }
 0x226   :  { %175 = vmin.xlane.f32.xlu0 %v174_v60  ;;  %v179_v12 = vshll.u32 %v178_v8, 16 }
 0x227   :  { %v200_v62 = vpop.xlane.xlu0 %199  ;;  %v186_v63 = vpop.xlane.xlu1 %185 }
 0x228   :  { %vm201_vm6 = vcmp.eq.f32.partialorder %v198_v51, %v200_v62  ;;  %vm187_vm7 = vcmp.eq.f32.partialorder %v184_v50, %v186_v63  ;;  %v206_v9 = vcvt.f32.s32 %v200_v62  ;;  %v192_v10 = vcvt.f32.s32 %v186_v63 }
 0x229   :  { %v202_v2 = vsel %vm201_vm6, %v197_v0, inf  ;;  %v188_v4 = vsel %vm187_vm7, %v183_v1, inf }
 0x22a   :  { %203 = vmin.xlane.f32.xlu0 %v202_v2  ;;  %189 = vmin.xlane.f32.xlu1 %v188_v4  ;;  %v207_v15 = vshll.u32 %v206_v9, 16  ;;  %v193_v16 = vshll.u32 %v192_v10, 16 }
 0x22b   :  { %v214_v5 = vpop.xlane.xlu1 %213 }
 0x22c   :  { %vm215_vm8 = vcmp.eq.f32.partialorder %v212_v54, %v214_v5  ;;  %v220_v22 = vcvt.f32.s32 %v214_v5 }
 0x22d   :  { %v216_v7 = vsel %vm215_vm8, %v211_v6, inf }
 0x22e   :  { %217 = vmin.xlane.f32.xlu1 %v216_v7  ;;  %v221_v30 = vshll.u32 %v220_v22, 16 }
 0x2af   :  { %v176_v11 = vpop.xlane.xlu0 %175 }
 0x2b0   :  { %v177_v13 = vcvt.f32.s32 %v176_v11 }
 0x2b2   :  { %v180_v14 = vadd.s32 %v179_v12, %v177_v13 }
 0x2b3   :  { %v204_v20 = vpop.xlane.xlu0 %203  ;;  %v190_v21 = vpop.xlane.xlu1 %189 }
 0x2b4   :  { %v205_v24 = vcvt.f32.s32 %v204_v20  ;;  %v191_v25 = vcvt.f32.s32 %v190_v21  ;;  %vm223_vm10 = vcmp.eq.s32.totalorder %v662_v23, %v180_v14  ;;  %381 = vst.msk [vmem:[%s717_s4] sm:$0xff] %vm380_vm9, %v180_v14 }
 0x2b5   :  { %526 = vmatprep.mubr.msk.f32.mxu1 %vm223_vm10, %v557_v26 }
 0x2b6   :  { %v208_v27 = vadd.s32 %v207_v15, %v205_v24  ;;  %v194_v28 = vadd.s32 %v193_v16, %v191_v25 }
 0x2b7   :  { %v218_v29 = vpop.xlane.xlu1 %217 }
 0x2b8   :  { %383 = vst.msk [vmem:[%s717_s4 + $0x10] sm:$0xff] %vm380_vm9, %v208_v27  ;;  %382 = vst.msk [vmem:[%s717_s4 + $0x8] sm:$0xff] %vm380_vm9, %v194_v28  ;;  %v219_v31 = vcvt.f32.s32 %v218_v29  ;;  %vm224_vm11 = vcmp.eq.s32.totalorder %v662_v23, %v194_v28  ;;  %vm225_vm12 = vcmp.eq.s32.totalorder %v662_v23, %v208_v27 }
 0x2b9   :  { %527 = vmatmul.mubr.msk.f32.vlgmr.msra.gmra.mxu1 %vm224_vm11, %v557_v26 }
 0x2ba   :  { %v222_v32 = vadd.s32 %v221_v30, %v219_v31  ;;  %529 = vmatprep.mubr.msk.f32.mxu1 %vm225_vm12, %v557_v26 }
 0x2bc   :  { %384 = vst.msk [vmem:[%s717_s4 + $0x18] sm:$0xff] %vm380_vm9, %v222_v32  ;;  %vm226_vm13 = vcmp.eq.s32.totalorder %v662_v23, %v222_v32 }
 0x2bd   :  { %530 = vmatmul.mubr.msk.f32.gmra.mxu1 %vm226_vm13, %v557_v26 }
 0x379   :  { %v528_v33 = vpop.f32.mrf.mxu1 }
 0x37a   :  { %v344_v34 = vsub.f32 %v528_v33, %v647_v17  ;;  %377 = vst [vmem:[%s716_s3 + $0x8] sm:$0xff] %v528_v33 }
 0x37b   :  { %v301_v35 = vpop.f32.mrf.mxu1 }
 0x37c   :  { %v343_v36 = vsub.f32 %v301_v35, %v602_v3  ;;  %376 = vst [vmem:[%s716_s3] sm:$0xff] %v301_v35  ;;  %v348_v37 = vmul.f32 %v344_v34, %v344_v34 }
 0x37d   :  { %v531_v38 = vpop.f32.mrf.mxu1 }
 0x37e   :  { %v346_v39 = vsub.f32 %v531_v38, %v659_v19  ;;  %379 = vst [vmem:[%s716_s3 + $0x18] sm:$0xff] %v531_v38  ;;  %353 = vadd.xlane.f32.xlu1 %v348_v37  ;;  %v347_v17 = vmul.f32 %v343_v36, %v343_v36  ;;  %v558_v19 = vmov 0.0  }
 0x37f   :  { %v311_v23 = vpop.f32.mrf.mxu1  ;;  %23 = vst.msk [vmem:[#allocation2] sm:$0x1] %vm22_vm14, %v558_v19 }
 0x380   :  { %v345_v40 = vsub.f32 %v311_v23, %v652_v18  ;;  %378 = vst [vmem:[%s716_s3 + $0x10] sm:$0xff] %v311_v23  ;;  %351 = vadd.xlane.f32.xlu0 %v347_v17  ;;  %v350_v3 = vmul.f32 %v346_v39, %v346_v39  ;;  %s559_s3 = smov [#allocation2]  }
 0x381   :  { %s395_s22 = sshll.u32 %s559_s3, 4  ;;  %s396_s22 = int_to_ptr.vmem [resolvable:$true] %s395_s22 }
 0x382   :  { %v349_v41 = vmul.f32 %v345_v40, %v345_v40  ;;  %357 = vadd.xlane.f32.xlu1 %v350_v3  ;;  %s535_s23 = scalar_lea.vmem %s396_s22, 16  ;;  %s539_s24 = scalar_lea.vmem %s396_s22, 32 }
 0x383   :  { %p536_p0 = scmp.ne.s32.totalorder %s396_s22, %s535_s23  ;;  %p540_p1 = scmp.lt.s32.totalorder %s396_s22, %s396_s22 }
 0x384   :  { %355 = vadd.xlane.f32.xlu0 %v349_v41  ;;  %p541_p2 = scmp.lt.s32.totalorder %s539_s24, %s535_s23 }
 0x386   :  { %v372_v53 = vld [vmem:[#allocation2] sm:$0x1]  ;;  %p542_p3 = por %p541_p2, %p540_p1 }
 0x388   :  { %p543_p4 = pnand %p542_p3, %p536_p0 }
 0x407   :  { %v354_v42 = vpop.xlane.xlu1 %353 }
 0x409   :  { %v352_v43 = vpop.xlane.xlu0 %351 }
 0x40a   :  { %v363_v44 = vadd.f32 %v354_v42, %v352_v43 }
 0x40b   :  { %v358_v47 = vpop.xlane.xlu1 %357 }
 0x40d   :  { %v356_v45 = vpop.xlane.xlu0 %355 }
 0x40e   :  { %v364_v46 = vadd.f32 %v363_v44, %v356_v45 }
 0x410   :  { %v365_v18 = vadd.f32 %v364_v46, %v358_v47 }
 0x412   :  { %v366_v48 = vrot.slane %v365_v18, 4 }
 0x414   :  { %v367_v49 = vadd.f32 %v366_v48, %v365_v18 }
 0x416   :  { %v368_v50 = vrot.slane %v367_v49, 2 }
 0x418   :  { %v369_v51 = vadd.f32 %v368_v50, %v367_v49 }
 0x41a   :  { %v370_v52 = vrot.slane %v369_v51, 1 }
 0x41c   :  { %v371_v54 = vadd.f32 %v370_v52, %v369_v51 }
 0x41e   :  { %v373_v55 = vadd.f32 %v372_v53, %v371_v54 }
 0x420   :  { %375 = vst.msk [vmem:[#allocation2] sm:$0x1] %vm22_vm14, %v373_v55 }
 0x421   :  { %546 = shalt.err (!%p543_p4)
}
 0x422   :  { %398 = dma.vmem_to_hbm [thread:$0]  %s396_s22, 16, %s718_s5, [#allocation3]  }
 0x423   :  { %555 = dma.done.wait [#allocation3], 16  }
 0x424   :  { %556 = vsyncadd [#allocation3], 4294967280 }
 0x425   :  { %406 = vsyncpa [#allocation3], 1 }

// kernel: vqvae_forward.20
= control target key start
LH: loop header
LB: loop body
LE: loop exit
PB: predicated region body
PF: predicated region fallthrough
CT: control target
= control target key end

     0   :  { %v3202_v50 = vmov 0   ;;  %s4322_s1 = inlined_call_operand.vmem [shape: bf16[1152,512], index: 1, kind: input, shape index: {}]   ;;  %s4323_s0 = inlined_call_operand.vmem [shape: bf16[32,1152], index: 0, kind: input, shape index: {}]   ;;  %s4324_s2 = inlined_call_operand.vmem [shape: f32[1,512], index: 2, kind: input, shape index: {}]   ;;  %s4325_s3 = inlined_call_operand.vmem [shape: f32[32,512], index: 3, kind: output, shape index: {}]  }
   0x1   :  { %v2770_v0 = vld [vmem:[%s4322_s1 + $0xe4] ss:$16 sps:$4 sm:$0xff]   ;;  %v2774_v2 = vld [vmem:[%s4322_s1 + $0xe0] ss:$16 sps:$4 sm:$0xff]   ;;  %v16_v52 = vld [vmem:[%s4323_s0 + $0x8] sm:$0xff] }
   0x2   :  { %v2772_v1 = vld [vmem:[%s4322_s1 + $0x2e4] ss:$16 sps:$4 sm:$0xff]   ;;  %1897 = vmatprep.subr.bf16.mxu0 %v2770_v0  ;;  %v2775_v3 = vld [vmem:[%s4322_s1 + $0x2e0] ss:$16 sps:$4 sm:$0xff]   ;;  %v36_v56 = vmax.bf16 %v3202_v50, %v16_v52 }
   0x3   :  { %1950 = vmatprep.subr.bf16.mxu1 %v2772_v1  ;;  %v2776_v4 = vld [vmem:[%s4322_s1 + $0xc4] ss:$16 sps:$4 sm:$0xff]   ;;  %1898 = vmatpush1.bf16.msra.mxu0 %v2774_v2  ;;  %v2780_v6 = vld [vmem:[%s4322_s1 + $0xc0] ss:$16 sps:$4 sm:$0xff]  }
   0x4   :  { %1951 = vmatpush1.bf16.msra.mxu1 %v2775_v3  ;;  %v2778_v5 = vld [vmem:[%s4322_s1 + $0x2c4] ss:$16 sps:$4 sm:$0xff]   ;;  %1899 = vmatprep.subr.bf16.mxu0 %v2776_v4  ;;  %v2781_v7 = vld [vmem:[%s4322_s1 + $0x2c0] ss:$16 sps:$4 sm:$0xff]  }
   0x5   :  { %1952 = vmatprep.subr.bf16.mxu1 %v2778_v5  ;;  %v2782_v8 = vld [vmem:[%s4322_s1 + $0xa4] ss:$16 sps:$4 sm:$0xff]   ;;  %v2786_v10 = vld [vmem:[%s4322_s1 + $0xa0] ss:$16 sps:$4 sm:$0xff]  }
   0x6   :  { %v2784_v9 = vld [vmem:[%s4322_s1 + $0x2a4] ss:$16 sps:$4 sm:$0xff]   ;;  %v2787_v11 = vld [vmem:[%s4322_s1 + $0x2a0] ss:$16 sps:$4 sm:$0xff]  }
   0x7   :  { %1900 = vmatpush1.bf16.msra.mxu0 %v2780_v6  ;;  %v2788_v12 = vld [vmem:[%s4322_s1 + $0x84] ss:$16 sps:$4 sm:$0xff]   ;;  %v2792_v14 = vld [vmem:[%s4322_s1 + $0x80] ss:$16 sps:$4 sm:$0xff]  }
   0x8   :  { %1953 = vmatpush1.bf16.msra.mxu1 %v2781_v7  ;;  %1901 = vmatprep.subr.bf16.mxu0 %v2782_v8  ;;  %v2790_v13 = vld [vmem:[%s4322_s1 + $0x284] ss:$16 sps:$4 sm:$0xff]   ;;  %v2793_v15 = vld [vmem:[%s4322_s1 + $0x280] ss:$16 sps:$4 sm:$0xff]  }
   0x9   :  { %1954 = vmatprep.subr.bf16.mxu1 %v2784_v9  ;;  %v2794_v16 = vld [vmem:[%s4322_s1 + $0x64] ss:$16 sps:$4 sm:$0xff]   ;;  %v2798_v18 = vld [vmem:[%s4322_s1 + $0x60] ss:$16 sps:$4 sm:$0xff]  }
   0xa   :  { %v2796_v17 = vld [vmem:[%s4322_s1 + $0x264] ss:$16 sps:$4 sm:$0xff]   ;;  %v2799_v19 = vld [vmem:[%s4322_s1 + $0x260] ss:$16 sps:$4 sm:$0xff]  }
   0xb   :  { %1902 = vmatpush1.bf16.msra.mxu0 %v2786_v10  ;;  %v2800_v20 = vld [vmem:[%s4322_s1 + $0x44] ss:$16 sps:$4 sm:$0xff]   ;;  %v2804_v22 = vld [vmem:[%s4322_s1 + $0x40] ss:$16 sps:$4 sm:$0xff]  }
   0xc   :  { %1955 = vmatpush1.bf16.msra.mxu1 %v2787_v11  ;;  %1903 = vmatprep.subr.bf16.mxu0 %v2788_v12  ;;  %v2802_v21 = vld [vmem:[%s4322_s1 + $0x244] ss:$16 sps:$4 sm:$0xff]   ;;  %v2805_v23 = vld [vmem:[%s4322_s1 + $0x240] ss:$16 sps:$4 sm:$0xff]  }
   0xd   :  { %1956 = vmatprep.subr.bf16.mxu1 %v2790_v13  ;;  %v2806_v24 = vld [vmem:[%s4322_s1 + $0x24] ss:$16 sps:$4 sm:$0xff]   ;;  %v2810_v26 = vld [vmem:[%s4322_s1 + $0x20] ss:$16 sps:$4 sm:$0xff]  }
   0xe   :  { %v2808_v25 = vld [vmem:[%s4322_s1 + $0x224] ss:$16 sps:$4 sm:$0xff]   ;;  %v2811_v27 = vld [vmem:[%s4322_s1 + $0x220] ss:$16 sps:$4 sm:$0xff]  }
   0xf   :  { %1904 = vmatpush1.bf16.msra.mxu0 %v2792_v14  ;;  %v2812_v28 = vld [vmem:[%s4322_s1 + $0x4] ss:$16 sps:$4 sm:$0xff]   ;;  %v2816_v30 = vld [vmem:[%s4322_s1] ss:$16 sps:$4 sm:$0xff]  }
  0x10   :  { %1957 = vmatpush1.bf16.msra.mxu1 %v2793_v15  ;;  %1905 = vmatprep.subr.bf16.mxu0 %v2794_v16  ;;  %v2814_v29 = vld [vmem:[%s4322_s1 + $0x204] ss:$16 sps:$4 sm:$0xff]   ;;  %v2817_v31 = vld [vmem:[%s4322_s1 + $0x200] ss:$16 sps:$4 sm:$0xff]  }
  0x11   :  { %1958 = vmatprep.subr.bf16.mxu1 %v2796_v17  ;;  %v2818_v32 = vld [vmem:[%s4322_s1 + $0x1e4] ss:$16 sps:$4 sm:$0xff]   ;;  %v2822_v34 = vld [vmem:[%s4322_s1 + $0x1e0] ss:$16 sps:$4 sm:$0xff]  }
  0x12   :  { %v2820_v33 = vld [vmem:[%s4322_s1 + $0x3e4] ss:$16 sps:$4 sm:$0xff]   ;;  %v2823_v35 = vld [vmem:[%s4322_s1 + $0x3e0] ss:$16 sps:$4 sm:$0xff]  }
  0x13   :  { %1906 = vmatpush1.bf16.msra.mxu0 %v2798_v18  ;;  %v2824_v36 = vld [vmem:[%s4322_s1 + $0x1c4] ss:$16 sps:$4 sm:$0xff]   ;;  %v2828_v38 = vld [vmem:[%s4322_s1 + $0x1c0] ss:$16 sps:$4 sm:$0xff]  }
  0x14   :  { %1959 = vmatpush1.bf16.msra.mxu1 %v2799_v19  ;;  %1907 = vmatprep.subr.bf16.mxu0 %v2800_v20  ;;  %v2826_v37 = vld [vmem:[%s4322_s1 + $0x3c4] ss:$16 sps:$4 sm:$0xff]   ;;  %v2829_v39 = vld [vmem:[%s4322_s1 + $0x3c0] ss:$16 sps:$4 sm:$0xff]  }
  0x15   :  { %1960 = vmatprep.subr.bf16.mxu1 %v2802_v21  ;;  %v2830_v40 = vld [vmem:[%s4322_s1 + $0x1a4] ss:$16 sps:$4 sm:$0xff]   ;;  %v2834_v42 = vld [vmem:[%s4322_s1 + $0x1a0] ss:$16 sps:$4 sm:$0xff]  }
  0x16   :  { %v2832_v41 = vld [vmem:[%s4322_s1 + $0x3a4] ss:$16 sps:$4 sm:$0xff]   ;;  %v2835_v43 = vld [vmem:[%s4322_s1 + $0x3a0] ss:$16 sps:$4 sm:$0xff]  }
  0x17   :  { %1908 = vmatpush1.bf16.msra.mxu0 %v2804_v22  ;;  %v2836_v44 = vld [vmem:[%s4322_s1 + $0x184] ss:$16 sps:$4 sm:$0xff]   ;;  %v2840_v46 = vld [vmem:[%s4322_s1 + $0x180] ss:$16 sps:$4 sm:$0xff]  }
  0x18   :  { %1961 = vmatpush1.bf16.msra.mxu1 %v2805_v23  ;;  %1909 = vmatprep.subr.bf16.mxu0 %v2806_v24  ;;  %v2838_v45 = vld [vmem:[%s4322_s1 + $0x384] ss:$16 sps:$4 sm:$0xff]   ;;  %v2841_v47 = vld [vmem:[%s4322_s1 + $0x380] ss:$16 sps:$4 sm:$0xff]  }
  0x19   :  { %1962 = vmatprep.subr.bf16.mxu1 %v2808_v25  ;;  %v15_v48 = vld [vmem:[%s4323_s0] sm:$0xff]  ;;  %v21_v53 = vld [vmem:[%s4323_s0 + $0x2c] sm:$0xff] }
  0x1a   :  { %v20_v49 = vld [vmem:[%s4323_s0 + $0x24] sm:$0xff]  ;;  %v35_v51 = vmax.bf16 %v3202_v50, %v15_v48  ;;  %v41_v57 = vmax.bf16 %v3202_v50, %v21_v53  ;;  %v2846_v61 = vld [vmem:[%s4322_s1 + $0x160] ss:$16 sps:$4 sm:$0xff]  }
  0x1b   :  { %1910 = vmatpush1.bf16.msra.mxu0 %v2810_v26  ;;  %v2842_v54 = vld [vmem:[%s4322_s1 + $0x164] ss:$16 sps:$4 sm:$0xff]   ;;  %v40_v55 = vmax.bf16 %v3202_v50, %v20_v49  ;;  %v2847_v62 = vld [vmem:[%s4322_s1 + $0x360] ss:$16 sps:$4 sm:$0xff]  }
  0x1c   :  { %1963 = vmatpush1.bf16.msra.mxu1 %v2811_v27  ;;  %1911 = vmatprep.subr.bf16.mxu0 %v2812_v28  ;;  %v2844_v58 = vld [vmem:[%s4322_s1 + $0x364] ss:$16 sps:$4 sm:$0xff]   ;;  %v3391_v60 = vcombine.high %v36_v56, %v41_v57  ;;  %v2852_v1 = vld [vmem:[%s4322_s1 + $0x140] ss:$16 sps:$4 sm:$0xff]   ;;  %v3445_v14 = vcombine.low %v36_v56, %v41_v57 }
  0x1d   :  { %1964 = vmatprep.subr.bf16.mxu1 %v2814_v29  ;;  %v3389_v59 = vcombine.high %v35_v51, %v40_v55  ;;  %v2848_v63 = vld [vmem:[%s4322_s1 + $0x144] ss:$16 sps:$4 sm:$0xff]   ;;  %v2853_v2 = vld [vmem:[%s4322_s1 + $0x340] ss:$16 sps:$4 sm:$0xff]   ;;  %v3443_v13 = vcombine.low %v35_v51, %v40_v55 }
  0x1e   :  { %v2850_v0 = vld [vmem:[%s4322_s1 + $0x344] ss:$16 sps:$4 sm:$0xff]   ;;  %1982 = vmatprep.mubr.bf16.mxu1 %v3391_v60  ;;  %v2858_v5 = vld [vmem:[%s4322_s1 + $0x120] ss:$16 sps:$4 sm:$0xff]  }
  0x1f   :  { %1912 = vmatpush1.bf16.msra.mxu0 %v2816_v30  ;;  %1929 = vmatprep.mubr.bf16.mxu0 %v3389_v59  ;;  %v2854_v3 = vld [vmem:[%s4322_s1 + $0x124] ss:$16 sps:$4 sm:$0xff]   ;;  %v2859_v6 = vld [vmem:[%s4322_s1 + $0x320] ss:$16 sps:$4 sm:$0xff]  }
  0x20   :  { %1965 = vmatpush1.bf16.msra.mxu1 %v2817_v31  ;;  %1913 = vmatprep.subr.bf16.mxu0 %v2818_v32  ;;  %v2856_v4 = vld [vmem:[%s4322_s1 + $0x324] ss:$16 sps:$4 sm:$0xff]   ;;  %v2864_v9 = vld [vmem:[%s4322_s1 + $0x100] ss:$16 sps:$4 sm:$0xff]  }
  0x21   :  { %1966 = vmatprep.subr.bf16.mxu1 %v2820_v33  ;;  %v2860_v7 = vld [vmem:[%s4322_s1 + $0x104] ss:$16 sps:$4 sm:$0xff]   ;;  %v2865_v10 = vld [vmem:[%s4322_s1 + $0x300] ss:$16 sps:$4 sm:$0xff]   ;;  %v25_v33 = vld [vmem:[%s4323_s0 + $0x48] sm:$0xff] }
  0x22   :  { %v2862_v8 = vld [vmem:[%s4322_s1 + $0x304] ss:$16 sps:$4 sm:$0xff]   ;;  %v2866_v15 = vld [vmem:[%s4322_s1 + $0x4e0] ss:$16 sps:$4 sm:$0xff]  }
  0x23   :  { %1914 = vmatpush2.bf16.msra.mxu0 %v2822_v34  ;;  %v2868_v11 = vld [vmem:[%s4322_s1 + $0x4e4] ss:$16 sps:$4 sm:$0xff]   ;;  %v2869_v16 = vld [vmem:[%s4322_s1 + $0x6e0] ss:$16 sps:$4 sm:$0xff]  }
  0x24   :  { %1967 = vmatpush2.bf16.msra.mxu1 %v2823_v35  ;;  %1915 = vmatprep.subr.bf16.mxu0 %v2824_v36  ;;  %v2871_v12 = vld [vmem:[%s4322_s1 + $0x6e4] ss:$16 sps:$4 sm:$0xff]   ;;  %v2872_v19 = vld [vmem:[%s4322_s1 + $0x4c0] ss:$16 sps:$4 sm:$0xff]   ;;  %v45_v35 = vmax.bf16 %v3202_v50, %v25_v33 }
  0x25   :  { %1968 = vmatprep.subr.bf16.mxu1 %v2826_v37  ;;  %v2874_v17 = vld [vmem:[%s4322_s1 + $0x4c4] ss:$16 sps:$4 sm:$0xff]   ;;  %v2875_v20 = vld [vmem:[%s4322_s1 + $0x6c0] ss:$16 sps:$4 sm:$0xff]  }
  0x26   :  { %v2877_v18 = vld [vmem:[%s4322_s1 + $0x6c4] ss:$16 sps:$4 sm:$0xff]   ;;  %v2878_v23 = vld [vmem:[%s4322_s1 + $0x4a0] ss:$16 sps:$4 sm:$0xff]  }
  0x27   :  { %1916 = vmatpush2.bf16.msra.mxu0 %v2828_v38  ;;  %v2880_v21 = vld [vmem:[%s4322_s1 + $0x4a4] ss:$16 sps:$4 sm:$0xff]   ;;  %v2881_v24 = vld [vmem:[%s4322_s1 + $0x6a0] ss:$16 sps:$4 sm:$0xff]  }
  0x28   :  { %1969 = vmatpush2.bf16.msra.mxu1 %v2829_v39  ;;  %1917 = vmatprep.subr.bf16.mxu0 %v2830_v40  ;;  %v2883_v22 = vld [vmem:[%s4322_s1 + $0x6a4] ss:$16 sps:$4 sm:$0xff]   ;;  %v2884_v27 = vld [vmem:[%s4322_s1 + $0x480] ss:$16 sps:$4 sm:$0xff]  }
  0x29   :  { %1970 = vmatprep.subr.bf16.mxu1 %v2832_v41  ;;  %v2886_v25 = vld [vmem:[%s4322_s1 + $0x484] ss:$16 sps:$4 sm:$0xff]   ;;  %v2887_v28 = vld [vmem:[%s4322_s1 + $0x680] ss:$16 sps:$4 sm:$0xff]  }
  0x2a   :  { %v2889_v26 = vld [vmem:[%s4322_s1 + $0x684] ss:$16 sps:$4 sm:$0xff]   ;;  %v2890_v31 = vld [vmem:[%s4322_s1 + $0x460] ss:$16 sps:$4 sm:$0xff]  }
  0x2b   :  { %1918 = vmatpush2.bf16.msra.mxu0 %v2834_v42  ;;  %v2892_v29 = vld [vmem:[%s4322_s1 + $0x464] ss:$16 sps:$4 sm:$0xff]   ;;  %v2893_v32 = vld [vmem:[%s4322_s1 + $0x660] ss:$16 sps:$4 sm:$0xff]  }
  0x2c   :  { %1971 = vmatpush2.bf16.msra.mxu1 %v2835_v43  ;;  %1919 = vmatprep.subr.bf16.mxu0 %v2836_v44  ;;  %v2895_v30 = vld [vmem:[%s4322_s1 + $0x664] ss:$16 sps:$4 sm:$0xff]   ;;  %v30_v34 = vld [vmem:[%s4323_s0 + $0x6c] sm:$0xff] }
  0x2d   :  { %1972 = vmatprep.subr.bf16.mxu1 %v2838_v45  ;;  %v26_v36 = vld [vmem:[%s4323_s0 + $0x50] sm:$0xff]  ;;  %v50_v39 = vmax.bf16 %v3202_v50, %v30_v34 }
  0x2e   :  { %v31_v37 = vld [vmem:[%s4323_s0 + $0x74] sm:$0xff]  ;;  %v46_v40 = vmax.bf16 %v3202_v50, %v26_v36  ;;  %v2896_v45 = vld [vmem:[%s4322_s1 + $0x440] ss:$16 sps:$4 sm:$0xff]  }
  0x2f   :  { %1920 = vmatpush2.bf16.msra.mxu0 %v2840_v46  ;;  %v2898_v38 = vld [vmem:[%s4322_s1 + $0x444] ss:$16 sps:$4 sm:$0xff]   ;;  %v51_v41 = vmax.bf16 %v3202_v50, %v31_v37  ;;  %v3525_v43 = vcombine.high %v45_v35, %v50_v39  ;;  %v2899_v46 = vld [vmem:[%s4322_s1 + $0x640] ss:$16 sps:$4 sm:$0xff]  }
  0x30   :  { %1973 = vmatpush2.bf16.msra.mxu1 %v2841_v47  ;;  %1921 = vmatprep.subr.bf16.mxu0 %v2842_v54  ;;  %v2901_v42 = vld [vmem:[%s4322_s1 + $0x644] ss:$16 sps:$4 sm:$0xff]   ;;  %v3535_v47 = vcombine.low %v45_v35, %v50_v39  ;;  %v2902_v52 = vld [vmem:[%s4322_s1 + $0x420] ss:$16 sps:$4 sm:$0xff]  }
  0x31   :  { %1974 = vmatprep.subr.bf16.mxu1 %v2844_v58  ;;  %v3527_v44 = vcombine.high %v46_v40, %v51_v41  ;;  %v3537_v48 = vcombine.low %v46_v40, %v51_v41  ;;  %v2904_v49 = vld [vmem:[%s4322_s1 + $0x424] ss:$16 sps:$4 sm:$0xff]   ;;  %v2905_v53 = vld [vmem:[%s4322_s1 + $0x620] ss:$16 sps:$4 sm:$0xff]   ;;  %v18_v58 = vld [vmem:[%s4323_s0 + $0x18] sm:$0xff] }
  0x32   :  { %v2907_v51 = vld [vmem:[%s4322_s1 + $0x624] ss:$16 sps:$4 sm:$0xff]   ;;  %v2950_v34 = vld [vmem:[%s4322_s1 + $0x520] ss:$16 sps:$4 sm:$0xff]   ;;  %v27_v40 = vld [vmem:[%s4323_s0 + $0x58] sm:$0xff] }
  0x33   :  { %1922 = vmatpush2.bf16.msra.mxu0 %v2846_v61  ;;  %v2910_v54 = vld [vmem:[%s4322_s1 + $0x404] ss:$16 sps:$4 sm:$0xff]   ;;  %v2953_v35 = vld [vmem:[%s4322_s1 + $0x720] ss:$16 sps:$4 sm:$0xff]  }
  0x34   :  { %1975 = vmatpush2.bf16.msra.mxu1 %v2847_v62  ;;  %1923 = vmatprep.subr.bf16.mxu0 %v2848_v63  ;;  %v2913_v55 = vld [vmem:[%s4322_s1 + $0x604] ss:$16 sps:$4 sm:$0xff]   ;;  %v23_v63 = vld [vmem:[%s4323_s0 + $0x3c] sm:$0xff] }
  0x35   :  { %1976 = vmatprep.subr.bf16.mxu1 %v2850_v0  ;;  %v17_v56 = vld [vmem:[%s4323_s0 + $0x10] sm:$0xff]  ;;  %v3580_v0 = vmax.bf16 %v3202_v50, %v18_v58  ;;  %v32_v41 = vld [vmem:[%s4323_s0 + $0x7c] sm:$0xff]  ;;  %v2965_v58 = vld [vmem:[%s4322_s1 + $0xe8] ss:$16 sps:$4 sm:$0xff]  }
  0x36   :  { %v22_v57 = vld [vmem:[%s4323_s0 + $0x34] sm:$0xff]  ;;  %v3571_v61 = vmax.bf16 %v3202_v50, %v17_v56  ;;  %v2959_v39 = vld [vmem:[%s4322_s1 + $0x700] ss:$16 sps:$4 sm:$0xff]  }
  0x37   :  { %1924 = vmatpush2.bf16.msra.mxu0 %v2852_v1  ;;  %v3574_v62 = vmax.bf16 %v3202_v50, %v22_v57  ;;  %v3583_v1 = vmax.bf16 %v3202_v50, %v23_v63  ;;  %v2955_v33 = vld [vmem:[%s4322_s1 + $0x724] ss:$16 sps:$4 sm:$0xff]   ;;  %v2962_v57 = vld [vmem:[%s4322_s1 + $0x8e0] ss:$16 sps:$4 sm:$0xff]  }
  0x38   :  { %1977 = vmatpush2.bf16.msra.mxu1 %v2853_v2  ;;  %1925 = vmatprep.subr.bf16.mxu0 %v2854_v3  ;;  %v2908_v2 = vld [vmem:[%s4322_s1 + $0x400] ss:$16 sps:$4 sm:$0xff]   ;;  %v2958_v36 = vld [vmem:[%s4322_s1 + $0x504] ss:$16 sps:$4 sm:$0xff]  }
  0x39   :  { %1978 = vmatprep.subr.bf16.mxu1 %v2856_v4  ;;  %v2911_v3 = vld [vmem:[%s4322_s1 + $0x600] ss:$16 sps:$4 sm:$0xff]   ;;  %v3593_v4 = vcombine.high %v3571_v61, %v3574_v62  ;;  %v2961_v37 = vld [vmem:[%s4322_s1 + $0x704] ss:$16 sps:$4 sm:$0xff]   ;;  %v3725_v56 = vcombine.low %v3580_v0, %v3583_v1 }
  0x3a   :  { %v2970_v63 = vld [vmem:[%s4322_s1 + $0x8c4] ss:$16 sps:$4 sm:$0xff]  }
  0x3b   :  { %1926 = vmatpush2.bf16.msra.mxu0 %v2858_v5  ;;  %v2916_v5 = vld [vmem:[%s4322_s1 + $0x5e4] ss:$16 sps:$4 sm:$0xff]  }
  0x3c   :  { %1979 = vmatpush2.bf16.msra.mxu1 %v2859_v6  ;;  %1927 = vmatprep.subr.bf16.mxu0 %v2860_v7  ;;  %v3600_v6 = vcombine.high %v3580_v0, %v3583_v1  ;;  %v2919_v7 = vld [vmem:[%s4322_s1 + $0x7e4] ss:$16 sps:$4 sm:$0xff]   ;;  %v2968_v1 = vld [vmem:[%s4322_s1 + $0x8c0] ss:$16 sps:$4 sm:$0xff]  }
  0x3d   :  { %1980 = vmatprep.subr.bf16.mxu1 %v2862_v8  ;;  %v2914_v8 = vld [vmem:[%s4322_s1 + $0x5e0] ss:$16 sps:$4 sm:$0xff]  }
  0x3f   :  { %1928 = vmatpush2.bf16.msra.mxu0 %v2864_v9  ;;  %v2917_v9 = vld [vmem:[%s4322_s1 + $0x7e0] ss:$16 sps:$4 sm:$0xff]  }
  0x40   :  { %1981 = vmatpush2.bf16.msra.mxu1 %v2865_v10  ;;  %2003 = vmatprep.subr.bf16.mxu0 %v2868_v11  ;;  %v2922_v10 = vld [vmem:[%s4322_s1 + $0x5c4] ss:$16 sps:$4 sm:$0xff]  }
  0x41   :  { %2056 = vmatprep.subr.bf16.mxu1 %v2871_v12  ;;  %v2925_v11 = vld [vmem:[%s4322_s1 + $0x7c4] ss:$16 sps:$4 sm:$0xff]   ;;  %v2920_v12 = vld [vmem:[%s4322_s1 + $0x5c0] ss:$16 sps:$4 sm:$0xff]  }
  0x42   :  { %1930 = vmatmul.mubr.bf16.vlgmr.msra.gmra.mxu0 %v3443_v13 }
  0x43   :  { %1983 = vmatmul.mubr.bf16.vlgmr.msra.gmra.mxu1 %v3445_v14  ;;  %2004 = vmatpush1.bf16.msra.mxu0 %v2866_v15  ;;  %v2923_v15 = vld [vmem:[%s4322_s1 + $0x7c0] ss:$16 sps:$4 sm:$0xff]  }
  0x44   :  { %2057 = vmatpush1.bf16.msra.mxu1 %v2869_v16  ;;  %2005 = vmatprep.subr.bf16.mxu0 %v2874_v17  ;;  %v2928_v16 = vld [vmem:[%s4322_s1 + $0x5a4] ss:$16 sps:$4 sm:$0xff]  }
  0x45   :  { %2058 = vmatprep.subr.bf16.mxu1 %v2877_v18  ;;  %1939 = vmatprep.mubr.bf16.mxu0 %v3525_v43  ;;  %v2931_v17 = vld [vmem:[%s4322_s1 + $0x7a4] ss:$16 sps:$4 sm:$0xff]   ;;  %v2926_v18 = vld [vmem:[%s4322_s1 + $0x5a0] ss:$16 sps:$4 sm:$0xff]  }
  0x46   :  { %1992 = vmatprep.mubr.bf16.mxu1 %v3527_v44 }
  0x47   :  { %2006 = vmatpush1.bf16.msra.mxu0 %v2872_v19  ;;  %v2929_v19 = vld [vmem:[%s4322_s1 + $0x7a0] ss:$16 sps:$4 sm:$0xff]  }
  0x48   :  { %2059 = vmatpush1.bf16.msra.mxu1 %v2875_v20  ;;  %2007 = vmatprep.subr.bf16.mxu0 %v2880_v21  ;;  %v2934_v20 = vld [vmem:[%s4322_s1 + $0x584] ss:$16 sps:$4 sm:$0xff]  }
  0x49   :  { %2060 = vmatprep.subr.bf16.mxu1 %v2883_v22  ;;  %v2937_v21 = vld [vmem:[%s4322_s1 + $0x784] ss:$16 sps:$4 sm:$0xff]   ;;  %v2932_v22 = vld [vmem:[%s4322_s1 + $0x580] ss:$16 sps:$4 sm:$0xff]  }
  0x4a   :  { %1940 = vmatmul.mubr.bf16.gmra.mxu0 %v3535_v47 }
  0x4b   :  { %2008 = vmatpush1.bf16.msra.mxu0 %v2878_v23  ;;  %1993 = vmatmul.mubr.bf16.gmra.mxu1 %v3537_v48  ;;  %v2935_v23 = vld [vmem:[%s4322_s1 + $0x780] ss:$16 sps:$4 sm:$0xff]  }
  0x4c   :  { %2061 = vmatpush1.bf16.msra.mxu1 %v2881_v24  ;;  %2009 = vmatprep.subr.bf16.mxu0 %v2886_v25  ;;  %v2940_v24 = vld [vmem:[%s4322_s1 + $0x564] ss:$16 sps:$4 sm:$0xff]  }
  0x4d   :  { %2062 = vmatprep.subr.bf16.mxu1 %v2889_v26  ;;  %2035 = vmatprep.mubr.bf16.mxu0 %v3593_v4  ;;  %v2943_v25 = vld [vmem:[%s4322_s1 + $0x764] ss:$16 sps:$4 sm:$0xff]   ;;  %v2938_v26 = vld [vmem:[%s4322_s1 + $0x560] ss:$16 sps:$4 sm:$0xff]  }
  0x4e   :  { %2088 = vmatprep.mubr.bf16.mxu1 %v3600_v6 }
  0x4f   :  { %2010 = vmatpush1.bf16.msra.mxu0 %v2884_v27  ;;  %v2941_v27 = vld [vmem:[%s4322_s1 + $0x760] ss:$16 sps:$4 sm:$0xff]  }
  0x50   :  { %2063 = vmatpush1.bf16.msra.mxu1 %v2887_v28  ;;  %2011 = vmatprep.subr.bf16.mxu0 %v2892_v29  ;;  %v2946_v28 = vld [vmem:[%s4322_s1 + $0x544] ss:$16 sps:$4 sm:$0xff]  }
  0x51   :  { %2064 = vmatprep.subr.bf16.mxu1 %v2895_v30  ;;  %v2949_v29 = vld [vmem:[%s4322_s1 + $0x744] ss:$16 sps:$4 sm:$0xff]   ;;  %v2944_v30 = vld [vmem:[%s4322_s1 + $0x540] ss:$16 sps:$4 sm:$0xff]  }
  0x53   :  { %2012 = vmatpush1.bf16.msra.mxu0 %v2890_v31  ;;  %v2947_v31 = vld [vmem:[%s4322_s1 + $0x740] ss:$16 sps:$4 sm:$0xff]  }
  0x54   :  { %2065 = vmatpush1.bf16.msra.mxu1 %v2893_v32  ;;  %2013 = vmatprep.subr.bf16.mxu0 %v2898_v38  ;;  %v2952_v32 = vld [vmem:[%s4322_s1 + $0x524] ss:$16 sps:$4 sm:$0xff]   ;;  %v2956_v38 = vld [vmem:[%s4322_s1 + $0x500] ss:$16 sps:$4 sm:$0xff]  }
  0x55   :  { %2066 = vmatprep.subr.bf16.mxu1 %v2901_v42  ;;  %v28_v42 = vld [vmem:[%s4323_s0 + $0x60] sm:$0xff] }
  0x57   :  { %2014 = vmatpush1.bf16.msra.mxu0 %v2896_v45  ;;  %v33_v45 = vld [vmem:[%s4323_s0 + $0x84] sm:$0xff] }
  0x58   :  { %2067 = vmatpush1.bf16.msra.mxu1 %v2899_v46  ;;  %2015 = vmatprep.subr.bf16.mxu0 %v2904_v49  ;;  %v2964_v46 = vld [vmem:[%s4322_s1 + $0x8e4] ss:$16 sps:$4 sm:$0xff]   ;;  %v2967_v49 = vld [vmem:[%s4322_s1 + $0xec] ss:$16 sps:$4 sm:$0xff]  }
  0x59   :  { %2068 = vmatprep.subr.bf16.mxu1 %v2907_v51  ;;  %v47_v51 = vmax.bf16 %v3202_v50, %v27_v40 }
  0x5b   :  { %2016 = vmatpush1.bf16.msra.mxu0 %v2902_v52  ;;  %v52_v52 = vmax.bf16 %v3202_v50, %v32_v41  ;;  %v3018_v41 = vld [vmem:[%s4322_s1 + $0x1cc] ss:$16 sps:$4 sm:$0xff]  }
  0x5c   :  { %2069 = vmatpush1.bf16.msra.mxu1 %v2905_v53  ;;  %2017 = vmatprep.subr.bf16.mxu0 %v2910_v54  ;;  %v48_v53 = vmax.bf16 %v3202_v50, %v28_v42  ;;  %v53_v54 = vmax.bf16 %v3202_v50, %v33_v45  ;;  %v29_v42 = vld [vmem:[%s4323_s0 + $0x68] sm:$0xf]  ;;  %v34_v45 = vld [vmem:[%s4323_s0 + $0x8c] sm:$0xf] }
  0x5d   :  { %2070 = vmatprep.subr.bf16.mxu1 %v2913_v55  ;;  %v3721_v55 = vcombine.low %v3571_v61, %v3574_v62  ;;  %v2973_v61 = vld [vmem:[%s4322_s1 + $0xcc] ss:$16 sps:$4 sm:$0xff]   ;;  %v3739_v62 = vcombine.high %v47_v51, %v52_v52 }
  0x5e   :  { %v3741_v0 = vcombine.high %v48_v53, %v53_v54 }
  0x5f   :  { %2018 = vmatpush1.bf16.msra.mxu0 %v2908_v2  ;;  %v2971_v2 = vld [vmem:[%s4322_s1 + $0xc8] ss:$16 sps:$4 sm:$0xff]  }
  0x60   :  { %2071 = vmatpush1.bf16.msra.mxu1 %v2911_v3  ;;  %2019 = vmatprep.subr.bf16.mxu0 %v2916_v5  ;;  %v2976_v3 = vld [vmem:[%s4322_s1 + $0x8a4] ss:$16 sps:$4 sm:$0xff]   ;;  %v2979_v5 = vld [vmem:[%s4322_s1 + $0xac] ss:$16 sps:$4 sm:$0xff]  }
  0x61   :  { %2072 = vmatprep.subr.bf16.mxu1 %v2919_v7  ;;  %v3759_v7 = vcombine.low %v47_v51, %v52_v52  ;;  %v3019_v51 = vld [vmem:[%s4322_s1 + $0x2c8] ss:$16 sps:$4 sm:$0xff]   ;;  %v49_v52 = vmax.bf16 %v3202_v50, %v29_v42 }
  0x62   :  { %v3085_v42 = vld [vmem:[%s4322_s1 + $0x468] ss:$16 sps:$4 sm:$0xff]  }
  0x63   :  { %2020 = vmatpush2.bf16.msra.mxu0 %v2914_v8  ;;  %v2974_v8 = vld [vmem:[%s4322_s1 + $0x8a0] ss:$16 sps:$4 sm:$0xff]  }
  0x64   :  { %2073 = vmatpush2.bf16.msra.mxu1 %v2917_v9  ;;  %2021 = vmatprep.subr.bf16.mxu0 %v2922_v10  ;;  %v2977_v9 = vld [vmem:[%s4322_s1 + $0xa8] ss:$16 sps:$4 sm:$0xff]   ;;  %v3767_v10 = vcombine.low %v48_v53, %v53_v54  ;;  %v54_v53 = vmax.bf16 %v3202_v50, %v34_v45  ;;  %v3024_v54 = vld [vmem:[%s4322_s1 + $0x1ac] ss:$16 sps:$4 sm:$0xff]  }
  0x65   :  { %2074 = vmatprep.subr.bf16.mxu1 %v2925_v11  ;;  %v2982_v11 = vld [vmem:[%s4322_s1 + $0x884] ss:$16 sps:$4 sm:$0xff]   ;;  %v3090_v45 = vld [vmem:[%s4322_s1 + $0x34c] ss:$16 sps:$4 sm:$0xff]  }
  0x67   :  { %2022 = vmatpush2.bf16.msra.mxu0 %v2920_v12  ;;  %v2985_v12 = vld [vmem:[%s4322_s1 + $0x8c] ss:$16 sps:$4 sm:$0xff]  }
  0x68   :  { %2075 = vmatpush2.bf16.msra.mxu1 %v2923_v15  ;;  %2023 = vmatprep.subr.bf16.mxu0 %v2928_v16  ;;  %v2980_v15 = vld [vmem:[%s4322_s1 + $0x880] ss:$16 sps:$4 sm:$0xff]   ;;  %v2983_v16 = vld [vmem:[%s4322_s1 + $0x88] ss:$16 sps:$4 sm:$0xff]  }
  0x69   :  { %2076 = vmatprep.subr.bf16.mxu1 %v2931_v17  ;;  %v2988_v17 = vld [vmem:[%s4322_s1 + $0x864] ss:$16 sps:$4 sm:$0xff]  }
  0x6b   :  { %2024 = vmatpush2.bf16.msra.mxu0 %v2926_v18  ;;  %v2991_v18 = vld [vmem:[%s4322_s1 + $0x6c] ss:$16 sps:$4 sm:$0xff]  }
  0x6c   :  { %2077 = vmatpush2.bf16.msra.mxu1 %v2929_v19  ;;  %2025 = vmatprep.subr.bf16.mxu0 %v2934_v20  ;;  %v2986_v19 = vld [vmem:[%s4322_s1 + $0x860] ss:$16 sps:$4 sm:$0xff]   ;;  %v2989_v20 = vld [vmem:[%s4322_s1 + $0x68] ss:$16 sps:$4 sm:$0xff]  }
  0x6d   :  { %2078 = vmatprep.subr.bf16.mxu1 %v2937_v21  ;;  %v2994_v21 = vld [vmem:[%s4322_s1 + $0x844] ss:$16 sps:$4 sm:$0xff]  }
  0x6f   :  { %2026 = vmatpush2.bf16.msra.mxu0 %v2932_v22  ;;  %v2992_v22 = vld [vmem:[%s4322_s1 + $0x840] ss:$16 sps:$4 sm:$0xff]  }
  0x70   :  { %2079 = vmatpush2.bf16.msra.mxu1 %v2935_v23  ;;  %2027 = vmatprep.subr.bf16.mxu0 %v2940_v24  ;;  %v2995_v23 = vld [vmem:[%s4322_s1 + $0x48] ss:$16 sps:$4 sm:$0xff]   ;;  %v3000_v24 = vld [vmem:[%s4322_s1 + $0x824] ss:$16 sps:$4 sm:$0xff]  }
  0x71   :  { %2080 = vmatprep.subr.bf16.mxu1 %v2943_v25  ;;  %v3003_v25 = vld [vmem:[%s4322_s1 + $0x2c] ss:$16 sps:$4 sm:$0xff]  }
  0x73   :  { %2028 = vmatpush2.bf16.msra.mxu0 %v2938_v26  ;;  %v2998_v26 = vld [vmem:[%s4322_s1 + $0x820] ss:$16 sps:$4 sm:$0xff]  }
  0x74   :  { %2081 = vmatpush2.bf16.msra.mxu1 %v2941_v27  ;;  %2029 = vmatprep.subr.bf16.mxu0 %v2946_v28  ;;  %v3001_v27 = vld [vmem:[%s4322_s1 + $0x28] ss:$16 sps:$4 sm:$0xff]   ;;  %v3006_v28 = vld [vmem:[%s4322_s1 + $0x804] ss:$16 sps:$4 sm:$0xff]  }
  0x75   :  { %2082 = vmatprep.subr.bf16.mxu1 %v2949_v29  ;;  %v19_v29 = vld [vmem:[%s4323_s0 + $0x20] sm:$0xf] }
  0x77   :  { %2030 = vmatpush2.bf16.msra.mxu0 %v2944_v30  ;;  %v24_v30 = vld [vmem:[%s4323_s0 + $0x44] sm:$0xf] }
  0x78   :  { %2083 = vmatpush2.bf16.msra.mxu1 %v2947_v31  ;;  %2031 = vmatprep.subr.bf16.mxu0 %v2952_v32  ;;  %v3009_v31 = vld [vmem:[%s4322_s1 + $0xc] ss:$16 sps:$4 sm:$0xff]   ;;  %v3004_v32 = vld [vmem:[%s4322_s1 + $0x800] ss:$16 sps:$4 sm:$0xff]  }
  0x79   :  { %2084 = vmatprep.subr.bf16.mxu1 %v2955_v33  ;;  %v3007_v33 = vld [vmem:[%s4322_s1 + $0x8] ss:$16 sps:$4 sm:$0xff]  }
  0x7b   :  { %2032 = vmatpush2.bf16.msra.mxu0 %v2950_v34  ;;  %v39_v34 = vmax.bf16 %v3202_v50, %v19_v29  ;;  %v3066_v29 = vld [vmem:[%s4322_s1 + $0x3cc] ss:$16 sps:$4 sm:$0xff]  }
  0x7c   :  { %2085 = vmatpush2.bf16.msra.mxu1 %v2953_v35  ;;  %2033 = vmatprep.subr.bf16.mxu0 %v2958_v36  ;;  %v44_v35 = vmax.bf16 %v3202_v50, %v24_v30  ;;  %v3012_v36 = vld [vmem:[%s4322_s1 + $0x1ec] ss:$16 sps:$4 sm:$0xff]  }
  0x7d   :  { %2086 = vmatprep.subr.bf16.mxu1 %v2961_v37  ;;  %v3015_v37 = vld [vmem:[%s4322_s1 + $0x2ec] ss:$16 sps:$4 sm:$0xff]  }
  0x7e   :  { %v3853_v40 = vcombine.low %v39_v34, %v44_v35  ;;  %v3069_v30 = vld [vmem:[%s4322_s1 + $0x4cc] ss:$16 sps:$4 sm:$0xff]   ;;  %v3070_v34 = vld [vmem:[%s4322_s1 + $0x3a8] ss:$16 sps:$4 sm:$0xff]  }
  0x7f   :  { %2034 = vmatpush2.bf16.msra.mxu0 %v2956_v38  ;;  %v3010_v38 = vld [vmem:[%s4322_s1 + $0x1e8] ss:$16 sps:$4 sm:$0xff]  }
  0x80   :  { %2087 = vmatpush2.bf16.msra.mxu1 %v2959_v39  ;;  %2109 = vmatprep.subr.bf16.mxu0 %v2964_v46  ;;  %v3013_v39 = vld [vmem:[%s4322_s1 + $0x2e8] ss:$16 sps:$4 sm:$0xff]   ;;  %v3021_v46 = vld [vmem:[%s4322_s1 + $0x2cc] ss:$16 sps:$4 sm:$0xff]  }
  0x81   :  { %2162 = vmatprep.subr.bf16.mxu1 %v2967_v49  ;;  %v3016_v49 = vld [vmem:[%s4322_s1 + $0x1c8] ss:$16 sps:$4 sm:$0xff]  }
  0x82   :  { %2036 = vmatmul.mubr.bf16.vlgmr.msra.gmra.mxu0 %v3721_v55  ;;  %v3073_v35 = vld [vmem:[%s4322_s1 + $0x4a8] ss:$16 sps:$4 sm:$0xff]  }
  0x83   :  { %2089 = vmatmul.mubr.bf16.vlgmr.msra.gmra.mxu1 %v3725_v56  ;;  %2110 = vmatpush1.bf16.msra.mxu0 %v2962_v57  ;;  %v3027_v57 = vld [vmem:[%s4322_s1 + $0x2ac] ss:$16 sps:$4 sm:$0xff]  }
  0x84   :  { %2163 = vmatpush1.bf16.msra.mxu1 %v2965_v58  ;;  %2111 = vmatprep.subr.bf16.mxu0 %v2970_v63  ;;  %v3883_v58 = vcombine.low %v49_v52, %v54_v53  ;;  %v3022_v63 = vld [vmem:[%s4322_s1 + $0x1a8] ss:$16 sps:$4 sm:$0xff]   ;;  %v3099_v52 = vld [vmem:[%s4322_s1 + $0x42c] ss:$16 sps:$4 sm:$0xff]  }
  0x85   :  { %2164 = vmatprep.subr.bf16.mxu1 %v2973_v61  ;;  %2045 = vmatprep.mubr.bf16.mxu0 %v3739_v62  ;;  %v3025_v61 = vld [vmem:[%s4322_s1 + $0x2a8] ss:$16 sps:$4 sm:$0xff]  }
  0x86   :  { %2098 = vmatprep.mubr.bf16.mxu1 %v3741_v0  ;;  %v3094_v53 = vld [vmem:[%s4322_s1 + $0x328] ss:$16 sps:$4 sm:$0xff]  }
  0x87   :  { %2112 = vmatpush1.bf16.msra.mxu0 %v2968_v1  ;;  %v3030_v1 = vld [vmem:[%s4322_s1 + $0x18c] ss:$16 sps:$4 sm:$0xff]  }
  0x88   :  { %2165 = vmatpush1.bf16.msra.mxu1 %v2971_v2  ;;  %2113 = vmatprep.subr.bf16.mxu0 %v2976_v3  ;;  %v3033_v2 = vld [vmem:[%s4322_s1 + $0x28c] ss:$16 sps:$4 sm:$0xff]   ;;  %v3028_v3 = vld [vmem:[%s4322_s1 + $0x188] ss:$16 sps:$4 sm:$0xff]  }
  0x89   :  { %2166 = vmatprep.subr.bf16.mxu1 %v2979_v5  ;;  %v3031_v5 = vld [vmem:[%s4322_s1 + $0x288] ss:$16 sps:$4 sm:$0xff]  }
  0x8a   :  { %2046 = vmatmul.mubr.bf16.gmra.mxu0 %v3759_v7 }
  0x8b   :  { %2099 = vmatmul.mubr.bf16.gmra.mxu1 %v3767_v10  ;;  %2114 = vmatpush1.bf16.msra.mxu0 %v2974_v8  ;;  %v3036_v8 = vld [vmem:[%s4322_s1 + $0x16c] ss:$16 sps:$4 sm:$0xff]  }
  0x8c   :  { %2167 = vmatpush1.bf16.msra.mxu1 %v2977_v9  ;;  %2115 = vmatprep.subr.bf16.mxu0 %v2982_v11  ;;  %v3039_v9 = vld [vmem:[%s4322_s1 + $0x26c] ss:$16 sps:$4 sm:$0xff]   ;;  %v3034_v11 = vld [vmem:[%s4322_s1 + $0x168] ss:$16 sps:$4 sm:$0xff]  }
  0x8d   :  { %2168 = vmatprep.subr.bf16.mxu1 %v2985_v12  ;;  %2141 = vmatprep.mubr.bf16.mxu0 %v3202_v50  ;;  %v3037_v12 = vld [vmem:[%s4322_s1 + $0x268] ss:$16 sps:$4 sm:$0xff]  }
  0x8e   :  { %2194 = vmatprep.mubr.bf16.mxu1 %v3389_v59  ;;  %v2997_v59 = vld [vmem:[%s4322_s1 + $0x4c] ss:$16 sps:$4 sm:$0xff]  }
  0x8f   :  { %2116 = vmatpush1.bf16.msra.mxu0 %v2980_v15  ;;  %v3042_v15 = vld [vmem:[%s4322_s1 + $0x14c] ss:$16 sps:$4 sm:$0xff]  }
  0x90   :  { %2169 = vmatpush1.bf16.msra.mxu1 %v2983_v16  ;;  %2117 = vmatprep.subr.bf16.mxu0 %v2988_v17  ;;  %v3040_v16 = vld [vmem:[%s4322_s1 + $0x148] ss:$16 sps:$4 sm:$0xff]  }
  0x91   :  { %2170 = vmatprep.subr.bf16.mxu1 %v2991_v18  ;;  %v3043_v17 = vld [vmem:[%s4322_s1 + $0x248] ss:$16 sps:$4 sm:$0xff]   ;;  %v3048_v18 = vld [vmem:[%s4322_s1 + $0x12c] ss:$16 sps:$4 sm:$0xff]  }
  0x93   :  { %2118 = vmatpush1.bf16.msra.mxu0 %v2986_v19  ;;  %v3051_v19 = vld [vmem:[%s4322_s1 + $0x22c] ss:$16 sps:$4 sm:$0xff]  }
  0x94   :  { %2171 = vmatpush1.bf16.msra.mxu1 %v2989_v20  ;;  %2119 = vmatprep.subr.bf16.mxu0 %v2994_v21  ;;  %v3046_v20 = vld [vmem:[%s4322_s1 + $0x128] ss:$16 sps:$4 sm:$0xff]  }
  0x95   :  { %2172 = vmatprep.subr.bf16.mxu1 %v2997_v59  ;;  %v3049_v21 = vld [vmem:[%s4322_s1 + $0x228] ss:$16 sps:$4 sm:$0xff]   ;;  %v3054_v59 = vld [vmem:[%s4322_s1 + $0x10c] ss:$16 sps:$4 sm:$0xff]  }
  0x97   :  { %2120 = vmatpush1.bf16.msra.mxu0 %v2992_v22  ;;  %v3057_v22 = vld [vmem:[%s4322_s1 + $0x20c] ss:$16 sps:$4 sm:$0xff]  }
  0x98   :  { %2173 = vmatpush1.bf16.msra.mxu1 %v2995_v23  ;;  %2121 = vmatprep.subr.bf16.mxu0 %v3000_v24  ;;  %v3052_v23 = vld [vmem:[%s4322_s1 + $0x108] ss:$16 sps:$4 sm:$0xff]  }
  0x99   :  { %2174 = vmatprep.subr.bf16.mxu1 %v3003_v25  ;;  %v3055_v24 = vld [vmem:[%s4322_s1 + $0x208] ss:$16 sps:$4 sm:$0xff]   ;;  %v3060_v25 = vld [vmem:[%s4322_s1 + $0x3ec] ss:$16 sps:$4 sm:$0xff]  }
  0x9b   :  { %2122 = vmatpush1.bf16.msra.mxu0 %v2998_v26  ;;  %v3063_v26 = vld [vmem:[%s4322_s1 + $0x4ec] ss:$16 sps:$4 sm:$0xff]  }
  0x9c   :  { %2175 = vmatpush1.bf16.msra.mxu1 %v3001_v27  ;;  %2123 = vmatprep.subr.bf16.mxu0 %v3006_v28  ;;  %v3058_v27 = vld [vmem:[%s4322_s1 + $0x3e8] ss:$16 sps:$4 sm:$0xff]  }
  0x9d   :  { %2176 = vmatprep.subr.bf16.mxu1 %v3009_v31  ;;  %v3061_v28 = vld [vmem:[%s4322_s1 + $0x4e8] ss:$16 sps:$4 sm:$0xff]  }
  0x9e   :  { %v3064_v31 = vld [vmem:[%s4322_s1 + $0x3c8] ss:$16 sps:$4 sm:$0xff]  }
  0x9f   :  { %2124 = vmatpush1.bf16.msra.mxu0 %v3004_v32  ;;  %v3067_v32 = vld [vmem:[%s4322_s1 + $0x4c8] ss:$16 sps:$4 sm:$0xff]  }
  0xa0   :  { %2177 = vmatpush1.bf16.msra.mxu1 %v3007_v33  ;;  %2215 = vmatprep.subr.bf16.mxu0 %v3015_v37  ;;  %v3072_v33 = vld [vmem:[%s4322_s1 + $0x3ac] ss:$16 sps:$4 sm:$0xff]   ;;  %v3076_v37 = vld [vmem:[%s4322_s1 + $0x388] ss:$16 sps:$4 sm:$0xff]  }
  0xa1   :  { %2178 = vmatprep.subr.bf16.mxu1 %v3012_v36  ;;  %v3078_v36 = vld [vmem:[%s4322_s1 + $0x38c] ss:$16 sps:$4 sm:$0xff]  }
  0xa2   :  { %2142 = vmatmul.mubr.bf16.vlgmr.msra.gmra.mxu0 %v3853_v40 }
  0xa3   :  { %2216 = vmatpush1.bf16.msra.mxu0 %v3013_v39  ;;  %2151 = vmatprep.mubr.bf16.mxu0 %v3202_v50  ;;  %v3084_v39 = vld [vmem:[%s4322_s1 + $0x36c] ss:$16 sps:$4 sm:$0xff]  }
  0xa4   :  { %2179 = vmatpush2.bf16.msra.mxu1 %v3010_v38  ;;  %2217 = vmatprep.subr.bf16.mxu0 %v3021_v46  ;;  %v3079_v38 = vld [vmem:[%s4322_s1 + $0x488] ss:$16 sps:$4 sm:$0xff]  }
  0xa5   :  { %2180 = vmatprep.subr.bf16.mxu1 %v3018_v41  ;;  %v3082_v41 = vld [vmem:[%s4322_s1 + $0x368] ss:$16 sps:$4 sm:$0xff]  }
  0xa6   :  { %v3088_v46 = vld [vmem:[%s4322_s1 + $0x348] ss:$16 sps:$4 sm:$0xff]  }
  0xa7   :  { %2218 = vmatpush1.bf16.msra.mxu0 %v3019_v51  ;;  %v3096_v51 = vld [vmem:[%s4322_s1 + $0x32c] ss:$16 sps:$4 sm:$0xff]  }
  0xa8   :  { %2181 = vmatpush2.bf16.msra.mxu1 %v3016_v49  ;;  %2219 = vmatprep.subr.bf16.mxu0 %v3027_v57  ;;  %v3091_v49 = vld [vmem:[%s4322_s1 + $0x448] ss:$16 sps:$4 sm:$0xff]   ;;  %v3102_v57 = vld [vmem:[%s4322_s1 + $0x30c] ss:$16 sps:$4 sm:$0xff]  }
  0xa9   :  { %2182 = vmatprep.subr.bf16.mxu1 %v3024_v54  ;;  %v3097_v54 = vld [vmem:[%s4322_s1 + $0x428] ss:$16 sps:$4 sm:$0xff]  }
  0xaa   :  { %2152 = vmatmul.mubr.bf16.gmra.mxu0 %v3883_v58 }
  0xab   :  { %2220 = vmatpush1.bf16.msra.mxu0 %v3025_v61  ;;  %2247 = vmatprep.mubr.bf16.mxu0 %v3391_v60  ;;  %v3045_v60 = vld [vmem:[%s4322_s1 + $0x24c] ss:$16 sps:$4 sm:$0xff]   ;;  %v3100_v61 = vld [vmem:[%s4322_s1 + $0x308] ss:$16 sps:$4 sm:$0xff]  }
  0xac   :  { %2183 = vmatpush2.bf16.msra.mxu1 %v3022_v63  ;;  %2221 = vmatprep.subr.bf16.mxu0 %v3033_v2  ;;  %v3105_v63 = vld [vmem:[%s4322_s1 + $0x40c] ss:$16 sps:$4 sm:$0xff]  }
  0xad   :  { %2184 = vmatprep.subr.bf16.mxu1 %v3030_v1  ;;  %v3103_v1 = vld [vmem:[%s4322_s1 + $0x408] ss:$16 sps:$4 sm:$0xff]   ;;  %v3108_v2 = vld [vmem:[%s4322_s1 + $0x5ec] ss:$16 sps:$4 sm:$0xff]  }
  0xaf   :  { %2222 = vmatpush1.bf16.msra.mxu0 %v3031_v5  ;;  %v3106_v5 = vld [vmem:[%s4322_s1 + $0x5e8] ss:$16 sps:$4 sm:$0xff]  }
  0xb0   :  { %2185 = vmatpush2.bf16.msra.mxu1 %v3028_v3  ;;  %2223 = vmatprep.subr.bf16.mxu0 %v3039_v9  ;;  %v3111_v3 = vld [vmem:[%s4322_s1 + $0x6ec] ss:$16 sps:$4 sm:$0xff]  }
  0xb1   :  { %2186 = vmatprep.subr.bf16.mxu1 %v3036_v8  ;;  %v3109_v8 = vld [vmem:[%s4322_s1 + $0x6e8] ss:$16 sps:$4 sm:$0xff]   ;;  %v3114_v9 = vld [vmem:[%s4322_s1 + $0x5cc] ss:$16 sps:$4 sm:$0xff]  }
  0xb3   :  { %2224 = vmatpush1.bf16.msra.mxu0 %v3037_v12  ;;  %v3112_v12 = vld [vmem:[%s4322_s1 + $0x5c8] ss:$16 sps:$4 sm:$0xff]  }
  0xb4   :  { %2187 = vmatpush2.bf16.msra.mxu1 %v3034_v11  ;;  %2225 = vmatprep.subr.bf16.mxu0 %v3045_v60  ;;  %v3117_v11 = vld [vmem:[%s4322_s1 + $0x6cc] ss:$16 sps:$4 sm:$0xff]  }
  0xb5   :  { %2188 = vmatprep.subr.bf16.mxu1 %v3042_v15  ;;  %v3115_v15 = vld [vmem:[%s4322_s1 + $0x6c8] ss:$16 sps:$4 sm:$0xff]   ;;  %v3120_v60 = vld [vmem:[%s4322_s1 + $0x5ac] ss:$16 sps:$4 sm:$0xff]  }
  0xb7   :  { %2226 = vmatpush1.bf16.msra.mxu0 %v3043_v17  ;;  %v3121_v17 = vld [vmem:[%s4322_s1 + $0x6a8] ss:$16 sps:$4 sm:$0xff]  }
  0xb8   :  { %2189 = vmatpush2.bf16.msra.mxu1 %v3040_v16  ;;  %2227 = vmatprep.subr.bf16.mxu0 %v3051_v19  ;;  %v3118_v16 = vld [vmem:[%s4322_s1 + $0x5a8] ss:$16 sps:$4 sm:$0xff]  }
  0xb9   :  { %2190 = vmatprep.subr.bf16.mxu1 %v3048_v18  ;;  %v3126_v18 = vld [vmem:[%s4322_s1 + $0x58c] ss:$16 sps:$4 sm:$0xff]   ;;  %v3124_v19 = vld [vmem:[%s4322_s1 + $0x588] ss:$16 sps:$4 sm:$0xff]  }
  0xbb   :  { %2228 = vmatpush1.bf16.msra.mxu0 %v3049_v21  ;;  %v3132_v21 = vld [vmem:[%s4322_s1 + $0x56c] ss:$16 sps:$4 sm:$0xff]  }
  0xbc   :  { %2191 = vmatpush2.bf16.msra.mxu1 %v3046_v20  ;;  %2229 = vmatprep.subr.bf16.mxu0 %v3057_v22  ;;  %v3127_v20 = vld [vmem:[%s4322_s1 + $0x688] ss:$16 sps:$4 sm:$0xff]  }
  0xbd   :  { %2192 = vmatprep.subr.bf16.mxu1 %v3054_v59  ;;  %v3130_v59 = vld [vmem:[%s4322_s1 + $0x568] ss:$16 sps:$4 sm:$0xff]  }
  0xbe   :  { %v3133_v22 = vld [vmem:[%s4322_s1 + $0x668] ss:$16 sps:$4 sm:$0xff]  }
  0xbf   :  { %2230 = vmatpush1.bf16.msra.mxu0 %v3055_v24  ;;  %v3136_v24 = vld [vmem:[%s4322_s1 + $0x548] ss:$16 sps:$4 sm:$0xff]  }
  0xc0   :  { %2193 = vmatpush2.bf16.msra.mxu1 %v3052_v23  ;;  %2231 = vmatprep.subr.bf16.mxu0 %v3060_v25  ;;  %v3138_v23 = vld [vmem:[%s4322_s1 + $0x54c] ss:$16 sps:$4 sm:$0xff]   ;;  %v3139_v25 = vld [vmem:[%s4322_s1 + $0x648] ss:$16 sps:$4 sm:$0xff]  }
  0xc1   :  { %2268 = vmatprep.subr.bf16.mxu1 %v3063_v26  ;;  %v3144_v26 = vld [vmem:[%s4322_s1 + $0x52c] ss:$16 sps:$4 sm:$0xff]  }
  0xc3   :  { %2195 = vmatmul.mubr.bf16.vlgmr.msra.gmra.mxu1 %v3443_v13  ;;  %2232 = vmatpush2.bf16.msra.mxu0 %v3058_v27  ;;  %v3075_v13 = vld [vmem:[%s4322_s1 + $0x4ac] ss:$16 sps:$4 sm:$0xff]  }
  0xc4   :  { %2269 = vmatpush1.bf16.msra.mxu1 %v3061_v28  ;;  %2233 = vmatprep.subr.bf16.mxu0 %v3066_v29  ;;  %v3147_v27 = vld [vmem:[%s4322_s1 + $0x62c] ss:$16 sps:$4 sm:$0xff]   ;;  %v3142_v28 = vld [vmem:[%s4322_s1 + $0x528] ss:$16 sps:$4 sm:$0xff]  }
  0xc5   :  { %2270 = vmatprep.subr.bf16.mxu1 %v3069_v30  ;;  %2204 = vmatprep.mubr.bf16.mxu1 %v3525_v43  ;;  %v3081_v43 = vld [vmem:[%s4322_s1 + $0x48c] ss:$16 sps:$4 sm:$0xff]   ;;  %v3145_v29 = vld [vmem:[%s4322_s1 + $0x628] ss:$16 sps:$4 sm:$0xff]  }
  0xc6   :  { %v3150_v30 = vld [vmem:[%s4322_s1 + $0x50c] ss:$16 sps:$4 sm:$0xff]  }
  0xc7   :  { %2234 = vmatpush2.bf16.msra.mxu0 %v3064_v31  ;;  %v3153_v31 = vld [vmem:[%s4322_s1 + $0x60c] ss:$16 sps:$4 sm:$0xff]  }
  0xc8   :  { %2271 = vmatpush1.bf16.msra.mxu1 %v3067_v32  ;;  %2235 = vmatprep.subr.bf16.mxu0 %v3072_v33  ;;  %v3148_v32 = vld [vmem:[%s4322_s1 + $0x508] ss:$16 sps:$4 sm:$0xff]  }
  0xc9   :  { %2272 = vmatprep.subr.bf16.mxu1 %v3075_v13  ;;  %v3151_v33 = vld [vmem:[%s4322_s1 + $0x608] ss:$16 sps:$4 sm:$0xff]   ;;  %v3156_v13 = vld [vmem:[%s4322_s1 + $0x7ec] ss:$16 sps:$4 sm:$0xff]  }
  0xcb   :  { %2205 = vmatmul.mubr.bf16.gmra.mxu1 %v3535_v47  ;;  %2236 = vmatpush2.bf16.msra.mxu0 %v3070_v34  ;;  %v3087_v47 = vld [vmem:[%s4322_s1 + $0x46c] ss:$16 sps:$4 sm:$0xff]  }
  0xcc   :  { %2273 = vmatpush1.bf16.msra.mxu1 %v3073_v35  ;;  %2237 = vmatprep.subr.bf16.mxu0 %v3078_v36  ;;  %v3159_v34 = vld [vmem:[%s4322_s1 + $0x8ec] ss:$16 sps:$4 sm:$0xff]   ;;  %v3154_v35 = vld [vmem:[%s4322_s1 + $0x7e8] ss:$16 sps:$4 sm:$0xff]  }
  0xcd   :  { %2274 = vmatprep.subr.bf16.mxu1 %v3081_v43  ;;  %2300 = vmatprep.mubr.bf16.mxu1 %v3593_v4  ;;  %v3093_v4 = vld [vmem:[%s4322_s1 + $0x44c] ss:$16 sps:$4 sm:$0xff]   ;;  %v3157_v36 = vld [vmem:[%s4322_s1 + $0x8e8] ss:$16 sps:$4 sm:$0xff]  }
  0xce   :  { %v3162_v43 = vld [vmem:[%s4322_s1 + $0x7cc] ss:$16 sps:$4 sm:$0xff]  }
  0xcf   :  { %2238 = vmatpush2.bf16.msra.mxu0 %v3076_v37  ;;  %v3165_v37 = vld [vmem:[%s4322_s1 + $0x8cc] ss:$16 sps:$4 sm:$0xff]  }
  0xd0   :  { %2275 = vmatpush1.bf16.msra.mxu1 %v3079_v38  ;;  %2239 = vmatprep.subr.bf16.mxu0 %v3084_v39  ;;  %v3160_v38 = vld [vmem:[%s4322_s1 + $0x7c8] ss:$16 sps:$4 sm:$0xff]  }
  0xd1   :  { %2276 = vmatprep.subr.bf16.mxu1 %v3087_v47  ;;  %v3163_v39 = vld [vmem:[%s4322_s1 + $0x8c8] ss:$16 sps:$4 sm:$0xff]   ;;  %v3168_v47 = vld [vmem:[%s4322_s1 + $0x7ac] ss:$16 sps:$4 sm:$0xff]  }
  0xd3   :  { %2240 = vmatpush2.bf16.msra.mxu0 %v3082_v41  ;;  %v3166_v41 = vld [vmem:[%s4322_s1 + $0x7a8] ss:$16 sps:$4 sm:$0xff]  }
  0xd4   :  { %2277 = vmatpush1.bf16.msra.mxu1 %v3085_v42  ;;  %2241 = vmatprep.subr.bf16.mxu0 %v3090_v45  ;;  %v3169_v42 = vld [vmem:[%s4322_s1 + $0x8a8] ss:$16 sps:$4 sm:$0xff]   ;;  %v3174_v45 = vld [vmem:[%s4322_s1 + $0x78c] ss:$16 sps:$4 sm:$0xff]  }
  0xd5   :  { %2278 = vmatprep.subr.bf16.mxu1 %v3093_v4  ;;  %v3172_v4 = vld [vmem:[%s4322_s1 + $0x788] ss:$16 sps:$4 sm:$0xff]  }
  0xd7   :  { %2242 = vmatpush2.bf16.msra.mxu0 %v3088_v46  ;;  %v3175_v46 = vld [vmem:[%s4322_s1 + $0x888] ss:$16 sps:$4 sm:$0xff]  }
  0xd8   :  { %2279 = vmatpush1.bf16.msra.mxu1 %v3091_v49  ;;  %2243 = vmatprep.subr.bf16.mxu0 %v3096_v51  ;;  %v3180_v49 = vld [vmem:[%s4322_s1 + $0x76c] ss:$16 sps:$4 sm:$0xff]   ;;  %v3178_v51 = vld [vmem:[%s4322_s1 + $0x768] ss:$16 sps:$4 sm:$0xff]  }
  0xd9   :  { %2280 = vmatprep.subr.bf16.mxu1 %v3099_v52  ;;  %v3181_v52 = vld [vmem:[%s4322_s1 + $0x868] ss:$16 sps:$4 sm:$0xff]  }
  0xdb   :  { %2244 = vmatpush2.bf16.msra.mxu0 %v3094_v53  ;;  %v3186_v53 = vld [vmem:[%s4322_s1 + $0x74c] ss:$16 sps:$4 sm:$0xff]  }
  0xdc   :  { %2281 = vmatpush1.bf16.msra.mxu1 %v3097_v54  ;;  %2245 = vmatprep.subr.bf16.mxu0 %v3102_v57  ;;  %v3189_v54 = vld [vmem:[%s4322_s1 + $0x84c] ss:$16 sps:$4 sm:$0xff]   ;;  %v3184_v57 = vld [vmem:[%s4322_s1 + $0x748] ss:$16 sps:$4 sm:$0xff]  }
  0xdd   :  { %2282 = vmatprep.subr.bf16.mxu1 %v3105_v63  ;;  %v3187_v63 = vld [vmem:[%s4322_s1 + $0x848] ss:$16 sps:$4 sm:$0xff]  }
  0xdf   :  { %2246 = vmatpush2.bf16.msra.mxu0 %v3100_v61  ;;  %v3192_v61 = vld [vmem:[%s4322_s1 + $0x72c] ss:$16 sps:$4 sm:$0xff]  }
  0xe0   :  { %2283 = vmatpush1.bf16.msra.mxu1 %v3103_v1  ;;  %2321 = vmatprep.subr.bf16.mxu0 %v3111_v3  ;;  %v3195_v1 = vld [vmem:[%s4322_s1 + $0x82c] ss:$16 sps:$4 sm:$0xff]   ;;  %v3193_v3 = vld [vmem:[%s4322_s1 + $0x828] ss:$16 sps:$4 sm:$0xff]  }
  0xe1   :  { %2284 = vmatprep.subr.bf16.mxu1 %v3108_v2  ;;  %v3190_v2 = vld [vmem:[%s4322_s1 + $0x728] ss:$16 sps:$4 sm:$0xff]  }
  0xe2   :  { %2248 = vmatmul.mubr.bf16.vlgmr.msra.gmra.mxu0 %v3445_v14  ;;  %v3123_v14 = vld [vmem:[%s4322_s1 + $0x6ac] ss:$16 sps:$4 sm:$0xff]  }
  0xe3   :  { %2322 = vmatpush1.bf16.msra.mxu0 %v3109_v8  ;;  %2257 = vmatprep.mubr.bf16.mxu0 %v3527_v44  ;;  %v3129_v44 = vld [vmem:[%s4322_s1 + $0x68c] ss:$16 sps:$4 sm:$0xff]  }
  0xe4   :  { %2285 = vmatpush2.bf16.msra.mxu1 %v3106_v5  ;;  %2323 = vmatprep.subr.bf16.mxu0 %v3117_v11  ;;  %v3198_v5 = vld [vmem:[%s4322_s1 + $0x70c] ss:$16 sps:$4 sm:$0xff]   ;;  %v3199_v11 = vld [vmem:[%s4322_s1 + $0x808] ss:$16 sps:$4 sm:$0xff]  }
  0xe5   :  { %2286 = vmatprep.subr.bf16.mxu1 %v3114_v9  ;;  %v3201_v8 = vld [vmem:[%s4322_s1 + $0x80c] ss:$16 sps:$4 sm:$0xff]   ;;  %v3196_v9 = vld [vmem:[%s4322_s1 + $0x708] ss:$16 sps:$4 sm:$0xff]  }
  0xe7   :  { %2324 = vmatpush1.bf16.msra.mxu0 %v3115_v15 }
  0xe8   :  { %2287 = vmatpush2.bf16.msra.mxu1 %v3112_v12  ;;  %2325 = vmatprep.subr.bf16.mxu0 %v3123_v14 }
  0xe9   :  { %2288 = vmatprep.subr.bf16.mxu1 %v3120_v60 }
  0xea   :  { %2258 = vmatmul.mubr.bf16.gmra.mxu0 %v3537_v48  ;;  %v3135_v48 = vld [vmem:[%s4322_s1 + $0x66c] ss:$16 sps:$4 sm:$0xff]  }
  0xeb   :  { %2326 = vmatpush1.bf16.msra.mxu0 %v3121_v17  ;;  %2353 = vmatprep.mubr.bf16.mxu0 %v3600_v6  ;;  %v3141_v6 = vld [vmem:[%s4322_s1 + $0x64c] ss:$16 sps:$4 sm:$0xff]  }
  0xec   :  { %2289 = vmatpush2.bf16.msra.mxu1 %v3118_v16  ;;  %2327 = vmatprep.subr.bf16.mxu0 %v3129_v44 }
  0xed   :  { %2290 = vmatprep.subr.bf16.mxu1 %v3126_v18 }
  0xef   :  { %2328 = vmatpush1.bf16.msra.mxu0 %v3127_v20 }
  0xf0   :  { %2291 = vmatpush2.bf16.msra.mxu1 %v3124_v19  ;;  %2329 = vmatprep.subr.bf16.mxu0 %v3135_v48  ;;  %v345_v48 = vlaneseq }
  0xf1   :  { %2292 = vmatprep.subr.bf16.mxu1 %v3132_v21 }
  0xf3   :  { %2330 = vmatpush1.bf16.msra.mxu0 %v3133_v22  ;;  %v4259_v22 = vshrl.u32 %v345_v48, 7 }
  0xf4   :  { %2293 = vmatpush2.bf16.msra.mxu1 %v3130_v59  ;;  %2331 = vmatprep.subr.bf16.mxu0 %v3141_v6  ;;  %v4265_v6 = vld [vmem:[%s4324_s2] sm:$0xf] }
  0xf5   :  { %2294 = vmatprep.subr.bf16.mxu1 %v3138_v23  ;;  %v347_v23 = vsub.s32 0, %v4259_v22 }
  0xf7   :  { %2332 = vmatpush1.bf16.msra.mxu0 %v3139_v25 }
  0xf8   :  { %2295 = vmatpush2.bf16.msra.mxu1 %v3136_v24  ;;  %2333 = vmatprep.subr.bf16.mxu0 %v3147_v27 }
  0xf9   :  { %2296 = vmatprep.subr.bf16.mxu1 %v3144_v26  ;;  %v351_v26 = vsub.s32 1, %v4259_v22 }
  0xfb   :  { %2334 = vmatpush1.bf16.msra.mxu0 %v3145_v29 }
  0xfc   :  { %2297 = vmatpush2.bf16.msra.mxu1 %v3142_v28  ;;  %2335 = vmatprep.subr.bf16.mxu0 %v3153_v31  ;;  %v348_v28 = vrot.slane %v4265_v6, %v347_v23 }
  0xfd   :  { %2298 = vmatprep.subr.bf16.mxu1 %v3150_v30  ;;  %v352_v30 = vrot.slane %v4265_v6, %v351_v26 }
  0xff   :  { %2336 = vmatpush1.bf16.msra.mxu0 %v3151_v33 }
 0x100   :  { %2299 = vmatpush2.bf16.msra.mxu1 %v3148_v32  ;;  %2337 = vmatprep.subr.bf16.mxu0 %v3156_v13 }
 0x101   :  { %2374 = vmatprep.subr.bf16.mxu1 %v3159_v34 }
 0x102   :  { %v1931_v12 = vpop.f32.mrf.mxu0 }
 0x103   :  { %2301 = vmatmul.mubr.bf16.vlgmr.msra.gmra.mxu1 %v3721_v55  ;;  %2338 = vmatpush2.bf16.msra.mxu0 %v3154_v35  ;;  %v3171_v55 = vld [vmem:[%s4322_s1 + $0x8ac] ss:$16 sps:$4 sm:$0xff]   ;;  %v1984_v16 = vpop.f32.mrf.mxu1  ;;  %v1932_v32 = vadd.f32 %v1931_v12, %v348_v28 }
 0x104   :  { %2375 = vmatpush1.bf16.msra.mxu1 %v3157_v36  ;;  %2339 = vmatprep.subr.bf16.mxu0 %v3162_v43  ;;  %v1933_v15 = vpop.f32.mrf.mxu0 }
 0x105   :  { %2376 = vmatprep.subr.bf16.mxu1 %v3165_v37  ;;  %2310 = vmatprep.mubr.bf16.mxu1 %v3739_v62  ;;  %v3177_v62 = vld [vmem:[%s4322_s1 + $0x88c] ss:$16 sps:$4 sm:$0xff]   ;;  %v1986_v18 = vpop.f32.mrf.mxu1  ;;  %v1934_v13 = vadd.f32 %v1933_v15, %v352_v30  ;;  %v1985_v35 = vadd.f32 %v1984_v16, %v1932_v32 }
 0x106   :  { %v1935_v60 = vpop.f32.mrf.mxu0 }
 0x107   :  { %2340 = vmatpush2.bf16.msra.mxu0 %v3160_v38  ;;  %v1988_v19 = vpop.f32.mrf.mxu1  ;;  %v1936_v36 = vadd.f32 %v1935_v60, %v348_v28  ;;  %v1987_v37 = vadd.f32 %v1986_v18, %v1934_v13 }
 0x108   :  { %2377 = vmatpush1.bf16.msra.mxu1 %v3163_v39  ;;  %2341 = vmatprep.subr.bf16.mxu0 %v3168_v47  ;;  %v1937_v14 = vpop.f32.mrf.mxu0 }
 0x109   :  { %2378 = vmatprep.subr.bf16.mxu1 %v3171_v55  ;;  %v1990_v20 = vpop.f32.mrf.mxu1  ;;  %v1938_v38 = vadd.f32 %v1937_v14, %v352_v30  ;;  %v1989_v55 = vadd.f32 %v1988_v19, %v1936_v36 }
 0x10a   :  { %v1941_v17 = vpop.f32.mrf.mxu0 }
 0x10b   :  { %2311 = vmatmul.mubr.bf16.gmra.mxu1 %v3759_v7  ;;  %2342 = vmatpush2.bf16.msra.mxu0 %v3166_v41  ;;  %v3183_v7 = vld [vmem:[%s4322_s1 + $0x86c] ss:$16 sps:$4 sm:$0xff]   ;;  %v1994_v21 = vpop.f32.mrf.mxu1  ;;  %v1942_v41 = vadd.f32 %v1941_v17, %v348_v28 }
 0x10c   :  { %2379 = vmatpush1.bf16.msra.mxu1 %v3169_v42  ;;  %2343 = vmatprep.subr.bf16.mxu0 %v3174_v45  ;;  %v1943_v44 = vpop.f32.mrf.mxu0 }
 0x10d   :  { %2380 = vmatprep.subr.bf16.mxu1 %v3177_v62  ;;  %2406 = vmatprep.mubr.bf16.mxu1 %v3202_v50  ;;  %v1944_v45 = vadd.f32 %v1943_v44, %v352_v30 }
 0x10f   :  { %2344 = vmatpush2.bf16.msra.mxu0 %v3172_v4 }
 0x110   :  { %2381 = vmatpush1.bf16.msra.mxu1 %v3175_v46  ;;  %2345 = vmatprep.subr.bf16.mxu0 %v3180_v49  ;;  %v1991_v46 = vadd.f32 %v1990_v20, %v1938_v38 }
 0x111   :  { %2382 = vmatprep.subr.bf16.mxu1 %v3183_v7 }
 0x113   :  { %2346 = vmatpush2.bf16.msra.mxu0 %v3178_v51 }
 0x114   :  { %2383 = vmatpush1.bf16.msra.mxu1 %v3181_v52  ;;  %2347 = vmatprep.subr.bf16.mxu0 %v3186_v53  ;;  %v1995_v53 = vadd.f32 %v1994_v21, %v1942_v41 }
 0x115   :  { %2384 = vmatprep.subr.bf16.mxu1 %v3189_v54 }
 0x117   :  { %2348 = vmatpush2.bf16.msra.mxu0 %v3184_v57 }
 0x118   :  { %2385 = vmatpush1.bf16.msra.mxu1 %v3187_v63  ;;  %2349 = vmatprep.subr.bf16.mxu0 %v3192_v61 }
 0x119   :  { %2386 = vmatprep.subr.bf16.mxu1 %v3195_v1 }
 0x11b   :  { %2350 = vmatpush2.bf16.msra.mxu0 %v3190_v2 }
 0x11c   :  { %2387 = vmatpush1.bf16.msra.mxu1 %v3193_v3  ;;  %2351 = vmatprep.subr.bf16.mxu0 %v3198_v5 }
 0x11d   :  { %2388 = vmatprep.subr.bf16.mxu1 %v3201_v8 }
 0x11f   :  { %2352 = vmatpush2.bf16.msra.mxu0 %v3196_v9 }
 0x120   :  { %2389 = vmatpush1.bf16.msra.mxu1 %v3199_v11 }
 0x122   :  { %2354 = vmatmul.mubr.bf16.vlgmr.msra.gmra.mxu0 %v3725_v56  ;;  %v1945_v56 = vpop.f32.mrf.mxu0 }
 0x123   :  { %2407 = vmatmul.mubr.bf16.vlgmr.msra.gmra.mxu1 %v3853_v40  ;;  %2363 = vmatprep.mubr.bf16.mxu0 %v3741_v0  ;;  %v1946_v51 = vadd.f32 %v1945_v56, %v348_v28 }
 0x124   :  { %2416 = vmatprep.mubr.bf16.mxu1 %v3202_v50  ;;  %v1947_v40 = vpop.f32.mrf.mxu0  ;;  %v1996_v50 = vpop.f32.mrf.mxu1 }
 0x125   :  { %v1997_v61 = vadd.f32 %v1996_v50, %v1944_v45  ;;  %v1948_v1 = vadd.f32 %v1947_v40, %v352_v30 }
 0x12a   :  { %2364 = vmatmul.mubr.bf16.gmra.mxu0 %v3767_v10  ;;  %v1998_v10 = vpop.f32.mrf.mxu1 }
 0x12b   :  { %2417 = vmatmul.mubr.bf16.gmra.mxu1 %v3883_v58  ;;  %v1999_v12 = vadd.f32 %v1998_v10, %v1946_v51 }
 0x12c   :  { %v2000_v24 = vpop.f32.mrf.mxu1 }
 0x12d   :  { %v2001_v18 = vadd.f32 %v2000_v24, %v1948_v1 }
 0x142   :  { %v2037_v0 = vpop.f32.mrf.mxu0 }
 0x143   :  { %v2090_v27 = vpop.f32.mrf.mxu1  ;;  %v2038_v39 = vadd.f32 %v2037_v0, %v1985_v35 }
 0x144   :  { %v2039_v59 = vpop.f32.mrf.mxu0 }
 0x145   :  { %v2092_v31 = vpop.f32.mrf.mxu1  ;;  %v2040_v42 = vadd.f32 %v2039_v59, %v1987_v37  ;;  %v2091_v49 = vadd.f32 %v2090_v27, %v2038_v39 }
 0x146   :  { %v2041_v58 = vpop.f32.mrf.mxu0 }
 0x147   :  { %v2094_v34 = vpop.f32.mrf.mxu1  ;;  %v2042_v7 = vadd.f32 %v2041_v58, %v1989_v55  ;;  %v2093_v54 = vadd.f32 %v2092_v31, %v2040_v42 }
 0x148   :  { %v2043_v25 = vpop.f32.mrf.mxu0 }
 0x149   :  { %v2096_v47 = vpop.f32.mrf.mxu1  ;;  %v2044_v57 = vadd.f32 %v2043_v25, %v1991_v46  ;;  %v2095_v5 = vadd.f32 %v2094_v34, %v2042_v7 }
 0x14a   :  { %v2047_v29 = vpop.f32.mrf.mxu0 }
 0x14b   :  { %v2100_v62 = vpop.f32.mrf.mxu1  ;;  %v2048_v8 = vadd.f32 %v2047_v29, %v1995_v53  ;;  %v2097_v60 = vadd.f32 %v2096_v47, %v2044_v57  ;;  %v359_v53 = vsub.s32 3, %v4259_v22 }
 0x14c   :  { %v2049_v33 = vpop.f32.mrf.mxu0 }
 0x14d   :  { %v2102_v2 = vpop.f32.mrf.mxu1  ;;  %v2050_v14 = vadd.f32 %v2049_v33, %v1997_v61  ;;  %v2101_v56 = vadd.f32 %v2100_v62, %v2048_v8  ;;  %v360_v61 = vrot.slane %v4265_v6, %v359_v53 }
 0x14e   :  { %v2051_v43 = vpop.f32.mrf.mxu0 }
 0x14f   :  { %v2104_v44 = vpop.f32.mrf.mxu1  ;;  %v2052_v20 = vadd.f32 %v2051_v43, %v1999_v12  ;;  %v2103_v48 = vadd.f32 %v2102_v2, %v2050_v14 }
 0x150   :  { %v2053_v4 = vpop.f32.mrf.mxu0 }
 0x151   :  { %v2054_v50 = vadd.f32 %v2053_v4, %v2001_v18  ;;  %v2106_v58 = vpop.f32.mrf.mxu1  ;;  %v2105_v24 = vadd.f32 %v2104_v44, %v2052_v20 }
 0x153   :  { %v2107_v28 = vadd.f32 %v2106_v58, %v2054_v50 }
 0x162   :  { %v2143_v52 = vpop.f32.mrf.mxu0 }
 0x163   :  { %v2144_v63 = vadd.f32 %v2143_v52, %v2091_v49  ;;  %v355_v52 = vsub.s32 2, %v4259_v22 }
 0x164   :  { %v2145_v3 = vpop.f32.mrf.mxu0 }
 0x165   :  { %v2427_v9 = vmax.f32 %v2144_v63, 0.0  ;;  %v2146_v11 = vadd.f32 %v2145_v3, %v2093_v54  ;;  %v356_v63 = vrot.slane %v4265_v6, %v355_v52 }
 0x166   :  { %v2147_v15 = vpop.f32.mrf.mxu0 }
 0x167   :  { %2443 = vst [vmem:[%s4325_s3] sm:$0xff] %v2427_v9  ;;  %v2428_v16 = vmax.f32 %v2146_v11, 0.0  ;;  %v2148_v17 = vadd.f32 %v2147_v15, %v2095_v5 }
 0x168   :  { %v2149_v19 = vpop.f32.mrf.mxu0 }
 0x169   :  { %2444 = vst [vmem:[%s4325_s3 + $0x8] sm:$0xff] %v2428_v16  ;;  %v2431_v40 = vmax.f32 %v2148_v17, 0.0  ;;  %v2150_v21 = vadd.f32 %v2149_v19, %v2097_v60 }
 0x16a   :  { %v2153_v0 = vpop.f32.mrf.mxu0 }
 0x16b   :  { %2447 = vst [vmem:[%s4325_s3 + $0x20] sm:$0xff] %v2431_v40  ;;  %v2432_v59 = vmax.f32 %v2150_v21, 0.0  ;;  %v2154_v10 = vadd.f32 %v2153_v0, %v2101_v56 }
 0x16c   :  { %v2155_v23 = vpop.f32.mrf.mxu0 }
 0x16d   :  { %2448 = vst [vmem:[%s4325_s3 + $0x28] sm:$0xff] %v2432_v59  ;;  %v2435_v25 = vmax.f32 %v2154_v10, 0.0  ;;  %v2156_v26 = vadd.f32 %v2155_v23, %v2103_v48 }
 0x16e   :  { %v2157_v27 = vpop.f32.mrf.mxu0 }
 0x16f   :  { %2451 = vst [vmem:[%s4325_s3 + $0x40] sm:$0xff] %v2435_v25  ;;  %v2436_v29 = vmax.f32 %v2156_v26, 0.0  ;;  %v2158_v30 = vadd.f32 %v2157_v27, %v2105_v24 }
 0x170   :  { %v2159_v31 = vpop.f32.mrf.mxu0 }
 0x171   :  { %2452 = vst [vmem:[%s4325_s3 + $0x48] sm:$0xff] %v2436_v29  ;;  %v2439_v32 = vmax.f32 %v2158_v30, 0.0  ;;  %v2160_v33 = vadd.f32 %v2159_v31, %v2107_v28 }
 0x173   :  { %2455 = vst [vmem:[%s4325_s3 + $0x60] sm:$0xff] %v2439_v32  ;;  %v2440_v13 = vmax.f32 %v2160_v33, 0.0 }
 0x175   :  { %2456 = vst [vmem:[%s4325_s3 + $0x68] sm:$0xff] %v2440_v13 }
 0x183   :  { %v2196_v34 = vpop.f32.mrf.mxu1 }
 0x184   :  { %v2197_v3 = vadd.f32 %v2196_v34, %v356_v63 }
 0x185   :  { %v2198_v35 = vpop.f32.mrf.mxu1 }
 0x186   :  { %v2199_v5 = vadd.f32 %v2198_v35, %v360_v61 }
 0x187   :  { %v2200_v36 = vpop.f32.mrf.mxu1 }
 0x188   :  { %v2201_v12 = vadd.f32 %v2200_v36, %v356_v63 }
 0x189   :  { %v2202_v43 = vpop.f32.mrf.mxu1 }
 0x18a   :  { %v2203_v22 = vadd.f32 %v2202_v43, %v360_v61 }
 0x18b   :  { %v2206_v37 = vpop.f32.mrf.mxu1 }
 0x18c   :  { %v2207_v14 = vadd.f32 %v2206_v37, %v356_v63 }
 0x18d   :  { %v2208_v38 = vpop.f32.mrf.mxu1 }
 0x18e   :  { %v2209_v56 = vadd.f32 %v2208_v38, %v360_v61 }
 0x18f   :  { %v2210_v39 = vpop.f32.mrf.mxu1 }
 0x190   :  { %v2211_v59 = vadd.f32 %v2210_v39, %v356_v63 }
 0x191   :  { %v2212_v47 = vpop.f32.mrf.mxu1 }
 0x192   :  { %v2213_v28 = vadd.f32 %v2212_v47, %v360_v61 }
 0x1a2   :  { %v2249_v41 = vpop.f32.mrf.mxu0 }
 0x1a3   :  { %v2250_v8 = vadd.f32 %v2249_v41, %v2197_v3 }
 0x1a4   :  { %v2251_v45 = vpop.f32.mrf.mxu0 }
 0x1a5   :  { %v2252_v15 = vadd.f32 %v2251_v45, %v2199_v5 }
 0x1a6   :  { %v2253_v4 = vpop.f32.mrf.mxu0 }
 0x1a7   :  { %v2254_v18 = vadd.f32 %v2253_v4, %v2201_v12 }
 0x1a8   :  { %v2255_v49 = vpop.f32.mrf.mxu0 }
 0x1a9   :  { %v2256_v40 = vadd.f32 %v2255_v49, %v2203_v22 }
 0x1aa   :  { %v2259_v7 = vpop.f32.mrf.mxu0 }
 0x1ab   :  { %v2260_v50 = vadd.f32 %v2259_v7, %v2207_v14 }
 0x1ac   :  { %v2261_v54 = vpop.f32.mrf.mxu0 }
 0x1ad   :  { %v2262_v27 = vadd.f32 %v2261_v54, %v2209_v56 }
 0x1ae   :  { %v2263_v1 = vpop.f32.mrf.mxu0 }
 0x1af   :  { %v2264_v34 = vadd.f32 %v2263_v1, %v2211_v59 }
 0x1b0   :  { %v2265_v9 = vpop.f32.mrf.mxu0 }
 0x1b1   :  { %v2266_v47 = vadd.f32 %v2265_v9, %v2213_v28 }
 0x1c3   :  { %v2302_v55 = vpop.f32.mrf.mxu1 }
 0x1c4   :  { %v2303_v60 = vadd.f32 %v2302_v55, %v2250_v8 }
 0x1c5   :  { %v2304_v42 = vpop.f32.mrf.mxu1 }
 0x1c6   :  { %v2305_v44 = vadd.f32 %v2304_v42, %v2252_v15 }
 0x1c7   :  { %v2306_v62 = vpop.f32.mrf.mxu1 }
 0x1c8   :  { %v2307_v21 = vadd.f32 %v2306_v62, %v2254_v18 }
 0x1c9   :  { %v2308_v46 = vpop.f32.mrf.mxu1 }
 0x1ca   :  { %v2309_v23 = vadd.f32 %v2308_v46, %v2256_v40 }
 0x1cb   :  { %v2312_v51 = vpop.f32.mrf.mxu1 }
 0x1cc   :  { %v2313_v31 = vadd.f32 %v2312_v51, %v2260_v50 }
 0x1cd   :  { %v2314_v57 = vpop.f32.mrf.mxu1 }
 0x1ce   :  { %v2315_v43 = vadd.f32 %v2314_v57, %v2262_v27 }
 0x1cf   :  { %v2316_v2 = vpop.f32.mrf.mxu1 }
 0x1d0   :  { %v2317_v42 = vadd.f32 %v2316_v2, %v2264_v34 }
 0x1d1   :  { %v2318_v11 = vpop.f32.mrf.mxu1 }
 0x1d2   :  { %v2319_v7 = vadd.f32 %v2318_v11, %v2266_v47 }
 0x1e2   :  { %v2355_v16 = vpop.f32.mrf.mxu0 }
 0x1e3   :  { %v2408_v17 = vpop.f32.mrf.mxu1  ;;  %v2356_v19 = vadd.f32 %v2355_v16, %v2303_v60 }
 0x1e4   :  { %v2357_v20 = vpop.f32.mrf.mxu0 }
 0x1e5   :  { %v2410_v6 = vpop.f32.mrf.mxu1  ;;  %v2409_v0 = vadd.f32 %v2408_v17, %v2356_v19  ;;  %v2358_v48 = vadd.f32 %v2357_v20, %v2305_v44 }
 0x1e6   :  { %v2359_v10 = vpop.f32.mrf.mxu0 }
 0x1e7   :  { %v2412_v58 = vpop.f32.mrf.mxu1  ;;  %v2429_v24 = vmax.f32 %v2409_v0, 0.0  ;;  %v2411_v25 = vadd.f32 %v2410_v6, %v2358_v48  ;;  %v2360_v26 = vadd.f32 %v2359_v10, %v2307_v21 }
 0x1e8   :  { %v2361_v29 = vpop.f32.mrf.mxu0 }
 0x1e9   :  { %v2414_v30 = vpop.f32.mrf.mxu1  ;;  %2445 = vst [vmem:[%s4325_s3 + $0x10] sm:$0xff] %v2429_v24  ;;  %v2430_v32 = vmax.f32 %v2411_v25, 0.0  ;;  %v2413_v33 = vadd.f32 %v2412_v58, %v2360_v26  ;;  %v2362_v13 = vadd.f32 %v2361_v29, %v2309_v23 }
 0x1ea   :  { %v2365_v35 = vpop.f32.mrf.mxu0 }
 0x1eb   :  { %v2418_v36 = vpop.f32.mrf.mxu1  ;;  %2446 = vst [vmem:[%s4325_s3 + $0x18] sm:$0xff] %v2430_v32  ;;  %v2433_v37 = vmax.f32 %v2413_v33, 0.0  ;;  %v2415_v38 = vadd.f32 %v2414_v30, %v2362_v13  ;;  %v2366_v39 = vadd.f32 %v2365_v35, %v2313_v31 }
 0x1ec   :  { %v2367_v55 = vpop.f32.mrf.mxu0 }
 0x1ed   :  { %v2420_v41 = vpop.f32.mrf.mxu1  ;;  %2449 = vst [vmem:[%s4325_s3 + $0x30] sm:$0xff] %v2433_v37  ;;  %v2434_v45 = vmax.f32 %v2415_v38, 0.0  ;;  %v2419_v62 = vadd.f32 %v2418_v36, %v2366_v39  ;;  %v2368_v4 = vadd.f32 %v2367_v55, %v2315_v43 }
 0x1ee   :  { %v2369_v46 = vpop.f32.mrf.mxu0 }
 0x1ef   :  { %v2422_v49 = vpop.f32.mrf.mxu1  ;;  %2450 = vst [vmem:[%s4325_s3 + $0x38] sm:$0xff] %v2434_v45  ;;  %v2437_v51 = vmax.f32 %v2419_v62, 0.0  ;;  %v2421_v52 = vadd.f32 %v2420_v41, %v2368_v4  ;;  %v2370_v53 = vadd.f32 %v2369_v46, %v2317_v42 }
 0x1f0   :  { %v2371_v54 = vpop.f32.mrf.mxu0 }
 0x1f1   :  { %2453 = vst [vmem:[%s4325_s3 + $0x50] sm:$0xff] %v2437_v51  ;;  %v2438_v57 = vmax.f32 %v2421_v52, 0.0  ;;  %v2423_v63 = vadd.f32 %v2422_v49, %v2370_v53  ;;  %v2372_v61 = vadd.f32 %v2371_v54, %v2319_v7  ;;  %v2424_v1 = vpop.f32.mrf.mxu1 }
 0x1f3   :  { %2454 = vst [vmem:[%s4325_s3 + $0x58] sm:$0xff] %v2438_v57  ;;  %v2441_v2 = vmax.f32 %v2423_v63, 0.0  ;;  %v2425_v3 = vadd.f32 %v2424_v1, %v2372_v61 }
 0x1f5   :  { %2457 = vst [vmem:[%s4325_s3 + $0x70] sm:$0xff] %v2441_v2  ;;  %v2442_v5 = vmax.f32 %v2425_v3, 0.0 }
 0x1f7   :  { %2458 = vst [vmem:[%s4325_s3 + $0x78] sm:$0xff] %v2442_v5 }

// kernel: vqvae_forward.21
= control target key start
LH: loop header
LB: loop body
LE: loop exit
PB: predicated region body
PF: predicated region fallthrough
CT: control target
= control target key end

     0   :  { %s6562_s1 = inlined_call_operand.vmem [shape: bf16[1152,512], index: 1, kind: input, shape index: {}]   ;;  %s6563_s0 = inlined_call_operand.vmem [shape: bf16[128,1152], index: 0, kind: input, shape index: {}]   ;;  %s6564_s2 = inlined_call_operand.vmem [shape: f32[1,512], index: 2, kind: input, shape index: {}]   ;;  %s6565_s3 = inlined_call_operand.vmem [shape: f32[128,512], index: 3, kind: output, shape index: {}]  }
   0x1   :  { %v3772_v0 = vld [vmem:[%s6562_s1 + $0xe4] ss:$16 sps:$4 sm:$0xff]   ;;  %v3776_v2 = vld [vmem:[%s6562_s1 + $0xe0] ss:$16 sps:$4 sm:$0xff]  }
   0x2   :  { %v3774_v1 = vld [vmem:[%s6562_s1 + $0x2e4] ss:$16 sps:$4 sm:$0xff]   ;;  %2213 = vmatprep.subr.bf16.mxu0 %v3772_v0  ;;  %v3777_v3 = vld [vmem:[%s6562_s1 + $0x2e0] ss:$16 sps:$4 sm:$0xff]  }
   0x3   :  { %2326 = vmatprep.subr.bf16.mxu1 %v3774_v1  ;;  %v3778_v4 = vld [vmem:[%s6562_s1 + $0xc4] ss:$16 sps:$4 sm:$0xff]   ;;  %2214 = vmatpush1.bf16.msra.mxu0 %v3776_v2  ;;  %v3782_v6 = vld [vmem:[%s6562_s1 + $0xc0] ss:$16 sps:$4 sm:$0xff]  }
   0x4   :  { %2327 = vmatpush1.bf16.msra.mxu1 %v3777_v3  ;;  %v3780_v5 = vld [vmem:[%s6562_s1 + $0x2c4] ss:$16 sps:$4 sm:$0xff]   ;;  %2215 = vmatprep.subr.bf16.mxu0 %v3778_v4  ;;  %v3783_v7 = vld [vmem:[%s6562_s1 + $0x2c0] ss:$16 sps:$4 sm:$0xff]  }
   0x5   :  { %2328 = vmatprep.subr.bf16.mxu1 %v3780_v5  ;;  %v3784_v8 = vld [vmem:[%s6562_s1 + $0xa4] ss:$16 sps:$4 sm:$0xff]   ;;  %v3788_v10 = vld [vmem:[%s6562_s1 + $0xa0] ss:$16 sps:$4 sm:$0xff]   ;;  %v3871_v5 = vld [vmem:[%s6563_s0 + $0x8] ss:$36 sps:$4 sm:$0xff]  }
   0x6   :  { %v3786_v9 = vld [vmem:[%s6562_s1 + $0x2a4] ss:$16 sps:$4 sm:$0xff]   ;;  %v3789_v11 = vld [vmem:[%s6562_s1 + $0x2a0] ss:$16 sps:$4 sm:$0xff]  }
   0x7   :  { %2216 = vmatpush1.bf16.msra.mxu0 %v3782_v6  ;;  %v3790_v12 = vld [vmem:[%s6562_s1 + $0x84] ss:$16 sps:$4 sm:$0xff]   ;;  %v3794_v14 = vld [vmem:[%s6562_s1 + $0x80] ss:$16 sps:$4 sm:$0xff]  }
   0x8   :  { %2329 = vmatpush1.bf16.msra.mxu1 %v3783_v7  ;;  %2217 = vmatprep.subr.bf16.mxu0 %v3784_v8  ;;  %v3792_v13 = vld [vmem:[%s6562_s1 + $0x284] ss:$16 sps:$4 sm:$0xff]   ;;  %v3795_v15 = vld [vmem:[%s6562_s1 + $0x280] ss:$16 sps:$4 sm:$0xff]  }
   0x9   :  { %2330 = vmatprep.subr.bf16.mxu1 %v3786_v9  ;;  %v3796_v16 = vld [vmem:[%s6562_s1 + $0x64] ss:$16 sps:$4 sm:$0xff]   ;;  %v3800_v18 = vld [vmem:[%s6562_s1 + $0x60] ss:$16 sps:$4 sm:$0xff]  }
   0xa   :  { %v3798_v17 = vld [vmem:[%s6562_s1 + $0x264] ss:$16 sps:$4 sm:$0xff]   ;;  %v3801_v19 = vld [vmem:[%s6562_s1 + $0x260] ss:$16 sps:$4 sm:$0xff]  }
   0xb   :  { %2218 = vmatpush1.bf16.msra.mxu0 %v3788_v10  ;;  %v3802_v20 = vld [vmem:[%s6562_s1 + $0x44] ss:$16 sps:$4 sm:$0xff]   ;;  %v3806_v22 = vld [vmem:[%s6562_s1 + $0x40] ss:$16 sps:$4 sm:$0xff]  }
   0xc   :  { %2331 = vmatpush1.bf16.msra.mxu1 %v3789_v11  ;;  %2219 = vmatprep.subr.bf16.mxu0 %v3790_v12  ;;  %v3804_v21 = vld [vmem:[%s6562_s1 + $0x244] ss:$16 sps:$4 sm:$0xff]   ;;  %v3807_v23 = vld [vmem:[%s6562_s1 + $0x240] ss:$16 sps:$4 sm:$0xff]  }
   0xd   :  { %2332 = vmatprep.subr.bf16.mxu1 %v3792_v13  ;;  %v3808_v24 = vld [vmem:[%s6562_s1 + $0x24] ss:$16 sps:$4 sm:$0xff]   ;;  %v3812_v26 = vld [vmem:[%s6562_s1 + $0x20] ss:$16 sps:$4 sm:$0xff]  }
   0xe   :  { %v3810_v25 = vld [vmem:[%s6562_s1 + $0x224] ss:$16 sps:$4 sm:$0xff]   ;;  %v3813_v27 = vld [vmem:[%s6562_s1 + $0x220] ss:$16 sps:$4 sm:$0xff]  }
   0xf   :  { %2220 = vmatpush1.bf16.msra.mxu0 %v3794_v14  ;;  %v3814_v28 = vld [vmem:[%s6562_s1 + $0x4] ss:$16 sps:$4 sm:$0xff]   ;;  %v3818_v30 = vld [vmem:[%s6562_s1] ss:$16 sps:$4 sm:$0xff]  }
  0x10   :  { %2333 = vmatpush1.bf16.msra.mxu1 %v3795_v15  ;;  %2221 = vmatprep.subr.bf16.mxu0 %v3796_v16  ;;  %v3816_v29 = vld [vmem:[%s6562_s1 + $0x204] ss:$16 sps:$4 sm:$0xff]   ;;  %v3819_v31 = vld [vmem:[%s6562_s1 + $0x200] ss:$16 sps:$4 sm:$0xff]   ;;  %v3890_v16 = vld [vmem:[%s6563_s0 + $0x48] ss:$36 sps:$4 sm:$0xff]  }
  0x11   :  { %2334 = vmatprep.subr.bf16.mxu1 %v3798_v17  ;;  %v3820_v32 = vld [vmem:[%s6562_s1 + $0x1e4] ss:$16 sps:$4 sm:$0xff]   ;;  %v3824_v34 = vld [vmem:[%s6562_s1 + $0x1e0] ss:$16 sps:$4 sm:$0xff]  }
  0x12   :  { %v3822_v33 = vld [vmem:[%s6562_s1 + $0x3e4] ss:$16 sps:$4 sm:$0xff]   ;;  %v3825_v35 = vld [vmem:[%s6562_s1 + $0x3e0] ss:$16 sps:$4 sm:$0xff]  }
  0x13   :  { %2222 = vmatpush1.bf16.msra.mxu0 %v3800_v18  ;;  %v3826_v36 = vld [vmem:[%s6562_s1 + $0x1c4] ss:$16 sps:$4 sm:$0xff]   ;;  %v3830_v38 = vld [vmem:[%s6562_s1 + $0x1c0] ss:$16 sps:$4 sm:$0xff]  }
  0x14   :  { %2335 = vmatpush1.bf16.msra.mxu1 %v3801_v19  ;;  %2223 = vmatprep.subr.bf16.mxu0 %v3802_v20  ;;  %v3828_v37 = vld [vmem:[%s6562_s1 + $0x3c4] ss:$16 sps:$4 sm:$0xff]   ;;  %v3831_v39 = vld [vmem:[%s6562_s1 + $0x3c0] ss:$16 sps:$4 sm:$0xff]  }
  0x15   :  { %2336 = vmatprep.subr.bf16.mxu1 %v3804_v21  ;;  %v3832_v40 = vld [vmem:[%s6562_s1 + $0x1a4] ss:$16 sps:$4 sm:$0xff]   ;;  %v3836_v42 = vld [vmem:[%s6562_s1 + $0x1a0] ss:$16 sps:$4 sm:$0xff]  }
  0x16   :  { %v3834_v41 = vld [vmem:[%s6562_s1 + $0x3a4] ss:$16 sps:$4 sm:$0xff]   ;;  %v3837_v43 = vld [vmem:[%s6562_s1 + $0x3a0] ss:$16 sps:$4 sm:$0xff]  }
  0x17   :  { %2224 = vmatpush1.bf16.msra.mxu0 %v3806_v22  ;;  %v3838_v44 = vld [vmem:[%s6562_s1 + $0x184] ss:$16 sps:$4 sm:$0xff]   ;;  %v3842_v46 = vld [vmem:[%s6562_s1 + $0x180] ss:$16 sps:$4 sm:$0xff]  }
  0x18   :  { %2337 = vmatpush1.bf16.msra.mxu1 %v3807_v23  ;;  %2225 = vmatprep.subr.bf16.mxu0 %v3808_v24  ;;  %v3840_v45 = vld [vmem:[%s6562_s1 + $0x384] ss:$16 sps:$4 sm:$0xff]   ;;  %v3843_v47 = vld [vmem:[%s6562_s1 + $0x380] ss:$16 sps:$4 sm:$0xff]  }
  0x19   :  { %2338 = vmatprep.subr.bf16.mxu1 %v3810_v25  ;;  %v3844_v48 = vld [vmem:[%s6562_s1 + $0x164] ss:$16 sps:$4 sm:$0xff]   ;;  %v3873_v51 = vld [vmem:[%s6563_s0 + $0xc] ss:$36 sps:$4 sm:$0xff]   ;;  %v3906_v23 = vld [vmem:[%s6563_s0 + $0x9c] ss:$36 sps:$4 sm:$0xff]  }
  0x1a   :  { %v3870_v49 = vld [vmem:[%s6563_s0 + $0x4] ss:$36 sps:$4 sm:$0xff]   ;;  %v3848_v52 = vld [vmem:[%s6562_s1 + $0x160] ss:$16 sps:$4 sm:$0xff]   ;;  %2358 = vmatprep.mubr.bf16.mxu1 %v3873_v51  ;;  %v3888_v11 = vld [vmem:[%s6563_s0 + $0x54] ss:$36 sps:$4 sm:$0xff]  }
  0x1b   :  { %2226 = vmatpush1.bf16.msra.mxu0 %v3812_v26  ;;  %v3846_v50 = vld [vmem:[%s6562_s1 + $0x364] ss:$16 sps:$4 sm:$0xff]   ;;  %2245 = vmatprep.mubr.bf16.mxu0 %v3870_v49  ;;  %v3849_v53 = vld [vmem:[%s6562_s1 + $0x360] ss:$16 sps:$4 sm:$0xff]  }
  0x1c   :  { %2339 = vmatpush1.bf16.msra.mxu1 %v3813_v27  ;;  %2227 = vmatprep.subr.bf16.mxu0 %v3814_v28  ;;  %v3850_v54 = vld [vmem:[%s6562_s1 + $0x144] ss:$16 sps:$4 sm:$0xff]   ;;  %v3854_v56 = vld [vmem:[%s6562_s1 + $0x140] ss:$16 sps:$4 sm:$0xff]  }
  0x1d   :  { %2340 = vmatprep.subr.bf16.mxu1 %v3816_v29  ;;  %v3852_v55 = vld [vmem:[%s6562_s1 + $0x344] ss:$16 sps:$4 sm:$0xff]   ;;  %v3855_v57 = vld [vmem:[%s6562_s1 + $0x340] ss:$16 sps:$4 sm:$0xff]   ;;  %v3909_v29 = vld [vmem:[%s6563_s0 + $0x98] ss:$36 sps:$4 sm:$0xff]  }
  0x1e   :  { %v3856_v58 = vld [vmem:[%s6562_s1 + $0x124] ss:$16 sps:$4 sm:$0xff]   ;;  %v3860_v60 = vld [vmem:[%s6562_s1 + $0x120] ss:$16 sps:$4 sm:$0xff]  }
  0x1f   :  { %2228 = vmatpush1.bf16.msra.mxu0 %v3818_v30  ;;  %v3858_v59 = vld [vmem:[%s6562_s1 + $0x324] ss:$16 sps:$4 sm:$0xff]   ;;  %v3861_v61 = vld [vmem:[%s6562_s1 + $0x320] ss:$16 sps:$4 sm:$0xff]  }
  0x20   :  { %2341 = vmatpush1.bf16.msra.mxu1 %v3819_v31  ;;  %2229 = vmatprep.subr.bf16.mxu0 %v3820_v32  ;;  %v3862_v62 = vld [vmem:[%s6562_s1 + $0x104] ss:$16 sps:$4 sm:$0xff]   ;;  %v3866_v0 = vld [vmem:[%s6562_s1 + $0x100] ss:$16 sps:$4 sm:$0xff]  }
  0x21   :  { %2342 = vmatprep.subr.bf16.mxu1 %v3822_v33  ;;  %v3864_v63 = vld [vmem:[%s6562_s1 + $0x304] ss:$16 sps:$4 sm:$0xff]   ;;  %v3867_v1 = vld [vmem:[%s6562_s1 + $0x300] ss:$16 sps:$4 sm:$0xff]  }
  0x22   :  { %v3876_v2 = vld [vmem:[%s6562_s1 + $0x4e4] ss:$16 sps:$4 sm:$0xff]   ;;  %v3874_v6 = vld [vmem:[%s6562_s1 + $0x4e0] ss:$16 sps:$4 sm:$0xff]  }
  0x23   :  { %2230 = vmatpush2.bf16.msra.mxu0 %v3824_v34  ;;  %v3879_v3 = vld [vmem:[%s6562_s1 + $0x6e4] ss:$16 sps:$4 sm:$0xff]   ;;  %v3877_v7 = vld [vmem:[%s6562_s1 + $0x6e0] ss:$16 sps:$4 sm:$0xff]  }
  0x24   :  { %2343 = vmatpush2.bf16.msra.mxu1 %v3825_v35  ;;  %2231 = vmatprep.subr.bf16.mxu0 %v3826_v36  ;;  %v3868_v4 = vld [vmem:[%s6563_s0] ss:$36 sps:$4 sm:$0xff]   ;;  %v3886_v10 = vld [vmem:[%s6563_s0 + $0x4c] ss:$36 sps:$4 sm:$0xff]   ;;  %v3904_v22 = vld [vmem:[%s6563_s0 + $0x94] ss:$36 sps:$4 sm:$0xff]  }
  0x25   :  { %2344 = vmatprep.subr.bf16.mxu1 %v3828_v37  ;;  %v3882_v8 = vld [vmem:[%s6562_s1 + $0x4c4] ss:$16 sps:$4 sm:$0xff]   ;;  %v3880_v12 = vld [vmem:[%s6562_s1 + $0x4c0] ss:$16 sps:$4 sm:$0xff]  }
  0x26   :  { %v3885_v9 = vld [vmem:[%s6562_s1 + $0x6c4] ss:$16 sps:$4 sm:$0xff]   ;;  %v3883_v13 = vld [vmem:[%s6562_s1 + $0x6c0] ss:$16 sps:$4 sm:$0xff]  }
  0x27   :  { %2232 = vmatpush2.bf16.msra.mxu0 %v3830_v38  ;;  %v3894_v14 = vld [vmem:[%s6562_s1 + $0x4a4] ss:$16 sps:$4 sm:$0xff]   ;;  %v3892_v18 = vld [vmem:[%s6562_s1 + $0x4a0] ss:$16 sps:$4 sm:$0xff]  }
  0x28   :  { %2345 = vmatpush2.bf16.msra.mxu1 %v3831_v39  ;;  %2233 = vmatprep.subr.bf16.mxu0 %v3832_v40  ;;  %v3897_v15 = vld [vmem:[%s6562_s1 + $0x6a4] ss:$16 sps:$4 sm:$0xff]   ;;  %v3895_v19 = vld [vmem:[%s6562_s1 + $0x6a0] ss:$16 sps:$4 sm:$0xff]   ;;  %v3926_v40 = vld [vmem:[%s6563_s0 + $0xd8] ss:$36 sps:$4 sm:$0xff]  }
  0x29   :  { %2346 = vmatprep.subr.bf16.mxu1 %v3834_v41  ;;  %v3891_v17 = vld [vmem:[%s6563_s0 + $0x50] ss:$36 sps:$4 sm:$0xff]   ;;  %v3922_v34 = vld [vmem:[%s6563_s0 + $0xdc] ss:$36 sps:$4 sm:$0xff]   ;;  %v3924_v35 = vld [vmem:[%s6563_s0 + $0xe4] ss:$36 sps:$4 sm:$0xff]  }
  0x2a   :  { %v3900_v20 = vld [vmem:[%s6562_s1 + $0x484] ss:$16 sps:$4 sm:$0xff]   ;;  %v3898_v24 = vld [vmem:[%s6562_s1 + $0x480] ss:$16 sps:$4 sm:$0xff]  }
  0x2b   :  { %2234 = vmatpush2.bf16.msra.mxu0 %v3836_v42  ;;  %v3903_v21 = vld [vmem:[%s6562_s1 + $0x684] ss:$16 sps:$4 sm:$0xff]   ;;  %v3901_v25 = vld [vmem:[%s6562_s1 + $0x680] ss:$16 sps:$4 sm:$0xff]  }
  0x2c   :  { %2347 = vmatpush2.bf16.msra.mxu1 %v3837_v43  ;;  %2235 = vmatprep.subr.bf16.mxu0 %v3838_v44  ;;  %v3912_v26 = vld [vmem:[%s6562_s1 + $0x464] ss:$16 sps:$4 sm:$0xff]   ;;  %v3910_v30 = vld [vmem:[%s6562_s1 + $0x460] ss:$16 sps:$4 sm:$0xff]  }
  0x2d   :  { %2348 = vmatprep.subr.bf16.mxu1 %v3840_v45  ;;  %v3915_v27 = vld [vmem:[%s6562_s1 + $0x664] ss:$16 sps:$4 sm:$0xff]   ;;  %v3913_v31 = vld [vmem:[%s6562_s1 + $0x660] ss:$16 sps:$4 sm:$0xff]  }
  0x2e   :  { %v3908_v28 = vld [vmem:[%s6563_s0 + $0x90] ss:$36 sps:$4 sm:$0xff]   ;;  %v3927_v41 = vld [vmem:[%s6563_s0 + $0xe0] ss:$36 sps:$4 sm:$0xff]  }
  0x2f   :  { %2236 = vmatpush2.bf16.msra.mxu0 %v3842_v46  ;;  %v3918_v32 = vld [vmem:[%s6562_s1 + $0x444] ss:$16 sps:$4 sm:$0xff]   ;;  %v3916_v36 = vld [vmem:[%s6562_s1 + $0x440] ss:$16 sps:$4 sm:$0xff]  }
  0x30   :  { %2349 = vmatpush2.bf16.msra.mxu1 %v3843_v47  ;;  %2237 = vmatprep.subr.bf16.mxu0 %v3844_v48  ;;  %v3921_v33 = vld [vmem:[%s6562_s1 + $0x644] ss:$16 sps:$4 sm:$0xff]   ;;  %v3919_v37 = vld [vmem:[%s6562_s1 + $0x640] ss:$16 sps:$4 sm:$0xff]  }
  0x31   :  { %2350 = vmatprep.subr.bf16.mxu1 %v3846_v50  ;;  %v3930_v38 = vld [vmem:[%s6562_s1 + $0x424] ss:$16 sps:$4 sm:$0xff]   ;;  %v3928_v42 = vld [vmem:[%s6562_s1 + $0x420] ss:$16 sps:$4 sm:$0xff]  }
  0x32   :  { %v3933_v39 = vld [vmem:[%s6562_s1 + $0x624] ss:$16 sps:$4 sm:$0xff]   ;;  %v3931_v43 = vld [vmem:[%s6562_s1 + $0x620] ss:$16 sps:$4 sm:$0xff]  }
  0x33   :  { %2238 = vmatpush2.bf16.msra.mxu0 %v3848_v52  ;;  %v3936_v44 = vld [vmem:[%s6562_s1 + $0x404] ss:$16 sps:$4 sm:$0xff]   ;;  %v3942_v47 = vld [vmem:[%s6563_s0 + $0x12c] ss:$36 sps:$4 sm:$0xff]  }
  0x34   :  { %2351 = vmatpush2.bf16.msra.mxu1 %v3849_v53  ;;  %2239 = vmatprep.subr.bf16.mxu0 %v3850_v54  ;;  %v3939_v45 = vld [vmem:[%s6562_s1 + $0x604] ss:$16 sps:$4 sm:$0xff]   ;;  %v3934_v48 = vld [vmem:[%s6562_s1 + $0x400] ss:$16 sps:$4 sm:$0xff]   ;;  %v3945_v53 = vld [vmem:[%s6563_s0 + $0x128] ss:$36 sps:$4 sm:$0xff]  }
  0x35   :  { %2352 = vmatprep.subr.bf16.mxu1 %v3852_v55  ;;  %v3940_v46 = vld [vmem:[%s6563_s0 + $0x124] ss:$36 sps:$4 sm:$0xff]   ;;  %v3937_v49 = vld [vmem:[%s6562_s1 + $0x600] ss:$16 sps:$4 sm:$0xff]  }
  0x36   :  { %v3948_v50 = vld [vmem:[%s6562_s1 + $0x5e4] ss:$16 sps:$4 sm:$0xff]   ;;  %v3946_v54 = vld [vmem:[%s6562_s1 + $0x5e0] ss:$16 sps:$4 sm:$0xff]  }
  0x37   :  { %2240 = vmatpush2.bf16.msra.mxu0 %v3854_v56  ;;  %v3951_v51 = vld [vmem:[%s6562_s1 + $0x7e4] ss:$16 sps:$4 sm:$0xff]   ;;  %v3949_v55 = vld [vmem:[%s6562_s1 + $0x7e0] ss:$16 sps:$4 sm:$0xff]  }
  0x38   :  { %2353 = vmatpush2.bf16.msra.mxu1 %v3855_v57  ;;  %2241 = vmatprep.subr.bf16.mxu0 %v3856_v58  ;;  %v3944_v52 = vld [vmem:[%s6563_s0 + $0x120] ss:$36 sps:$4 sm:$0xff]   ;;  %v3958_v58 = vld [vmem:[%s6563_s0 + $0x16c] ss:$36 sps:$4 sm:$0xff]  }
  0x39   :  { %2354 = vmatprep.subr.bf16.mxu1 %v3858_v59  ;;  %v3954_v56 = vld [vmem:[%s6562_s1 + $0x5c4] ss:$16 sps:$4 sm:$0xff]  }
  0x3a   :  { %v3957_v57 = vld [vmem:[%s6562_s1 + $0x7c4] ss:$16 sps:$4 sm:$0xff]  }
  0x3b   :  { %2242 = vmatpush2.bf16.msra.mxu0 %v3860_v60  ;;  %v3960_v59 = vld [vmem:[%s6563_s0 + $0x174] ss:$36 sps:$4 sm:$0xff]   ;;  %v3952_v60 = vld [vmem:[%s6562_s1 + $0x5c0] ss:$16 sps:$4 sm:$0xff]  }
  0x3c   :  { %2355 = vmatpush2.bf16.msra.mxu1 %v3861_v61  ;;  %2243 = vmatprep.subr.bf16.mxu0 %v3862_v62  ;;  %v3955_v61 = vld [vmem:[%s6562_s1 + $0x7c0] ss:$16 sps:$4 sm:$0xff]   ;;  %v3966_v62 = vld [vmem:[%s6562_s1 + $0x5a4] ss:$16 sps:$4 sm:$0xff]  }
  0x3d   :  { %2356 = vmatprep.subr.bf16.mxu1 %v3864_v63  ;;  %v3969_v63 = vld [vmem:[%s6562_s1 + $0x7a4] ss:$16 sps:$4 sm:$0xff]  }
  0x3f   :  { %2244 = vmatpush2.bf16.msra.mxu0 %v3866_v0  ;;  %v3962_v0 = vld [vmem:[%s6563_s0 + $0x168] ss:$36 sps:$4 sm:$0xff]  }
  0x40   :  { %2357 = vmatpush2.bf16.msra.mxu1 %v3867_v1  ;;  %2439 = vmatprep.subr.bf16.mxu0 %v3876_v2  ;;  %v3963_v1 = vld [vmem:[%s6563_s0 + $0x170] ss:$36 sps:$4 sm:$0xff]  }
  0x41   :  { %2552 = vmatprep.subr.bf16.mxu1 %v3879_v3  ;;  %v3964_v2 = vld [vmem:[%s6562_s1 + $0x5a0] ss:$16 sps:$4 sm:$0xff]  }
  0x42   :  { %2246 = vmatmul.mubr.bf16.vlgmr.msra.gmra.mxu0 %v3868_v4  ;;  %v3967_v3 = vld [vmem:[%s6562_s1 + $0x7a0] ss:$16 sps:$4 sm:$0xff]   ;;  %v3972_v4 = vld [vmem:[%s6562_s1 + $0x584] ss:$16 sps:$4 sm:$0xff]  }
  0x43   :  { %2359 = vmatmul.mubr.bf16.vlgmr.msra.gmra.mxu1 %v3871_v5  ;;  %2440 = vmatpush1.bf16.msra.mxu0 %v3874_v6  ;;  %v3975_v5 = vld [vmem:[%s6562_s1 + $0x784] ss:$16 sps:$4 sm:$0xff]  }
  0x44   :  { %2553 = vmatpush1.bf16.msra.mxu1 %v3877_v7  ;;  %2441 = vmatprep.subr.bf16.mxu0 %v3882_v8  ;;  %v3976_v6 = vld [vmem:[%s6563_s0 + $0x1b4] ss:$36 sps:$4 sm:$0xff]   ;;  %v3978_v7 = vld [vmem:[%s6563_s0 + $0x1bc] ss:$36 sps:$4 sm:$0xff]  }
  0x45   :  { %2554 = vmatprep.subr.bf16.mxu1 %v3885_v9  ;;  %2255 = vmatprep.mubr.bf16.mxu0 %v3886_v10  ;;  %v3970_v8 = vld [vmem:[%s6562_s1 + $0x580] ss:$16 sps:$4 sm:$0xff]   ;;  %v3984_v10 = vld [vmem:[%s6562_s1 + $0x564] ss:$16 sps:$4 sm:$0xff]  }
  0x46   :  { %2368 = vmatprep.mubr.bf16.mxu1 %v3888_v11  ;;  %v3973_v9 = vld [vmem:[%s6562_s1 + $0x780] ss:$16 sps:$4 sm:$0xff]  }
  0x47   :  { %2442 = vmatpush1.bf16.msra.mxu0 %v3880_v12  ;;  %v3980_v11 = vld [vmem:[%s6563_s0 + $0x1b0] ss:$36 sps:$4 sm:$0xff]  }
  0x48   :  { %2555 = vmatpush1.bf16.msra.mxu1 %v3883_v13  ;;  %2443 = vmatprep.subr.bf16.mxu0 %v3894_v14  ;;  %v3987_v12 = vld [vmem:[%s6562_s1 + $0x764] ss:$16 sps:$4 sm:$0xff]   ;;  %v3981_v13 = vld [vmem:[%s6563_s0 + $0x1b8] ss:$36 sps:$4 sm:$0xff]   ;;  %v3982_v14 = vld [vmem:[%s6562_s1 + $0x560] ss:$16 sps:$4 sm:$0xff]  }
  0x49   :  { %2556 = vmatprep.subr.bf16.mxu1 %v3897_v15  ;;  %v3985_v15 = vld [vmem:[%s6562_s1 + $0x760] ss:$16 sps:$4 sm:$0xff]  }
  0x4a   :  { %2256 = vmatmul.mubr.bf16.gmra.mxu0 %v3890_v16  ;;  %v3990_v16 = vld [vmem:[%s6562_s1 + $0x544] ss:$16 sps:$4 sm:$0xff]  }
  0x4b   :  { %2369 = vmatmul.mubr.bf16.gmra.mxu1 %v3891_v17  ;;  %2444 = vmatpush1.bf16.msra.mxu0 %v3892_v18  ;;  %v3993_v17 = vld [vmem:[%s6562_s1 + $0x744] ss:$16 sps:$4 sm:$0xff]   ;;  %v3994_v18 = vld [vmem:[%s6563_s0 + $0x1fc] ss:$36 sps:$4 sm:$0xff]  }
  0x4c   :  { %2557 = vmatpush1.bf16.msra.mxu1 %v3895_v19  ;;  %2445 = vmatprep.subr.bf16.mxu0 %v3900_v20  ;;  %v3996_v19 = vld [vmem:[%s6563_s0 + $0x204] ss:$36 sps:$4 sm:$0xff]   ;;  %v3988_v20 = vld [vmem:[%s6562_s1 + $0x540] ss:$16 sps:$4 sm:$0xff]  }
  0x4d   :  { %2558 = vmatprep.subr.bf16.mxu1 %v3903_v21  ;;  %2265 = vmatprep.mubr.bf16.mxu0 %v3904_v22  ;;  %v3991_v21 = vld [vmem:[%s6562_s1 + $0x740] ss:$16 sps:$4 sm:$0xff]   ;;  %v4002_v22 = vld [vmem:[%s6562_s1 + $0x524] ss:$16 sps:$4 sm:$0xff]  }
  0x4e   :  { %2378 = vmatprep.mubr.bf16.mxu1 %v3906_v23  ;;  %v4005_v23 = vld [vmem:[%s6562_s1 + $0x724] ss:$16 sps:$4 sm:$0xff]  }
  0x4f   :  { %2446 = vmatpush1.bf16.msra.mxu0 %v3898_v24  ;;  %v3998_v24 = vld [vmem:[%s6563_s0 + $0x1f8] ss:$36 sps:$4 sm:$0xff]  }
  0x50   :  { %2559 = vmatpush1.bf16.msra.mxu1 %v3901_v25  ;;  %2447 = vmatprep.subr.bf16.mxu0 %v3912_v26  ;;  %v3999_v25 = vld [vmem:[%s6563_s0 + $0x200] ss:$36 sps:$4 sm:$0xff]  }
  0x51   :  { %2560 = vmatprep.subr.bf16.mxu1 %v3915_v27  ;;  %v4000_v26 = vld [vmem:[%s6562_s1 + $0x520] ss:$16 sps:$4 sm:$0xff]  }
  0x52   :  { %2266 = vmatmul.mubr.bf16.gmra.mxu0 %v3908_v28  ;;  %v4003_v27 = vld [vmem:[%s6562_s1 + $0x720] ss:$16 sps:$4 sm:$0xff]   ;;  %v4008_v28 = vld [vmem:[%s6562_s1 + $0x504] ss:$16 sps:$4 sm:$0xff]  }
  0x53   :  { %2379 = vmatmul.mubr.bf16.gmra.mxu1 %v3909_v29  ;;  %2448 = vmatpush1.bf16.msra.mxu0 %v3910_v30  ;;  %v4011_v29 = vld [vmem:[%s6562_s1 + $0x704] ss:$16 sps:$4 sm:$0xff]  }
  0x54   :  { %2561 = vmatpush1.bf16.msra.mxu1 %v3913_v31  ;;  %2449 = vmatprep.subr.bf16.mxu0 %v3918_v32  ;;  %v4014_v30 = vld [vmem:[%s6563_s0 + $0x14] ss:$36 sps:$4 sm:$0xff]   ;;  %v4017_v31 = vld [vmem:[%s6563_s0 + $0x1c] ss:$36 sps:$4 sm:$0xff]  }
  0x55   :  { %2562 = vmatprep.subr.bf16.mxu1 %v3921_v33  ;;  %2275 = vmatprep.mubr.bf16.mxu0 %v3922_v34  ;;  %v4006_v32 = vld [vmem:[%s6562_s1 + $0x500] ss:$16 sps:$4 sm:$0xff]   ;;  %v4020_v34 = vld [vmem:[%s6562_s1 + $0x8e4] ss:$16 sps:$4 sm:$0xff]  }
  0x56   :  { %2388 = vmatprep.mubr.bf16.mxu1 %v3924_v35  ;;  %v4009_v33 = vld [vmem:[%s6562_s1 + $0x700] ss:$16 sps:$4 sm:$0xff]   ;;  %v4023_v35 = vld [vmem:[%s6562_s1 + $0xec] ss:$16 sps:$4 sm:$0xff]  }
  0x57   :  { %2450 = vmatpush1.bf16.msra.mxu0 %v3916_v36  ;;  %v4012_v36 = vld [vmem:[%s6563_s0 + $0x10] ss:$36 sps:$4 sm:$0xff]  }
  0x58   :  { %2563 = vmatpush1.bf16.msra.mxu1 %v3919_v37  ;;  %2451 = vmatprep.subr.bf16.mxu0 %v3930_v38  ;;  %v4015_v37 = vld [vmem:[%s6563_s0 + $0x18] ss:$36 sps:$4 sm:$0xff]   ;;  %v4018_v38 = vld [vmem:[%s6562_s1 + $0x8e0] ss:$16 sps:$4 sm:$0xff]  }
  0x59   :  { %2564 = vmatprep.subr.bf16.mxu1 %v3933_v39  ;;  %v4021_v39 = vld [vmem:[%s6562_s1 + $0xe8] ss:$16 sps:$4 sm:$0xff]  }
  0x5a   :  { %2276 = vmatmul.mubr.bf16.gmra.mxu0 %v3926_v40  ;;  %v4026_v40 = vld [vmem:[%s6562_s1 + $0xcc] ss:$16 sps:$4 sm:$0xff]  }
  0x5b   :  { %2389 = vmatmul.mubr.bf16.gmra.mxu1 %v3927_v41  ;;  %2452 = vmatpush1.bf16.msra.mxu0 %v3928_v42  ;;  %v4027_v41 = vld [vmem:[%s6563_s0 + $0x5c] ss:$36 sps:$4 sm:$0xff]   ;;  %v4029_v42 = vld [vmem:[%s6563_s0 + $0x64] ss:$36 sps:$4 sm:$0xff]  }
  0x5c   :  { %2565 = vmatpush1.bf16.msra.mxu1 %v3931_v43  ;;  %2453 = vmatprep.subr.bf16.mxu0 %v3936_v44  ;;  %v4035_v43 = vld [vmem:[%s6562_s1 + $0x8c4] ss:$16 sps:$4 sm:$0xff]   ;;  %v4024_v44 = vld [vmem:[%s6562_s1 + $0xc8] ss:$16 sps:$4 sm:$0xff]  }
  0x5d   :  { %2566 = vmatprep.subr.bf16.mxu1 %v3939_v45  ;;  %2285 = vmatprep.mubr.bf16.mxu0 %v3940_v46  ;;  %v4033_v45 = vld [vmem:[%s6562_s1 + $0x8c0] ss:$16 sps:$4 sm:$0xff]   ;;  %v4038_v46 = vld [vmem:[%s6562_s1 + $0xac] ss:$16 sps:$4 sm:$0xff]  }
  0x5e   :  { %2398 = vmatprep.mubr.bf16.mxu1 %v3942_v47  ;;  %v4050_v47 = vld [vmem:[%s6562_s1 + $0x8a4] ss:$16 sps:$4 sm:$0xff]  }
  0x5f   :  { %2454 = vmatpush1.bf16.msra.mxu0 %v3934_v48  ;;  %v4031_v48 = vld [vmem:[%s6563_s0 + $0x58] ss:$36 sps:$4 sm:$0xff]  }
  0x60   :  { %2567 = vmatpush1.bf16.msra.mxu1 %v3937_v49  ;;  %2455 = vmatprep.subr.bf16.mxu0 %v3948_v50  ;;  %v4032_v49 = vld [vmem:[%s6563_s0 + $0x60] ss:$36 sps:$4 sm:$0xff]   ;;  %v4036_v50 = vld [vmem:[%s6562_s1 + $0xa8] ss:$16 sps:$4 sm:$0xff]  }
  0x61   :  { %2568 = vmatprep.subr.bf16.mxu1 %v3951_v51  ;;  %v4041_v51 = vld [vmem:[%s6562_s1 + $0x8c] ss:$16 sps:$4 sm:$0xff]  }
  0x62   :  { %2286 = vmatmul.mubr.bf16.gmra.mxu0 %v3944_v52  ;;  %v4042_v52 = vld [vmem:[%s6563_s0 + $0xa4] ss:$36 sps:$4 sm:$0xff]  }
  0x63   :  { %2399 = vmatmul.mubr.bf16.gmra.mxu1 %v3945_v53  ;;  %2456 = vmatpush2.bf16.msra.mxu0 %v3946_v54  ;;  %v4044_v53 = vld [vmem:[%s6563_s0 + $0xac] ss:$36 sps:$4 sm:$0xff]  }
  0x64   :  { %2569 = vmatpush2.bf16.msra.mxu1 %v3949_v55  ;;  %2457 = vmatprep.subr.bf16.mxu0 %v3954_v56  ;;  %v4048_v54 = vld [vmem:[%s6562_s1 + $0x8a0] ss:$16 sps:$4 sm:$0xff]   ;;  %v4065_v55 = vld [vmem:[%s6562_s1 + $0x884] ss:$16 sps:$4 sm:$0xff]   ;;  %v4039_v56 = vld [vmem:[%s6562_s1 + $0x88] ss:$16 sps:$4 sm:$0xff]  }
  0x65   :  { %2570 = vmatprep.subr.bf16.mxu1 %v3957_v57  ;;  %2295 = vmatprep.mubr.bf16.mxu0 %v3958_v58  ;;  %v4046_v57 = vld [vmem:[%s6563_s0 + $0xa0] ss:$36 sps:$4 sm:$0xff]   ;;  %v4053_v58 = vld [vmem:[%s6562_s1 + $0x6c] ss:$16 sps:$4 sm:$0xff]  }
  0x66   :  { %2408 = vmatprep.mubr.bf16.mxu1 %v3960_v59  ;;  %v4047_v59 = vld [vmem:[%s6563_s0 + $0xa8] ss:$36 sps:$4 sm:$0xff]  }
  0x67   :  { %2458 = vmatpush2.bf16.msra.mxu0 %v3952_v60  ;;  %v4063_v60 = vld [vmem:[%s6562_s1 + $0x880] ss:$16 sps:$4 sm:$0xff]  }
  0x68   :  { %2571 = vmatpush2.bf16.msra.mxu1 %v3955_v61  ;;  %2459 = vmatprep.subr.bf16.mxu0 %v3966_v62  ;;  %v4051_v61 = vld [vmem:[%s6562_s1 + $0x68] ss:$16 sps:$4 sm:$0xff]   ;;  %v4056_v62 = vld [vmem:[%s6562_s1 + $0x4c] ss:$16 sps:$4 sm:$0xff]  }
  0x69   :  { %2572 = vmatprep.subr.bf16.mxu1 %v3969_v63  ;;  %v4057_v63 = vld [vmem:[%s6563_s0 + $0xec] ss:$36 sps:$4 sm:$0xff]  }
  0x6a   :  { %2296 = vmatmul.mubr.bf16.gmra.mxu0 %v3962_v0  ;;  %v4059_v0 = vld [vmem:[%s6563_s0 + $0xf4] ss:$36 sps:$4 sm:$0xff]  }
  0x6b   :  { %2409 = vmatmul.mubr.bf16.gmra.mxu1 %v3963_v1  ;;  %2460 = vmatpush2.bf16.msra.mxu0 %v3964_v2  ;;  %v4080_v1 = vld [vmem:[%s6562_s1 + $0x864] ss:$16 sps:$4 sm:$0xff]   ;;  %v4078_v2 = vld [vmem:[%s6562_s1 + $0x860] ss:$16 sps:$4 sm:$0xff]  }
  0x6c   :  { %2573 = vmatpush2.bf16.msra.mxu1 %v3967_v3  ;;  %2461 = vmatprep.subr.bf16.mxu0 %v3972_v4  ;;  %v4054_v3 = vld [vmem:[%s6562_s1 + $0x48] ss:$16 sps:$4 sm:$0xff]   ;;  %v4095_v4 = vld [vmem:[%s6562_s1 + $0x844] ss:$16 sps:$4 sm:$0xff]  }
  0x6d   :  { %2574 = vmatprep.subr.bf16.mxu1 %v3975_v5  ;;  %2305 = vmatprep.mubr.bf16.mxu0 %v3976_v6  ;;  %v4068_v5 = vld [vmem:[%s6562_s1 + $0x2c] ss:$16 sps:$4 sm:$0xff]  }
  0x6e   :  { %2418 = vmatprep.mubr.bf16.mxu1 %v3978_v7  ;;  %v4061_v6 = vld [vmem:[%s6563_s0 + $0xe8] ss:$36 sps:$4 sm:$0xff]   ;;  %v4062_v7 = vld [vmem:[%s6563_s0 + $0xf0] ss:$36 sps:$4 sm:$0xff]  }
  0x6f   :  { %2462 = vmatpush2.bf16.msra.mxu0 %v3970_v8  ;;  %v4066_v8 = vld [vmem:[%s6562_s1 + $0x28] ss:$16 sps:$4 sm:$0xff]  }
  0x70   :  { %2575 = vmatpush2.bf16.msra.mxu1 %v3973_v9  ;;  %2463 = vmatprep.subr.bf16.mxu0 %v3984_v10  ;;  %v4071_v9 = vld [vmem:[%s6562_s1 + $0xc] ss:$16 sps:$4 sm:$0xff]   ;;  %v4072_v10 = vld [vmem:[%s6563_s0 + $0x134] ss:$36 sps:$4 sm:$0xff]  }
  0x71   :  { %2576 = vmatprep.subr.bf16.mxu1 %v3987_v12  ;;  %v4093_v12 = vld [vmem:[%s6562_s1 + $0x840] ss:$16 sps:$4 sm:$0xff]  }
  0x72   :  { %2306 = vmatmul.mubr.bf16.gmra.mxu0 %v3980_v11  ;;  %v4074_v11 = vld [vmem:[%s6563_s0 + $0x13c] ss:$36 sps:$4 sm:$0xff]  }
  0x73   :  { %2419 = vmatmul.mubr.bf16.gmra.mxu1 %v3981_v13  ;;  %2464 = vmatpush2.bf16.msra.mxu0 %v3982_v14  ;;  %v4110_v13 = vld [vmem:[%s6562_s1 + $0x824] ss:$16 sps:$4 sm:$0xff]   ;;  %v4069_v14 = vld [vmem:[%s6562_s1 + $0x8] ss:$16 sps:$4 sm:$0xff]  }
  0x74   :  { %2577 = vmatpush2.bf16.msra.mxu1 %v3985_v15  ;;  %2465 = vmatprep.subr.bf16.mxu0 %v3990_v16  ;;  %v4076_v15 = vld [vmem:[%s6563_s0 + $0x130] ss:$36 sps:$4 sm:$0xff]   ;;  %v4083_v16 = vld [vmem:[%s6562_s1 + $0x1ec] ss:$16 sps:$4 sm:$0xff]  }
  0x75   :  { %2578 = vmatprep.subr.bf16.mxu1 %v3993_v17  ;;  %2315 = vmatprep.mubr.bf16.mxu0 %v3994_v18  ;;  %v4077_v17 = vld [vmem:[%s6563_s0 + $0x138] ss:$36 sps:$4 sm:$0xff]   ;;  %v4108_v18 = vld [vmem:[%s6562_s1 + $0x820] ss:$16 sps:$4 sm:$0xff]  }
  0x76   :  { %2428 = vmatprep.mubr.bf16.mxu1 %v3996_v19  ;;  %v4081_v19 = vld [vmem:[%s6562_s1 + $0x1e8] ss:$16 sps:$4 sm:$0xff]  }
  0x77   :  { %2466 = vmatpush2.bf16.msra.mxu0 %v3988_v20  ;;  %v4086_v20 = vld [vmem:[%s6562_s1 + $0x1cc] ss:$16 sps:$4 sm:$0xff]  }
  0x78   :  { %2579 = vmatpush2.bf16.msra.mxu1 %v3991_v21  ;;  %2467 = vmatprep.subr.bf16.mxu0 %v4002_v22  ;;  %v4087_v21 = vld [vmem:[%s6563_s0 + $0x17c] ss:$36 sps:$4 sm:$0xff]   ;;  %v4089_v22 = vld [vmem:[%s6563_s0 + $0x184] ss:$36 sps:$4 sm:$0xff]  }
  0x79   :  { %2580 = vmatprep.subr.bf16.mxu1 %v4005_v23  ;;  %v4125_v23 = vld [vmem:[%s6562_s1 + $0x804] ss:$16 sps:$4 sm:$0xff]  }
  0x7a   :  { %2316 = vmatmul.mubr.bf16.gmra.mxu0 %v3998_v24  ;;  %v4123_v24 = vld [vmem:[%s6562_s1 + $0x800] ss:$16 sps:$4 sm:$0xff]  }
  0x7b   :  { %2429 = vmatmul.mubr.bf16.gmra.mxu1 %v3999_v25  ;;  %2468 = vmatpush2.bf16.msra.mxu0 %v4000_v26  ;;  %v4084_v25 = vld [vmem:[%s6562_s1 + $0x1c8] ss:$16 sps:$4 sm:$0xff]   ;;  %v4135_v26 = vld [vmem:[%s6562_s1 + $0x2ec] ss:$16 sps:$4 sm:$0xff]  }
  0x7c   :  { %2581 = vmatpush2.bf16.msra.mxu1 %v4003_v27  ;;  %2469 = vmatprep.subr.bf16.mxu0 %v4008_v28  ;;  %v4098_v27 = vld [vmem:[%s6562_s1 + $0x1ac] ss:$16 sps:$4 sm:$0xff]  }
  0x7d   :  { %2582 = vmatprep.subr.bf16.mxu1 %v4011_v29  ;;  %2471 = vmatprep.mubr.bf16.mxu0 %v4014_v30  ;;  %v4091_v28 = vld [vmem:[%s6563_s0 + $0x178] ss:$36 sps:$4 sm:$0xff]   ;;  %v4092_v29 = vld [vmem:[%s6563_s0 + $0x180] ss:$36 sps:$4 sm:$0xff]  }
  0x7e   :  { %2584 = vmatprep.mubr.bf16.mxu1 %v4017_v31  ;;  %v4096_v30 = vld [vmem:[%s6562_s1 + $0x1a8] ss:$16 sps:$4 sm:$0xff]  }
  0x7f   :  { %2470 = vmatpush2.bf16.msra.mxu0 %v4006_v32  ;;  %v4102_v31 = vld [vmem:[%s6563_s0 + $0x1c4] ss:$36 sps:$4 sm:$0xff]   ;;  %v4101_v32 = vld [vmem:[%s6562_s1 + $0x18c] ss:$16 sps:$4 sm:$0xff]  }
  0x80   :  { %2583 = vmatpush2.bf16.msra.mxu1 %v4009_v33  ;;  %2665 = vmatprep.subr.bf16.mxu0 %v4020_v34  ;;  %v4104_v33 = vld [vmem:[%s6563_s0 + $0x1cc] ss:$36 sps:$4 sm:$0xff]   ;;  %v4099_v34 = vld [vmem:[%s6562_s1 + $0x188] ss:$16 sps:$4 sm:$0xff]  }
  0x81   :  { %2778 = vmatprep.subr.bf16.mxu1 %v4023_v35  ;;  %v4113_v35 = vld [vmem:[%s6562_s1 + $0x16c] ss:$16 sps:$4 sm:$0xff]  }
  0x82   :  { %2472 = vmatmul.mubr.bf16.vlgmr.msra.gmra.mxu0 %v4012_v36  ;;  %v4106_v36 = vld [vmem:[%s6563_s0 + $0x1c0] ss:$36 sps:$4 sm:$0xff]  }
  0x83   :  { %2585 = vmatmul.mubr.bf16.vlgmr.msra.gmra.mxu1 %v4015_v37  ;;  %2666 = vmatpush1.bf16.msra.mxu0 %v4018_v38  ;;  %v4107_v37 = vld [vmem:[%s6563_s0 + $0x1c8] ss:$36 sps:$4 sm:$0xff]  }
  0x84   :  { %2779 = vmatpush1.bf16.msra.mxu1 %v4021_v39  ;;  %2481 = vmatprep.mubr.bf16.mxu0 %v4027_v41  ;;  %v4111_v38 = vld [vmem:[%s6562_s1 + $0x168] ss:$16 sps:$4 sm:$0xff]   ;;  %v4117_v39 = vld [vmem:[%s6563_s0 + $0x20c] ss:$36 sps:$4 sm:$0xff]  }
  0x85   :  { %2780 = vmatprep.subr.bf16.mxu1 %v4026_v40  ;;  %2594 = vmatprep.mubr.bf16.mxu1 %v4029_v42  ;;  %v4116_v40 = vld [vmem:[%s6562_s1 + $0x14c] ss:$16 sps:$4 sm:$0xff]   ;;  %v4119_v41 = vld [vmem:[%s6563_s0 + $0x214] ss:$36 sps:$4 sm:$0xff]  }
  0x86   :  { %2667 = vmatprep.subr.bf16.mxu0 %v4035_v43  ;;  %v4114_v42 = vld [vmem:[%s6562_s1 + $0x148] ss:$16 sps:$4 sm:$0xff]   ;;  %v4128_v43 = vld [vmem:[%s6562_s1 + $0x12c] ss:$16 sps:$4 sm:$0xff]  }
  0x87   :  { %2668 = vmatpush1.bf16.msra.mxu0 %v4033_v45  ;;  %v4122_v45 = vld [vmem:[%s6563_s0 + $0x210] ss:$36 sps:$4 sm:$0xff]  }
  0x88   :  { %2781 = vmatpush1.bf16.msra.mxu1 %v4024_v44  ;;  %2669 = vmatprep.subr.bf16.mxu0 %v4050_v47  ;;  %v4121_v44 = vld [vmem:[%s6563_s0 + $0x208] ss:$36 sps:$4 sm:$0xff]  }
  0x89   :  { %2782 = vmatprep.subr.bf16.mxu1 %v4038_v46  ;;  %v4126_v46 = vld [vmem:[%s6562_s1 + $0x128] ss:$16 sps:$4 sm:$0xff]   ;;  %v4131_v47 = vld [vmem:[%s6562_s1 + $0x10c] ss:$16 sps:$4 sm:$0xff]  }
  0x8a   :  { %2482 = vmatmul.mubr.bf16.gmra.mxu0 %v4031_v48  ;;  %v4129_v48 = vld [vmem:[%s6562_s1 + $0x108] ss:$16 sps:$4 sm:$0xff]  }
  0x8b   :  { %2595 = vmatmul.mubr.bf16.gmra.mxu1 %v4032_v49  ;;  %2491 = vmatprep.mubr.bf16.mxu0 %v4042_v52  ;;  %v6566_v49 = vmov 0   ;;  %v5126_v52 = vld [vmem:[%s6563_s0 + $0x20] ss:$36 sps:$4 sm:$0xff]  }
  0x8c   :  { %2783 = vmatpush1.bf16.msra.mxu1 %v4036_v50  ;;  %2604 = vmatprep.mubr.bf16.mxu1 %v4044_v53  ;;  %v4308_v50 = vld [vmem:[%s6563_s0 + $0x4] ss:$36 sps:$4 sm:$0xff]  }
  0x8d   :  { %2784 = vmatprep.subr.bf16.mxu1 %v4041_v51  ;;  %2670 = vmatpush1.bf16.msra.mxu0 %v4048_v54  ;;  %v4138_v51 = vld [vmem:[%s6562_s1 + $0x4ec] ss:$16 sps:$4 sm:$0xff]   ;;  %v4133_v53 = vld [vmem:[%s6562_s1 + $0x2e8] ss:$16 sps:$4 sm:$0xff]  }
  0x8e   :  { %2671 = vmatprep.subr.bf16.mxu0 %v4065_v55  ;;  %v4136_v54 = vld [vmem:[%s6562_s1 + $0x4e8] ss:$16 sps:$4 sm:$0xff]   ;;  %v4141_v55 = vld [vmem:[%s6562_s1 + $0x2cc] ss:$16 sps:$4 sm:$0xff]  }
  0x90   :  { %2785 = vmatpush1.bf16.msra.mxu1 %v4039_v56  ;;  %v4144_v56 = vld [vmem:[%s6562_s1 + $0x4cc] ss:$16 sps:$4 sm:$0xff]  }
  0x91   :  { %2786 = vmatprep.subr.bf16.mxu1 %v4053_v58  ;;  %2672 = vmatpush1.bf16.msra.mxu0 %v4063_v60  ;;  %v4139_v58 = vld [vmem:[%s6562_s1 + $0x2c8] ss:$16 sps:$4 sm:$0xff]   ;;  %v4148_v60 = vld [vmem:[%s6562_s1 + $0x2ac] ss:$16 sps:$4 sm:$0xff]  }
  0x92   :  { %2492 = vmatmul.mubr.bf16.gmra.mxu0 %v4046_v57  ;;  %2673 = vmatprep.subr.bf16.mxu0 %v4080_v1  ;;  %v4309_v57 = vld [vmem:[%s6563_s0] ss:$36 sps:$4 sm:$0xff]   ;;  %v4149_v1 = vld [vmem:[%s6562_s1 + $0x4a8] ss:$16 sps:$4 sm:$0xff]  }
  0x93   :  { %2605 = vmatmul.mubr.bf16.gmra.mxu1 %v4047_v59  ;;  %2501 = vmatprep.mubr.bf16.mxu0 %v4057_v63  ;;  %v4142_v59 = vld [vmem:[%s6562_s1 + $0x4c8] ss:$16 sps:$4 sm:$0xff]  }
  0x94   :  { %2787 = vmatpush1.bf16.msra.mxu1 %v4051_v61  ;;  %2614 = vmatprep.mubr.bf16.mxu1 %v4059_v0  ;;  %v4151_v61 = vld [vmem:[%s6562_s1 + $0x4ac] ss:$16 sps:$4 sm:$0xff]   ;;  %v4146_v0 = vld [vmem:[%s6562_s1 + $0x2a8] ss:$16 sps:$4 sm:$0xff]  }
  0x95   :  { %2788 = vmatprep.subr.bf16.mxu1 %v4056_v62  ;;  %2674 = vmatpush1.bf16.msra.mxu0 %v4078_v2  ;;  %v4310_v62 = vld [vmem:[%s6563_s0 + $0x4c] ss:$36 sps:$4 sm:$0xff]  }
  0x96   :  { %2675 = vmatprep.subr.bf16.mxu0 %v4095_v4  ;;  %v5163_v63 = vld [vmem:[%s6563_s0 + $0x68] ss:$36 sps:$4 sm:$0xff]  }
  0x97   :  { %v4154_v2 = vld [vmem:[%s6562_s1 + $0x28c] ss:$16 sps:$4 sm:$0xff]   ;;  %v4152_v4 = vld [vmem:[%s6562_s1 + $0x288] ss:$16 sps:$4 sm:$0xff]  }
  0x98   :  { %2789 = vmatpush1.bf16.msra.mxu1 %v4054_v3  ;;  %v4157_v3 = vld [vmem:[%s6562_s1 + $0x48c] ss:$16 sps:$4 sm:$0xff]  }
  0x99   :  { %2790 = vmatprep.subr.bf16.mxu1 %v4068_v5  ;;  %2676 = vmatpush1.bf16.msra.mxu0 %v4093_v12  ;;  %v4311_v5 = vld [vmem:[%s6563_s0 + $0x48] ss:$36 sps:$4 sm:$0xff]  }
  0x9a   :  { %2502 = vmatmul.mubr.bf16.gmra.mxu0 %v4061_v6  ;;  %2677 = vmatprep.subr.bf16.mxu0 %v4110_v13  ;;  %v4155_v6 = vld [vmem:[%s6562_s1 + $0x488] ss:$16 sps:$4 sm:$0xff]   ;;  %v4167_v13 = vld [vmem:[%s6562_s1 + $0x24c] ss:$16 sps:$4 sm:$0xff]  }
  0x9b   :  { %2615 = vmatmul.mubr.bf16.gmra.mxu1 %v4062_v7  ;;  %2511 = vmatprep.mubr.bf16.mxu0 %v4072_v10  ;;  %v4161_v7 = vld [vmem:[%s6562_s1 + $0x26c] ss:$16 sps:$4 sm:$0xff]   ;;  %v5200_v10 = vld [vmem:[%s6563_s0 + $0xb0] ss:$36 sps:$4 sm:$0xff]   ;;  %v4162_v12 = vld [vmem:[%s6562_s1 + $0x468] ss:$16 sps:$4 sm:$0xff]  }
  0x9c   :  { %2791 = vmatpush1.bf16.msra.mxu1 %v4066_v8  ;;  %2624 = vmatprep.mubr.bf16.mxu1 %v4074_v11  ;;  %v4164_v8 = vld [vmem:[%s6562_s1 + $0x46c] ss:$16 sps:$4 sm:$0xff]   ;;  %v4159_v11 = vld [vmem:[%s6562_s1 + $0x268] ss:$16 sps:$4 sm:$0xff]  }
  0x9d   :  { %2792 = vmatprep.subr.bf16.mxu1 %v4071_v9  ;;  %2678 = vmatpush1.bf16.msra.mxu0 %v4108_v18  ;;  %v4312_v9 = vld [vmem:[%s6563_s0 + $0x94] ss:$36 sps:$4 sm:$0xff]   ;;  %v4174_v18 = vld [vmem:[%s6562_s1 + $0x22c] ss:$16 sps:$4 sm:$0xff]  }
  0x9e   :  { %2679 = vmatprep.subr.bf16.mxu0 %v4125_v23  ;;  %v4175_v23 = vld [vmem:[%s6562_s1 + $0x428] ss:$16 sps:$4 sm:$0xff]  }
  0xa0   :  { %2793 = vmatpush1.bf16.msra.mxu1 %v4069_v14  ;;  %v4170_v14 = vld [vmem:[%s6562_s1 + $0x44c] ss:$16 sps:$4 sm:$0xff]  }
  0xa1   :  { %2794 = vmatprep.subr.bf16.mxu1 %v4083_v16  ;;  %2680 = vmatpush1.bf16.msra.mxu0 %v4123_v24  ;;  %v4165_v16 = vld [vmem:[%s6562_s1 + $0x248] ss:$16 sps:$4 sm:$0xff]   ;;  %v4180_v24 = vld [vmem:[%s6562_s1 + $0x20c] ss:$16 sps:$4 sm:$0xff]  }
  0xa2   :  { %2512 = vmatmul.mubr.bf16.gmra.mxu0 %v4076_v15  ;;  %2891 = vmatprep.subr.bf16.mxu0 %v4135_v26  ;;  %v4313_v15 = vld [vmem:[%s6563_s0 + $0x90] ss:$36 sps:$4 sm:$0xff]   ;;  %v4315_v26 = vld [vmem:[%s6563_s0 + $0xd8] ss:$36 sps:$4 sm:$0xff]  }
  0xa3   :  { %2625 = vmatmul.mubr.bf16.gmra.mxu1 %v4077_v17  ;;  %2521 = vmatprep.mubr.bf16.mxu0 %v4087_v21  ;;  %v4168_v17 = vld [vmem:[%s6562_s1 + $0x448] ss:$16 sps:$4 sm:$0xff]  }
  0xa4   :  { %2795 = vmatpush2.bf16.msra.mxu1 %v4081_v19  ;;  %2634 = vmatprep.mubr.bf16.mxu1 %v4089_v22  ;;  %v4177_v19 = vld [vmem:[%s6562_s1 + $0x42c] ss:$16 sps:$4 sm:$0xff]   ;;  %v4172_v22 = vld [vmem:[%s6562_s1 + $0x228] ss:$16 sps:$4 sm:$0xff]  }
  0xa5   :  { %2796 = vmatprep.subr.bf16.mxu1 %v4086_v20  ;;  %v4314_v20 = vld [vmem:[%s6563_s0 + $0xdc] ss:$36 sps:$4 sm:$0xff]  }
  0xa6   :  { %v5237_v21 = vld [vmem:[%s6563_s0 + $0xf8] ss:$36 sps:$4 sm:$0xff]  }
  0xa8   :  { %2797 = vmatpush2.bf16.msra.mxu1 %v4084_v25  ;;  %v4183_v25 = vld [vmem:[%s6562_s1 + $0x40c] ss:$16 sps:$4 sm:$0xff]  }
  0xa9   :  { %2798 = vmatprep.subr.bf16.mxu1 %v4098_v27  ;;  %v4178_v27 = vld [vmem:[%s6562_s1 + $0x208] ss:$16 sps:$4 sm:$0xff]  }
  0xaa   :  { %2522 = vmatmul.mubr.bf16.gmra.mxu0 %v4091_v28  ;;  %v4181_v28 = vld [vmem:[%s6562_s1 + $0x408] ss:$16 sps:$4 sm:$0xff]  }
  0xab   :  { %2635 = vmatmul.mubr.bf16.gmra.mxu1 %v4092_v29  ;;  %2531 = vmatprep.mubr.bf16.mxu0 %v4102_v31  ;;  %v4187_v29 = vld [vmem:[%s6562_s1 + $0x3ec] ss:$16 sps:$4 sm:$0xff]   ;;  %v4316_v31 = vld [vmem:[%s6563_s0 + $0x124] ss:$36 sps:$4 sm:$0xff]  }
  0xac   :  { %2799 = vmatpush2.bf16.msra.mxu1 %v4096_v30  ;;  %2644 = vmatprep.mubr.bf16.mxu1 %v4104_v33  ;;  %v4190_v30 = vld [vmem:[%s6562_s1 + $0x5ec] ss:$16 sps:$4 sm:$0xff]   ;;  %v4185_v33 = vld [vmem:[%s6562_s1 + $0x3e8] ss:$16 sps:$4 sm:$0xff]  }
  0xad   :  { %2800 = vmatprep.subr.bf16.mxu1 %v4101_v32  ;;  %v5274_v32 = vld [vmem:[%s6563_s0 + $0x140] ss:$36 sps:$4 sm:$0xff]  }
  0xb0   :  { %2801 = vmatpush2.bf16.msra.mxu1 %v4099_v34  ;;  %v4188_v34 = vld [vmem:[%s6562_s1 + $0x5e8] ss:$16 sps:$4 sm:$0xff]  }
  0xb1   :  { %2802 = vmatprep.subr.bf16.mxu1 %v4113_v35  ;;  %v4193_v35 = vld [vmem:[%s6562_s1 + $0x3cc] ss:$16 sps:$4 sm:$0xff]  }
  0xb2   :  { %2532 = vmatmul.mubr.bf16.gmra.mxu0 %v4106_v36  ;;  %v4196_v36 = vld [vmem:[%s6562_s1 + $0x5cc] ss:$16 sps:$4 sm:$0xff]  }
  0xb3   :  { %2645 = vmatmul.mubr.bf16.gmra.mxu1 %v4107_v37  ;;  %2541 = vmatprep.mubr.bf16.mxu0 %v4117_v39  ;;  %v4317_v37 = vld [vmem:[%s6563_s0 + $0x120] ss:$36 sps:$4 sm:$0xff]   ;;  %v4194_v39 = vld [vmem:[%s6562_s1 + $0x5c8] ss:$16 sps:$4 sm:$0xff]  }
  0xb4   :  { %2803 = vmatpush2.bf16.msra.mxu1 %v4111_v38  ;;  %2654 = vmatprep.mubr.bf16.mxu1 %v4119_v41  ;;  %v4191_v38 = vld [vmem:[%s6562_s1 + $0x3c8] ss:$16 sps:$4 sm:$0xff]   ;;  %v4203_v41 = vld [vmem:[%s6562_s1 + $0x5ac] ss:$16 sps:$4 sm:$0xff]  }
  0xb5   :  { %2804 = vmatprep.subr.bf16.mxu1 %v4116_v40  ;;  %v4200_v40 = vld [vmem:[%s6562_s1 + $0x3ac] ss:$16 sps:$4 sm:$0xff]  }
  0xb8   :  { %2805 = vmatpush2.bf16.msra.mxu1 %v4114_v42  ;;  %v4318_v42 = vld [vmem:[%s6563_s0 + $0x16c] ss:$36 sps:$4 sm:$0xff]  }
  0xb9   :  { %2806 = vmatprep.subr.bf16.mxu1 %v4128_v43  ;;  %v5311_v43 = vld [vmem:[%s6563_s0 + $0x188] ss:$36 sps:$4 sm:$0xff]  }
  0xba   :  { %2542 = vmatmul.mubr.bf16.gmra.mxu0 %v4121_v44  ;;  %v4198_v44 = vld [vmem:[%s6562_s1 + $0x3a8] ss:$16 sps:$4 sm:$0xff]  }
  0xbb   :  { %2655 = vmatmul.mubr.bf16.gmra.mxu1 %v4122_v45  ;;  %2697 = vmatprep.mubr.bf16.mxu0 %v6566_v49  ;;  %v4201_v45 = vld [vmem:[%s6562_s1 + $0x5a8] ss:$16 sps:$4 sm:$0xff]  }
  0xbc   :  { %2807 = vmatpush2.bf16.msra.mxu1 %v4126_v46  ;;  %2810 = vmatprep.mubr.bf16.mxu1 %v4308_v50  ;;  %v4206_v46 = vld [vmem:[%s6562_s1 + $0x38c] ss:$16 sps:$4 sm:$0xff]   ;;  %v4204_v50 = vld [vmem:[%s6562_s1 + $0x388] ss:$16 sps:$4 sm:$0xff]  }
  0xbd   :  { %2808 = vmatprep.subr.bf16.mxu1 %v4131_v47  ;;  %v4209_v47 = vld [vmem:[%s6562_s1 + $0x58c] ss:$16 sps:$4 sm:$0xff]  }
  0xc0   :  { %2809 = vmatpush2.bf16.msra.mxu1 %v4129_v48  ;;  %v4319_v48 = vld [vmem:[%s6563_s0 + $0x168] ss:$36 sps:$4 sm:$0xff]  }
  0xc1   :  { %3004 = vmatprep.subr.bf16.mxu1 %v4138_v51  ;;  %v4207_v51 = vld [vmem:[%s6562_s1 + $0x588] ss:$16 sps:$4 sm:$0xff]  }
  0xc2   :  { %2698 = vmatmul.mubr.bf16.vlgmr.msra.gmra.mxu0 %v5126_v52 }
  0xc3   :  { %2811 = vmatmul.mubr.bf16.vlgmr.msra.gmra.mxu1 %v4309_v57  ;;  %2892 = vmatpush1.bf16.msra.mxu0 %v4133_v53  ;;  %v4213_v53 = vld [vmem:[%s6562_s1 + $0x36c] ss:$16 sps:$4 sm:$0xff]   ;;  %v4211_v57 = vld [vmem:[%s6562_s1 + $0x368] ss:$16 sps:$4 sm:$0xff]  }
  0xc4   :  { %3005 = vmatpush1.bf16.msra.mxu1 %v4136_v54  ;;  %2893 = vmatprep.subr.bf16.mxu0 %v4141_v55  ;;  %v4216_v54 = vld [vmem:[%s6562_s1 + $0x56c] ss:$16 sps:$4 sm:$0xff]   ;;  %v4320_v55 = vld [vmem:[%s6563_s0 + $0x1b4] ss:$36 sps:$4 sm:$0xff]  }
  0xc5   :  { %3006 = vmatprep.subr.bf16.mxu1 %v4144_v56  ;;  %2707 = vmatprep.mubr.bf16.mxu0 %v6566_v49  ;;  %v5348_v56 = vld [vmem:[%s6563_s0 + $0x1d0] ss:$36 sps:$4 sm:$0xff]  }
  0xc6   :  { %2820 = vmatprep.mubr.bf16.mxu1 %v4310_v62  ;;  %v4217_v62 = vld [vmem:[%s6562_s1 + $0x348] ss:$16 sps:$4 sm:$0xff]  }
  0xc7   :  { %2894 = vmatpush1.bf16.msra.mxu0 %v4139_v58  ;;  %v4214_v58 = vld [vmem:[%s6562_s1 + $0x568] ss:$16 sps:$4 sm:$0xff]  }
  0xc8   :  { %3007 = vmatpush1.bf16.msra.mxu1 %v4142_v59  ;;  %2895 = vmatprep.subr.bf16.mxu0 %v4148_v60  ;;  %v4219_v59 = vld [vmem:[%s6562_s1 + $0x34c] ss:$16 sps:$4 sm:$0xff]  }
  0xc9   :  { %3008 = vmatprep.subr.bf16.mxu1 %v4151_v61  ;;  %v4222_v60 = vld [vmem:[%s6562_s1 + $0x54c] ss:$16 sps:$4 sm:$0xff]   ;;  %v4321_v61 = vld [vmem:[%s6563_s0 + $0x1b0] ss:$36 sps:$4 sm:$0xff]  }
  0xca   :  { %2708 = vmatmul.mubr.bf16.gmra.mxu0 %v5163_v63 }
  0xcb   :  { %2821 = vmatmul.mubr.bf16.gmra.mxu1 %v4311_v5  ;;  %2896 = vmatpush1.bf16.msra.mxu0 %v4146_v0  ;;  %v4220_v0 = vld [vmem:[%s6562_s1 + $0x548] ss:$16 sps:$4 sm:$0xff]  }
  0xcc   :  { %3009 = vmatpush1.bf16.msra.mxu1 %v4149_v1  ;;  %2897 = vmatprep.subr.bf16.mxu0 %v4154_v2  ;;  %v385_v1 = vlaneseq  ;;  %v4226_v2 = vld [vmem:[%s6562_s1 + $0x32c] ss:$16 sps:$4 sm:$0xff]  }
  0xcd   :  { %3010 = vmatprep.subr.bf16.mxu1 %v4157_v3  ;;  %2717 = vmatprep.mubr.bf16.mxu0 %v6566_v49  ;;  %v4229_v3 = vld [vmem:[%s6562_s1 + $0x52c] ss:$16 sps:$4 sm:$0xff]  }
  0xce   :  { %2830 = vmatprep.mubr.bf16.mxu1 %v4312_v9  ;;  %v5385_v5 = vld [vmem:[%s6563_s0 + $0x218] ss:$36 sps:$4 sm:$0xff]  }
  0xcf   :  { %2898 = vmatpush1.bf16.msra.mxu0 %v4152_v4  ;;  %v4322_v4 = vld [vmem:[%s6563_s0 + $0x1fc] ss:$36 sps:$4 sm:$0xff]  }
  0xd0   :  { %3011 = vmatpush1.bf16.msra.mxu1 %v4155_v6  ;;  %2899 = vmatprep.subr.bf16.mxu0 %v4161_v7  ;;  %v4224_v6 = vld [vmem:[%s6562_s1 + $0x328] ss:$16 sps:$4 sm:$0xff]   ;;  %v4232_v9 = vld [vmem:[%s6562_s1 + $0x30c] ss:$16 sps:$4 sm:$0xff]  }
  0xd1   :  { %3012 = vmatprep.subr.bf16.mxu1 %v4164_v8  ;;  %v4227_v7 = vld [vmem:[%s6562_s1 + $0x528] ss:$16 sps:$4 sm:$0xff]   ;;  %v5393_v8 = vshrl.u32 %v385_v1, 7  ;;  %v4268_v1 = vld [vmem:[%s6562_s1 + $0x88c] ss:$16 sps:$4 sm:$0xff]  }
  0xd2   :  { %2718 = vmatmul.mubr.bf16.gmra.mxu0 %v5200_v10 }
  0xd3   :  { %2831 = vmatmul.mubr.bf16.gmra.mxu1 %v4313_v15  ;;  %2900 = vmatpush1.bf16.msra.mxu0 %v4159_v11  ;;  %v4235_v11 = vld [vmem:[%s6562_s1 + $0x50c] ss:$16 sps:$4 sm:$0xff]   ;;  %v387_v15 = vsub.s32 0, %v5393_v8 }
  0xd4   :  { %3013 = vmatpush1.bf16.msra.mxu1 %v4162_v12  ;;  %2901 = vmatprep.subr.bf16.mxu0 %v4167_v13  ;;  %v4323_v12 = vld [vmem:[%s6563_s0 + $0x1f8] ss:$36 sps:$4 sm:$0xff]  }
  0xd5   :  { %3014 = vmatprep.subr.bf16.mxu1 %v4170_v14  ;;  %2727 = vmatprep.mubr.bf16.mxu0 %v6566_v49  ;;  %v4230_v13 = vld [vmem:[%s6562_s1 + $0x308] ss:$16 sps:$4 sm:$0xff]  }
  0xd6   :  { %2840 = vmatprep.mubr.bf16.mxu1 %v4314_v20  ;;  %v4233_v14 = vld [vmem:[%s6562_s1 + $0x508] ss:$16 sps:$4 sm:$0xff]  }
  0xd7   :  { %2902 = vmatpush1.bf16.msra.mxu0 %v4165_v16  ;;  %v5415_v16 = vld [vmem:[%s6564_s2] sm:$0xf]  ;;  %v4325_v20 = vld [vmem:[%s6563_s0 + $0x14] ss:$36 sps:$4 sm:$0xff]  }
  0xd8   :  { %3015 = vmatpush1.bf16.msra.mxu1 %v4168_v17  ;;  %2903 = vmatprep.subr.bf16.mxu0 %v4174_v18  ;;  %v4238_v17 = vld [vmem:[%s6562_s1 + $0x6ec] ss:$16 sps:$4 sm:$0xff]  }
  0xd9   :  { %3016 = vmatprep.subr.bf16.mxu1 %v4177_v19  ;;  %v4241_v18 = vld [vmem:[%s6562_s1 + $0x8ec] ss:$16 sps:$4 sm:$0xff]  }
  0xda   :  { %2728 = vmatmul.mubr.bf16.gmra.mxu0 %v5237_v21  ;;  %v4324_v19 = vld [vmem:[%s6563_s0 + $0xc] ss:$36 sps:$4 sm:$0xff]  }
  0xdb   :  { %2841 = vmatmul.mubr.bf16.gmra.mxu1 %v4315_v26  ;;  %2904 = vmatpush1.bf16.msra.mxu0 %v4172_v22  ;;  %v391_v22 = vsub.s32 1, %v5393_v8  ;;  %v4244_v26 = vld [vmem:[%s6562_s1 + $0x6cc] ss:$16 sps:$4 sm:$0xff]  }
  0xdc   :  { %3017 = vmatpush1.bf16.msra.mxu1 %v4175_v23  ;;  %2905 = vmatprep.subr.bf16.mxu0 %v4180_v24  ;;  %v5431_v23 = vrot.slane %v5415_v16, %v387_v15  ;;  %v4236_v24 = vld [vmem:[%s6562_s1 + $0x6e8] ss:$16 sps:$4 sm:$0xff]  }
  0xdd   :  { %3018 = vmatprep.subr.bf16.mxu1 %v4183_v25  ;;  %2737 = vmatprep.mubr.bf16.mxu0 %v6566_v49  ;;  %v4239_v25 = vld [vmem:[%s6562_s1 + $0x8e8] ss:$16 sps:$4 sm:$0xff]  }
  0xde   :  { %2850 = vmatprep.mubr.bf16.mxu1 %v4316_v31  ;;  %v4326_v31 = vld [vmem:[%s6563_s0 + $0x8] ss:$36 sps:$4 sm:$0xff]  }
  0xdf   :  { %2906 = vmatpush1.bf16.msra.mxu0 %v4178_v27  ;;  %v5443_v27 = vrot.slane %v5415_v16, %v391_v22  ;;  %v4266_v15 = vld [vmem:[%s6562_s1 + $0x888] ss:$16 sps:$4 sm:$0xff]  }
  0xe0   :  { %3019 = vmatpush1.bf16.msra.mxu1 %v4181_v28  ;;  %2907 = vmatprep.subr.bf16.mxu0 %v4187_v29  ;;  %v4250_v28 = vld [vmem:[%s6562_s1 + $0x8cc] ss:$16 sps:$4 sm:$0xff]   ;;  %v4254_v22 = vld [vmem:[%s6562_s1 + $0x668] ss:$16 sps:$4 sm:$0xff]  }
  0xe1   :  { %3020 = vmatprep.subr.bf16.mxu1 %v4190_v30 }
  0xe2   :  { %2738 = vmatmul.mubr.bf16.gmra.mxu0 %v5274_v32 }
  0xe3   :  { %2851 = vmatmul.mubr.bf16.gmra.mxu1 %v4317_v37  ;;  %2908 = vmatpush2.bf16.msra.mxu0 %v4185_v33  ;;  %v4327_v33 = vld [vmem:[%s6563_s0 + $0x10] ss:$36 sps:$4 sm:$0xff]  }
  0xe4   :  { %3021 = vmatpush2.bf16.msra.mxu1 %v4188_v34  ;;  %2909 = vmatprep.subr.bf16.mxu0 %v4193_v35  ;;  %v4242_v35 = vld [vmem:[%s6562_s1 + $0x6c8] ss:$16 sps:$4 sm:$0xff]  }
  0xe5   :  { %3022 = vmatprep.subr.bf16.mxu1 %v4196_v36  ;;  %2747 = vmatprep.mubr.bf16.mxu0 %v6566_v49  ;;  %v4248_v36 = vld [vmem:[%s6562_s1 + $0x8c8] ss:$16 sps:$4 sm:$0xff]  }
  0xe6   :  { %2860 = vmatprep.mubr.bf16.mxu1 %v4318_v42 }
  0xe7   :  { %2910 = vmatpush2.bf16.msra.mxu0 %v4191_v38 }
  0xe8   :  { %3023 = vmatpush2.bf16.msra.mxu1 %v4194_v39  ;;  %2911 = vmatprep.subr.bf16.mxu0 %v4200_v40  ;;  %v4328_v39 = vld [vmem:[%s6563_s0 + $0x54] ss:$36 sps:$4 sm:$0xff]   ;;  %v4247_v40 = vld [vmem:[%s6562_s1 + $0x6ac] ss:$16 sps:$4 sm:$0xff]  }
  0xe9   :  { %3024 = vmatprep.subr.bf16.mxu1 %v4203_v41  ;;  %v4259_v41 = vld [vmem:[%s6562_s1 + $0x8ac] ss:$16 sps:$4 sm:$0xff]  }
  0xea   :  { %2748 = vmatmul.mubr.bf16.gmra.mxu0 %v5311_v43 }
  0xeb   :  { %2861 = vmatmul.mubr.bf16.gmra.mxu1 %v4319_v48  ;;  %2912 = vmatpush2.bf16.msra.mxu0 %v4198_v44 }
  0xec   :  { %3025 = vmatpush2.bf16.msra.mxu1 %v4201_v45  ;;  %2913 = vmatprep.subr.bf16.mxu0 %v4206_v46  ;;  %v4329_v45 = vld [vmem:[%s6563_s0 + $0x5c] ss:$36 sps:$4 sm:$0xff]  }
  0xed   :  { %3026 = vmatprep.subr.bf16.mxu1 %v4209_v47  ;;  %2757 = vmatprep.mubr.bf16.mxu0 %v6566_v49 }
  0xee   :  { %2870 = vmatprep.mubr.bf16.mxu1 %v4320_v55  ;;  %v4253_v55 = vld [vmem:[%s6562_s1 + $0x68c] ss:$16 sps:$4 sm:$0xff]  }
  0xef   :  { %2914 = vmatpush2.bf16.msra.mxu0 %v4204_v50 }
  0xf0   :  { %3027 = vmatpush2.bf16.msra.mxu1 %v4207_v51  ;;  %2915 = vmatprep.subr.bf16.mxu0 %v4213_v53  ;;  %v4245_v51 = vld [vmem:[%s6562_s1 + $0x6a8] ss:$16 sps:$4 sm:$0xff]  }
  0xf1   :  { %3028 = vmatprep.subr.bf16.mxu1 %v4216_v54 }
  0xf2   :  { %2758 = vmatmul.mubr.bf16.gmra.mxu0 %v5348_v56 }
  0xf3   :  { %2871 = vmatmul.mubr.bf16.gmra.mxu1 %v4321_v61  ;;  %2916 = vmatpush2.bf16.msra.mxu0 %v4211_v57 }
  0xf4   :  { %3029 = vmatpush2.bf16.msra.mxu1 %v4214_v58  ;;  %2917 = vmatprep.subr.bf16.mxu0 %v4219_v59  ;;  %v4257_v59 = vld [vmem:[%s6562_s1 + $0x8a8] ss:$16 sps:$4 sm:$0xff]  }
  0xf5   :  { %3030 = vmatprep.subr.bf16.mxu1 %v4222_v60  ;;  %2767 = vmatprep.mubr.bf16.mxu0 %v6566_v49 }
  0xf6   :  { %2880 = vmatprep.mubr.bf16.mxu1 %v4322_v4  ;;  %v4251_v4 = vld [vmem:[%s6562_s1 + $0x688] ss:$16 sps:$4 sm:$0xff]  }
  0xf7   :  { %2918 = vmatpush2.bf16.msra.mxu0 %v4217_v62  ;;  %v4330_v62 = vld [vmem:[%s6563_s0 + $0x50] ss:$36 sps:$4 sm:$0xff]  }
  0xf8   :  { %3031 = vmatpush2.bf16.msra.mxu1 %v4220_v0  ;;  %2919 = vmatprep.subr.bf16.mxu0 %v4226_v2  ;;  %v4331_v0 = vld [vmem:[%s6563_s0 + $0x58] ss:$36 sps:$4 sm:$0xff]  }
  0xf9   :  { %3032 = vmatprep.subr.bf16.mxu1 %v4229_v3 }
  0xfa   :  { %2768 = vmatmul.mubr.bf16.gmra.mxu0 %v5385_v5 }
  0xfb   :  { %2881 = vmatmul.mubr.bf16.gmra.mxu1 %v4323_v12  ;;  %2920 = vmatpush2.bf16.msra.mxu0 %v4224_v6  ;;  %v4332_v6 = vld [vmem:[%s6563_s0 + $0x9c] ss:$36 sps:$4 sm:$0xff]  }
  0xfc   :  { %3033 = vmatpush2.bf16.msra.mxu1 %v4227_v7  ;;  %2921 = vmatprep.subr.bf16.mxu0 %v4232_v9  ;;  %v4256_v12 = vld [vmem:[%s6562_s1 + $0x66c] ss:$16 sps:$4 sm:$0xff]  }
  0xfd   :  { %3034 = vmatprep.subr.bf16.mxu1 %v4235_v11  ;;  %2923 = vmatprep.mubr.bf16.mxu0 %v4324_v19  ;;  %v4333_v11 = vld [vmem:[%s6563_s0 + $0xa4] ss:$36 sps:$4 sm:$0xff]  }
  0xfe   :  { %3036 = vmatprep.mubr.bf16.mxu1 %v4325_v20 }
  0xff   :  { %2922 = vmatpush2.bf16.msra.mxu0 %v4230_v13 }
 0x100   :  { %3035 = vmatpush2.bf16.msra.mxu1 %v4233_v14  ;;  %3117 = vmatprep.subr.bf16.mxu0 %v4238_v17 }
 0x101   :  { %3230 = vmatprep.subr.bf16.mxu1 %v4241_v18 }
 0x102   :  { %v2247_v29 = vpop.f32.mrf.mxu0  ;;  %2924 = vmatmul.mubr.bf16.vlgmr.msra.gmra.mxu0 %v4326_v31 }
 0x103   :  { %v2360_v30 = vpop.f32.mrf.mxu1  ;;  %3037 = vmatmul.mubr.bf16.vlgmr.msra.gmra.mxu1 %v4327_v33  ;;  %v2248_v34 = vadd.f32 %v2247_v29, %v5431_v23  ;;  %3118 = vmatpush1.bf16.msra.mxu0 %v4236_v24 }
 0x104   :  { %3231 = vmatpush1.bf16.msra.mxu1 %v4239_v25  ;;  %v2249_v37 = vpop.f32.mrf.mxu0  ;;  %3119 = vmatprep.subr.bf16.mxu0 %v4244_v26  ;;  %v4262_v26 = vld [vmem:[%s6562_s1 + $0x64c] ss:$16 sps:$4 sm:$0xff]  }
 0x105   :  { %v2362_v38 = vpop.f32.mrf.mxu1  ;;  %2933 = vmatprep.mubr.bf16.mxu0 %v4328_v39  ;;  %v5470_v42 = vadd.f32 %v2360_v30, %v2248_v34  ;;  %v2250_v44 = vadd.f32 %v2249_v37, %v5443_v27  ;;  %3046 = vmatprep.mubr.bf16.mxu1 %v4329_v45  ;;  %v4277_v30 = vld [vmem:[%s6562_s1 + $0x86c] ss:$16 sps:$4 sm:$0xff]   ;;  %v4260_v39 = vld [vmem:[%s6562_s1 + $0x648] ss:$16 sps:$4 sm:$0xff]  }
 0x106   :  { %3232 = vmatprep.subr.bf16.mxu1 %v4250_v28  ;;  %v2251_v46 = vpop.f32.mrf.mxu0  ;;  %v4334_v34 = vld [vmem:[%s6563_s0 + $0x98] ss:$36 sps:$4 sm:$0xff]  }
 0x107   :  { %v2364_v47 = vpop.f32.mrf.mxu1  ;;  %v5476_v48 = vadd.f32 %v2362_v38, %v2250_v44  ;;  %v2252_v50 = vadd.f32 %v2251_v46, %v5431_v23  ;;  %3120 = vmatpush1.bf16.msra.mxu0 %v4242_v35  ;;  %v4335_v35 = vld [vmem:[%s6563_s0 + $0xa0] ss:$36 sps:$4 sm:$0xff]   ;;  %v4337_v46 = vld [vmem:[%s6563_s0 + $0xec] ss:$36 sps:$4 sm:$0xff]  }
 0x108   :  { %3233 = vmatpush1.bf16.msra.mxu1 %v4248_v36  ;;  %v2253_v53 = vpop.f32.mrf.mxu0  ;;  %3121 = vmatprep.subr.bf16.mxu0 %v4247_v40  ;;  %v4275_v36 = vld [vmem:[%s6562_s1 + $0x868] ss:$16 sps:$4 sm:$0xff]  }
 0x109   :  { %v2366_v54 = vpop.f32.mrf.mxu1  ;;  %3234 = vmatprep.subr.bf16.mxu1 %v4259_v41  ;;  %v5485_v57 = vadd.f32 %v2364_v47, %v2252_v50  ;;  %v2254_v58 = vadd.f32 %v2253_v53, %v5443_v27  ;;  %v4336_v40 = vld [vmem:[%s6563_s0 + $0xe4] ss:$36 sps:$4 sm:$0xff]   ;;  %v4286_v41 = vld [vmem:[%s6562_s1 + $0x84c] ss:$16 sps:$4 sm:$0xff]  }
 0x10a   :  { %v2257_v60 = vpop.f32.mrf.mxu0  ;;  %2934 = vmatmul.mubr.bf16.gmra.mxu0 %v4330_v62  ;;  %v4265_v47 = vld [vmem:[%s6562_s1 + $0x62c] ss:$16 sps:$4 sm:$0xff]  }
 0x10b   :  { %v2370_v61 = vpop.f32.mrf.mxu1  ;;  %3047 = vmatmul.mubr.bf16.gmra.mxu1 %v4331_v0  ;;  %v5500_v2 = vadd.f32 %v2366_v54, %v2254_v58  ;;  %v2258_v3 = vadd.f32 %v2257_v60, %v5431_v23  ;;  %3122 = vmatpush1.bf16.msra.mxu0 %v4245_v51  ;;  %v4271_v62 = vld [vmem:[%s6562_s1 + $0x60c] ss:$16 sps:$4 sm:$0xff]  }
 0x10c   :  { %2943 = vmatprep.mubr.bf16.mxu0 %v4332_v6  ;;  %v2259_v7 = vpop.f32.mrf.mxu0  ;;  %3123 = vmatprep.subr.bf16.mxu0 %v4253_v55 }
 0x10d   :  { %v2372_v9 = vpop.f32.mrf.mxu1  ;;  %3056 = vmatprep.mubr.bf16.mxu1 %v4333_v11  ;;  %v5515_v13 = vadd.f32 %v2370_v61, %v2258_v3  ;;  %v2260_v14 = vadd.f32 %v2259_v7, %v5443_v27  ;;  %3235 = vmatpush1.bf16.msra.mxu1 %v4257_v59  ;;  %v4263_v59 = vld [vmem:[%s6562_s1 + $0x628] ss:$16 sps:$4 sm:$0xff]   ;;  %v4338_v7 = vld [vmem:[%s6563_s0 + $0xe0] ss:$36 sps:$4 sm:$0xff]   ;;  %v4295_v11 = vld [vmem:[%s6562_s1 + $0x82c] ss:$16 sps:$4 sm:$0xff]  }
 0x10e   :  { %v2261_v17 = vpop.f32.mrf.mxu0  ;;  %3236 = vmatprep.subr.bf16.mxu1 %v4268_v1  ;;  %v4284_v3 = vld [vmem:[%s6562_s1 + $0x848] ss:$16 sps:$4 sm:$0xff]  }
 0x10f   :  { %v2374_v18 = vpop.f32.mrf.mxu1  ;;  %v5521_v19 = vadd.f32 %v2372_v9, %v2260_v14  ;;  %v2262_v20 = vadd.f32 %v2261_v17, %v5431_v23  ;;  %3124 = vmatpush1.bf16.msra.mxu0 %v4251_v4  ;;  %v4339_v9 = vld [vmem:[%s6563_s0 + $0xe8] ss:$36 sps:$4 sm:$0xff]  }
 0x110   :  { %v2263_v24 = vpop.f32.mrf.mxu0  ;;  %3125 = vmatprep.subr.bf16.mxu0 %v4256_v12  ;;  %v4340_v17 = vld [vmem:[%s6563_s0 + $0x12c] ss:$36 sps:$4 sm:$0xff]  }
 0x111   :  { %v2376_v25 = vpop.f32.mrf.mxu1  ;;  %v5530_v28 = vadd.f32 %v2374_v18, %v2262_v20  ;;  %v2264_v29 = vadd.f32 %v2263_v24, %v5443_v27  ;;  %3237 = vmatpush1.bf16.msra.mxu1 %v4266_v15  ;;  %v4269_v15 = vld [vmem:[%s6562_s1 + $0x608] ss:$16 sps:$4 sm:$0xff]   ;;  %v4274_v24 = vld [vmem:[%s6562_s1 + $0x7ec] ss:$16 sps:$4 sm:$0xff]  }
 0x112   :  { %v2267_v31 = vpop.f32.mrf.mxu0  ;;  %2944 = vmatmul.mubr.bf16.gmra.mxu0 %v4334_v34  ;;  %3238 = vmatprep.subr.bf16.mxu1 %v4277_v30 }
 0x113   :  { %v2380_v33 = vpop.f32.mrf.mxu1  ;;  %3057 = vmatmul.mubr.bf16.gmra.mxu1 %v4335_v35  ;;  %v5545_v37 = vadd.f32 %v2376_v25, %v2264_v29  ;;  %v2268_v38 = vadd.f32 %v2267_v31, %v5431_v23  ;;  %3126 = vmatpush1.bf16.msra.mxu0 %v4254_v22  ;;  %v4341_v22 = vld [vmem:[%s6563_s0 + $0x134] ss:$36 sps:$4 sm:$0xff]  }
 0x114   :  { %2953 = vmatprep.mubr.bf16.mxu0 %v4336_v40  ;;  %v2269_v44 = vpop.f32.mrf.mxu0  ;;  %3127 = vmatprep.subr.bf16.mxu0 %v4262_v26  ;;  %v4293_v29 = vld [vmem:[%s6562_s1 + $0x828] ss:$16 sps:$4 sm:$0xff]  }
 0x115   :  { %v2382_v45 = vpop.f32.mrf.mxu1  ;;  %3066 = vmatprep.mubr.bf16.mxu1 %v4337_v46  ;;  %v5563_v50 = vadd.f32 %v2380_v33, %v2268_v38  ;;  %v2270_v51 = vadd.f32 %v2269_v44, %v5443_v27  ;;  %3239 = vmatpush1.bf16.msra.mxu1 %v4275_v36  ;;  %v4272_v35 = vld [vmem:[%s6562_s1 + $0x7e8] ss:$16 sps:$4 sm:$0xff]   ;;  %v4304_v44 = vld [vmem:[%s6562_s1 + $0x80c] ss:$16 sps:$4 sm:$0xff]  }
 0x116   :  { %v2271_v53 = vpop.f32.mrf.mxu0  ;;  %3240 = vmatprep.subr.bf16.mxu1 %v4286_v41 }
 0x117   :  { %v2384_v54 = vpop.f32.mrf.mxu1  ;;  %v5566_v55 = vadd.f32 %v2382_v45, %v2270_v51  ;;  %v2272_v58 = vadd.f32 %v2271_v53, %v5431_v23  ;;  %3128 = vmatpush1.bf16.msra.mxu0 %v4260_v39  ;;  %v4280_v39 = vld [vmem:[%s6562_s1 + $0x7cc] ss:$16 sps:$4 sm:$0xff]   ;;  %v4343_v51 = vld [vmem:[%s6563_s0 + $0x130] ss:$36 sps:$4 sm:$0xff]   ;;  %v4302_v53 = vld [vmem:[%s6562_s1 + $0x808] ss:$16 sps:$4 sm:$0xff]  }
 0x118   :  { %v2273_v60 = vpop.f32.mrf.mxu0  ;;  %3129 = vmatprep.subr.bf16.mxu0 %v4265_v47  ;;  %v4342_v47 = vld [vmem:[%s6563_s0 + $0x128] ss:$36 sps:$4 sm:$0xff]  }
 0x119   :  { %v2386_v61 = vpop.f32.mrf.mxu1  ;;  %v5575_v0 = vadd.f32 %v2384_v54, %v2272_v58  ;;  %v2274_v1 = vadd.f32 %v2273_v60, %v5443_v27  ;;  %3241 = vmatpush1.bf16.msra.mxu1 %v4284_v3  ;;  %v4344_v60 = vld [vmem:[%s6563_s0 + $0x174] ss:$36 sps:$4 sm:$0xff]   ;;  %v4283_v3 = vld [vmem:[%s6562_s1 + $0x7ac] ss:$16 sps:$4 sm:$0xff]  }
 0x11a   :  { %v2277_v4 = vpop.f32.mrf.mxu0  ;;  %2954 = vmatmul.mubr.bf16.gmra.mxu0 %v4338_v7  ;;  %3242 = vmatprep.subr.bf16.mxu1 %v4295_v11 }
 0x11b   :  { %v2390_v6 = vpop.f32.mrf.mxu1  ;;  %3067 = vmatmul.mubr.bf16.gmra.mxu1 %v4339_v9  ;;  %v5590_v12 = vadd.f32 %v2386_v61, %v2274_v1  ;;  %v2278_v14 = vadd.f32 %v2277_v4, %v5431_v23  ;;  %3130 = vmatpush1.bf16.msra.mxu0 %v4263_v59  ;;  %v4278_v59 = vld [vmem:[%s6562_s1 + $0x7c8] ss:$16 sps:$4 sm:$0xff]   ;;  %v4345_v1 = vld [vmem:[%s6563_s0 + $0x17c] ss:$36 sps:$4 sm:$0xff]  }
 0x11c   :  { %2963 = vmatprep.mubr.bf16.mxu0 %v4340_v17  ;;  %v2279_v18 = vpop.f32.mrf.mxu0  ;;  %3131 = vmatprep.subr.bf16.mxu0 %v4271_v62 }
 0x11d   :  { %v2392_v20 = vpop.f32.mrf.mxu1  ;;  %3076 = vmatprep.mubr.bf16.mxu1 %v4341_v22  ;;  %v5605_v25 = vadd.f32 %v2390_v6, %v2278_v14  ;;  %v2280_v26 = vadd.f32 %v2279_v18, %v5443_v27  ;;  %3243 = vmatpush1.bf16.msra.mxu1 %v4293_v29 }
 0x11e   :  { %v2281_v30 = vpop.f32.mrf.mxu0  ;;  %3244 = vmatprep.subr.bf16.mxu1 %v4304_v44  ;;  %v4349_v44 = vld [vmem:[%s6563_s0 + $0x1c4] ss:$36 sps:$4 sm:$0xff]  }
 0x11f   :  { %v2394_v31 = vpop.f32.mrf.mxu1  ;;  %v5611_v33 = vadd.f32 %v2392_v20, %v2280_v26  ;;  %v2282_v34 = vadd.f32 %v2281_v30, %v5431_v23  ;;  %3132 = vmatpush1.bf16.msra.mxu0 %v4269_v15  ;;  %v4281_v15 = vld [vmem:[%s6562_s1 + $0x7a8] ss:$16 sps:$4 sm:$0xff]   ;;  %v4289_v20 = vld [vmem:[%s6562_s1 + $0x78c] ss:$16 sps:$4 sm:$0xff]   ;;  %v4346_v30 = vld [vmem:[%s6563_s0 + $0x170] ss:$36 sps:$4 sm:$0xff]  }
 0x120   :  { %v2283_v36 = vpop.f32.mrf.mxu0  ;;  %3133 = vmatprep.subr.bf16.mxu0 %v4274_v24 }
 0x121   :  { %v2396_v38 = vpop.f32.mrf.mxu1  ;;  %v5620_v40 = vadd.f32 %v2394_v31, %v2282_v34  ;;  %v2284_v41 = vadd.f32 %v2283_v36, %v5443_v27  ;;  %3245 = vmatpush1.bf16.msra.mxu1 %v4302_v53  ;;  %v4347_v31 = vld [vmem:[%s6563_s0 + $0x178] ss:$36 sps:$4 sm:$0xff]  }
 0x122   :  { %v2287_v45 = vpop.f32.mrf.mxu0  ;;  %2964 = vmatmul.mubr.bf16.gmra.mxu0 %v4342_v47  ;;  %v4287_v36 = vld [vmem:[%s6562_s1 + $0x788] ss:$16 sps:$4 sm:$0xff]  }
 0x123   :  { %v2400_v46 = vpop.f32.mrf.mxu1  ;;  %3077 = vmatmul.mubr.bf16.gmra.mxu1 %v4343_v51  ;;  %v5635_v54 = vadd.f32 %v2396_v38, %v2284_v41  ;;  %v2288_v58 = vadd.f32 %v2287_v45, %v5431_v23  ;;  %3134 = vmatpush2.bf16.msra.mxu0 %v4272_v35  ;;  %v4348_v38 = vld [vmem:[%s6563_s0 + $0x1bc] ss:$36 sps:$4 sm:$0xff]  }
 0x124   :  { %2973 = vmatprep.mubr.bf16.mxu0 %v4344_v60  ;;  %v2289_v61 = vpop.f32.mrf.mxu0  ;;  %3135 = vmatprep.subr.bf16.mxu0 %v4280_v39  ;;  %v4292_v45 = vld [vmem:[%s6562_s1 + $0x76c] ss:$16 sps:$4 sm:$0xff]   ;;  %v4290_v60 = vld [vmem:[%s6562_s1 + $0x768] ss:$16 sps:$4 sm:$0xff]  }
 0x125   :  { %v2402_v62 = vpop.f32.mrf.mxu1  ;;  %3086 = vmatprep.mubr.bf16.mxu1 %v4345_v1  ;;  %v5650_v4 = vadd.f32 %v2400_v46, %v2288_v58  ;;  %v2290_v6 = vadd.f32 %v2289_v61, %v5443_v27  ;;  %v4298_v1 = vld [vmem:[%s6562_s1 + $0x74c] ss:$16 sps:$4 sm:$0xff]  }
 0x126   :  { %v2291_v7 = vpop.f32.mrf.mxu0 }
 0x127   :  { %v2404_v9 = vpop.f32.mrf.mxu1  ;;  %v5653_v11 = vadd.f32 %v2402_v62, %v2290_v6  ;;  %v2292_v14 = vadd.f32 %v2291_v7, %v5431_v23  ;;  %3136 = vmatpush2.bf16.msra.mxu0 %v4278_v59 }
 0x128   :  { %v2293_v17 = vpop.f32.mrf.mxu0  ;;  %3137 = vmatprep.subr.bf16.mxu0 %v4283_v3 }
 0x129   :  { %6568 = vst [vmem:[#allocation2_spill] sm:$0xff] %v5653_v11  ;;  %v2406_v18 = vpop.f32.mrf.mxu1  ;;  %v5662_v22 = vadd.f32 %v2404_v9, %v2292_v14  ;;  %v2294_v24 = vadd.f32 %v2293_v17, %v5443_v27  ;;  %v4350_v14 = vld [vmem:[%s6563_s0 + $0x1b8] ss:$36 sps:$4 sm:$0xff]  }
 0x12a   :  { %v2297_v26 = vpop.f32.mrf.mxu0  ;;  %2974 = vmatmul.mubr.bf16.gmra.mxu0 %v4346_v30  ;;  %v4353_v30 = vld [vmem:[%s6563_s0 + $0x20c] ss:$36 sps:$4 sm:$0xff]  }
 0x12b   :  { %6569 = vst [vmem:[#allocation3_spill] sm:$0xff] %v5662_v22  ;;  %v2410_v29 = vpop.f32.mrf.mxu1  ;;  %3087 = vmatmul.mubr.bf16.gmra.mxu1 %v4347_v31  ;;  %v5671_v34 = vadd.f32 %v2406_v18, %v2294_v24  ;;  %v2298_v35 = vadd.f32 %v2297_v26, %v5431_v23  ;;  %3138 = vmatpush2.bf16.msra.mxu0 %v4281_v15  ;;  %v4351_v15 = vld [vmem:[%s6563_s0 + $0x1c0] ss:$36 sps:$4 sm:$0xff]   ;;  %v4301_v31 = vld [vmem:[%s6562_s1 + $0x72c] ss:$16 sps:$4 sm:$0xff]  }
 0x12c   :  { %2983 = vmatprep.mubr.bf16.mxu0 %v4348_v38  ;;  %v2299_v39 = vpop.f32.mrf.mxu0  ;;  %3139 = vmatprep.subr.bf16.mxu0 %v4289_v20  ;;  %v4296_v20 = vld [vmem:[%s6562_s1 + $0x748] ss:$16 sps:$4 sm:$0xff]  }
 0x12d   :  { %6570 = vst [vmem:[#allocation4_spill] sm:$0xff] %v5671_v34  ;;  %v2412_v41 = vpop.f32.mrf.mxu1  ;;  %3096 = vmatprep.mubr.bf16.mxu1 %v4349_v44  ;;  %v5686_v46 = vadd.f32 %v2410_v29, %v2298_v35  ;;  %v2300_v47 = vadd.f32 %v2299_v39, %v5443_v27  ;;  %v4352_v24 = vld [vmem:[%s6563_s0 + $0x204] ss:$36 sps:$4 sm:$0xff]  }
 0x12e   :  { %v2301_v51 = vpop.f32.mrf.mxu0 }
 0x12f   :  { %6571 = vst [vmem:[#allocation5_spill] sm:$0xff] %v5686_v46  ;;  %v2414_v53 = vpop.f32.mrf.mxu1  ;;  %v5689_v58 = vadd.f32 %v2412_v41, %v2300_v47  ;;  %v2302_v59 = vadd.f32 %v2301_v51, %v5431_v23  ;;  %3140 = vmatpush2.bf16.msra.mxu0 %v4287_v36 }
 0x130   :  { %v2303_v61 = vpop.f32.mrf.mxu0  ;;  %3141 = vmatprep.subr.bf16.mxu0 %v4292_v45  ;;  %v4299_v45 = vld [vmem:[%s6562_s1 + $0x728] ss:$16 sps:$4 sm:$0xff]  }
 0x131   :  { %6572 = vst [vmem:[#allocation6_spill] sm:$0xff] %v5689_v58  ;;  %v2416_v62 = vpop.f32.mrf.mxu1  ;;  %v5698_v3 = vadd.f32 %v2414_v53, %v2302_v59  ;;  %v2304_v6 = vadd.f32 %v2303_v61, %v5443_v27  ;;  %v4307_v53 = vld [vmem:[%s6562_s1 + $0x70c] ss:$16 sps:$4 sm:$0xff]   ;;  %v4366_v58 = vld [vmem:[%s6563_s0 + $0x184] ss:$36 sps:$4 sm:$0xff]  }
 0x132   :  { %v2307_v7 = vpop.f32.mrf.mxu0  ;;  %2984 = vmatmul.mubr.bf16.gmra.mxu0 %v4350_v14  ;;  %v4305_v14 = vld [vmem:[%s6562_s1 + $0x708] ss:$16 sps:$4 sm:$0xff]  }
 0x133   :  { %6573 = vst [vmem:[#allocation7_spill] sm:$0xff] %v5698_v3  ;;  %v2420_v9 = vpop.f32.mrf.mxu1  ;;  %3097 = vmatmul.mubr.bf16.gmra.mxu1 %v4351_v15  ;;  %v5707_v17 = vadd.f32 %v2416_v62, %v2304_v6  ;;  %v2308_v18 = vadd.f32 %v2307_v7, %v5431_v23  ;;  %3142 = vmatpush2.bf16.msra.mxu0 %v4290_v60  ;;  %v4355_v6 = vld [vmem:[%s6563_s0 + $0x208] ss:$36 sps:$4 sm:$0xff]   ;;  %v4356_v15 = vld [vmem:[%s6563_s0 + $0x1c] ss:$36 sps:$4 sm:$0xff]  }
 0x134   :  { %2993 = vmatprep.mubr.bf16.mxu0 %v4352_v24  ;;  %v2309_v26 = vpop.f32.mrf.mxu0  ;;  %3143 = vmatprep.subr.bf16.mxu0 %v4298_v1  ;;  %v4354_v1 = vld [vmem:[%s6563_s0 + $0x200] ss:$36 sps:$4 sm:$0xff]  }
 0x135   :  { %6574 = vst [vmem:[#allocation8_spill] sm:$0xff] %v5707_v17  ;;  %v2422_v29 = vpop.f32.mrf.mxu1  ;;  %3106 = vmatprep.mubr.bf16.mxu1 %v4353_v30  ;;  %v5722_v35 = vadd.f32 %v2420_v9, %v2308_v18  ;;  %v2310_v36 = vadd.f32 %v2309_v26, %v5443_v27 }
 0x136   :  { %v2311_v38 = vpop.f32.mrf.mxu0 }
 0x137   :  { %6575 = vst [vmem:[#allocation9_spill] sm:$0xff] %v5722_v35  ;;  %v2424_v39 = vpop.f32.mrf.mxu1  ;;  %v5725_v41 = vadd.f32 %v2422_v29, %v2310_v36  ;;  %v2312_v44 = vadd.f32 %v2311_v38, %v5431_v23  ;;  %3144 = vmatpush2.bf16.msra.mxu0 %v4296_v20 }
 0x138   :  { %v2313_v47 = vpop.f32.mrf.mxu0  ;;  %3145 = vmatprep.subr.bf16.mxu0 %v4301_v31 }
 0x139   :  { %6576 = vst [vmem:[#allocation10_spill] sm:$0xff] %v5725_v41  ;;  %v2426_v51 = vpop.f32.mrf.mxu1  ;;  %v5734_v59 = vadd.f32 %v2424_v39, %v2312_v44  ;;  %v2314_v60 = vadd.f32 %v2313_v47, %v5443_v27 }
 0x13a   :  { %v2317_v61 = vpop.f32.mrf.mxu0  ;;  %2994 = vmatmul.mubr.bf16.gmra.mxu0 %v4354_v1 }
 0x13b   :  { %6577 = vst [vmem:[#allocation11_spill] sm:$0xff] %v5734_v59  ;;  %v2430_v62 = vpop.f32.mrf.mxu1  ;;  %3107 = vmatmul.mubr.bf16.gmra.mxu1 %v4355_v6  ;;  %v5743_v7 = vadd.f32 %v2426_v51, %v2314_v60  ;;  %v2318_v9 = vadd.f32 %v2317_v61, %v5431_v23  ;;  %3146 = vmatpush2.bf16.msra.mxu0 %v4299_v45 }
 0x13c   :  { %3149 = vmatprep.mubr.bf16.mxu0 %v4356_v15  ;;  %v2319_v18 = vpop.f32.mrf.mxu0  ;;  %3147 = vmatprep.subr.bf16.mxu0 %v4307_v53  ;;  %v4357_v53 = vld [vmem:[%s6563_s0 + $0x18] ss:$36 sps:$4 sm:$0xff]   ;;  %v4359_v15 = vld [vmem:[%s6563_s0 + $0x60] ss:$36 sps:$4 sm:$0xff]  }
 0x13d   :  { %6578 = vst [vmem:[#allocation12_spill] sm:$0xff] %v5743_v7  ;;  %v2432_v20 = vpop.f32.mrf.mxu1  ;;  %3262 = vmatprep.mubr.bf16.mxu1 %v6566_v49  ;;  %v5753_v24 = vadd.f32 %v2430_v62, %v2318_v9  ;;  %v2320_v26 = vadd.f32 %v2319_v18, %v5443_v27  ;;  %v4360_v18 = vld [vmem:[%s6563_s0 + $0xac] ss:$36 sps:$4 sm:$0xff]  }
 0x13e   :  { %v2321_v29 = vpop.f32.mrf.mxu0 }
 0x13f   :  { %6579 = vst [vmem:[#allocation13_spill] sm:$0xff] %v5753_v24  ;;  %v2434_v30 = vpop.f32.mrf.mxu1  ;;  %v5756_v31 = vadd.f32 %v2432_v20, %v2320_v26  ;;  %v2322_v36 = vadd.f32 %v2321_v29, %v5431_v23  ;;  %3148 = vmatpush2.bf16.msra.mxu0 %v4305_v14  ;;  %v4358_v23 = vld [vmem:[%s6563_s0 + $0x64] ss:$36 sps:$4 sm:$0xff]   ;;  %v6583_v24 = vmov 0  }
 0x140   :  { %v2323_v38 = vpop.f32.mrf.mxu0 }
 0x141   :  { %6580 = vst [vmem:[#allocation14_spill] sm:$0xff] %v5756_v31  ;;  %v2436_v39 = vpop.f32.mrf.mxu1  ;;  %v5759_v44 = vadd.f32 %v2434_v30, %v2322_v36  ;;  %v2324_v45 = vadd.f32 %v2323_v38, %v5443_v27 }
 0x142   :  { %v5762_v47 = vpop.f32.mrf.mxu0  ;;  %3150 = vmatmul.mubr.bf16.vlgmr.msra.gmra.mxu0 %v4357_v53  ;;  %v4362_v53 = vld [vmem:[%s6563_s0 + $0xf4] ss:$36 sps:$4 sm:$0xff]  }
 0x143   :  { %6581 = vst [vmem:[#allocation15_spill] sm:$0xff] %v5759_v44  ;;  %v5764_v51 = vpop.f32.mrf.mxu1  ;;  %3263 = vmatmul.mubr.bf16.vlgmr.msra.gmra.mxu1 %v5126_v52  ;;  %v5770_v60 = vadd.f32 %v2436_v39, %v2324_v45  ;;  %3159 = vmatprep.mubr.bf16.mxu0 %v4358_v23  ;;  %v4361_v45 = vld [vmem:[%s6563_s0 + $0xa8] ss:$36 sps:$4 sm:$0xff]  }
 0x144   :  { %3272 = vmatprep.mubr.bf16.mxu1 %v6566_v49  ;;  %v5776_v27 = vpop.f32.mrf.mxu0 }
 0x145   :  { %6582 = vst [vmem:[#allocation16_spill] sm:$0xff] %v5770_v60  ;;  %v5778_v61 = vpop.f32.mrf.mxu1 }
 0x146   :  { %v5780_v62 = vpop.f32.mrf.mxu0 }
 0x147   :  { %v5782_v1 = vpop.f32.mrf.mxu1 }
 0x148   :  { %v5784_v6 = vpop.f32.mrf.mxu0 }
 0x149   :  { %v5786_v52 = vpop.f32.mrf.mxu1 }
 0x14a   :  { %v5788_v9 = vpop.f32.mrf.mxu0  ;;  %3160 = vmatmul.mubr.bf16.gmra.mxu0 %v4359_v15 }
 0x14b   :  { %v5790_v14 = vpop.f32.mrf.mxu1  ;;  %3273 = vmatmul.mubr.bf16.gmra.mxu1 %v5163_v63  ;;  %3169 = vmatprep.mubr.bf16.mxu0 %v4360_v18 }
 0x14c   :  { %3282 = vmatprep.mubr.bf16.mxu1 %v6566_v49  ;;  %v5800_v20 = vpop.f32.mrf.mxu0 }
 0x14d   :  { %v5802_v26 = vpop.f32.mrf.mxu1 }
 0x14e   :  { %v5804_v29 = vpop.f32.mrf.mxu0 }
 0x14f   :  { %v5806_v30 = vpop.f32.mrf.mxu1 }
 0x150   :  { %v5808_v36 = vpop.f32.mrf.mxu0 }
 0x151   :  { %v5810_v38 = vpop.f32.mrf.mxu1 }
 0x152   :  { %v5812_v63 = vpop.f32.mrf.mxu0  ;;  %3170 = vmatmul.mubr.bf16.gmra.mxu0 %v4361_v45 }
 0x153   :  { %v5814_v39 = vpop.f32.mrf.mxu1  ;;  %3283 = vmatmul.mubr.bf16.gmra.mxu1 %v5200_v10  ;;  %3179 = vmatprep.mubr.bf16.mxu0 %v4362_v53  ;;  %v4363_v53 = vld [vmem:[%s6563_s0 + $0xf0] ss:$36 sps:$4 sm:$0xff]  }
 0x154   :  { %3292 = vmatprep.mubr.bf16.mxu1 %v6566_v49  ;;  %v5824_v23 = vpop.f32.mrf.mxu0  ;;  %v4364_v49 = vld [vmem:[%s6563_s0 + $0x13c] ss:$36 sps:$4 sm:$0xff]  }
 0x155   :  { %v5826_v15 = vpop.f32.mrf.mxu1 }
 0x156   :  { %v5828_v18 = vpop.f32.mrf.mxu0 }
 0x157   :  { %v5830_v60 = vpop.f32.mrf.mxu1 }
 0x158   :  { %v5832_v44 = vpop.f32.mrf.mxu0 }
 0x159   :  { %v5834_v45 = vpop.f32.mrf.mxu1 }
 0x15a   :  { %v5836_v10 = vpop.f32.mrf.mxu0  ;;  %3180 = vmatmul.mubr.bf16.gmra.mxu0 %v4363_v53 }
 0x15b   :  { %v5838_v31 = vpop.f32.mrf.mxu1  ;;  %3293 = vmatmul.mubr.bf16.gmra.mxu1 %v5237_v21  ;;  %3189 = vmatprep.mubr.bf16.mxu0 %v4364_v49  ;;  %v4365_v49 = vld [vmem:[%s6563_s0 + $0x138] ss:$36 sps:$4 sm:$0xff]  }
 0x15c   :  { %3302 = vmatprep.mubr.bf16.mxu1 %v6583_v24  ;;  %v5848_v7 = vpop.f32.mrf.mxu0 }
 0x15d   :  { %v5850_v59 = vpop.f32.mrf.mxu1 }
 0x15e   :  { %v5852_v41 = vpop.f32.mrf.mxu0 }
 0x15f   :  { %v5854_v35 = vpop.f32.mrf.mxu1 }
 0x160   :  { %v5856_v17 = vpop.f32.mrf.mxu0 }
 0x161   :  { %v5858_v53 = vpop.f32.mrf.mxu1 }
 0x162   :  { %6584 = vst [vmem:[#allocation17_spill] sm:$0xff] %v5858_v53  ;;  %v5860_v21 = vpop.f32.mrf.mxu0  ;;  %3190 = vmatmul.mubr.bf16.gmra.mxu0 %v4365_v49 }
 0x163   :  { %v5862_v3 = vpop.f32.mrf.mxu1  ;;  %3303 = vmatmul.mubr.bf16.gmra.mxu1 %v5274_v32  ;;  %3199 = vmatprep.mubr.bf16.mxu0 %v4366_v58  ;;  %v4367_v58 = vld [vmem:[%s6563_s0 + $0x180] ss:$36 sps:$4 sm:$0xff]  }
 0x164   :  { %6585 = vst [vmem:[#allocation18_spill] sm:$0xff] %v5862_v3  ;;  %3312 = vmatprep.mubr.bf16.mxu1 %v6583_v24  ;;  %v5872_v46 = vpop.f32.mrf.mxu0 }
 0x165   :  { %v5874_v34 = vpop.f32.mrf.mxu1 }
 0x166   :  { %6586 = vst [vmem:[#allocation19_spill] sm:$0xff] %v5874_v34  ;;  %v5876_v22 = vpop.f32.mrf.mxu0  ;;  %v4368_v34 = vld [vmem:[%s6563_s0 + $0x1cc] ss:$36 sps:$4 sm:$0xff]  }
 0x167   :  { %6587 = vst [vmem:[#allocation20_spill] sm:$0xff] %v5876_v22  ;;  %v5878_v3 = vpop.f32.mrf.mxu1 }
 0x168   :  { %6588 = vst [vmem:[#allocation21_spill] sm:$0xff] %v5878_v3  ;;  %v5880_v11 = vpop.f32.mrf.mxu0 }
 0x169   :  { %6589 = vst [vmem:[#allocation22_spill] sm:$0xff] %v5880_v11  ;;  %v5882_v49 = vpop.f32.mrf.mxu1 }
 0x16a   :  { %6590 = vst [vmem:[#allocation23_spill] sm:$0xff] %v5882_v49  ;;  %v5884_v32 = vpop.f32.mrf.mxu0  ;;  %3200 = vmatmul.mubr.bf16.gmra.mxu0 %v4367_v58 }
 0x16b   :  { %6591 = vst [vmem:[#allocation24_spill] sm:$0xff] %v5884_v32  ;;  %v5886_v53 = vpop.f32.mrf.mxu1  ;;  %3313 = vmatmul.mubr.bf16.gmra.mxu1 %v5311_v43  ;;  %3209 = vmatprep.mubr.bf16.mxu0 %v4368_v34  ;;  %v4369_v34 = vld [vmem:[%s6563_s0 + $0x1c8] ss:$36 sps:$4 sm:$0xff]  }
 0x16c   :  { %6592 = vst [vmem:[#allocation25_spill] sm:$0xff] %v5886_v53  ;;  %3322 = vmatprep.mubr.bf16.mxu1 %v6583_v24  ;;  %v5896_v3 = vpop.f32.mrf.mxu0 }
 0x16d   :  { %v5898_v49 = vpop.f32.mrf.mxu1 }
 0x16e   :  { %6593 = vst [vmem:[#allocation26_spill] sm:$0xff] %v5898_v49  ;;  %v5900_v32 = vpop.f32.mrf.mxu0  ;;  %v4370_v49 = vld [vmem:[%s6563_s0 + $0x214] ss:$36 sps:$4 sm:$0xff]  }
 0x16f   :  { %6594 = vst [vmem:[#allocation27_spill] sm:$0xff] %v5900_v32  ;;  %v5902_v53 = vpop.f32.mrf.mxu1 }
 0x170   :  { %6595 = vst [vmem:[#allocation28_spill] sm:$0xff] %v5902_v53  ;;  %v5904_v11 = vpop.f32.mrf.mxu0 }
 0x171   :  { %6596 = vst [vmem:[#allocation29_spill] sm:$0xff] %v5904_v11  ;;  %v5906_v58 = vpop.f32.mrf.mxu1 }
 0x172   :  { %6597 = vst [vmem:[#allocation30_spill] sm:$0xff] %v5906_v58  ;;  %v5908_v43 = vpop.f32.mrf.mxu0  ;;  %3210 = vmatmul.mubr.bf16.gmra.mxu0 %v4369_v34 }
 0x173   :  { %6598 = vst [vmem:[#allocation31_spill] sm:$0xff] %v5908_v43  ;;  %v5910_v22 = vpop.f32.mrf.mxu1  ;;  %3323 = vmatmul.mubr.bf16.gmra.mxu1 %v5348_v56  ;;  %3219 = vmatprep.mubr.bf16.mxu0 %v4370_v49  ;;  %v395_v49 = vsub.s32 2, %v5393_v8 }
 0x174   :  { %6599 = vst [vmem:[#allocation32_spill] sm:$0xff] %v5910_v22  ;;  %3332 = vmatprep.mubr.bf16.mxu1 %v6583_v24  ;;  %v5920_v53 = vpop.f32.mrf.mxu0  ;;  %v4371_v24 = vld [vmem:[%s6563_s0 + $0x210] ss:$36 sps:$4 sm:$0xff]  }
 0x175   :  { %v5922_v58 = vpop.f32.mrf.mxu1 }
 0x176   :  { %6600 = vst [vmem:[#allocation33_spill] sm:$0xff] %v5922_v58  ;;  %v5924_v43 = vpop.f32.mrf.mxu0 }
 0x177   :  { %6601 = vst [vmem:[#allocation34_spill] sm:$0xff] %v5924_v43  ;;  %v5926_v22 = vpop.f32.mrf.mxu1 }
 0x178   :  { %6602 = vst [vmem:[#allocation35_spill] sm:$0xff] %v5926_v22  ;;  %v5928_v11 = vpop.f32.mrf.mxu0 }
 0x179   :  { %6603 = vst [vmem:[#allocation36_spill] sm:$0xff] %v5928_v11  ;;  %v5930_v34 = vpop.f32.mrf.mxu1 }
 0x17a   :  { %6604 = vst [vmem:[#allocation37_spill] sm:$0xff] %v5930_v34  ;;  %v5932_v56 = vpop.f32.mrf.mxu0  ;;  %3220 = vmatmul.mubr.bf16.gmra.mxu0 %v4371_v24  ;;  %v2474_v34 = vadd.f32 %v5762_v47, %v5470_v42  ;;  %v2476_v24 = vadd.f32 %v5776_v27, %v5476_v48  ;;  %v2478_v42 = vadd.f32 %v5780_v62, %v5485_v57 }
 0x17b   :  { %6605 = vst [vmem:[#allocation38_spill] sm:$0xff] %v5932_v56  ;;  %v5934_v32 = vpop.f32.mrf.mxu1  ;;  %3333 = vmatmul.mubr.bf16.gmra.mxu1 %v5385_v5  ;;  %v399_v56 = vsub.s32 3, %v5393_v8  ;;  %v5955_v5 = vrot.slane %v5415_v16, %v395_v49  ;;  %v2480_v48 = vadd.f32 %v5784_v6, %v5500_v2  ;;  %v2484_v57 = vadd.f32 %v5788_v9, %v5515_v13 }
 0x17c   :  { %6606 = vst [vmem:[#allocation39_spill] sm:$0xff] %v5934_v32  ;;  %v5941_v58 = vpop.f32.mrf.mxu0  ;;  %v2486_v6 = vadd.f32 %v5800_v20, %v5521_v19 }
 0x17d   :  { %6607 = vst [vmem:[#allocation40_spill] sm:$0xff] %v5941_v58  ;;  %v5943_v22 = vpop.f32.mrf.mxu1  ;;  %v5965_v8 = vrot.slane %v5415_v16, %v399_v56  ;;  %v2593_v62 = vadd.f32 %v5786_v52, %v2480_v48  ;;  %v2490_v56 = vadd.f32 %v5808_v36, %v5545_v37 }
 0x17e   :  { %6608 = vst [vmem:[#allocation41_spill] sm:$0xff] %v5943_v22  ;;  %v5948_v11 = vpop.f32.mrf.mxu0  ;;  %v2587_v22 = vadd.f32 %v5764_v51, %v2474_v34  ;;  %v2591_v51 = vadd.f32 %v5782_v1, %v2478_v42  ;;  %v2599_v34 = vadd.f32 %v5802_v26, %v2486_v6  ;;  %v2500_v6 = vadd.f32 %v5832_v44, %v5590_v12 }
 0x17f   :  { %6609 = vst [vmem:[#allocation42_spill] sm:$0xff] %v5948_v11  ;;  %v5950_v32 = vpop.f32.mrf.mxu1  ;;  %v2589_v11 = vadd.f32 %v5778_v61, %v2476_v24 }
 0x180   :  { %6610 = vst [vmem:[#allocation43_spill] sm:$0xff] %v5950_v32  ;;  %v5957_v43 = vpop.f32.mrf.mxu0 }
 0x181   :  { %6611 = vst [vmem:[#allocation44_spill] sm:$0xff] %v5957_v43  ;;  %v5959_v58 = vpop.f32.mrf.mxu1 }
 0x182   :  { %6612 = vst [vmem:[#allocation45_spill] sm:$0xff] %v5959_v58  ;;  %v2699_v47 = vpop.f32.mrf.mxu0 }
 0x183   :  { %v2812_v32 = vpop.f32.mrf.mxu1  ;;  %v2700_v27 = vadd.f32 %v2699_v47, %v2587_v22  ;;  %v2494_v47 = vadd.f32 %v5812_v63, %v5563_v50 }
 0x184   :  { %v5971_v49 = vadd.f32 %v2812_v32, %v5955_v5  ;;  %v2701_v58 = vpop.f32.mrf.mxu0  ;;  %v2597_v32 = vadd.f32 %v5790_v14, %v2484_v57 }
 0x185   :  { %v2814_v43 = vpop.f32.mrf.mxu1  ;;  %3343 = vst [vmem:[%s6565_s3] sm:$0xff] %v2700_v27  ;;  %v2702_v16 = vadd.f32 %v2701_v58, %v2589_v11  ;;  %v2488_v58 = vadd.f32 %v5804_v29, %v5530_v28  ;;  %v2603_v27 = vadd.f32 %v5810_v38, %v2490_v56 }
 0x186   :  { %v5980_v61 = vadd.f32 %v2814_v43, %v5965_v8  ;;  %v2703_v2 = vpop.f32.mrf.mxu0 }
 0x187   :  { %v2816_v22 = vpop.f32.mrf.mxu1  ;;  %3344 = vst [vmem:[%s6565_s3 + $0x8] sm:$0xff] %v2702_v16  ;;  %v2704_v13 = vadd.f32 %v2703_v2, %v2591_v51  ;;  %v2601_v42 = vadd.f32 %v5806_v30, %v2488_v58  ;;  %v2496_v51 = vadd.f32 %v5824_v23, %v5566_v55  ;;  %v2607_v16 = vadd.f32 %v5814_v39, %v2494_v47 }
 0x188   :  { %v5989_v1 = vadd.f32 %v2816_v22, %v5955_v5  ;;  %v2705_v9 = vpop.f32.mrf.mxu0  ;;  %v2498_v2 = vadd.f32 %v5828_v18, %v5575_v0  ;;  %v2613_v58 = vadd.f32 %v5834_v45, %v2500_v6  ;;  %v2514_v47 = vadd.f32 %v5860_v21, %v5650_v4  ;;  %v6618_v6 = vld [vmem:[#allocation19_spill] sm:$0xff] }
 0x189   :  { %v2818_v11 = vpop.f32.mrf.mxu1  ;;  %3347 = vst [vmem:[%s6565_s3 + $0x20] sm:$0xff] %v2704_v13  ;;  %v2706_v19 = vadd.f32 %v2705_v9, %v2593_v62  ;;  %v2609_v62 = vadd.f32 %v5826_v15, %v2496_v51 }
 0x18a   :  { %v5998_v52 = vadd.f32 %v2818_v11, %v5965_v8  ;;  %v2709_v20 = vpop.f32.mrf.mxu0  ;;  %v2611_v9 = vadd.f32 %v5830_v60, %v2498_v2  ;;  %v2504_v11 = vadd.f32 %v5836_v10, %v5605_v25  ;;  %v6617_v2 = vld [vmem:[#allocation20_spill] sm:$0xff] }
 0x18b   :  { %v2822_v43 = vpop.f32.mrf.mxu1  ;;  %3348 = vst [vmem:[%s6565_s3 + $0x28] sm:$0xff] %v2706_v19  ;;  %v2710_v28 = vadd.f32 %v2709_v20, %v2597_v32  ;;  %v2506_v19 = vadd.f32 %v5848_v7, %v5611_v33 }
 0x18c   :  { %v6007_v14 = vadd.f32 %v2822_v43, %v5955_v5  ;;  %v2711_v29 = vpop.f32.mrf.mxu0  ;;  %v2617_v43 = vadd.f32 %v5838_v31, %v2504_v11 }
 0x18d   :  { %v2824_v24 = vpop.f32.mrf.mxu1  ;;  %3351 = vst [vmem:[%s6565_s3 + $0x40] sm:$0xff] %v2710_v28  ;;  %v2712_v37 = vadd.f32 %v2711_v29, %v2599_v34  ;;  %v2508_v34 = vadd.f32 %v5852_v41, %v5620_v40  ;;  %v2619_v28 = vadd.f32 %v5850_v59, %v2506_v19  ;;  %v2510_v29 = vadd.f32 %v5856_v17, %v5635_v54 }
 0x18e   :  { %v6016_v26 = vadd.f32 %v2824_v24, %v5965_v8  ;;  %v2713_v36 = vpop.f32.mrf.mxu0 }
 0x18f   :  { %v2826_v48 = vpop.f32.mrf.mxu1  ;;  %3352 = vst [vmem:[%s6565_s3 + $0x48] sm:$0xff] %v2712_v37  ;;  %v2714_v50 = vadd.f32 %v2713_v36, %v2601_v42  ;;  %v2621_v42 = vadd.f32 %v5854_v35, %v2508_v34  ;;  %v6613_v36 = vld [vmem:[#allocation17_spill] sm:$0xff] }
 0x190   :  { %v6025_v30 = vadd.f32 %v2826_v48, %v5955_v5  ;;  %v2715_v63 = vpop.f32.mrf.mxu0  ;;  %v2623_v48 = vadd.f32 %v6613_v36, %v2510_v29  ;;  %v6625_v29 = vld [vmem:[#allocation6_spill] sm:$0xff]  ;;  %v6629_v36 = vld [vmem:[#allocation27_spill] sm:$0xff] }
 0x191   :  { %v2828_v57 = vpop.f32.mrf.mxu1  ;;  %3355 = vst [vmem:[%s6565_s3 + $0x60] sm:$0xff] %v2714_v50  ;;  %v2716_v55 = vadd.f32 %v2715_v63, %v2603_v27  ;;  %v6614_v27 = vld [vmem:[#allocation2_spill] sm:$0xff] }
 0x192   :  { %v6034_v38 = vadd.f32 %v2828_v57, %v5965_v8  ;;  %v2719_v23 = vpop.f32.mrf.mxu0  ;;  %v2516_v51 = vadd.f32 %v5872_v46, %v6614_v27  ;;  %v6615_v63 = vld [vmem:[#allocation18_spill] sm:$0xff] }
 0x193   :  { %v2832_v22 = vpop.f32.mrf.mxu1  ;;  %3356 = vst [vmem:[%s6565_s3 + $0x68] sm:$0xff] %v2716_v55  ;;  %v2720_v0 = vadd.f32 %v2719_v23, %v2607_v16  ;;  %v2627_v57 = vadd.f32 %v6615_v63, %v2514_v47  ;;  %v6616_v16 = vld [vmem:[#allocation3_spill] sm:$0xff]  ;;  %v6632_v63 = vld [vmem:[#allocation8_spill] sm:$0xff] }
 0x194   :  { %v6043_v39 = vadd.f32 %v2832_v22, %v5955_v5  ;;  %v2721_v18 = vpop.f32.mrf.mxu0  ;;  %v2518_v55 = vadd.f32 %v6617_v2, %v6616_v16 }
 0x195   :  { %v2834_v13 = vpop.f32.mrf.mxu1  ;;  %3359 = vst [vmem:[%s6565_s3 + $0x80] sm:$0xff] %v2720_v0  ;;  %v2722_v12 = vadd.f32 %v2721_v18, %v2609_v62  ;;  %v2629_v0 = vadd.f32 %v6618_v6, %v2516_v51  ;;  %v6619_v18 = vld [vmem:[#allocation4_spill] sm:$0xff] }
 0x196   :  { %v6052_v44 = vadd.f32 %v2834_v13, %v5965_v8  ;;  %v2723_v15 = vpop.f32.mrf.mxu0  ;;  %v6620_v13 = vld [vmem:[#allocation22_spill] sm:$0xff] }
 0x197   :  { %v2836_v32 = vpop.f32.mrf.mxu1  ;;  %3360 = vst [vmem:[%s6565_s3 + $0x88] sm:$0xff] %v2722_v12  ;;  %v2724_v25 = vadd.f32 %v2723_v15, %v2611_v9  ;;  %v2520_v9 = vadd.f32 %v6620_v13, %v6619_v18  ;;  %v6637_v18 = vld [vmem:[#allocation31_spill] sm:$0xff] }
 0x198   :  { %v6061_v60 = vadd.f32 %v2836_v32, %v5955_v5  ;;  %v2725_v10 = vpop.f32.mrf.mxu0 }
 0x199   :  { %v2838_v20 = vpop.f32.mrf.mxu1  ;;  %3363 = vst [vmem:[%s6565_s3 + $0xa0] sm:$0xff] %v2724_v25  ;;  %v2726_v33 = vadd.f32 %v2725_v10, %v2613_v58  ;;  %v6621_v58 = vld [vmem:[#allocation21_spill] sm:$0xff]  ;;  %v6623_v10 = vld [vmem:[#allocation24_spill] sm:$0xff] }
 0x19a   :  { %v6070_v7 = vadd.f32 %v2838_v20, %v5965_v8  ;;  %v2729_v45 = vpop.f32.mrf.mxu0  ;;  %v2631_v19 = vadd.f32 %v6621_v58, %v2518_v55  ;;  %v6622_v25 = vld [vmem:[#allocation5_spill] sm:$0xff]  ;;  %v6639_v58 = vld [vmem:[#allocation30_spill] sm:$0xff] }
 0x19b   :  { %v2842_v56 = vpop.f32.mrf.mxu1  ;;  %3364 = vst [vmem:[%s6565_s3 + $0xa8] sm:$0xff] %v2726_v33  ;;  %v2730_v40 = vadd.f32 %v2729_v45, %v2617_v43  ;;  %v2524_v20 = vadd.f32 %v6623_v10, %v6622_v25  ;;  %v6640_v25 = vld [vmem:[#allocation10_spill] sm:$0xff] }
 0x19c   :  { %v6079_v41 = vadd.f32 %v2842_v56, %v5955_v5  ;;  %v2731_v31 = vpop.f32.mrf.mxu0  ;;  %v6624_v56 = vld [vmem:[#allocation23_spill] sm:$0xff]  ;;  %v2536_v10 = vadd.f32 %v5920_v53, %v6640_v25 }
 0x19d   :  { %v2844_v24 = vpop.f32.mrf.mxu1  ;;  %3367 = vst [vmem:[%s6565_s3 + $0xc0] sm:$0xff] %v2730_v40  ;;  %v2732_v54 = vadd.f32 %v2731_v31, %v2619_v28  ;;  %v2633_v28 = vadd.f32 %v6624_v56, %v2520_v9  ;;  %v2526_v40 = vadd.f32 %v5896_v3, %v6625_v29  ;;  %v6642_v56 = vld [vmem:[#allocation32_spill] sm:$0xff]  ;;  %v6643_v29 = vld [vmem:[#allocation11_spill] sm:$0xff] }
 0x19e   :  { %v6088_v17 = vadd.f32 %v2844_v24, %v5965_v8  ;;  %v2733_v59 = vpop.f32.mrf.mxu0 }
 0x19f   :  { %v2846_v37 = vpop.f32.mrf.mxu1  ;;  %3368 = vst [vmem:[%s6565_s3 + $0xc8] sm:$0xff] %v2732_v54  ;;  %v2734_v4 = vadd.f32 %v2733_v59, %v2621_v42  ;;  %v6627_v54 = vld [vmem:[#allocation25_spill] sm:$0xff] }
 0x1a0   :  { %v6097_v35 = vadd.f32 %v2846_v37, %v5955_v5  ;;  %v2735_v21 = vpop.f32.mrf.mxu0  ;;  %v2637_v59 = vadd.f32 %v6627_v54, %v2524_v20  ;;  %v6628_v37 = vld [vmem:[#allocation7_spill] sm:$0xff] }
 0x1a1   :  { %v2848_v50 = vpop.f32.mrf.mxu1  ;;  %3371 = vst [vmem:[%s6565_s3 + $0xe0] sm:$0xff] %v2734_v4  ;;  %v2736_v46 = vadd.f32 %v2735_v21, %v2623_v48  ;;  %v2528_v48 = vadd.f32 %v6629_v36, %v6628_v37  ;;  %v6631_v21 = vld [vmem:[#allocation26_spill] sm:$0xff]  ;;  %v6647_v36 = vld [vmem:[#allocation12_spill] sm:$0xff] }
 0x1a2   :  { %v6106_v23 = vadd.f32 %v2848_v50, %v5965_v8  ;;  %v2739_v22 = vpop.f32.mrf.mxu0  ;;  %v2639_v50 = vadd.f32 %v6631_v21, %v2526_v40  ;;  %v6644_v40 = vld [vmem:[#allocation34_spill] sm:$0xff] }
 0x1a3   :  { %v2852_v62 = vpop.f32.mrf.mxu1  ;;  %3372 = vst [vmem:[%s6565_s3 + $0xe8] sm:$0xff] %v2736_v46  ;;  %v2740_v11 = vadd.f32 %v2739_v22, %v2627_v57  ;;  %v6633_v57 = vld [vmem:[#allocation29_spill] sm:$0xff] }
 0x1a4   :  { %v6115_v12 = vadd.f32 %v2852_v62, %v5955_v5  ;;  %v2741_v15 = vpop.f32.mrf.mxu0  ;;  %v2530_v16 = vadd.f32 %v6633_v57, %v6632_v63  ;;  %v6635_v62 = vld [vmem:[#allocation28_spill] sm:$0xff]  ;;  %v6650_v63 = vld [vmem:[#allocation35_spill] sm:$0xff] }
 0x1a5   :  { %v2854_v32 = vpop.f32.mrf.mxu1  ;;  %3375 = vst [vmem:[%s6565_s3 + $0x100] sm:$0xff] %v2740_v11  ;;  %v2742_v43 = vadd.f32 %v2741_v15, %v2629_v0  ;;  %v2641_v6 = vadd.f32 %v6635_v62, %v2528_v48  ;;  %v6636_v0 = vld [vmem:[#allocation9_spill] sm:$0xff]  ;;  %v6648_v48 = vld [vmem:[#allocation36_spill] sm:$0xff] }
 0x1a6   :  { %v6124_v34 = vadd.f32 %v2854_v32, %v5965_v8  ;;  %v2743_v33 = vpop.f32.mrf.mxu0  ;;  %v2534_v13 = vadd.f32 %v6637_v18, %v6636_v0  ;;  %v6654_v18 = vld [vmem:[#allocation37_spill] sm:$0xff] }
 0x1a7   :  { %v2856_v45 = vpop.f32.mrf.mxu1  ;;  %3376 = vst [vmem:[%s6565_s3 + $0x108] sm:$0xff] %v2742_v43  ;;  %v2744_v31 = vadd.f32 %v2743_v33, %v2631_v19  ;;  %v2643_v19 = vadd.f32 %v6639_v58, %v2530_v16  ;;  %v6651_v16 = vld [vmem:[#allocation13_spill] sm:$0xff] }
 0x1a8   :  { %v6133_v24 = vadd.f32 %v2856_v45, %v5955_v5  ;;  %v2745_v42 = vpop.f32.mrf.mxu0 }
 0x1a9   :  { %v2858_v47 = vpop.f32.mrf.mxu1  ;;  %3379 = vst [vmem:[%s6565_s3 + $0x120] sm:$0xff] %v2744_v31  ;;  %v2746_v3 = vadd.f32 %v2745_v42, %v2633_v28  ;;  %v2647_v28 = vadd.f32 %v6642_v56, %v2534_v13  ;;  %v2538_v31 = vadd.f32 %v6644_v40, %v6643_v29  ;;  %v6660_v56 = vld [vmem:[#allocation42_spill] sm:$0xff] }
 0x1aa   :  { %6626 = vst [vmem:[#allocation17_spill] sm:$0xff] %v6133_v24  ;;  %v6142_v27 = vadd.f32 %v2858_v47, %v5965_v8  ;;  %v2749_v51 = vpop.f32.mrf.mxu0 }
 0x1ab   :  { %v2862_v4 = vpop.f32.mrf.mxu1  ;;  %3380 = vst [vmem:[%s6565_s3 + $0x128] sm:$0xff] %v2746_v3  ;;  %v2750_v2 = vadd.f32 %v2749_v51, %v2637_v59  ;;  %v6646_v59 = vld [vmem:[#allocation33_spill] sm:$0xff]  ;;  %v2540_v3 = vadd.f32 %v6648_v48, %v6647_v36  ;;  %v2651_v57 = vadd.f32 %v6650_v63, %v2538_v31 }
 0x1ac   :  { %6630 = vst [vmem:[#allocation2_spill] sm:$0xff] %v6142_v27  ;;  %v6151_v55 = vadd.f32 %v2862_v4, %v5955_v5  ;;  %v2751_v46 = vpop.f32.mrf.mxu0  ;;  %v2649_v37 = vadd.f32 %v6646_v59, %v2536_v10  ;;  %v6663_v59 = vld [vmem:[#allocation16_spill] sm:$0xff] }
 0x1ad   :  { %v2864_v22 = vpop.f32.mrf.mxu1  ;;  %3383 = vst [vmem:[%s6565_s3 + $0x140] sm:$0xff] %v2750_v2  ;;  %v2752_v9 = vadd.f32 %v2751_v46, %v2639_v50  ;;  %v6652_v2 = vld [vmem:[#allocation38_spill] sm:$0xff]  ;;  %v2653_v13 = vadd.f32 %v6654_v18, %v2540_v3 }
 0x1ae   :  { %6634 = vst [vmem:[#allocation18_spill] sm:$0xff] %v6151_v55  ;;  %v6160_v11 = vadd.f32 %v2864_v22, %v5965_v8  ;;  %v2753_v15 = vpop.f32.mrf.mxu0  ;;  %v2544_v46 = vadd.f32 %v6652_v2, %v6651_v16 }
 0x1af   :  { %v2866_v32 = vpop.f32.mrf.mxu1  ;;  %3384 = vst [vmem:[%s6565_s3 + $0x148] sm:$0xff] %v2752_v9  ;;  %v2754_v20 = vadd.f32 %v2753_v15, %v2641_v6  ;;  %v6655_v9 = vld [vmem:[#allocation14_spill] sm:$0xff]  ;;  %v6656_v15 = vld [vmem:[#allocation40_spill] sm:$0xff] }
 0x1b0   :  { %6638 = vst [vmem:[#allocation3_spill] sm:$0xff] %v6160_v11  ;;  %v6169_v43 = vadd.f32 %v2866_v32, %v5955_v5  ;;  %v2755_v33 = vpop.f32.mrf.mxu0  ;;  %v2546_v32 = vadd.f32 %v6656_v15, %v6655_v9 }
 0x1b1   :  { %v2868_v45 = vpop.f32.mrf.mxu1  ;;  %3387 = vst [vmem:[%s6565_s3 + $0x160] sm:$0xff] %v2754_v20  ;;  %v2756_v53 = vadd.f32 %v2755_v33, %v2643_v19  ;;  %v6658_v20 = vld [vmem:[#allocation39_spill] sm:$0xff] }
 0x1b2   :  { %6641 = vst [vmem:[#allocation20_spill] sm:$0xff] %v6169_v43  ;;  %v6178_v42 = vadd.f32 %v2868_v45, %v5965_v8  ;;  %v2759_v47 = vpop.f32.mrf.mxu0  ;;  %v2657_v33 = vadd.f32 %v6658_v20, %v2544_v46  ;;  %v6659_v45 = vld [vmem:[#allocation15_spill] sm:$0xff] }
 0x1b3   :  { %v2872_v54 = vpop.f32.mrf.mxu1  ;;  %3388 = vst [vmem:[%s6565_s3 + $0x168] sm:$0xff] %v2756_v53  ;;  %v2760_v51 = vadd.f32 %v2759_v47, %v2647_v28  ;;  %v2548_v28 = vadd.f32 %v6660_v56, %v6659_v45  ;;  %v6662_v47 = vld [vmem:[#allocation41_spill] sm:$0xff] }
 0x1b4   :  { %6645 = vst [vmem:[#allocation19_spill] sm:$0xff] %v6178_v42  ;;  %v6187_v4 = vadd.f32 %v2872_v54, %v5955_v5  ;;  %v2761_v21 = vpop.f32.mrf.mxu0  ;;  %v2659_v54 = vadd.f32 %v6662_v47, %v2546_v32 }
 0x1b5   :  { %v2874_v50 = vpop.f32.mrf.mxu1  ;;  %3391 = vst [vmem:[%s6565_s3 + $0x180] sm:$0xff] %v2760_v51  ;;  %v2762_v22 = vadd.f32 %v2761_v21, %v2649_v37  ;;  %v6664_v37 = vld [vmem:[#allocation44_spill] sm:$0xff] }
 0x1b6   :  { %6649 = vst [vmem:[#allocation4_spill] sm:$0xff] %v6187_v4  ;;  %v6196_v62 = vadd.f32 %v2874_v50, %v5965_v8  ;;  %v2763_v6 = vpop.f32.mrf.mxu0  ;;  %v2550_v36 = vadd.f32 %v6664_v37, %v6663_v59  ;;  %v6666_v50 = vld [vmem:[#allocation43_spill] sm:$0xff] }
 0x1b7   :  { %v2876_v0 = vpop.f32.mrf.mxu1  ;;  %3392 = vst [vmem:[%s6565_s3 + $0x188] sm:$0xff] %v2762_v22  ;;  %v2764_v58 = vadd.f32 %v2763_v6, %v2651_v57  ;;  %v2661_v63 = vadd.f32 %v6666_v50, %v2548_v28  ;;  %v6668_v22 = vld [vmem:[#allocation45_spill] sm:$0xff] }
 0x1b8   :  { %6653 = vst [vmem:[#allocation22_spill] sm:$0xff] %v6196_v62  ;;  %v6205_v19 = vadd.f32 %v2876_v0, %v5955_v5  ;;  %v2765_v25 = vpop.f32.mrf.mxu0  ;;  %v2663_v6 = vadd.f32 %v6668_v22, %v2550_v36 }
 0x1b9   :  { %v2878_v10 = vpop.f32.mrf.mxu1  ;;  %3395 = vst [vmem:[%s6565_s3 + $0x1a0] sm:$0xff] %v2764_v58  ;;  %v2766_v29 = vadd.f32 %v2765_v25, %v2653_v13 }
 0x1ba   :  { %6657 = vst [vmem:[#allocation21_spill] sm:$0xff] %v6205_v19  ;;  %v6214_v40 = vadd.f32 %v2878_v10, %v5965_v8  ;;  %v2769_v31 = vpop.f32.mrf.mxu0 }
 0x1bb   :  { %v2882_v53 = vpop.f32.mrf.mxu1  ;;  %3396 = vst [vmem:[%s6565_s3 + $0x1a8] sm:$0xff] %v2766_v29  ;;  %v2770_v48 = vadd.f32 %v2769_v31, %v2657_v33 }
 0x1bc   :  { %6661 = vst [vmem:[#allocation5_spill] sm:$0xff] %v6214_v40  ;;  %v6223_v3 = vadd.f32 %v2882_v53, %v5955_v5  ;;  %v2771_v51 = vpop.f32.mrf.mxu0 }
 0x1bd   :  { %v2884_v21 = vpop.f32.mrf.mxu1  ;;  %3399 = vst [vmem:[%s6565_s3 + $0x1c0] sm:$0xff] %v2770_v48  ;;  %v2772_v57 = vadd.f32 %v2771_v51, %v2659_v54 }
 0x1be   :  { %6665 = vst [vmem:[#allocation24_spill] sm:$0xff] %v6223_v3  ;;  %v6230_v16 = vadd.f32 %v2884_v21, %v5965_v8  ;;  %v2773_v2 = vpop.f32.mrf.mxu0 }
 0x1bf   :  { %v2886_v46 = vpop.f32.mrf.mxu1  ;;  %3400 = vst [vmem:[%s6565_s3 + $0x1c8] sm:$0xff] %v2772_v57  ;;  %v2774_v0 = vadd.f32 %v2773_v2, %v2661_v63 }
 0x1c0   :  { %6667 = vst [vmem:[#allocation23_spill] sm:$0xff] %v6230_v16  ;;  %v6237_v18 = vadd.f32 %v2886_v46, %v5955_v5  ;;  %v2775_v13 = vpop.f32.mrf.mxu0 }
 0x1c1   :  { %v2888_v9 = vpop.f32.mrf.mxu1  ;;  %3403 = vst [vmem:[%s6565_s3 + $0x1e0] sm:$0xff] %v2774_v0  ;;  %v2776_v15 = vadd.f32 %v2775_v13, %v2663_v6 }
 0x1c2   :  { %6669 = vst [vmem:[#allocation6_spill] sm:$0xff] %v6237_v18  ;;  %v6243_v32 = vadd.f32 %v2888_v9, %v5965_v8  ;;  %v2925_v58 = vpop.f32.mrf.mxu0 }
 0x1c3   :  { %v6245_v25 = vpop.f32.mrf.mxu1  ;;  %3404 = vst [vmem:[%s6565_s3 + $0x1e8] sm:$0xff] %v2776_v15 }
 0x1c4   :  { %6670 = vst [vmem:[#allocation25_spill] sm:$0xff] %v6243_v32  ;;  %v2927_v10 = vpop.f32.mrf.mxu0 }
 0x1c5   :  { %v6250_v5 = vpop.f32.mrf.mxu1 }
 0x1c6   :  { %v6252_v20 = vpop.f32.mrf.mxu0 }
 0x1c7   :  { %v6254_v33 = vpop.f32.mrf.mxu1 }
 0x1c8   :  { %v6256_v45 = vpop.f32.mrf.mxu0 }
 0x1c9   :  { %v6258_v56 = vpop.f32.mrf.mxu1 }
 0x1ca   :  { %v6260_v8 = vpop.f32.mrf.mxu0 }
 0x1cb   :  { %v6262_v28 = vpop.f32.mrf.mxu1 }
 0x1cc   :  { %v6264_v29 = vpop.f32.mrf.mxu0 }
 0x1cd   :  { %v6266_v31 = vpop.f32.mrf.mxu1 }
 0x1ce   :  { %v6268_v53 = vpop.f32.mrf.mxu0 }
 0x1cf   :  { %v6270_v47 = vpop.f32.mrf.mxu1 }
 0x1d0   :  { %v6272_v54 = vpop.f32.mrf.mxu0 }
 0x1d1   :  { %v6274_v59 = vpop.f32.mrf.mxu1 }
 0x1d2   :  { %v6276_v37 = vpop.f32.mrf.mxu0 }
 0x1d3   :  { %v6278_v36 = vpop.f32.mrf.mxu1 }
 0x1d4   :  { %v6280_v48 = vpop.f32.mrf.mxu0 }
 0x1d5   :  { %v6282_v51 = vpop.f32.mrf.mxu1 }
 0x1d6   :  { %v6284_v21 = vpop.f32.mrf.mxu0 }
 0x1d7   :  { %v6286_v50 = vpop.f32.mrf.mxu1 }
 0x1d8   :  { %v6288_v63 = vpop.f32.mrf.mxu0 }
 0x1d9   :  { %v6290_v57 = vpop.f32.mrf.mxu1 }
 0x1da   :  { %v6292_v2 = vpop.f32.mrf.mxu0 }
 0x1db   :  { %v6294_v46 = vpop.f32.mrf.mxu1 }
 0x1dc   :  { %v6296_v22 = vpop.f32.mrf.mxu0 }
 0x1dd   :  { %v6298_v6 = vpop.f32.mrf.mxu1 }
 0x1de   :  { %v6300_v0 = vpop.f32.mrf.mxu0 }
 0x1df   :  { %v6302_v13 = vpop.f32.mrf.mxu1 }
 0x1e0   :  { %v6304_v9 = vpop.f32.mrf.mxu0 }
 0x1e1   :  { %v6306_v15 = vpop.f32.mrf.mxu1 }
 0x1e2   :  { %v6308_v32 = vpop.f32.mrf.mxu0 }
 0x1e3   :  { %v6310_v18 = vpop.f32.mrf.mxu1 }
 0x1e4   :  { %v6312_v16 = vpop.f32.mrf.mxu0 }
 0x1e5   :  { %v6314_v3 = vpop.f32.mrf.mxu1 }
 0x1e6   :  { %6671 = vst [vmem:[#allocation7_spill] sm:$0xff] %v6314_v3  ;;  %v6316_v40 = vpop.f32.mrf.mxu0 }
 0x1e7   :  { %6672 = vst [vmem:[#allocation27_spill] sm:$0xff] %v6316_v40  ;;  %v6318_v19 = vpop.f32.mrf.mxu1 }
 0x1e8   :  { %6673 = vst [vmem:[#allocation26_spill] sm:$0xff] %v6318_v19  ;;  %v6320_v62 = vpop.f32.mrf.mxu0 }
 0x1e9   :  { %6674 = vst [vmem:[#allocation8_spill] sm:$0xff] %v6320_v62  ;;  %v6322_v4 = vpop.f32.mrf.mxu1 }
 0x1ea   :  { %6675 = vst [vmem:[#allocation29_spill] sm:$0xff] %v6322_v4  ;;  %v6324_v42 = vpop.f32.mrf.mxu0 }
 0x1eb   :  { %6676 = vst [vmem:[#allocation28_spill] sm:$0xff] %v6324_v42  ;;  %v6326_v43 = vpop.f32.mrf.mxu1 }
 0x1ec   :  { %6677 = vst [vmem:[#allocation9_spill] sm:$0xff] %v6326_v43  ;;  %v6328_v11 = vpop.f32.mrf.mxu0 }
 0x1ed   :  { %6678 = vst [vmem:[#allocation31_spill] sm:$0xff] %v6328_v11  ;;  %v6330_v55 = vpop.f32.mrf.mxu1 }
 0x1ee   :  { %6679 = vst [vmem:[#allocation30_spill] sm:$0xff] %v6330_v55  ;;  %v6332_v27 = vpop.f32.mrf.mxu0 }
 0x1ef   :  { %6680 = vst [vmem:[#allocation10_spill] sm:$0xff] %v6332_v27  ;;  %v6334_v24 = vpop.f32.mrf.mxu1 }
 0x1f0   :  { %6681 = vst [vmem:[#allocation32_spill] sm:$0xff] %v6334_v24  ;;  %v6336_v3 = vpop.f32.mrf.mxu0 }
 0x1f1   :  { %6682 = vst [vmem:[#allocation11_spill] sm:$0xff] %v6336_v3  ;;  %v6338_v40 = vpop.f32.mrf.mxu1 }
 0x1f2   :  { %6683 = vst [vmem:[#allocation34_spill] sm:$0xff] %v6338_v40  ;;  %v6340_v19 = vpop.f32.mrf.mxu0 }
 0x1f3   :  { %6684 = vst [vmem:[#allocation33_spill] sm:$0xff] %v6340_v19  ;;  %v6342_v62 = vpop.f32.mrf.mxu1 }
 0x1f4   :  { %6685 = vst [vmem:[#allocation12_spill] sm:$0xff] %v6342_v62  ;;  %v6344_v4 = vpop.f32.mrf.mxu0  ;;  %v2926_v62 = vadd.f32 %v2925_v58, %v5971_v49  ;;  %v2932_v49 = vadd.f32 %v6256_v45, %v5998_v52 }
 0x1f5   :  { %6686 = vst [vmem:[#allocation36_spill] sm:$0xff] %v6344_v4  ;;  %v6346_v42 = vpop.f32.mrf.mxu1 }
 0x1f6   :  { %6687 = vst [vmem:[#allocation35_spill] sm:$0xff] %v6346_v42  ;;  %v6348_v43 = vpop.f32.mrf.mxu0 }
 0x1f7   :  { %6688 = vst [vmem:[#allocation13_spill] sm:$0xff] %v6348_v43  ;;  %v6350_v11 = vpop.f32.mrf.mxu1 }
 0x1f8   :  { %6689 = vst [vmem:[#allocation38_spill] sm:$0xff] %v6350_v11  ;;  %v6352_v55 = vpop.f32.mrf.mxu0  ;;  %v2928_v11 = vadd.f32 %v2927_v10, %v5980_v61  ;;  %v2936_v10 = vadd.f32 %v6260_v8, %v6007_v14  ;;  %v2940_v14 = vadd.f32 %v6268_v53, %v6025_v30  ;;  %v2948_v53 = vadd.f32 %v6280_v48, %v6052_v44 }
 0x1f9   :  { %6690 = vst [vmem:[#allocation37_spill] sm:$0xff] %v6352_v55  ;;  %v6354_v27 = vpop.f32.mrf.mxu1 }
 0x1fa   :  { %6691 = vst [vmem:[#allocation14_spill] sm:$0xff] %v6354_v27  ;;  %v6356_v24 = vpop.f32.mrf.mxu0  ;;  %v3039_v27 = vadd.f32 %v6245_v25, %v2926_v62 }
 0x1fb   :  { %6692 = vst [vmem:[#allocation40_spill] sm:$0xff] %v6356_v24  ;;  %v6358_v3 = vpop.f32.mrf.mxu1 }
 0x1fc   :  { %6693 = vst [vmem:[#allocation39_spill] sm:$0xff] %v6358_v3  ;;  %v6360_v40 = vpop.f32.mrf.mxu0  ;;  %v2930_v3 = vadd.f32 %v6252_v20, %v5989_v1  ;;  %v3045_v1 = vadd.f32 %v6258_v56, %v2932_v49  ;;  %v3053_v56 = vadd.f32 %v6270_v47, %v2940_v14  ;;  %v2960_v14 = vadd.f32 %v6300_v0, %v6097_v35 }
 0x1fd   :  { %6694 = vst [vmem:[#allocation15_spill] sm:$0xff] %v6360_v40  ;;  %v6362_v19 = vpop.f32.mrf.mxu1 }
 0x1fe   :  { %6695 = vst [vmem:[#allocation42_spill] sm:$0xff] %v6362_v19  ;;  %v6365_v4 = vpop.f32.mrf.mxu0  ;;  %v3041_v19 = vadd.f32 %v6250_v5, %v2928_v11  ;;  %v3043_v61 = vadd.f32 %v6254_v33, %v2930_v3  ;;  %v2938_v11 = vadd.f32 %v6264_v29, %v6016_v26  ;;  %v3049_v5 = vadd.f32 %v6262_v28, %v2936_v10 }
 0x1ff   :  { %6696 = vst [vmem:[#allocation41_spill] sm:$0xff] %v6365_v4  ;;  %v6367_v42 = vpop.f32.mrf.mxu1  ;;  %v3061_v10 = vadd.f32 %v6282_v51, %v2948_v53  ;;  %v6703_v53 = vld [vmem:[#allocation2_spill] sm:$0xff] }
 0x200   :  { %6697 = vst [vmem:[#allocation16_spill] sm:$0xff] %v6367_v42  ;;  %v6370_v43 = vpop.f32.mrf.mxu0  ;;  %v3051_v20 = vadd.f32 %v6266_v31, %v2938_v11  ;;  %v2956_v11 = vadd.f32 %v6292_v2, %v6079_v41 }
 0x201   :  { %6698 = vst [vmem:[#allocation44_spill] sm:$0xff] %v6370_v43  ;;  %v6372_v55 = vpop.f32.mrf.mxu1 }
 0x202   :  { %6699 = vst [vmem:[#allocation43_spill] sm:$0xff] %v6372_v55  ;;  %v3151_v40 = vpop.f32.mrf.mxu0 }
 0x203   :  { %v3264_v24 = vpop.f32.mrf.mxu1  ;;  %v3152_v58 = vadd.f32 %v3151_v40, %v3039_v27 }
 0x204   :  { %v3153_v42 = vpop.f32.mrf.mxu0 }
 0x205   :  { %v3266_v4 = vpop.f32.mrf.mxu1  ;;  %v3265_v55 = vadd.f32 %v3264_v24, %v3152_v58  ;;  %v3154_v62 = vadd.f32 %v3153_v42, %v3041_v19  ;;  %v2950_v58 = vadd.f32 %v6284_v21, %v6061_v60 }
 0x206   :  { %v3155_v25 = vpop.f32.mrf.mxu0 }
 0x207   :  { %v3268_v43 = vpop.f32.mrf.mxu1  ;;  %3345 = vst [vmem:[%s6565_s3 + $0x10] sm:$0xff] %v3265_v55  ;;  %v3267_v52 = vadd.f32 %v3266_v4, %v3154_v62  ;;  %v3156_v27 = vadd.f32 %v3155_v25, %v3043_v61  ;;  %v2942_v55 = vadd.f32 %v6272_v54, %v6034_v38  ;;  %v2952_v62 = vadd.f32 %v6288_v63, %v6070_v7 }
 0x208   :  { %v3157_v40 = vpop.f32.mrf.mxu0 }
 0x209   :  { %v3270_v3 = vpop.f32.mrf.mxu1  ;;  %3346 = vst [vmem:[%s6565_s3 + $0x18] sm:$0xff] %v3267_v52  ;;  %v3269_v24 = vadd.f32 %v3268_v43, %v3156_v27  ;;  %v3158_v42 = vadd.f32 %v3157_v40, %v3045_v1  ;;  %v2946_v43 = vadd.f32 %v6276_v37, %v6043_v39  ;;  %v3055_v31 = vadd.f32 %v6274_v59, %v2942_v55 }
 0x20a   :  { %v3161_v26 = vpop.f32.mrf.mxu0  ;;  %v3063_v1 = vadd.f32 %v6286_v50, %v2950_v58  ;;  %v3065_v27 = vadd.f32 %v6290_v57, %v2952_v62  ;;  %v2958_v40 = vadd.f32 %v6296_v22, %v6088_v17  ;;  %v2966_v55 = vadd.f32 %v6308_v32, %v6115_v12  ;;  %v6705_v58 = vld [vmem:[#allocation26_spill] sm:$0xff] }
 0x20b   :  { %v3274_v19 = vpop.f32.mrf.mxu1  ;;  %3349 = vst [vmem:[%s6565_s3 + $0x30] sm:$0xff] %v3269_v24  ;;  %v3271_v4 = vadd.f32 %v3270_v3, %v3158_v42  ;;  %v3162_v33 = vadd.f32 %v3161_v26, %v3049_v5  ;;  %v3059_v49 = vadd.f32 %v6278_v36, %v2946_v43  ;;  %v3069_v5 = vadd.f32 %v6294_v46, %v2956_v11  ;;  %v6700_v43 = vld [vmem:[#allocation17_spill] sm:$0xff]  ;;  %v6710_v11 = vld [vmem:[#allocation31_spill] sm:$0xff] }
 0x20c   :  { %v3163_v30 = vpop.f32.mrf.mxu0  ;;  %v3071_v42 = vadd.f32 %v6298_v6, %v2958_v40  ;;  %v2962_v26 = vadd.f32 %v6304_v9, %v6106_v23  ;;  %v6711_v40 = vld [vmem:[#allocation9_spill] sm:$0xff] }
 0x20d   :  { %v3276_v45 = vpop.f32.mrf.mxu1  ;;  %3350 = vst [vmem:[%s6565_s3 + $0x38] sm:$0xff] %v3271_v4  ;;  %v3275_v8 = vadd.f32 %v3274_v19, %v3162_v33  ;;  %v3164_v28 = vadd.f32 %v3163_v30, %v3051_v20  ;;  %v3073_v20 = vadd.f32 %v6302_v13, %v2960_v14  ;;  %v2968_v30 = vadd.f32 %v6312_v16, %v6124_v34 }
 0x20e   :  { %v3165_v38 = vpop.f32.mrf.mxu0  ;;  %v3075_v33 = vadd.f32 %v6306_v15, %v2962_v26  ;;  %v6716_v26 = vld [vmem:[#allocation11_spill] sm:$0xff] }
 0x20f   :  { %v3278_v29 = vpop.f32.mrf.mxu1  ;;  %3353 = vst [vmem:[%s6565_s3 + $0x50] sm:$0xff] %v3275_v8  ;;  %v3277_v47 = vadd.f32 %v3276_v45, %v3164_v28  ;;  %v3166_v54 = vadd.f32 %v3165_v38, %v3053_v56  ;;  %v3079_v56 = vadd.f32 %v6310_v18, %v2966_v55  ;;  %v6701_v8 = vld [vmem:[#allocation27_spill] sm:$0xff]  ;;  %v6717_v55 = vld [vmem:[#allocation32_spill] sm:$0xff] }
 0x210   :  { %v3167_v39 = vpop.f32.mrf.mxu0  ;;  %v2970_v28 = vadd.f32 %v6701_v8, %v6700_v43  ;;  %v6722_v43 = vld [vmem:[#allocation36_spill] sm:$0xff] }
 0x211   :  { %v3280_v37 = vpop.f32.mrf.mxu1  ;;  %3354 = vst [vmem:[%s6565_s3 + $0x58] sm:$0xff] %v3277_v47  ;;  %v3279_v59 = vadd.f32 %v3278_v29, %v3166_v54  ;;  %v3168_v61 = vadd.f32 %v3167_v39, %v3055_v31  ;;  %v6702_v29 = vld [vmem:[#allocation7_spill] sm:$0xff]  ;;  %v6704_v47 = vld [vmem:[#allocation8_spill] sm:$0xff] }
 0x212   :  { %v3171_v44 = vpop.f32.mrf.mxu0  ;;  %v3081_v31 = vadd.f32 %v6702_v29, %v2968_v30  ;;  %v2972_v54 = vadd.f32 %v6704_v47, %v6703_v53  ;;  %v6725_v53 = vld [vmem:[#allocation13_spill] sm:$0xff] }
 0x213   :  { %v3284_v48 = vpop.f32.mrf.mxu1  ;;  %3357 = vst [vmem:[%s6565_s3 + $0x70] sm:$0xff] %v3279_v59  ;;  %v3281_v36 = vadd.f32 %v3280_v37, %v3168_v61  ;;  %v3172_v25 = vadd.f32 %v3171_v44, %v3059_v49  ;;  %v3083_v59 = vadd.f32 %v6705_v58, %v2970_v28  ;;  %v6706_v61 = vld [vmem:[#allocation18_spill] sm:$0xff]  ;;  %v6707_v44 = vld [vmem:[#allocation28_spill] sm:$0xff] }
 0x214   :  { %v3173_v60 = vpop.f32.mrf.mxu0 }
 0x215   :  { %v3286_v21 = vpop.f32.mrf.mxu1  ;;  %3358 = vst [vmem:[%s6565_s3 + $0x78] sm:$0xff] %v3281_v36  ;;  %v3285_v51 = vadd.f32 %v3284_v48, %v3172_v25  ;;  %v3174_v52 = vadd.f32 %v3173_v60, %v3061_v10  ;;  %v2976_v48 = vadd.f32 %v6707_v44, %v6706_v61  ;;  %v6708_v60 = vld [vmem:[#allocation29_spill] sm:$0xff] }
 0x216   :  { %v3175_v7 = vpop.f32.mrf.mxu0  ;;  %v6728_v61 = vld [vmem:[#allocation37_spill] sm:$0xff] }
 0x217   :  { %v3288_v63 = vpop.f32.mrf.mxu1  ;;  %3361 = vst [vmem:[%s6565_s3 + $0x90] sm:$0xff] %v3285_v51  ;;  %v3287_v50 = vadd.f32 %v3286_v21, %v3174_v52  ;;  %v3176_v3 = vadd.f32 %v3175_v7, %v3063_v1  ;;  %v3085_v21 = vadd.f32 %v6708_v60, %v2972_v54  ;;  %v6709_v1 = vld [vmem:[#allocation3_spill] sm:$0xff] }
 0x218   :  { %v3177_v41 = vpop.f32.mrf.mxu0  ;;  %v2978_v51 = vadd.f32 %v6710_v11, %v6709_v1  ;;  %v6731_v1 = vld [vmem:[#allocation40_spill] sm:$0xff] }
 0x219   :  { %v3290_v2 = vpop.f32.mrf.mxu1  ;;  %3362 = vst [vmem:[%s6565_s3 + $0x98] sm:$0xff] %v3287_v50  ;;  %v3289_v57 = vadd.f32 %v3288_v63, %v3176_v3  ;;  %v3178_v24 = vadd.f32 %v3177_v41, %v3065_v27  ;;  %v3089_v50 = vadd.f32 %v6711_v40, %v2976_v48  ;;  %v6712_v3 = vld [vmem:[#allocation20_spill] sm:$0xff]  ;;  %v6713_v41 = vld [vmem:[#allocation10_spill] sm:$0xff] }
 0x21a   :  { %v3181_v17 = vpop.f32.mrf.mxu0 }
 0x21b   :  { %v3294_v22 = vpop.f32.mrf.mxu1  ;;  %3365 = vst [vmem:[%s6565_s3 + $0xb0] sm:$0xff] %v3289_v57  ;;  %v3291_v46 = vadd.f32 %v3290_v2, %v3178_v24  ;;  %v3182_v19 = vadd.f32 %v3181_v17, %v3069_v5  ;;  %v2980_v2 = vadd.f32 %v6713_v41, %v6712_v3  ;;  %v6714_v17 = vld [vmem:[#allocation30_spill] sm:$0xff]  ;;  %v6734_v3 = vld [vmem:[#allocation15_spill] sm:$0xff] }
 0x21c   :  { %v3183_v35 = vpop.f32.mrf.mxu0 }
 0x21d   :  { %v3296_v0 = vpop.f32.mrf.mxu1  ;;  %3366 = vst [vmem:[%s6565_s3 + $0xb8] sm:$0xff] %v3291_v46  ;;  %v3295_v6 = vadd.f32 %v3294_v22, %v3182_v19  ;;  %v3184_v4 = vadd.f32 %v3183_v35, %v3071_v42  ;;  %v3091_v22 = vadd.f32 %v6714_v17, %v2978_v51  ;;  %v6715_v42 = vld [vmem:[#allocation19_spill] sm:$0xff] }
 0x21e   :  { %v3185_v23 = vpop.f32.mrf.mxu0  ;;  %v2982_v46 = vadd.f32 %v6716_v26, %v6715_v42  ;;  %v6737_v42 = vld [vmem:[#allocation41_spill] sm:$0xff] }
 0x21f   :  { %v3298_v9 = vpop.f32.mrf.mxu1  ;;  %3369 = vst [vmem:[%s6565_s3 + $0xd0] sm:$0xff] %v3295_v6  ;;  %v3297_v13 = vadd.f32 %v3296_v0, %v3184_v4  ;;  %v3186_v45 = vadd.f32 %v3185_v23, %v3073_v20  ;;  %v3093_v6 = vadd.f32 %v6717_v55, %v2980_v2  ;;  %v6718_v4 = vld [vmem:[#allocation4_spill] sm:$0xff]  ;;  %v6719_v23 = vld [vmem:[#allocation33_spill] sm:$0xff] }
 0x220   :  { %v3187_v12 = vpop.f32.mrf.mxu0 }
 0x221   :  { %v3300_v32 = vpop.f32.mrf.mxu1  ;;  %3370 = vst [vmem:[%s6565_s3 + $0xd8] sm:$0xff] %v3297_v13  ;;  %v3299_v15 = vadd.f32 %v3298_v9, %v3186_v45  ;;  %v3188_v38 = vadd.f32 %v3187_v12, %v3075_v33  ;;  %v2986_v9 = vadd.f32 %v6719_v23, %v6718_v4  ;;  %v6720_v12 = vld [vmem:[#allocation34_spill] sm:$0xff]  ;;  %v6740_v4 = vld [vmem:[#allocation44_spill] sm:$0xff] }
 0x222   :  { %v3191_v34 = vpop.f32.mrf.mxu0 }
 0x223   :  { %v3304_v16 = vpop.f32.mrf.mxu1  ;;  %3373 = vst [vmem:[%s6565_s3 + $0xf0] sm:$0xff] %v3299_v15  ;;  %v3301_v18 = vadd.f32 %v3300_v32, %v3188_v38  ;;  %v3192_v39 = vadd.f32 %v3191_v34, %v3079_v56  ;;  %v3095_v32 = vadd.f32 %v6720_v12, %v2982_v46  ;;  %v6721_v56 = vld [vmem:[#allocation22_spill] sm:$0xff] }
 0x224   :  { %v3193_v37 = vpop.f32.mrf.mxu0  ;;  %v2988_v8 = vadd.f32 %v6722_v43, %v6721_v56 }
 0x225   :  { %v3306_v49 = vpop.f32.mrf.mxu1  ;;  %3374 = vst [vmem:[%s6565_s3 + $0xf8] sm:$0xff] %v3301_v18  ;;  %v3305_v10 = vadd.f32 %v3304_v16, %v3192_v39  ;;  %v3194_v62 = vadd.f32 %v3193_v37, %v3081_v31  ;;  %v6723_v16 = vld [vmem:[#allocation12_spill] sm:$0xff]  ;;  %v6724_v31 = vld [vmem:[#allocation21_spill] sm:$0xff] }
 0x226   :  { %v3195_v36 = vpop.f32.mrf.mxu0  ;;  %v3099_v29 = vadd.f32 %v6723_v16, %v2986_v9  ;;  %v2990_v47 = vadd.f32 %v6725_v53, %v6724_v31 }
 0x227   :  { %v3308_v25 = vpop.f32.mrf.mxu1  ;;  %3377 = vst [vmem:[%s6565_s3 + $0x110] sm:$0xff] %v3305_v10  ;;  %v3307_v52 = vadd.f32 %v3306_v49, %v3194_v62  ;;  %v3196_v7 = vadd.f32 %v3195_v36, %v3083_v59  ;;  %v6726_v49 = vld [vmem:[#allocation35_spill] sm:$0xff]  ;;  %v6727_v59 = vld [vmem:[#allocation5_spill] sm:$0xff] }
 0x228   :  { %v3197_v63 = vpop.f32.mrf.mxu0  ;;  %v3101_v58 = vadd.f32 %v6726_v49, %v2988_v8  ;;  %v2992_v44 = vadd.f32 %v6728_v61, %v6727_v59 }
 0x229   :  { %v3310_v27 = vpop.f32.mrf.mxu1  ;;  %3378 = vst [vmem:[%s6565_s3 + $0x118] sm:$0xff] %v3307_v52  ;;  %v3309_v5 = vadd.f32 %v3308_v25, %v3196_v7  ;;  %v3198_v14 = vadd.f32 %v3197_v63, %v3085_v21  ;;  %v6729_v25 = vld [vmem:[#allocation38_spill] sm:$0xff]  ;;  %v6730_v21 = vld [vmem:[#allocation24_spill] sm:$0xff] }
 0x22a   :  { %v3201_v57 = vpop.f32.mrf.mxu0  ;;  %v3103_v60 = vadd.f32 %v6729_v25, %v2990_v47  ;;  %v2996_v11 = vadd.f32 %v6731_v1, %v6730_v21 }
 0x22b   :  { %v3314_v24 = vpop.f32.mrf.mxu1  ;;  %3381 = vst [vmem:[%s6565_s3 + $0x130] sm:$0xff] %v3309_v5  ;;  %v3311_v19 = vadd.f32 %v3310_v27, %v3198_v14  ;;  %v3202_v35 = vadd.f32 %v3201_v57, %v3089_v50  ;;  %v6732_v27 = vld [vmem:[#allocation14_spill] sm:$0xff]  ;;  %v6733_v50 = vld [vmem:[#allocation23_spill] sm:$0xff] }
 0x22c   :  { %v3203_v0 = vpop.f32.mrf.mxu0  ;;  %v3105_v40 = vadd.f32 %v6732_v27, %v2992_v44  ;;  %v2998_v41 = vadd.f32 %v6734_v3, %v6733_v50 }
 0x22d   :  { %v3316_v20 = vpop.f32.mrf.mxu1  ;;  %3382 = vst [vmem:[%s6565_s3 + $0x138] sm:$0xff] %v3311_v19  ;;  %v3315_v33 = vadd.f32 %v3314_v24, %v3202_v35  ;;  %v3204_v30 = vadd.f32 %v3203_v0, %v3091_v22  ;;  %v6735_v24 = vld [vmem:[#allocation39_spill] sm:$0xff]  ;;  %v6736_v22 = vld [vmem:[#allocation6_spill] sm:$0xff] }
 0x22e   :  { %v3205_v13 = vpop.f32.mrf.mxu0  ;;  %v3109_v17 = vadd.f32 %v6735_v24, %v2996_v11  ;;  %v3000_v26 = vadd.f32 %v6737_v42, %v6736_v22 }
 0x22f   :  { %v3318_v45 = vpop.f32.mrf.mxu1  ;;  %3385 = vst [vmem:[%s6565_s3 + $0x150] sm:$0xff] %v3315_v33  ;;  %v3317_v28 = vadd.f32 %v3316_v20, %v3204_v30  ;;  %v3206_v15 = vadd.f32 %v3205_v13, %v3093_v6  ;;  %v6738_v20 = vld [vmem:[#allocation42_spill] sm:$0xff]  ;;  %v6739_v6 = vld [vmem:[#allocation25_spill] sm:$0xff] }
 0x230   :  { %v3207_v38 = vpop.f32.mrf.mxu0  ;;  %v3111_v55 = vadd.f32 %v6738_v20, %v2998_v41  ;;  %v3002_v23 = vadd.f32 %v6740_v4, %v6739_v6 }
 0x231   :  { %v3320_v34 = vpop.f32.mrf.mxu1  ;;  %3386 = vst [vmem:[%s6565_s3 + $0x158] sm:$0xff] %v3317_v28  ;;  %v3319_v54 = vadd.f32 %v3318_v45, %v3206_v15  ;;  %v3208_v18 = vadd.f32 %v3207_v38, %v3095_v32  ;;  %v6741_v45 = vld [vmem:[#allocation16_spill] sm:$0xff]  ;;  %v6742_v28 = vld [vmem:[#allocation43_spill] sm:$0xff] }
 0x232   :  { %v3211_v39 = vpop.f32.mrf.mxu0  ;;  %v3113_v12 = vadd.f32 %v6741_v45, %v3000_v26  ;;  %v3115_v15 = vadd.f32 %v6742_v28, %v3002_v23 }
 0x233   :  { %v3324_v37 = vpop.f32.mrf.mxu1  ;;  %3389 = vst [vmem:[%s6565_s3 + $0x170] sm:$0xff] %v3319_v54  ;;  %v3321_v48 = vadd.f32 %v3320_v34, %v3208_v18  ;;  %v3212_v10 = vadd.f32 %v3211_v39, %v3099_v29 }
 0x234   :  { %v3213_v62 = vpop.f32.mrf.mxu0 }
 0x235   :  { %v3326_v36 = vpop.f32.mrf.mxu1  ;;  %3390 = vst [vmem:[%s6565_s3 + $0x178] sm:$0xff] %v3321_v48  ;;  %v3325_v51 = vadd.f32 %v3324_v37, %v3212_v10  ;;  %v3214_v52 = vadd.f32 %v3213_v62, %v3101_v58 }
 0x236   :  { %v3215_v7 = vpop.f32.mrf.mxu0 }
 0x237   :  { %v3328_v63 = vpop.f32.mrf.mxu1  ;;  %3393 = vst [vmem:[%s6565_s3 + $0x190] sm:$0xff] %v3325_v51  ;;  %v3327_v2 = vadd.f32 %v3326_v36, %v3214_v52  ;;  %v3216_v5 = vadd.f32 %v3215_v7, %v3103_v60 }
 0x238   :  { %v3217_v14 = vpop.f32.mrf.mxu0 }
 0x239   :  { %v3330_v57 = vpop.f32.mrf.mxu1  ;;  %3394 = vst [vmem:[%s6565_s3 + $0x198] sm:$0xff] %v3327_v2  ;;  %v3329_v46 = vadd.f32 %v3328_v63, %v3216_v5  ;;  %v3218_v19 = vadd.f32 %v3217_v14, %v3105_v40 }
 0x23a   :  { %v3221_v35 = vpop.f32.mrf.mxu0 }
 0x23b   :  { %v3334_v0 = vpop.f32.mrf.mxu1  ;;  %3397 = vst [vmem:[%s6565_s3 + $0x1b0] sm:$0xff] %v3329_v46  ;;  %v3331_v9 = vadd.f32 %v3330_v57, %v3218_v19  ;;  %v3222_v33 = vadd.f32 %v3221_v35, %v3109_v17 }
 0x23c   :  { %v3223_v30 = vpop.f32.mrf.mxu0 }
 0x23d   :  { %v3336_v13 = vpop.f32.mrf.mxu1  ;;  %3398 = vst [vmem:[%s6565_s3 + $0x1b8] sm:$0xff] %v3331_v9  ;;  %v3335_v32 = vadd.f32 %v3334_v0, %v3222_v33  ;;  %v3224_v56 = vadd.f32 %v3223_v30, %v3111_v55 }
 0x23e   :  { %v3225_v43 = vpop.f32.mrf.mxu0 }
 0x23f   :  { %v3338_v8 = vpop.f32.mrf.mxu1  ;;  %3401 = vst [vmem:[%s6565_s3 + $0x1d0] sm:$0xff] %v3335_v32  ;;  %v3337_v38 = vadd.f32 %v3336_v13, %v3224_v56  ;;  %v3226_v34 = vadd.f32 %v3225_v43, %v3113_v12 }
 0x240   :  { %v3227_v16 = vpop.f32.mrf.mxu0 }
 0x241   :  { %3402 = vst [vmem:[%s6565_s3 + $0x1d8] sm:$0xff] %v3337_v38  ;;  %v3339_v29 = vadd.f32 %v3338_v8, %v3226_v34  ;;  %v3228_v31 = vadd.f32 %v3227_v16, %v3115_v15  ;;  %v3340_v53 = vpop.f32.mrf.mxu1 }
 0x243   :  { %3405 = vst [vmem:[%s6565_s3 + $0x1f0] sm:$0xff] %v3339_v29  ;;  %v3341_v47 = vadd.f32 %v3340_v53, %v3228_v31 }
 0x245   :  { %3406 = vst [vmem:[%s6565_s3 + $0x1f8] sm:$0xff] %v3341_v47 }

</bundles_post_ra>
